<compile_context>
chip_gen: v7x
topology: tpu7x:2x2x1
jax: 0.10.0
libtpu: 0.0.40
codegen_flags: <defaults>
</compile_context>

<pallas_src>
import functools
import math

import jax
import jax.numpy as jnp
from jax.experimental import pallas as pl
from jax.experimental.pallas import tpu as pltpu

LEAKY_SLOPE = 0.01          # F.leaky_relu default negative_slope
PARAMS_PER_LAYER = 3        # per layer the kernel sees (W, gate, eff_bias)


def _pointwise_net_kernel(x_ref, *rest, num_layers, residual):
    o_ref = rest[-1]
    prefs = rest[:-1]                       # 3 refs per layer: (W, gate, eff)

    x_tile = x_ref[0]                       # (TILE_N, d) float32
    h = x_tile

    for i in range(num_layers):
        w_ref, g_ref, e_ref = prefs[PARAMS_PER_LAYER * i: PARAMS_PER_LAYER * (i + 1)]
        gate = g_ref[0]                     # (1, dout) f32 = sigmoid(ctx_emb@Wg+bg)
        eff = e_ref[0]                      # (1, dout) f32 = b*gate + ctx_emb@Wb

        din = w_ref.shape[0]
        if i == 0 and din <= 8:
            # Tiny contraction dim: three broadcasted FMAs on the VPU instead
            # of a K=3 -> 128/256 padded MXU pass.
            w = w_ref[...]                  # (din, dout) f32
            acc = h[:, 0:1] * w[0:1, :]
            for j in range(1, din):
                acc = acc + h[:, j:j + 1] * w[j:j + 1, :]
            h = acc
        else:
            # bf16 operands, f32 accumulation on the MXU.
            h = jnp.dot(h.astype(w_ref.dtype), w_ref[...],
                        preferred_element_type=jnp.float32)

        h = h * gate + eff                  # (h@W + b)*gate + bias, b folded into eff
        if i < num_layers - 1:
            h = jnp.where(h > 0, h, LEAKY_SLOPE * h)

    if residual:
        h = x_tile + h
    o_ref[0] = h.astype(o_ref.dtype)


def pointwise_net_forward(x, beta, context, params, *, residual=True,
                          tile_n=512, mxu_dtype=jnp.bfloat16):
    """x: (B, N, d), beta: (B,), context: (B, F) -> (B, N, d).

    params: list of (W, b, Wg, bg, Wb) per layer,
            W: (din, dout), b/bg: (1, dout), Wg/Wb: (F+3, dout).
    """
    B, N, d = x.shape
    F = context.shape[-1]
    num_layers = len(params)

    # ---- hoisted per-batch hyper-network (tiny, plain JAX) -------------------
    hp = jax.lax.Precision.HIGHEST
    beta_ = beta.reshape(B, 1, 1).astype(jnp.float32)
    ctx = context.reshape(B, 1, F).astype(jnp.float32)
    ctx_emb = jnp.concatenate(
        [beta_, jnp.sin(beta_), jnp.cos(beta_), ctx], axis=-1)        # (B,1,F+3)

    flat_inputs = []
    layer_specs = []
    for i, (w, b, wg, bg, wb) in enumerate(params):
        din, dout = w.shape
        gate = jax.nn.sigmoid(jnp.matmul(ctx_emb, wg, precision=hp)
                              + bg.reshape(1, 1, dout))               # (B,1,dout)
        eff = (b.reshape(1, 1, dout) * gate
               + jnp.matmul(ctx_emb, wb, precision=hp))               # (B,1,dout)

        # first layer runs on the VPU in f32; all other matmuls use bf16 on MXU
        w_dtype = jnp.float32 if (i == 0 and din <= 8) else mxu_dtype
        flat_inputs += [w.astype(w_dtype),
                        gate.astype(jnp.float32),
                        eff.astype(jnp.float32)]
        layer_specs += [
            pl.BlockSpec((din, dout), lambda bi, ni: (0, 0)),          # resident weight
            pl.BlockSpec((1, 1, dout), lambda bi, ni: (bi, 0, 0)),     # gate
            pl.BlockSpec((1, 1, dout), lambda bi, ni: (bi, 0, 0)),     # eff bias
        ]

    # ---- point-axis tiling ----------------------------------------------------
    tile_n = int(tile_n)
    if N <= tile_n:
        tile_n = max(8, pl.cdiv(N, 8) * 8)
    n_pad = pl.cdiv(N, tile_n) * tile_n
    n_tiles = n_pad // tile_n

    x_in = x.astype(jnp.float32)
    if n_pad != N:
        x_in = jnp.pad(x_in, ((0, 0), (0, n_pad - N), (0, 0)))

    kernel = functools.partial(_pointwise_net_kernel,
                               num_layers=num_layers, residual=residual)

    out = pl.pallas_call(
        kernel,
        out_shape=jax.ShapeDtypeStruct((B, n_pad, d), jnp.float32),
        grid_spec=pltpu.PrefetchScalarGridSpec(
            num_scalar_prefetch=0,
            grid=(B, n_tiles),
            in_specs=[pl.BlockSpec((1, tile_n, d), lambda bi, ni: (bi, ni, 0))]
                     + layer_specs,
            out_specs=pl.BlockSpec((1, tile_n, d), lambda bi, ni: (bi, ni, 0)),
        ),
        compiler_params=pltpu.CompilerParams(
            dimension_semantics=("parallel", "parallel"),
            vmem_limit_bytes=48 * 1024 * 1024,     # safe under v7x 64 MiB physical
        ),
    )(x_in, *flat_inputs)

    if n_pad != N:
        out = out[:, :N, :]
    return out


def pointwise_net_reference(x, beta, context, params, residual):
    """Plain-JAX reference mirroring the PyTorch forward (HIGHEST precision)."""
    B = x.shape[0]
    hp = jax.lax.Precision.HIGHEST
    beta_ = beta.reshape(B, 1, 1)
    ctx = context.reshape(B, 1, -1)
    time_emb = jnp.concatenate([beta_, jnp.sin(beta_), jnp.cos(beta_)], axis=-1)
    ctx_emb = jnp.concatenate([time_emb, ctx], axis=-1)
    out = x
    num_layers = len(params)
    for i, (w, b, wg, bg, wb) in enumerate(params):
        gate = jax.nn.sigmoid(jnp.matmul(ctx_emb, wg, precision=hp) + bg)
        bias = jnp.matmul(ctx_emb, wb, precision=hp)
        out = (jnp.matmul(out, w, precision=hp) + b) * gate + bias
        if i < num_layers - 1:
            out = jnp.where(out > 0, out, LEAKY_SLOPE * out)
    return x + out if residual else out


if __name__ == "__main__":
    key = jax.random.PRNGKey(0)
    B, N, point_dim, context_dim = 2, 512, 3, 16
    residual = True

    dims = [point_dim, 128, 256, 512, 256, 128, point_dim]
    ctx_dim = context_dim + 3

    keys = jax.random.split(key, 3 + 5 * 6)
    ki = iter(keys)

    x = jax.random.normal(next(ki), (B, N, point_dim), dtype=jnp.float32)
    beta = jax.random.uniform(next(ki), (B,), dtype=jnp.float32)
    context = jax.random.normal(next(ki), (B, context_dim), dtype=jnp.float32)

    params = []
    for i in range(6):
        din, dout = dims[i], dims[i + 1]
        w = jax.random.normal(next(ki), (din, dout), jnp.float32) / math.sqrt(din)
        b = jax.random.normal(next(ki), (1, dout), jnp.float32) * 0.1
        wg = jax.random.normal(next(ki), (ctx_dim, dout), jnp.float32) / math.sqrt(ctx_dim)
        bg = jax.random.normal(next(ki), (1, dout), jnp.float32) * 0.1
        wb = jax.random.normal(next(ki), (ctx_dim, dout), jnp.float32) / math.sqrt(ctx_dim)
        params.append((w, b, wg, bg, wb))

    out = pointwise_net_forward(x, beta, context, params,
                                residual=residual, tile_n=512)
    out = jax.block_until_ready(out)

    ref = pointwise_net_reference(x, beta, context, params, residual)

    assert out.shape == (B, N, point_dim)
    max_err = float(jnp.max(jnp.abs(out - ref)))
    # bf16 MXU operands with f32 accumulation -> slightly looser tolerance.
    assert jnp.allclose(out, ref, atol=3e-2, rtol=3e-2), f"max_err={max_err}"

    print("KERNEL_OK")
</pallas_src>

<mosaic_0001>
module attributes {stable_mosaic.version = 11 : i64} {
  func.func @_pointwise_net_kernel(%arg0: i32, %arg1: i32, %arg2: memref<1x512x3xf32, #tpu.memory_space<vmem>>, %arg3: memref<3x128xf32, #tpu.memory_space<vmem>>, %arg4: memref<1x1x128xf32, #tpu.memory_space<vmem>>, %arg5: memref<1x1x128xf32, #tpu.memory_space<vmem>>, %arg6: memref<128x256xbf16, #tpu.memory_space<vmem>>, %arg7: memref<1x1x256xf32, #tpu.memory_space<vmem>>, %arg8: memref<1x1x256xf32, #tpu.memory_space<vmem>>, %arg9: memref<256x512xbf16, #tpu.memory_space<vmem>>, %arg10: memref<1x1x512xf32, #tpu.memory_space<vmem>>, %arg11: memref<1x1x512xf32, #tpu.memory_space<vmem>>, %arg12: memref<512x256xbf16, #tpu.memory_space<vmem>>, %arg13: memref<1x1x256xf32, #tpu.memory_space<vmem>>, %arg14: memref<1x1x256xf32, #tpu.memory_space<vmem>>, %arg15: memref<256x128xbf16, #tpu.memory_space<vmem>>, %arg16: memref<1x1x128xf32, #tpu.memory_space<vmem>>, %arg17: memref<1x1x128xf32, #tpu.memory_space<vmem>>, %arg18: memref<128x3xbf16, #tpu.memory_space<vmem>>, %arg19: memref<1x1x3xf32, #tpu.memory_space<vmem>>, %arg20: memref<1x1x3xf32, #tpu.memory_space<vmem>>, %arg21: memref<1x512x3xf32, #tpu.memory_space<vmem>>) attributes {dimension_semantics = [#tpu.dimension_semantics<parallel>, #tpu.dimension_semantics<parallel>], iteration_bounds = array<i64: 2, 1>, scalar_prefetch = 0 : i64, scratch_operands = 0 : i64, tpu.core_type = #tpu.core_type<tc>, window_params = [{transform_indices = @transform_0, window_bounds = array<i64: 1, 512, 3>}, {pipeline_mode = #tpu.pipeline_mode<synchronous>, transform_indices = @transform_1, window_bounds = array<i64: 3, 128>}, {transform_indices = @transform_2, window_bounds = array<i64: 1, 1, 128>}, {transform_indices = @transform_3, window_bounds = array<i64: 1, 1, 128>}, {pipeline_mode = #tpu.pipeline_mode<synchronous>, transform_indices = @transform_4, window_bounds = array<i64: 128, 256>}, {transform_indices = @transform_5, window_bounds = array<i64: 1, 1, 256>}, {transform_indices = @transform_6, window_bounds = array<i64: 1, 1, 256>}, {pipeline_mode = #tpu.pipeline_mode<synchronous>, transform_indices = @transform_7, window_bounds = array<i64: 256, 512>}, {transform_indices = @transform_8, window_bounds = array<i64: 1, 1, 512>}, {transform_indices = @transform_9, window_bounds = array<i64: 1, 1, 512>}, {pipeline_mode = #tpu.pipeline_mode<synchronous>, transform_indices = @transform_10, window_bounds = array<i64: 512, 256>}, {transform_indices = @transform_11, window_bounds = array<i64: 1, 1, 256>}, {transform_indices = @transform_12, window_bounds = array<i64: 1, 1, 256>}, {pipeline_mode = #tpu.pipeline_mode<synchronous>, transform_indices = @transform_13, window_bounds = array<i64: 256, 128>}, {transform_indices = @transform_14, window_bounds = array<i64: 1, 1, 128>}, {transform_indices = @transform_15, window_bounds = array<i64: 1, 1, 128>}, {pipeline_mode = #tpu.pipeline_mode<synchronous>, transform_indices = @transform_16, window_bounds = array<i64: 128, 3>}, {transform_indices = @transform_17, window_bounds = array<i64: 1, 1, 3>}, {transform_indices = @transform_18, window_bounds = array<i64: 1, 1, 3>}, {transform_indices = @transform_19, window_bounds = array<i64: 1, 512, 3>}]} {
    %c0 = arith.constant 0 : index
    %c0_0 = arith.constant 0 : index
    %c0_1 = arith.constant 0 : index
    %0 = vector.load %arg2[%c0, %c0_0, %c0_1] : memref<1x512x3xf32, #tpu.memory_space<vmem>>, vector<1x512x3xf32>
    %1 = vector.shape_cast %0 : vector<1x512x3xf32> to vector<512x3xf32>
    %c0_2 = arith.constant 0 : index
    %c0_3 = arith.constant 0 : index
    %c0_4 = arith.constant 0 : index
    %2 = vector.load %arg4[%c0_2, %c0_3, %c0_4] : memref<1x1x128xf32, #tpu.memory_space<vmem>>, vector<1x1x128xf32>
    %3 = vector.shape_cast %2 : vector<1x1x128xf32> to vector<1x128xf32>
    %c0_5 = arith.constant 0 : index
    %c0_6 = arith.constant 0 : index
    %c0_7 = arith.constant 0 : index
    %4 = vector.load %arg5[%c0_5, %c0_6, %c0_7] : memref<1x1x128xf32, #tpu.memory_space<vmem>>, vector<1x1x128xf32>
    %5 = vector.shape_cast %4 : vector<1x1x128xf32> to vector<1x128xf32>
    %c0_8 = arith.constant 0 : index
    %c0_9 = arith.constant 0 : index
    %6 = vector.load %arg3[%c0_8, %c0_9] : memref<3x128xf32, #tpu.memory_space<vmem>>, vector<3x128xf32>
    %7 = vector.extract_strided_slice %1 {offsets = [0, 0], sizes = [512, 1], strides = [1, 1]} : vector<512x3xf32> to vector<512x1xf32>
    %8 = vector.extract_strided_slice %6 {offsets = [0, 0], sizes = [1, 128], strides = [1, 1]} : vector<3x128xf32> to vector<1x128xf32>
    %9 = vector.broadcast %7 : vector<512x1xf32> to vector<512x128xf32>
    %10 = vector.broadcast %8 : vector<1x128xf32> to vector<512x128xf32>
    %11 = arith.mulf %9, %10 : vector<512x128xf32>
    %12 = vector.extract_strided_slice %1 {offsets = [0, 1], sizes = [512, 1], strides = [1, 1]} : vector<512x3xf32> to vector<512x1xf32>
    %13 = vector.extract_strided_slice %6 {offsets = [1, 0], sizes = [1, 128], strides = [1, 1]} : vector<3x128xf32> to vector<1x128xf32>
    %14 = vector.broadcast %12 : vector<512x1xf32> to vector<512x128xf32>
    %15 = vector.broadcast %13 : vector<1x128xf32> to vector<512x128xf32>
    %16 = arith.mulf %14, %15 : vector<512x128xf32>
    %17 = arith.addf %11, %16 : vector<512x128xf32>
    %18 = vector.extract_strided_slice %1 {offsets = [0, 2], sizes = [512, 1], strides = [1, 1]} : vector<512x3xf32> to vector<512x1xf32>
    %19 = vector.extract_strided_slice %6 {offsets = [2, 0], sizes = [1, 128], strides = [1, 1]} : vector<3x128xf32> to vector<1x128xf32>
    %20 = vector.broadcast %18 : vector<512x1xf32> to vector<512x128xf32>
    %21 = vector.broadcast %19 : vector<1x128xf32> to vector<512x128xf32>
    %22 = arith.mulf %20, %21 : vector<512x128xf32>
    %23 = arith.addf %17, %22 : vector<512x128xf32>
    %24 = vector.broadcast %3 : vector<1x128xf32> to vector<512x128xf32>
    %25 = arith.mulf %23, %24 : vector<512x128xf32>
    %26 = vector.broadcast %5 : vector<1x128xf32> to vector<512x128xf32>
    %27 = arith.addf %25, %26 : vector<512x128xf32>
    %cst = arith.constant 0.000000e+00 : f32
    %28 = vector.broadcast %cst : f32 to vector<512x128xf32>
    %29 = arith.cmpf ogt, %27, %28 : vector<512x128xf32>
    %cst_10 = arith.constant 0.00999999977 : f32
    %30 = vector.broadcast %cst_10 : f32 to vector<512x128xf32>
    %31 = arith.mulf %30, %27 : vector<512x128xf32>
    %32 = arith.select %29, %27, %31 : vector<512x128xi1>, vector<512x128xf32>
    %c0_11 = arith.constant 0 : index
    %c0_12 = arith.constant 0 : index
    %c0_13 = arith.constant 0 : index
    %33 = vector.load %arg7[%c0_11, %c0_12, %c0_13] : memref<1x1x256xf32, #tpu.memory_space<vmem>>, vector<1x1x256xf32>
    %34 = vector.shape_cast %33 : vector<1x1x256xf32> to vector<1x256xf32>
    %c0_14 = arith.constant 0 : index
    %c0_15 = arith.constant 0 : index
    %c0_16 = arith.constant 0 : index
    %35 = vector.load %arg8[%c0_14, %c0_15, %c0_16] : memref<1x1x256xf32, #tpu.memory_space<vmem>>, vector<1x1x256xf32>
    %36 = vector.shape_cast %35 : vector<1x1x256xf32> to vector<1x256xf32>
    %37 = arith.truncf %32 : vector<512x128xf32> to vector<512x128xbf16>
    %c0_17 = arith.constant 0 : index
    %c0_18 = arith.constant 0 : index
    %38 = vector.load %arg6[%c0_17, %c0_18] : memref<128x256xbf16, #tpu.memory_space<vmem>>, vector<128x256xbf16>
    %cst_19 = arith.constant dense<0.000000e+00> : vector<512x256xf32>
    %39 = tpu.matmul %37, %38, %cst_19 {dimension_numbers = #tpu.dot_dimension_numbers<[1], [0], [0], [1], [0, 0, 1, 1], [], []>} : vector<512x128xbf16>, vector<128x256xbf16>, vector<512x256xf32> -> vector<512x256xf32>
    %40 = vector.broadcast %34 : vector<1x256xf32> to vector<512x256xf32>
    %41 = arith.mulf %39, %40 : vector<512x256xf32>
    %42 = vector.broadcast %36 : vector<1x256xf32> to vector<512x256xf32>
    %43 = arith.addf %41, %42 : vector<512x256xf32>
    %cst_20 = arith.constant 0.000000e+00 : f32
    %44 = vector.broadcast %cst_20 : f32 to vector<512x256xf32>
    %45 = arith.cmpf ogt, %43, %44 : vector<512x256xf32>
    %cst_21 = arith.constant 0.00999999977 : f32
    %46 = vector.broadcast %cst_21 : f32 to vector<512x256xf32>
    %47 = arith.mulf %46, %43 : vector<512x256xf32>
    %48 = arith.select %45, %43, %47 : vector<512x256xi1>, vector<512x256xf32>
    %c0_22 = arith.constant 0 : index
    %c0_23 = arith.constant 0 : index
    %c0_24 = arith.constant 0 : index
    %49 = vector.load %arg10[%c0_22, %c0_23, %c0_24] : memref<1x1x512xf32, #tpu.memory_space<vmem>>, vector<1x1x512xf32>
    %50 = vector.shape_cast %49 : vector<1x1x512xf32> to vector<1x512xf32>
    %c0_25 = arith.constant 0 : index
    %c0_26 = arith.constant 0 : index
    %c0_27 = arith.constant 0 : index
    %51 = vector.load %arg11[%c0_25, %c0_26, %c0_27] : memref<1x1x512xf32, #tpu.memory_space<vmem>>, vector<1x1x512xf32>
    %52 = vector.shape_cast %51 : vector<1x1x512xf32> to vector<1x512xf32>
    %53 = arith.truncf %48 : vector<512x256xf32> to vector<512x256xbf16>
    %c0_28 = arith.constant 0 : index
    %c0_29 = arith.constant 0 : index
    %54 = vector.load %arg9[%c0_28, %c0_29] : memref<256x512xbf16, #tpu.memory_space<vmem>>, vector<256x512xbf16>
    %cst_30 = arith.constant dense<0.000000e+00> : vector<512x512xf32>
    %55 = tpu.matmul %53, %54, %cst_30 {dimension_numbers = #tpu.dot_dimension_numbers<[1], [0], [0], [1], [0, 0, 1, 1], [], []>} : vector<512x256xbf16>, vector<256x512xbf16>, vector<512x512xf32> -> vector<512x512xf32>
    %56 = vector.broadcast %50 : vector<1x512xf32> to vector<512x512xf32>
    %57 = arith.mulf %55, %56 : vector<512x512xf32>
    %58 = vector.broadcast %52 : vector<1x512xf32> to vector<512x512xf32>
    %59 = arith.addf %57, %58 : vector<512x512xf32>
    %cst_31 = arith.constant 0.000000e+00 : f32
    %60 = vector.broadcast %cst_31 : f32 to vector<512x512xf32>
    %61 = arith.cmpf ogt, %59, %60 : vector<512x512xf32>
    %cst_32 = arith.constant 0.00999999977 : f32
    %62 = vector.broadcast %cst_32 : f32 to vector<512x512xf32>
    %63 = arith.mulf %62, %59 : vector<512x512xf32>
    %64 = arith.select %61, %59, %63 : vector<512x512xi1>, vector<512x512xf32>
    %c0_33 = arith.constant 0 : index
    %c0_34 = arith.constant 0 : index
    %c0_35 = arith.constant 0 : index
    %65 = vector.load %arg13[%c0_33, %c0_34, %c0_35] : memref<1x1x256xf32, #tpu.memory_space<vmem>>, vector<1x1x256xf32>
    %66 = vector.shape_cast %65 : vector<1x1x256xf32> to vector<1x256xf32>
    %c0_36 = arith.constant 0 : index
    %c0_37 = arith.constant 0 : index
    %c0_38 = arith.constant 0 : index
    %67 = vector.load %arg14[%c0_36, %c0_37, %c0_38] : memref<1x1x256xf32, #tpu.memory_space<vmem>>, vector<1x1x256xf32>
    %68 = vector.shape_cast %67 : vector<1x1x256xf32> to vector<1x256xf32>
    %69 = arith.truncf %64 : vector<512x512xf32> to vector<512x512xbf16>
    %c0_39 = arith.constant 0 : index
    %c0_40 = arith.constant 0 : index
    %70 = vector.load %arg12[%c0_39, %c0_40] : memref<512x256xbf16, #tpu.memory_space<vmem>>, vector<512x256xbf16>
    %cst_41 = arith.constant dense<0.000000e+00> : vector<512x256xf32>
    %71 = tpu.matmul %69, %70, %cst_41 {dimension_numbers = #tpu.dot_dimension_numbers<[1], [0], [0], [1], [0, 0, 1, 1], [], []>} : vector<512x512xbf16>, vector<512x256xbf16>, vector<512x256xf32> -> vector<512x256xf32>
    %72 = vector.broadcast %66 : vector<1x256xf32> to vector<512x256xf32>
    %73 = arith.mulf %71, %72 : vector<512x256xf32>
    %74 = vector.broadcast %68 : vector<1x256xf32> to vector<512x256xf32>
    %75 = arith.addf %73, %74 : vector<512x256xf32>
    %cst_42 = arith.constant 0.000000e+00 : f32
    %76 = vector.broadcast %cst_42 : f32 to vector<512x256xf32>
    %77 = arith.cmpf ogt, %75, %76 : vector<512x256xf32>
    %cst_43 = arith.constant 0.00999999977 : f32
    %78 = vector.broadcast %cst_43 : f32 to vector<512x256xf32>
    %79 = arith.mulf %78, %75 : vector<512x256xf32>
    %80 = arith.select %77, %75, %79 : vector<512x256xi1>, vector<512x256xf32>
    %c0_44 = arith.constant 0 : index
    %c0_45 = arith.constant 0 : index
    %c0_46 = arith.constant 0 : index
    %81 = vector.load %arg16[%c0_44, %c0_45, %c0_46] : memref<1x1x128xf32, #tpu.memory_space<vmem>>, vector<1x1x128xf32>
    %82 = vector.shape_cast %81 : vector<1x1x128xf32> to vector<1x128xf32>
    %c0_47 = arith.constant 0 : index
    %c0_48 = arith.constant 0 : index
    %c0_49 = arith.constant 0 : index
    %83 = vector.load %arg17[%c0_47, %c0_48, %c0_49] : memref<1x1x128xf32, #tpu.memory_space<vmem>>, vector<1x1x128xf32>
    %84 = vector.shape_cast %83 : vector<1x1x128xf32> to vector<1x128xf32>
    %85 = arith.truncf %80 : vector<512x256xf32> to vector<512x256xbf16>
    %c0_50 = arith.constant 0 : index
    %c0_51 = arith.constant 0 : index
    %86 = vector.load %arg15[%c0_50, %c0_51] : memref<256x128xbf16, #tpu.memory_space<vmem>>, vector<256x128xbf16>
    %cst_52 = arith.constant dense<0.000000e+00> : vector<512x128xf32>
    %87 = tpu.matmul %85, %86, %cst_52 {dimension_numbers = #tpu.dot_dimension_numbers<[1], [0], [0], [1], [0, 0, 1, 1], [], []>} : vector<512x256xbf16>, vector<256x128xbf16>, vector<512x128xf32> -> vector<512x128xf32>
    %88 = vector.broadcast %82 : vector<1x128xf32> to vector<512x128xf32>
    %89 = arith.mulf %87, %88 : vector<512x128xf32>
    %90 = vector.broadcast %84 : vector<1x128xf32> to vector<512x128xf32>
    %91 = arith.addf %89, %90 : vector<512x128xf32>
    %cst_53 = arith.constant 0.000000e+00 : f32
    %92 = vector.broadcast %cst_53 : f32 to vector<512x128xf32>
    %93 = arith.cmpf ogt, %91, %92 : vector<512x128xf32>
    %cst_54 = arith.constant 0.00999999977 : f32
    %94 = vector.broadcast %cst_54 : f32 to vector<512x128xf32>
    %95 = arith.mulf %94, %91 : vector<512x128xf32>
    %96 = arith.select %93, %91, %95 : vector<512x128xi1>, vector<512x128xf32>
    %c0_55 = arith.constant 0 : index
    %c0_56 = arith.constant 0 : index
    %c0_57 = arith.constant 0 : index
    %97 = vector.load %arg19[%c0_55, %c0_56, %c0_57] : memref<1x1x3xf32, #tpu.memory_space<vmem>>, vector<1x1x3xf32>
    %98 = vector.shape_cast %97 : vector<1x1x3xf32> to vector<1x3xf32>
    %c0_58 = arith.constant 0 : index
    %c0_59 = arith.constant 0 : index
    %c0_60 = arith.constant 0 : index
    %99 = vector.load %arg20[%c0_58, %c0_59, %c0_60] : memref<1x1x3xf32, #tpu.memory_space<vmem>>, vector<1x1x3xf32>
    %100 = vector.shape_cast %99 : vector<1x1x3xf32> to vector<1x3xf32>
    %101 = arith.truncf %96 : vector<512x128xf32> to vector<512x128xbf16>
    %c0_61 = arith.constant 0 : index
    %c0_62 = arith.constant 0 : index
    %102 = vector.load %arg18[%c0_61, %c0_62] : memref<128x3xbf16, #tpu.memory_space<vmem>>, vector<128x3xbf16>
    %cst_63 = arith.constant dense<0.000000e+00> : vector<512x3xf32>
    %103 = tpu.matmul %101, %102, %cst_63 {dimension_numbers = #tpu.dot_dimension_numbers<[1], [0], [0], [1], [0, 0, 1, 1], [], []>} : vector<512x128xbf16>, vector<128x3xbf16>, vector<512x3xf32> -> vector<512x3xf32>
    %104 = vector.broadcast %98 : vector<1x3xf32> to vector<512x3xf32>
    %105 = arith.mulf %103, %104 : vector<512x3xf32>
    %106 = vector.broadcast %100 : vector<1x3xf32> to vector<512x3xf32>
    %107 = arith.addf %105, %106 : vector<512x3xf32>
    %108 = arith.addf %1, %107 : vector<512x3xf32>
    %c0_64 = arith.constant 0 : index
    %c0_65 = arith.constant 0 : index
    %c0_66 = arith.constant 0 : index
    %109 = vector.load %arg21[%c0_64, %c0_65, %c0_66] : memref<1x512x3xf32, #tpu.memory_space<vmem>>, vector<1x512x3xf32>
    %110 = vector.shape_cast %109 : vector<1x512x3xf32> to vector<512x3xf32>
    %111 = vector.shape_cast %108 : vector<512x3xf32> to vector<1x512x3xf32>
    tpu.vector_store %arg21[%c0_64, %c0_65, %c0_66], %111 {strides = array<i32>} : memref<1x512x3xf32, #tpu.memory_space<vmem>>, vector<1x512x3xf32>,
    return
  }
  func.func @transform_0(%arg0: i32, %arg1: i32) -> (i32, i32, i32) {
    %c0_i32 = arith.constant 0 : i32
    %c0_i32_0 = arith.constant 0 : i32
    return %arg0, %arg1, %c0_i32 : i32, i32, i32
  }
  func.func @transform_1(%arg0: i32, %arg1: i32) -> (i32, i32) {
    %c0_i32 = arith.constant 0 : i32
    %c0_i32_0 = arith.constant 0 : i32
    %c0_i32_1 = arith.constant 0 : i32
    return %c0_i32, %c0_i32_0 : i32, i32
  }
  func.func @transform_2(%arg0: i32, %arg1: i32) -> (i32, i32, i32) {
    %c0_i32 = arith.constant 0 : i32
    %c0_i32_0 = arith.constant 0 : i32
    %c0_i32_1 = arith.constant 0 : i32
    return %arg0, %c0_i32, %c0_i32_0 : i32, i32, i32
  }
  func.func @transform_3(%arg0: i32, %arg1: i32) -> (i32, i32, i32) {
    %c0_i32 = arith.constant 0 : i32
    %c0_i32_0 = arith.constant 0 : i32
    %c0_i32_1 = arith.constant 0 : i32
    return %arg0, %c0_i32, %c0_i32_0 : i32, i32, i32
  }
  func.func @transform_4(%arg0: i32, %arg1: i32) -> (i32, i32) {
    %c0_i32 = arith.constant 0 : i32
    %c0_i32_0 = arith.constant 0 : i32
    %c0_i32_1 = arith.constant 0 : i32
    return %c0_i32, %c0_i32_0 : i32, i32
  }
  func.func @transform_5(%arg0: i32, %arg1: i32) -> (i32, i32, i32) {
    %c0_i32 = arith.constant 0 : i32
    %c0_i32_0 = arith.constant 0 : i32
    %c0_i32_1 = arith.constant 0 : i32
    return %arg0, %c0_i32, %c0_i32_0 : i32, i32, i32
  }
  func.func @transform_6(%arg0: i32, %arg1: i32) -> (i32, i32, i32) {
    %c0_i32 = arith.constant 0 : i32
    %c0_i32_0 = arith.constant 0 : i32
    %c0_i32_1 = arith.constant 0 : i32
    return %arg0, %c0_i32, %c0_i32_0 : i32, i32, i32
  }
  func.func @transform_7(%arg0: i32, %arg1: i32) -> (i32, i32) {
    %c0_i32 = arith.constant 0 : i32
    %c0_i32_0 = arith.constant 0 : i32
    %c0_i32_1 = arith.constant 0 : i32
    return %c0_i32, %c0_i32_0 : i32, i32
  }
  func.func @transform_8(%arg0: i32, %arg1: i32) -> (i32, i32, i32) {
    %c0_i32 = arith.constant 0 : i32
    %c0_i32_0 = arith.constant 0 : i32
    %c0_i32_1 = arith.constant 0 : i32
    return %arg0, %c0_i32, %c0_i32_0 : i32, i32, i32
  }
  func.func @transform_9(%arg0: i32, %arg1: i32) -> (i32, i32, i32) {
    %c0_i32 = arith.constant 0 : i32
    %c0_i32_0 = arith.constant 0 : i32
    %c0_i32_1 = arith.constant 0 : i32
    return %arg0, %c0_i32, %c0_i32_0 : i32, i32, i32
  }
  func.func @transform_10(%arg0: i32, %arg1: i32) -> (i32, i32) {
    %c0_i32 = arith.constant 0 : i32
    %c0_i32_0 = arith.constant 0 : i32
    %c0_i32_1 = arith.constant 0 : i32
    return %c0_i32, %c0_i32_0 : i32, i32
  }
  func.func @transform_11(%arg0: i32, %arg1: i32) -> (i32, i32, i32) {
    %c0_i32 = arith.constant 0 : i32
    %c0_i32_0 = arith.constant 0 : i32
    %c0_i32_1 = arith.constant 0 : i32
    return %arg0, %c0_i32, %c0_i32_0 : i32, i32, i32
  }
  func.func @transform_12(%arg0: i32, %arg1: i32) -> (i32, i32, i32) {
    %c0_i32 = arith.constant 0 : i32
    %c0_i32_0 = arith.constant 0 : i32
    %c0_i32_1 = arith.constant 0 : i32
    return %arg0, %c0_i32, %c0_i32_0 : i32, i32, i32
  }
  func.func @transform_13(%arg0: i32, %arg1: i32) -> (i32, i32) {
    %c0_i32 = arith.constant 0 : i32
    %c0_i32_0 = arith.constant 0 : i32
    %c0_i32_1 = arith.constant 0 : i32
    return %c0_i32, %c0_i32_0 : i32, i32
  }
  func.func @transform_14(%arg0: i32, %arg1: i32) -> (i32, i32, i32) {
    %c0_i32 = arith.constant 0 : i32
    %c0_i32_0 = arith.constant 0 : i32
    %c0_i32_1 = arith.constant 0 : i32
    return %arg0, %c0_i32, %c0_i32_0 : i32, i32, i32
  }
  func.func @transform_15(%arg0: i32, %arg1: i32) -> (i32, i32, i32) {
    %c0_i32 = arith.constant 0 : i32
    %c0_i32_0 = arith.constant 0 : i32
    %c0_i32_1 = arith.constant 0 : i32
    return %arg0, %c0_i32, %c0_i32_0 : i32, i32, i32
  }
  func.func @transform_16(%arg0: i32, %arg1: i32) -> (i32, i32) {
    %c0_i32 = arith.constant 0 : i32
    %c0_i32_0 = arith.constant 0 : i32
    %c0_i32_1 = arith.constant 0 : i32
    return %c0_i32, %c0_i32_0 : i32, i32
  }
  func.func @transform_17(%arg0: i32, %arg1: i32) -> (i32, i32, i32) {
    %c0_i32 = arith.constant 0 : i32
    %c0_i32_0 = arith.constant 0 : i32
    %c0_i32_1 = arith.constant 0 : i32
    return %arg0, %c0_i32, %c0_i32_0 : i32, i32, i32
  }
  func.func @transform_18(%arg0: i32, %arg1: i32) -> (i32, i32, i32) {
    %c0_i32 = arith.constant 0 : i32
    %c0_i32_0 = arith.constant 0 : i32
    %c0_i32_1 = arith.constant 0 : i32
    return %arg0, %c0_i32, %c0_i32_0 : i32, i32, i32
  }
  func.func @transform_19(%arg0: i32, %arg1: i32) -> (i32, i32, i32) {
    %c0_i32 = arith.constant 0 : i32
    %c0_i32_0 = arith.constant 0 : i32
    return %arg0, %arg1, %c0_i32 : i32, i32, i32
  }
}

</mosaic_0001>

<bundles_post_ra>
// kernel: tpu_custom_call.1
= control target key start
LH: loop header
LB: loop body
LE: loop exit
PB: predicated region body
PF: predicated region fallthrough
CT: control target
= control target key end

     0   :  { %s17524_s0 = inlined_call_operand.vmem [shape: f32[2,512,3], index: 0, kind: input, shape index: {}]   ;;  %s17525_s1 = inlined_call_operand.vmem [shape: f32[3,128], index: 1, kind: input, shape index: {}]   ;;  %s17526_s2 = inlined_call_operand.vmem [shape: f32[2,1,128], index: 2, kind: input, shape index: {}]   ;;  %s17527_s3 = inlined_call_operand.hbm [shape: f32[2,1,128], index: 3, kind: input, shape index: {}]   ;;  %s17528_s4 = inlined_call_operand.hbm [shape: bf16[128,256], index: 4, kind: input, shape index: {}]   ;;  %s17529_s5 = inlined_call_operand.hbm [shape: f32[2,1,256], index: 5, kind: input, shape index: {}]   ;;  %s17530_s6 = inlined_call_operand.hbm [shape: f32[2,1,256], index: 6, kind: input, shape index: {}]   ;;  %s17531_s7 = inlined_call_operand.vmem [shape: bf16[256,512], index: 7, kind: input, shape index: {}]   ;;  %s17532_s8 = inlined_call_operand.hbm [shape: f32[2,1,512], index: 8, kind: input, shape index: {}]   ;;  %s17533_s9 = inlined_call_operand.hbm [shape: f32[2,1,512], index: 9, kind: input, shape index: {}]   ;;  %s17534_s10 = inlined_call_operand.vmem [shape: bf16[512,256], index: 10, kind: input, shape index: {}]   ;;  %s17535_s11 = inlined_call_operand.hbm [shape: f32[2,1,256], index: 11, kind: input, shape index: {}]   ;;  %s17536_s12 = inlined_call_operand.hbm [shape: f32[2,1,256], index: 12, kind: input, shape index: {}]   ;;  %s17537_s13 = inlined_call_operand.vmem [shape: bf16[256,128], index: 13, kind: input, shape index: {}]   ;;  %s17538_s14 = inlined_call_operand.hbm [shape: f32[2,1,128], index: 14, kind: input, shape index: {}]   ;;  %s17539_s15 = inlined_call_operand.hbm [shape: f32[2,1,128], index: 15, kind: input, shape index: {}]   ;;  %s17540_s16 = inlined_call_operand.vmem [shape: bf16[128,3], index: 16, kind: input, shape index: {}]   ;;  %s17541_s17 = inlined_call_operand.vmem [shape: f32[2,1,3], index: 17, kind: input, shape index: {}]   ;;  %s17542_s18 = inlined_call_operand.vmem [shape: f32[2,1,3], index: 18, kind: input, shape index: {}]   ;;  %s17543_s19 = inlined_call_operand.vmem [shape: f32[2,512,3], index: 19, kind: output, shape index: {}]  }
   0x1   :  { %17759 = sst [smem:[#allocation182_spill]] %s17524_s0 }
   0x2   :  { %17760 = sst [smem:[#allocation183_spill]] %s17525_s1 }
   0x3   :  { %17761 = sst [smem:[#allocation184_spill]] %s17526_s2 }
   0x4   :  { %17762 = sst [smem:[#allocation185_spill]] %s17527_s3 }
   0x5   :  { %17763 = sst [smem:[#allocation186_spill]] %s17529_s5 }
   0x6   :  { %17764 = sst [smem:[#allocation187_spill]] %s17530_s6 }
   0x7   :  { %17765 = sst [smem:[#allocation188_spill]] %s17531_s7 }
   0x8   :  { %17766 = sst [smem:[#allocation189_spill]] %s17532_s8 }
   0x9   :  { %17767 = sst [smem:[#allocation190_spill]] %s17534_s10 }
   0xa   :  { %17768 = sst [smem:[#allocation191_spill]] %s17537_s13 }
   0xb   :  { %17769 = sst [smem:[#allocation192_spill]] %s17540_s16 }
   0xc   :  { %17770 = sst [smem:[#allocation193_spill]] %s17541_s17 }
   0xd   :  { %17771 = sst [smem:[#allocation194_spill]] %s17542_s18 }
   0xe   :  { %17772 = sst [smem:[#allocation195_spill]] %s17543_s19 }
   0xf   :  { %24 = vsyncpa [#allocation3], 0 }
  0x10   :  { %26 = vsyncpa [#allocation3 + $0x1], 0 }
  0x11   :  { %27 = vsyncpa [#allocation5], 0  ;;  %s11341_s0 = smov 0   ;;  %s11343_s30 = smov 0  }
  0x12   :  { %s11345_s20 = smov 0   ;;  %s11347_s21 = smov 0  }
  0x13   :  { %s11349_s1 = smov 0   ;;  %s11351_s22 = smov 0  }
  0x14 LB: > { %17773 = sst [smem:[#allocation17_spill]] %s11212_s20  ;;  %s45_s2 = sadd.s32 1, %s11220_s1  ;;  %s11224_s22 = sphi %s11351_s22, %s33_s22   ;;  %s11220_s1 = sphi %s11349_s1, %s18401_s1   ;;  %s11216_s21 = sphi %s11347_s21, %s18400_s21   ;;  %s11212_s20 = sphi %s11345_s20, %s18396_s20   ;;  %s11208_s30 = sphi %s11343_s30, %s18399_s30   ;;  %s11204_s0 = sphi %s11341_s0, %s18398_s0  }
  0x15   : > { %17774 = sst [smem:[#allocation18_spill]] %s11216_s21  ;;  %s127_s23 = sadd.s32 1, %s11212_s20 }
  0x16   : > { %p47_p0 = scmp.ge.s32.totalorder %s45_s2, 2  ;;  %p134_p1 = scmp.ne.s32.totalorder %s11212_s20, %s11208_s30 }
  0x17   : > { %p135_p2 = scmp.eq.s32.totalorder %s11224_s22, 0  ;;  %p10384_p4 = scmp.lt.s32.totalorder %s11224_s22, 2 }
  0x18   : > { %s18403_s2 = smov (%p47_p0, %s45_s2), 0  ;;  %s604_s25 = sand.u32 1, %s11224_s22  }
  0x19   : > { %17775 = sst [smem:[#allocation19_spill]] %s18403_s2  ;;  %p136_p3 = por %p135_p2, %p134_p1 }
  0x1a   : > { %s124_s24 = ssub.s32 %s11220_s1, %s18403_s2  ;;  %s11383_s3 = sand.u32 1, %s11212_s20  }
  0x1b   : > { %p125_p5 = scmp.eq.s32.totalorder %s124_s24, 0  ;;  %s11386_s26 = sshll.u32 %s11220_s1, 4 }
  0x1c   : > { %s17777_s19 = sld [smem:[#allocation185_spill]]  ;;  %s607_s2 = scalar_lea.vmem [#allocation2], %s11383_s3 }
  0x1d   : > { %s11389_s27 = scalar_select %p125_p5, %s11212_s20, %s127_s23  }
  0x1e   : > { %s614_s24 = sshll.u32 %s607_s2, 4  ;;  %p11398_p6 = pnand %p10384_p4, %p136_p3  ;;  %s11402_s24 = int_to_ptr.vmem [resolvable:$true] %s614_s24 }
  0x1f   : > { %17776 = sst [smem:[#allocation20_spill]] %s11389_s27  ;;  %s11405_s23 = sshll.u32 %s11383_s3, 1 }
  0x20   : > { %s17778_s17 = scalar_select %p11398_p6, 1, 0 }
  0x21   : > { %s11407_s27 = scalar_lea.sflag [#allocation3], %s604_s25  ;;  %p11413_p8 = pneg %p11398_p6 }
  0x22   : > { %s11395_s18 = scalar_lea.hbm %s17777_s19, %s11386_s26  ;;  %s10873_s16 = scalar_lea.hbm %s17777_s19, 32 }
  0x23   : > { %s10868_s28 = scalar_lea.hbm %s11395_s18, 16  ;;  %p10874_p11 = scmp.lt.u32.totalorder %s11395_s18, %s17777_s19 }
  0x24   : > { %p10869_p7 = scmp.ne.s32.totalorder %s11395_s18, %s10868_s28  ;;  %p10875_p12 = scmp.lt.u32.totalorder %s10873_s16, %s10868_s28 }
  0x25   : > { %s17779_s29 = scalar_select %p11413_p8, 1, 0 }
  0x26   : > { %p10871_p9 = pnand %p11413_p8, %p10869_p7  ;;  %p10876_p13 = por %p10875_p12, %p10874_p11 }
  0x27   : > { %p10877_p0 = scmp.lt.u32.totalorder %s10868_s28, %s11395_s18 }
  0x28   : > { %p10872_p10 = pneg %p10871_p9 }
  0x29   : > { %p10878_p1 = por %p10877_p0, %p10876_p13 }
  0x2b   : > { %p10879_p2 = pnand %p10878_p1, %p10872_p10 }
  0x2d   : > { %10882 = shalt.err (!%p10879_p2)
}
  0x2e   : > { %s10883_s25 = scalar_lea.vmem %s11402_s24, 16  ;;  %s11226_s20 = smov [#allocation2]  }
  0x2f   : > { %p10884_p3 = scmp.ne.s32.totalorder %s11402_s24, %s10883_s25  ;;  %s10888_s2 = sshll.u32 %s11226_s20, 4  ;;  %s10889_s2 = int_to_ptr.vmem [resolvable:$false] %s10888_s2 }
  0x30   : > { %s10890_s10 = scalar_lea.vmem %s10889_s2, 32  ;;  %p10891_p7 = scmp.lt.s32.totalorder %s11402_s24, %s10889_s2 }
  0x31   : > { %p10886_p4 = pnand %p10884_p3, %p11413_p8  ;;  %p10892_p9 = scmp.lt.s32.totalorder %s10890_s10, %s10883_s25 }
  0x33   : > { %p10887_p5 = pneg %p10886_p4  ;;  %p10893_p11 = por %p10892_p9, %p10891_p7 }
  0x35   : > { %p10894_p12 = pnand %p10893_p11, %p10887_p5 }
  0x37   : > { %10897 = shalt.err (!%p10894_p12)
}
  0x38   : > { %10358 = dma.hbm_to_vmem [thread:$0]  (!%p11398_p6), %s11395_s18, 16, %s11402_s24, %s11407_s27  }
  0x39   : > { %s11438_s13 = sshll.u32 %s11220_s1, 5  ;;  %s625_s16 = scalar_lea.vmem [#allocation6], %s11405_s23 }
  0x3a   : > { %s633_s28 = sshll.u32 %s625_s16, 4  ;;  %s17780_s5 = sld [smem:[#allocation186_spill]]  ;;  %s634_s28 = int_to_ptr.vmem [resolvable:$true] %s633_s28 }
  0x40   : > { %s631_s25 = scalar_lea.hbm %s17780_s5, %s11438_s13  ;;  %s10903_s21 = scalar_lea.hbm %s17780_s5, 64 }
  0x41   : > { %s10898_s10 = scalar_lea.hbm %s631_s25, 32  ;;  %p10904_p1 = scmp.lt.u32.totalorder %s631_s25, %s17780_s5 }
  0x42   : > { %p10899_p10 = scmp.ne.s32.totalorder %s631_s25, %s10898_s10  ;;  %p10905_p2 = scmp.lt.u32.totalorder %s10903_s21, %s10898_s10 }
  0x43   : > { %p10907_p4 = scmp.lt.u32.totalorder %s10898_s10, %s631_s25 }
  0x44   : > { %p10901_p13 = pnand %p10899_p10, %p11413_p8  ;;  %p10906_p3 = por %p10905_p2, %p10904_p1 }
  0x46   : > { %p10902_p0 = pneg %p10901_p13  ;;  %p10908_p5 = por %p10907_p4, %p10906_p3 }
  0x48   : > { %p10909_p7 = pnand %p10908_p5, %p10902_p0 }
  0x4a   : > { %10912 = shalt.err (!%p10909_p7)
}
  0x4b   : > { %s10913_s16 = scalar_lea.vmem %s634_s28, 32  ;;  %s11227_s20 = smov [#allocation6]  }
  0x4c   : > { %p10914_p9 = scmp.ne.s32.totalorder %s634_s28, %s10913_s16  ;;  %s10918_s2 = sshll.u32 %s11227_s20, 4  ;;  %s10919_s2 = int_to_ptr.vmem [resolvable:$false] %s10918_s2 }
  0x4d   : > { %s10920_s7 = scalar_lea.vmem %s10919_s2, 64  ;;  %p10921_p10 = scmp.lt.s32.totalorder %s634_s28, %s10919_s2 }
  0x4e   : > { %p10916_p11 = pnand %p10914_p9, %p11413_p8  ;;  %p10922_p13 = scmp.lt.s32.totalorder %s10920_s7, %s10913_s16 }
  0x50   : > { %p10917_p12 = pneg %p10916_p11  ;;  %p10923_p6 = por %p10922_p13, %p10921_p10 }
  0x52   : > { %p10924_p1 = pnand %p10923_p6, %p10917_p12 }
  0x54   : > { %10927 = shalt.err (!%p10924_p1)
}
  0x55   : > { %p17781_p2 = scmp.ne.s32.totalorder %s17778_s17, 0  ;;  %s17782_s6 = sld [smem:[#allocation187_spill]] }
  0x56   : > { %s644_s18 = scalar_lea.vmem [#allocation7], %s11405_s23 }
  0x57   : > { %10361 = dma.hbm_to_vmem [thread:$0]  (!%p17781_p2), %s631_s25, 32, %s634_s28, %s11407_s27  }
  0x58   : > { %s652_s24 = sshll.u32 %s644_s18, 4  ;;  %s653_s24 = int_to_ptr.vmem [resolvable:$true] %s652_s24 }
  0x5b   : > { %s11462_s10 = scalar_lea.hbm %s17782_s6, %s11438_s13  ;;  %s10933_s25 = scalar_lea.hbm %s17782_s6, 64 }
  0x5c   : > { %s10928_s20 = scalar_lea.hbm %s11462_s10, 32  ;;  %p10934_p4 = scmp.lt.u32.totalorder %s11462_s10, %s17782_s6 }
  0x5d   : > { %p10929_p6 = scmp.ne.s32.totalorder %s11462_s10, %s10928_s20  ;;  %p10935_p5 = scmp.lt.u32.totalorder %s10933_s25, %s10928_s20 }
  0x5e   : > { %p10937_p9 = scmp.lt.u32.totalorder %s10928_s20, %s11462_s10 }
  0x5f   : > { %p10931_p0 = pnand %p10929_p6, %p11413_p8  ;;  %p10936_p7 = por %p10935_p5, %p10934_p4 }
  0x61   : > { %p10932_p3 = pneg %p10931_p0  ;;  %p10938_p11 = por %p10937_p9, %p10936_p7 }
  0x63   : > { %p10939_p12 = pnand %p10938_p11, %p10932_p3 }
  0x65   : > { %10942 = shalt.err (!%p10939_p12)
}
  0x66   : > { %s10943_s21 = scalar_lea.vmem %s653_s24, 32  ;;  %s11228_s18 = smov [#allocation7]  }
  0x67   : > { %p10944_p10 = scmp.ne.s32.totalorder %s653_s24, %s10943_s21  ;;  %s10948_s16 = sshll.u32 %s11228_s18, 4  ;;  %s10949_s16 = int_to_ptr.vmem [resolvable:$false] %s10948_s16 }
  0x68   : > { %s10950_s2 = scalar_lea.vmem %s10949_s16, 64  ;;  %p10951_p6 = scmp.lt.s32.totalorder %s653_s24, %s10949_s16 }
  0x69   : > { %p10946_p13 = pnand %p10944_p10, %p11413_p8  ;;  %p10952_p0 = scmp.lt.s32.totalorder %s10950_s2, %s10943_s21 }
  0x6b   : > { %p10947_p1 = pneg %p10946_p13  ;;  %p10953_p2 = por %p10952_p0, %p10951_p6 }
  0x6d   : > { %p10954_p4 = pnand %p10953_p2, %p10947_p1 }
  0x6f   : > { %10957 = shalt.err (!%p10954_p4)
}
  0x70   : > { %p17783_p5 = scmp.ne.s32.totalorder %s17778_s17, 0  ;;  %s10059_s20 = sshll.u32 %s11220_s1, 6 }
  0x71   : > { %s17784_s28 = sshll.u32 %s11383_s3, 2  ;;  %s17785_s8 = sld [smem:[#allocation189_spill]] }
  0x72   : > { %10364 = dma.hbm_to_vmem [thread:$0]  (!%p17783_p5), %s11462_s10, 32, %s653_s24, %s11407_s27  }
  0x73   : > { %s663_s25 = scalar_lea.vmem [#allocation8], %s17784_s28 }
  0x74   : > { %s671_s7 = sshll.u32 %s663_s25, 4  ;;  %s672_s7 = int_to_ptr.vmem [resolvable:$true] %s671_s7 }
  0x77   : > { %s669_s21 = scalar_lea.hbm %s17785_s8, %s10059_s20  ;;  %s10963_s6 = scalar_lea.hbm %s17785_s8, 128 }
  0x78   : > { %s10958_s18 = scalar_lea.hbm %s669_s21, 64  ;;  %p10964_p9 = scmp.lt.u32.totalorder %s669_s21, %s17785_s8 }
  0x79   : > { %p10959_p2 = scmp.ne.s32.totalorder %s669_s21, %s10958_s18  ;;  %p10965_p11 = scmp.lt.u32.totalorder %s10963_s6, %s10958_s18 }
  0x7a   : > { %p10967_p10 = scmp.lt.u32.totalorder %s10958_s18, %s669_s21 }
  0x7b   : > { %p10961_p3 = pnand %p10959_p2, %p11413_p8  ;;  %p10966_p12 = por %p10965_p11, %p10964_p9 }
  0x7d   : > { %p10962_p7 = pneg %p10961_p3  ;;  %p10968_p13 = por %p10967_p10, %p10966_p12 }
  0x7f   : > { %p10969_p1 = pnand %p10968_p13, %p10962_p7 }
  0x81   : > { %10972 = shalt.err (!%p10969_p1)
}
  0x82   : > { %s10973_s28 = scalar_lea.vmem %s672_s7, 64  ;;  %s11229_s25 = smov [#allocation8]  }
  0x83   : > { %p10974_p6 = scmp.ne.s32.totalorder %s672_s7, %s10973_s28  ;;  %s10978_s19 = sshll.u32 %s11229_s25, 4  ;;  %s10979_s19 = int_to_ptr.vmem [resolvable:$false] %s10978_s19 }
  0x84   : > { %s10980_s5 = scalar_lea.vmem %s10979_s19, 128  ;;  %p10981_p2 = scmp.lt.s32.totalorder %s672_s7, %s10979_s19 }
  0x85   : > { %p10976_p0 = pnand %p10974_p6, %p11413_p8  ;;  %p10982_p3 = scmp.lt.s32.totalorder %s10980_s5, %s10973_s28 }
  0x87   : > { %p10977_p4 = pneg %p10976_p0  ;;  %p10983_p5 = por %p10982_p3, %p10981_p2 }
  0x89   : > { %p10984_p9 = pnand %p10983_p5, %p10977_p4 }
  0x8b   : > { %10987 = shalt.err (!%p10984_p9)
}
  0x8c   : > { %p17786_p11 = scmp.ne.s32.totalorder %s17778_s17, 0  ;;  %s11510_s18 = scalar_lea.hbm %s17533_s9, %s10059_s20 }
  0x8d   : > { %s17787_s2 = sshll.u32 %s11383_s3, 2  ;;  %s11518_s19 = scalar_lea.hbm %s17535_s11, %s11438_s13 }
  0x8e   : > { %10367 = dma.hbm_to_vmem [thread:$0]  (!%p17786_p11), %s669_s21, 64, %s672_s7, %s11407_s27  }
  0x8f   : > { %s682_s10 = scalar_lea.vmem [#allocation9], %s17787_s2  ;;  %s10988_s7 = scalar_lea.hbm %s11510_s18, 64 }
  0x90   : > { %s690_s24 = sshll.u32 %s682_s10, 4  ;;  %p10989_p5 = scmp.ne.s32.totalorder %s11510_s18, %s10988_s7  ;;  %s691_s24 = int_to_ptr.vmem [resolvable:$true] %s690_s24 }
  0x91   : > { %s10993_s5 = scalar_lea.hbm %s17533_s9, 128  ;;  %p10994_p10 = scmp.lt.u32.totalorder %s11510_s18, %s17533_s9 }
  0x92   : > { %p10991_p7 = pnand %p10989_p5, %p11413_p8  ;;  %p10995_p13 = scmp.lt.u32.totalorder %s10993_s5, %s10988_s7 }
  0x93   : > { %p10997_p6 = scmp.lt.u32.totalorder %s10988_s7, %s11510_s18 }
  0x94   : > { %p10992_p12 = pneg %p10991_p7  ;;  %p10996_p1 = por %p10995_p13, %p10994_p10 }
  0x96   : > { %p10998_p0 = por %p10997_p6, %p10996_p1 }
  0x98   : > { %p10999_p4 = pnand %p10998_p0, %p10992_p12 }
  0x9a   : > { %11002 = shalt.err (!%p10999_p4)
}
  0x9b   : > { %s11003_s2 = scalar_lea.vmem %s691_s24, 64  ;;  %s11230_s10 = smov [#allocation9]  }
  0x9c   : > { %p11004_p2 = scmp.ne.s32.totalorder %s691_s24, %s11003_s2  ;;  %s11008_s28 = sshll.u32 %s11230_s10, 4  ;;  %s11009_s28 = int_to_ptr.vmem [resolvable:$false] %s11008_s28 }
  0x9d   : > { %s11010_s25 = scalar_lea.vmem %s11009_s28, 128  ;;  %p11011_p5 = scmp.lt.s32.totalorder %s691_s24, %s11009_s28 }
  0x9e   : > { %p11006_p3 = pnand %p11004_p2, %p11413_p8  ;;  %p11012_p7 = scmp.lt.s32.totalorder %s11010_s25, %s11003_s2 }
  0xa0   : > { %p11007_p9 = pneg %p11006_p3  ;;  %p11013_p11 = por %p11012_p7, %p11011_p5 }
  0xa2   : > { %p11014_p10 = pnand %p11013_p11, %p11007_p9 }
  0xa4   : > { %11017 = shalt.err (!%p11014_p10)
}
  0xa5   : > { %p17788_p13 = scmp.ne.s32.totalorder %s17778_s17, 0  ;;  %s701_s7 = scalar_lea.vmem [#allocation10], %s11405_s23 }
  0xa6   : > { %s709_s20 = sshll.u32 %s701_s7, 4  ;;  %s11543_s6 = scalar_lea.hbm %s17536_s12, %s11438_s13  ;;  %s710_s20 = int_to_ptr.vmem [resolvable:$true] %s709_s20 }
  0xa7   : > { %10370 = dma.hbm_to_vmem [thread:$0]  (!%p17788_p13), %s11510_s18, 64, %s691_s24, %s11407_s27  }
  0xa8   : > { %s11018_s16 = scalar_lea.hbm %s11518_s19, 32  ;;  %s11023_s28 = scalar_lea.hbm %s17535_s11, 64 }
  0xa9   : > { %p11019_p11 = scmp.ne.s32.totalorder %s11518_s19, %s11018_s16  ;;  %p11024_p6 = scmp.lt.u32.totalorder %s11518_s19, %s17535_s11 }
  0xaa   : > { %p11025_p0 = scmp.lt.u32.totalorder %s11023_s28, %s11018_s16  ;;  %p11027_p2 = scmp.lt.u32.totalorder %s11018_s16, %s11518_s19 }
  0xab   : > { %p11021_p12 = pnand %p11019_p11, %p11413_p8 }
  0xac   : > { %p11026_p4 = por %p11025_p0, %p11024_p6 }
  0xad   : > { %p11022_p1 = pneg %p11021_p12 }
  0xae   : > { %p11028_p3 = por %p11027_p2, %p11026_p4 }
  0xb0   : > { %p11029_p9 = pnand %p11028_p3, %p11022_p1 }
  0xb2   : > { %11032 = shalt.err (!%p11029_p9)
}
  0xb3   : > { %s11033_s13 = scalar_lea.vmem %s710_s20, 32  ;;  %s11231_s18 = smov [#allocation10]  }
  0xb4   : > { %p11034_p5 = scmp.ne.s32.totalorder %s710_s20, %s11033_s13  ;;  %s11038_s24 = sshll.u32 %s11231_s18, 4  ;;  %s11039_s24 = int_to_ptr.vmem [resolvable:$false] %s11038_s24 }
  0xb5   : > { %s11040_s7 = scalar_lea.vmem %s11039_s24, 64  ;;  %p11041_p11 = scmp.lt.s32.totalorder %s710_s20, %s11039_s24 }
  0xb6   : > { %p11036_p7 = pnand %p11034_p5, %p11413_p8  ;;  %p11042_p12 = scmp.lt.s32.totalorder %s11040_s7, %s11033_s13 }
  0xb8   : > { %p11037_p10 = pneg %p11036_p7  ;;  %p11043_p13 = por %p11042_p12, %p11041_p11 }
  0xba   : > { %p11044_p0 = pnand %p11043_p13, %p11037_p10 }
  0xbc   : > { %11047 = shalt.err (!%p11044_p0)
}
  0xbd   : > { %p17789_p6 = scmp.ne.s32.totalorder %s17778_s17, 0  ;;  %s720_s8 = scalar_lea.vmem [#allocation11], %s11405_s23 }
  0xbe   : > { %s728_s21 = sshll.u32 %s720_s8, 4  ;;  %s11568_s2 = scalar_lea.hbm %s17538_s14, %s11386_s26  ;;  %s729_s21 = int_to_ptr.vmem [resolvable:$true] %s728_s21 }
  0xbf   : > { %10373 = dma.hbm_to_vmem [thread:$0]  (!%p17789_p6), %s11518_s19, 32, %s710_s20, %s11407_s27  }
  0xc0   : > { %s11048_s10 = scalar_lea.hbm %s11543_s6, 32  ;;  %s11053_s13 = scalar_lea.hbm %s17536_s12, 64 }
  0xc1   : > { %p11049_p13 = scmp.ne.s32.totalorder %s11543_s6, %s11048_s10  ;;  %p11054_p2 = scmp.lt.u32.totalorder %s11543_s6, %s17536_s12 }
  0xc2   : > { %p11055_p3 = scmp.lt.u32.totalorder %s11053_s13, %s11048_s10  ;;  %p11057_p5 = scmp.lt.u32.totalorder %s11048_s10, %s11543_s6 }
  0xc3   : > { %p11051_p1 = pnand %p11049_p13, %p11413_p8 }
  0xc4   : > { %p11056_p9 = por %p11055_p3, %p11054_p2 }
  0xc5   : > { %p11052_p4 = pneg %p11051_p1 }
  0xc6   : > { %p11058_p7 = por %p11057_p5, %p11056_p9 }
  0xc8   : > { %p11059_p10 = pnand %p11058_p7, %p11052_p4 }
  0xca   : > { %11062 = shalt.err (!%p11059_p10)
}
  0xcb   : > { %s11063_s23 = scalar_lea.vmem %s729_s21, 32  ;;  %s11232_s19 = smov [#allocation11]  }
  0xcc   : > { %p11064_p11 = scmp.ne.s32.totalorder %s729_s21, %s11063_s23  ;;  %s11068_s20 = sshll.u32 %s11232_s19, 4  ;;  %s11069_s20 = int_to_ptr.vmem [resolvable:$false] %s11068_s20 }
  0xcd   : > { %s11070_s7 = scalar_lea.vmem %s11069_s20, 64  ;;  %p11071_p13 = scmp.lt.s32.totalorder %s729_s21, %s11069_s20 }
  0xce   : > { %p11066_p12 = pnand %p11064_p11, %p11413_p8  ;;  %p11072_p1 = scmp.lt.s32.totalorder %s11070_s7, %s11063_s23 }
  0xd0   : > { %p11067_p0 = pneg %p11066_p12  ;;  %p11073_p6 = por %p11072_p1, %p11071_p13 }
  0xd2   : > { %p11074_p2 = pnand %p11073_p6, %p11067_p0 }
  0xd4   : > { %11077 = shalt.err (!%p11074_p2)
}
  0xd5   : > { %p17790_p3 = scmp.ne.s32.totalorder %s17778_s17, 0  ;;  %s738_s8 = scalar_lea.vmem [#allocation12], %s11383_s3 }
  0xd6   : > { %s745_s5 = sshll.u32 %s738_s8, 4  ;;  %s11078_s16 = scalar_lea.hbm %s11568_s2, 16  ;;  %s746_s5 = int_to_ptr.vmem [resolvable:$true] %s745_s5 }
  0xd7   : > { %10376 = dma.hbm_to_vmem [thread:$0]  (!%p17790_p3), %s11543_s6, 32, %s729_s21, %s11407_s27  }
  0xd8   : > { %p11079_p4 = scmp.ne.s32.totalorder %s11568_s2, %s11078_s16  ;;  %s11083_s25 = scalar_lea.hbm %s17538_s14, 32 }
  0xd9   : > { %p11084_p5 = scmp.lt.u32.totalorder %s11568_s2, %s17538_s14  ;;  %p11085_p7 = scmp.lt.u32.totalorder %s11083_s25, %s11078_s16 }
  0xda   : > { %p11081_p9 = pnand %p11079_p4, %p11413_p8  ;;  %p11087_p11 = scmp.lt.u32.totalorder %s11078_s16, %s11568_s2 }
  0xdb   : > { %p11086_p10 = por %p11085_p7, %p11084_p5 }
  0xdc   : > { %p11082_p6 = pneg %p11081_p9 }
  0xdd   : > { %p11088_p12 = por %p11087_p11, %p11086_p10 }
  0xdf   : > { %p11089_p0 = pnand %p11088_p12, %p11082_p6 }
  0xe1   : > { %11092 = shalt.err (!%p11089_p0)
}
  0xe2   : > { %s11093_s6 = scalar_lea.vmem %s746_s5, 16  ;;  %s11233_s21 = smov [#allocation12]  }
  0xe3   : > { %p11094_p13 = scmp.ne.s32.totalorder %s746_s5, %s11093_s6  ;;  %s11098_s24 = sshll.u32 %s11233_s21, 4  ;;  %s11099_s24 = int_to_ptr.vmem [resolvable:$false] %s11098_s24 }
  0xe4   : > { %s11100_s23 = scalar_lea.vmem %s11099_s24, 32  ;;  %p11101_p4 = scmp.lt.s32.totalorder %s746_s5, %s11099_s24 }
  0xe5   : > { %p11096_p1 = pnand %p11094_p13, %p11413_p8  ;;  %p11102_p9 = scmp.lt.s32.totalorder %s11100_s23, %s11093_s6 }
  0xe7   : > { %p11097_p2 = pneg %p11096_p1  ;;  %p11103_p3 = por %p11102_p9, %p11101_p4 }
  0xe9   : > { %p11104_p5 = pnand %p11103_p3, %p11097_p2 }
  0xeb   : > { %11107 = shalt.err (!%p11104_p5)
}
  0xec   : > { %p17791_p7 = scmp.ne.s32.totalorder %s17778_s17, 0  ;;  %s9843_s19 = sadd.s32 4294967295, %s11224_s22  }
  0xed   : > { %p140_p6 = scmp.ne.s32.totalorder %s11208_s30, %s11204_s0  ;;  %p11612_p10 = scmp.eq.s32.totalorder %s9843_s19, 0 }
  0xee   : > { %10379 = dma.hbm_to_vmem [thread:$0]  (!%p17791_p7), %s11568_s2, 16, %s746_s5, %s11407_s27  }
  0xef   : > { %s17792_s20 = scalar_select %p11612_p10, 1, 0 }
  0xf0   : > { %p9845_p3 = scmp.ge.s32.totalorder %s11224_s22, 1  ;;  %p544_p11 = scmp.lt.s32.totalorder %s11224_s22, 3 }
  0xf1   : > { %p11620_p12 = por %p11612_p10, %p140_p6  ;;  %s11234_s0 = smov [#allocation4]  }
  0xf2   : > { %p11624_p0 = pnand %p9845_p3, %p544_p11  ;;  %s559_s2 = sshll.u32 %s11234_s0, 4  ;;  %s11628_s2 = int_to_ptr.vmem [resolvable:$true] %s559_s2 }
  0xf3   : > { %s17793_s7 = scalar_select %p11620_p12, 1, 0 }
  0xf4   : > { %s17794_s8 = scalar_select %p11624_p0, 1, 0 }
  0xf5   : > { %p10351_p13 = pneg %p11624_p0  ;;  %s755_s16 = scalar_lea.vmem [#allocation13], %s11383_s3 }
  0xf6   : > { %s762_s10 = sshll.u32 %s755_s16, 4  ;;  %s11643_s13 = scalar_lea.hbm %s17539_s15, %s11386_s26  ;;  %s11645_s10 = int_to_ptr.vmem [resolvable:$true] %s762_s10 }
  0xf7   : > { %p11634_p1 = pnand %p10351_p13, %p11612_p10  ;;  %s11108_s21 = scalar_lea.hbm %s17528_s4, 2048 }
  0xf8   : > { %p11109_p2 = scmp.ne.s32.totalorder %s17528_s4, %s11108_s21  ;;  %p11115_p6 = scmp.lt.u32.totalorder %s11108_s21, %s17528_s4 }
  0xf9   : > { %p11110_p4 = pneg %p11634_p1 }
  0xfb   : > { %p11111_p9 = pnand %p11110_p4, %p11109_p2 }
  0xfd   : > { %p11112_p5 = pneg %p11111_p9 }
  0xff   : > { %p11117_p3 = pnand %p11115_p6, %p11112_p5 }
 0x101   : > { %11120 = shalt.err (!%p11117_p3)
}
 0x102   : > { %s11121_s26 = scalar_lea.vmem %s11628_s2, 2048  ;;  %p11129_p12 = scmp.lt.s32.totalorder %s11628_s2, %s11628_s2 }
 0x103   : > { %p11122_p11 = scmp.ne.s32.totalorder %s11628_s2, %s11121_s26  ;;  %p11130_p0 = scmp.lt.s32.totalorder %s11121_s26, %s11121_s26 }
 0x105   : > { %p11124_p13 = pnand %p11122_p11, %p11110_p4  ;;  %p11131_p7 = por %p11130_p0, %p11129_p12 }
 0x107   : > { %p11125_p10 = pneg %p11124_p13 }
 0x109   : > { %p11132_p8 = pnand %p11131_p7, %p11125_p10 }
 0x10b   : > { %11135 = shalt.err (!%p11132_p8)
}
 0x10c   : > { %s11235_s16 = smov 128   ;;  %s11236_s28 = smov 8  }
 0x10d   : > { %10354 = dma.hbm_to_vmem [thread:$0]  (!%p11634_p1), %s17528_s4, 2048, %s11628_s2, [#allocation5], %s11235_s16, %s11235_s16, %s11236_s28  }
 0x10e   : > { %s11136_s6 = scalar_lea.hbm %s11643_s13, 16  ;;  %p17796_p4 = scmp.ne.s32.totalorder %s17779_s29, 0 }
 0x10f   : > { %p11137_p2 = scmp.ne.s32.totalorder %s11643_s13, %s11136_s6  ;;  %s11141_s23 = scalar_lea.hbm %s17539_s15, 32 }
 0x110   : > { %p11142_p8 = scmp.lt.u32.totalorder %s11643_s13, %s17539_s15  ;;  %p11143_p10 = scmp.lt.u32.totalorder %s11141_s23, %s11136_s6 }
 0x111   : > { %p11139_p12 = pnand %p11137_p2, %p17796_p4  ;;  %p11145_p9 = scmp.lt.u32.totalorder %s11136_s6, %s11643_s13 }
 0x112   : > { %p11144_p0 = por %p11143_p10, %p11142_p8 }
 0x113   : > { %p11140_p7 = pneg %p11139_p12 }
 0x114   : > { %p11146_p5 = por %p11145_p9, %p11144_p0 }
 0x116   : > { %p11147_p6 = pnand %p11146_p5, %p11140_p7 }
 0x118   : > { %11150 = shalt.err (!%p11147_p6)
}
 0x119   : > { %s11151_s2 = scalar_lea.vmem %s11645_s10, 16  ;;  %s11237_s5 = smov [#allocation13]  }
 0x11a   : > { %p11152_p1 = scmp.ne.s32.totalorder %s11645_s10, %s11151_s2  ;;  %s11156_s26 = sshll.u32 %s11237_s5, 4  ;;  %s11157_s26 = int_to_ptr.vmem [resolvable:$false] %s11156_s26 }
 0x11b   : > { %s11158_s16 = scalar_lea.vmem %s11157_s26, 32  ;;  %p11159_p13 = scmp.lt.s32.totalorder %s11645_s10, %s11157_s26 }
 0x11c   : > { %p11154_p3 = pnand %p11152_p1, %p17796_p4  ;;  %p11160_p2 = scmp.lt.s32.totalorder %s11158_s16, %s11151_s2 }
 0x11e   : > { %p11155_p11 = pneg %p11154_p3  ;;  %p11161_p12 = por %p11160_p2, %p11159_p13 }
 0x120   : > { %p11162_p8 = pnand %p11161_p12, %p11155_p11 }
 0x122   : > { %11165 = shalt.err (!%p11162_p8)
}
 0x123   : > { %p17797_p7 = scmp.ne.s32.totalorder %s17778_s17, 0  ;;  %p17798_p10 = scmp.ne.s32.totalorder %s17794_s8, 0 }
 0x125   : > { %10382 = dma.hbm_to_vmem [thread:$0]  (!%p17797_p7), %s11643_s13, 16, %s11645_s10, %s11407_s27  }
 0x126   : > { %783 = sbr.rel (%p17798_p10) target bundleno = 2525 (0x9dd), region = 96 }
 0x12d   : > { %s785_s29 = sand.u32 1, %s9843_s19   ;;  %s11695_s28 = sand.u32 1, %s11208_s30  }
 0x12e   : > { %s786_s25 = scalar_lea.sflag [#allocation3], %s785_s29  ;;  %s11698_s18 = scalar_lea.vmem [#allocation2], %s11695_s28 }
 0x12f   : > { %p17799_p4 = scmp.ne.s32.totalorder %s17793_s7, 0 }
 0x131   : > { %11191 = dma.done.wait (%p17799_p4), %s786_s25, 16  }
 0x132   : > { %11193 = vsyncadd (%p17799_p4), %s786_s25, 4294967280  ;;  %p17800_p0 = scmp.ne.s32.totalorder %s17792_s20, 0 }
 0x134   : > { %11195 = dma.done.wait (%p17800_p0), [#allocation5], 2048  }
 0x135   : > { %11197 = vsyncadd (%p17800_p0), [#allocation5], 4294965248  ;;  %s11709_s17 = sshll.u32 %s11695_s28, 1 }
 0x136   : > { %s801_s27 = scalar_lea.vmem [#allocation6], %s11709_s17 }
 0x137   : > { %11199 = dma.done.wait (%p17799_p4), %s786_s25, 288  }
 0x138   : > { %11201 = vsyncadd (%p17799_p4), %s786_s25, 4294967008  ;;  %s17801_s19 = sld [smem:[#allocation18_spill]]  ;;  %v17563_v0 = vmov 2   ;;  %v17568_v1 = vmov 1   ;;  %v17561_v2 = vmov 0   ;;  %s17802_s10 = sld [smem:[#allocation182_spill]]  ;;  %v1393_v48 = vlaneseq }
 0x139   : > { %10441 = vset.pattern.permute.xlu0 %v17563_v0  ;;  %10440 = vset.pattern.permute.xlu1 %v17568_v1  ;;  %v10539_v6 = vld [vmem:[#allocation4 + $0x4] ss:$8 sps:$4 sm:$0xff]   ;;  %v10541_v7 = vld [vmem:[#allocation4] ss:$8 sps:$4 sm:$0xff]   ;;  %v10542_v8 = vld [vmem:[#allocation4 + $0x14] ss:$8 sps:$4 sm:$0xff]  }
 0x13a   : > { %2731 = vmatprep.mubr.bf16.mxu0 %v17561_v2  ;;  %2971 = vmatprep.mubr.bf16.mxu1 %v17561_v2  ;;  %v10544_v9 = vld [vmem:[#allocation4 + $0x10] ss:$8 sps:$4 sm:$0xff]   ;;  %v10545_v10 = vld [vmem:[#allocation4 + $0x24] ss:$8 sps:$4 sm:$0xff]   ;;  %v10547_v12 = vld [vmem:[#allocation4 + $0x20] ss:$8 sps:$4 sm:$0xff]  }
 0x13b   : > { %2699 = vmatprep.subr.bf16.mxu0 %v10539_v6  ;;  %10185 = vmatprep.subr.bf16.mxu1 %v10539_v6  ;;  %v10548_v13 = vld [vmem:[#allocation4 + $0x34] ss:$8 sps:$4 sm:$0xff]   ;;  %v10550_v15 = vld [vmem:[#allocation4 + $0x30] ss:$8 sps:$4 sm:$0xff]   ;;  %v10551_v16 = vld [vmem:[#allocation4 + $0x44] ss:$8 sps:$4 sm:$0xff]  }
 0x13c   : > { %2700 = vmatpush1.bf16.msra.mxu0 %v10541_v7  ;;  %10193 = vmatpush1.bf16.msra.mxu1 %v10541_v7  ;;  %v10553_v18 = vld [vmem:[#allocation4 + $0x40] ss:$8 sps:$4 sm:$0xff]   ;;  %v10554_v19 = vld [vmem:[#allocation4 + $0x54] ss:$8 sps:$4 sm:$0xff]   ;;  %v10556_v21 = vld [vmem:[#allocation4 + $0x50] ss:$8 sps:$4 sm:$0xff]  }
 0x13d   : > { %2701 = vmatprep.subr.bf16.mxu0 %v10542_v8  ;;  %10186 = vmatprep.subr.bf16.mxu1 %v10542_v8  ;;  %v10557_v22 = vld [vmem:[#allocation4 + $0x64] ss:$8 sps:$4 sm:$0xff]   ;;  %v10559_v25 = vld [vmem:[#allocation4 + $0x60] ss:$8 sps:$4 sm:$0xff]   ;;  %v10560_v26 = vld [vmem:[#allocation4 + $0x74] ss:$8 sps:$4 sm:$0xff]  }
 0x13e   : > { %p977_p9 = scmp.lt.s32.totalorder %s17801_s19, 1  ;;  %v10562_v28 = vld [vmem:[#allocation4 + $0x70] ss:$8 sps:$4 sm:$0xff]   ;;  %v11848_v50 = vshrl.u32 %v1393_v48, 7  ;;  %s17806_s24 = sld [smem:[#allocation183_spill]] }
 0x13f   : > { %s17808_s0 = sld [smem:[#allocation184_spill]]  ;;  %s810_s5 = scalar_lea.vmem [#allocation7], %s11709_s17 }
 0x140   : > { %s18405_s19 = smov (!%p977_p9, %s17801_s19), 1  ;;  %2702 = vmatpush1.bf16.msra.mxu0 %v10544_v9  ;;  %10194 = vmatpush1.bf16.msra.mxu1 %v10544_v9  ;;  %17803 = vst [vmem:[#allocation21_spill] sm:$0xff] %v11848_v50  ;;  %v11856_v54 = vsub.s32 1, %v11848_v50  ;;  %v11859_v55 = vsub.s32 0, %v11848_v50  ;;  %v11865_v57 = vsub.s32 2, %v11848_v50  ;;  %s17815_s29 = sld [smem:[#allocation188_spill]] }
 0x141   : > { %s10063_s20 = sshll.u32 %s18405_s19, 9  ;;  %2703 = vmatprep.subr.bf16.mxu0 %v10545_v10  ;;  %10187 = vmatprep.subr.bf16.mxu1 %v10545_v10  ;;  %s17817_s7 = sld [smem:[#allocation190_spill]] }
 0x142   : > { %s11730_s13 = scalar_lea.vmem %s17802_s10, %s10063_s20  ;;  %17804 = vst [vmem:[#allocation22_spill] sm:$0xff] %v11856_v54  ;;  %17805 = vst [vmem:[#allocation23_spill] sm:$0xff] %v11859_v55  ;;  %s9873_s8 = sshll.u32 %s11695_s28, 2 }
 0x143   : > { %v1006_v3 = vld [vmem:[%s11730_s13] sm:$0xff]  ;;  %v1008_v4 = vld [vmem:[%s11730_s13 + $0x10] sm:$0xff]  ;;  %v1007_v5 = vld [vmem:[%s11730_s13 + $0x8] sm:$0xff]  ;;  %17807 = vst [vmem:[#allocation24_spill] sm:$0xff] %v11865_v57  ;;  %s819_s10 = scalar_lea.vmem [#allocation8], %s9873_s8  ;;  %s828_s6 = scalar_lea.vmem [#allocation9], %s9873_s8 }
 0x144   : > { %1850 = vperm.xlu0 %10441, %v1006_v3   ;;  %1462 = vperm.xlu1 %10440, %v1006_v3   ;;  %v1009_v11 = vld [vmem:[%s11730_s13 + $0x18] sm:$0xff]  ;;  %v1011_v14 = vld [vmem:[%s11730_s13 + $0x28] sm:$0xff]  ;;  %v1010_v24 = vld [vmem:[%s11730_s13 + $0x20] sm:$0xff]  ;;  %s18019_s23 = sld [smem:[#allocation191_spill]]  ;;  %s837_s8 = scalar_lea.vmem [#allocation10], %s11709_s17 }
 0x145   : > { %2704 = vmatpush1.bf16.msra.mxu0 %v10547_v12  ;;  %v11742_v17 = vld [vmem:[%s11730_s13 + $0x38] sm:$0xff]  ;;  %10195 = vmatpush1.bf16.msra.mxu1 %v10547_v12  ;;  %v11745_v20 = vld [vmem:[%s11730_s13 + $0x48] sm:$0xff]  ;;  %v1012_v32 = vld [vmem:[%s11730_s13 + $0x30] sm:$0xff]  ;;  %s11887_s2 = scalar_lea.vmem %s17808_s0, %s18405_s19  ;;  %s18393_s26 = sld [smem:[#allocation194_spill]] }
 0x146   : > { %2705 = vmatprep.subr.bf16.mxu0 %v10548_v13  ;;  %10188 = vmatprep.subr.bf16.mxu1 %v10548_v13  ;;  %v11750_v23 = vld [vmem:[%s11730_s13 + $0x58] sm:$0xff]  ;;  %v11756_v27 = vld [vmem:[%s11730_s13 + $0x68] sm:$0xff]  ;;  %v1014_v38 = vld [vmem:[%s11730_s13 + $0x40] sm:$0xff] }
 0x147   : > { %v11762_v29 = vld [vmem:[%s11730_s13 + $0x78] sm:$0xff]  ;;  %v11765_v30 = vld [vmem:[%s11730_s13 + $0x88] sm:$0xff]  ;;  %v1016_v41 = vld [vmem:[%s11730_s13 + $0x50] sm:$0xff] }
 0x148   : > { %1858 = vperm.xlu0 %10441, %v1008_v4   ;;  %1466 = vperm.xlu1 %10440, %v1007_v5   ;;  %v11769_v31 = vld [vmem:[%s11730_s13 + $0x98] sm:$0xff]  ;;  %v11775_v33 = vld [vmem:[%s11730_s13 + $0xa8] sm:$0xff]  ;;  %v1018_v42 = vld [vmem:[%s11730_s13 + $0x60] sm:$0xff] }
 0x149   : > { %2706 = vmatpush1.bf16.msra.mxu0 %v10550_v15  ;;  %10196 = vmatpush1.bf16.msra.mxu1 %v10550_v15  ;;  %v11780_v34 = vld [vmem:[%s11730_s13 + $0xb8] sm:$0xff]  ;;  %v11785_v35 = vld [vmem:[%s11730_s13 + $0xc8] sm:$0xff]  ;;  %v1020_v43 = vld [vmem:[%s11730_s13 + $0x70] sm:$0xff] }
 0x14a   : > { %2707 = vmatprep.subr.bf16.mxu0 %v10551_v16  ;;  %10189 = vmatprep.subr.bf16.mxu1 %v10551_v16  ;;  %v11789_v36 = vld [vmem:[%s11730_s13 + $0xd8] sm:$0xff]  ;;  %v11794_v37 = vld [vmem:[%s11730_s13 + $0xe8] sm:$0xff]  ;;  %v11824_v44 = vld [vmem:[%s11730_s13 + $0x80] sm:$0xff] }
 0x14b   : > { %v11801_v39 = vld [vmem:[%s11730_s13 + $0xf8] sm:$0xff]  ;;  %v11806_v40 = vld [vmem:[%s11730_s13 + $0x108] sm:$0xff]  ;;  %v11829_v45 = vld [vmem:[%s11730_s13 + $0x90] sm:$0xff]  ;;  %s994_s16 = scalar_lea.vmem %s18393_s26, %s18405_s19 }
 0x14c   : > { %10445 = vset.pattern.permute.xlu0 %v17561_v2  ;;  %10442 = vset.pattern.permute.xlu1 %v17563_v0  ;;  %v11834_v46 = vld [vmem:[%s11730_s13 + $0xa0] sm:$0xff]  ;;  %v11838_v47 = vld [vmem:[%s11730_s13 + $0xb0] sm:$0xff] }
 0x14d   : > { %1075 = vperm.xlu0 %10445, %v1006_v3   ;;  %1854 = vperm.xlu1 %10442, %v1007_v5   ;;  %v11843_v49 = vld [vmem:[%s11730_s13 + $0xc0] sm:$0xff]  ;;  %v11851_v51 = vld [vmem:[%s11730_s13 + $0xd0] sm:$0xff] }
 0x14e   : > { %2708 = vmatpush1.bf16.msra.mxu0 %v10553_v18  ;;  %10197 = vmatpush1.bf16.msra.mxu1 %v10553_v18  ;;  %v1072_v56 = vld [vmem:[%s17806_s24] sm:$0x7]  ;;  %v11892_v8 = vld [vmem:[%s11730_s13 + $0xf0] sm:$0xff]  ;;  %s18392_s24 = sld [smem:[#allocation193_spill]] }
 0x14f   : > { %2709 = vmatprep.subr.bf16.mxu0 %v10554_v19  ;;  %10190 = vmatprep.subr.bf16.mxu1 %v10554_v19  ;;  %v11869_v60 = vrot.slane %v1072_v56, %v11856_v54  ;;  %v11872_v61 = vrot.slane %v1072_v56, %v11859_v55  ;;  %v11875_v62 = vld [vmem:[%s11730_s13 + $0xe0] sm:$0xff]  ;;  %v11879_v63 = vrot.slane %v1072_v56, %v11865_v57 }
 0x150   : > { %v11896_v10 = vld [vmem:[%s11887_s2] ss:$0 sm:$0xff] }
 0x151   : > { %1080 = vperm.xlu0 %10445, %v1007_v5   ;;  %10443 = vset.pattern.permute.xlu1 %v17561_v2  ;;  %v11902_v16 = vld [vmem:[%s11730_s13 + $0x100] sm:$0xff] }
 0x152   : > { %1085 = vperm.xlu1 %10443, %v1008_v4   ;;  %2710 = vmatpush1.bf16.msra.mxu0 %v10556_v21 }
 0x153   : > { %2711 = vmatprep.subr.bf16.mxu0 %v10557_v22  ;;  %10198 = vmatpush1.bf16.msra.mxu1 %v10556_v21 }
 0x154   : > { %10191 = vmatprep.subr.bf16.mxu1 %v10557_v22  ;;  %s991_s3 = scalar_lea.vmem %s18392_s24, %s18405_s19 }
 0x155   : > { %1090 = vperm.xlu0 %10445, %v1009_v11  }
 0x156   : > { %10444 = vset.pattern.permute.xlu1 %v17568_v1  ;;  %2712 = vmatpush1.bf16.msra.mxu0 %v10559_v25 }
 0x157   : > { %1470 = vperm.xlu1 %10444, %v1008_v4   ;;  %2713 = vmatprep.subr.bf16.mxu0 %v10560_v26 }
 0x158   : > { %10199 = vmatpush1.bf16.msra.mxu1 %v10559_v25 }
 0x159   : > { %1100 = vperm.xlu0 %10445, %v1011_v14   ;;  %10192 = vmatprep.subr.bf16.mxu1 %v10560_v26 }
 0x15a   : > { %2714 = vmatpush1.bf16.msra.mxu0 %v10562_v28 }
 0x15b   : > { %1474 = vperm.xlu1 %10444, %v1009_v11  }
 0x15c   : > { %10200 = vmatpush1.bf16.msra.mxu1 %v10562_v28 }
 0x15d   : > { %1110 = vperm.xlu0 %10445, %v11742_v17  }
 0x15f   : > { %10446 = vset.pattern.permute.xlu1 %v17563_v0 }
 0x160   : > { %1862 = vperm.xlu1 %10446, %v1009_v11  }
 0x161   : > { %1120 = vperm.xlu0 %10445, %v11745_v20  }
 0x164   : > { %10447 = vset.pattern.permute.xlu1 %v17561_v2 }
 0x165   : > { %1130 = vperm.xlu0 %10445, %v11750_v23   ;;  %1095 = vperm.xlu1 %10447, %v1010_v24  }
 0x169   : > { %1140 = vperm.xlu0 %10445, %v11756_v27   ;;  %10448 = vset.pattern.permute.xlu1 %v17568_v1 }
 0x16a   : > { %1478 = vperm.xlu1 %10448, %v1010_v24  }
 0x16d   : > { %1150 = vperm.xlu0 %10445, %v11762_v29  }
 0x16e   : > { %1482 = vperm.xlu1 %10448, %v1011_v14  }
 0x171   : > { %1160 = vperm.xlu0 %10445, %v11765_v30  }
 0x172   : > { %10449 = vset.pattern.permute.xlu1 %v17563_v0 }
 0x173   : > { %1870 = vperm.xlu1 %10449, %v1011_v14  }
 0x175   : > { %1170 = vperm.xlu0 %10445, %v11769_v31  }
 0x177   : > { %10450 = vset.pattern.permute.xlu1 %v17561_v2 }
 0x178   : > { %1105 = vperm.xlu1 %10450, %v1012_v32  }
 0x179   : > { %1180 = vperm.xlu0 %10445, %v11775_v33  }
 0x17c   : > { %10451 = vset.pattern.permute.xlu1 %v17568_v1 }
 0x17d   : > { %1190 = vperm.xlu0 %10445, %v11780_v34   ;;  %1486 = vperm.xlu1 %10451, %v1012_v32  }
 0x181   : > { %1200 = vperm.xlu0 %10445, %v11785_v35   ;;  %1490 = vperm.xlu1 %10451, %v11742_v17  }
 0x185   : > { %1210 = vperm.xlu0 %10445, %v11789_v36   ;;  %10452 = vset.pattern.permute.xlu1 %v17563_v0 }
 0x186   : > { %1878 = vperm.xlu1 %10452, %v11742_v17   ;;  %v11906_v17 = vld [vmem:[%s11698_s18] ss:$0 sm:$0xff] }
 0x189   : > { %1220 = vperm.xlu0 %10445, %v11794_v37  }
 0x18a   : > { %10453 = vset.pattern.permute.xlu1 %v17561_v2 }
 0x18b   : > { %1115 = vperm.xlu1 %10453, %v1014_v38  }
 0x18d   : > { %1230 = vperm.xlu0 %10445, %v11801_v39  }
 0x18f   : > { %10454 = vset.pattern.permute.xlu1 %v17568_v1 }
 0x190   : > { %1494 = vperm.xlu1 %10454, %v1014_v38  }
 0x191   : > { %1240 = vperm.xlu0 %10445, %v11806_v40  }
 0x194   : > { %1498 = vperm.xlu1 %10454, %v11745_v20  }
 0x195   : > { %10490 = vset.pattern.permute.xlu0 %v17563_v0 }
 0x196   : > { %1866 = vperm.xlu0 %10490, %v1010_v24   ;;  %v11913_v24 = vld [vmem:[%s11730_s13 + $0x110] sm:$0xff] }
 0x198   : > { %10455 = vset.pattern.permute.xlu1 %v17563_v0 }
 0x199   : > { %1886 = vperm.xlu1 %10455, %v11745_v20  }
 0x19a   : > { %1874 = vperm.xlu0 %10490, %v1012_v32  }
 0x19d   : > { %10456 = vset.pattern.permute.xlu1 %v17561_v2 }
 0x19e   : > { %1882 = vperm.xlu0 %10490, %v1014_v38   ;;  %1125 = vperm.xlu1 %10456, %v1016_v41   ;;  %v11925_v38 = vld [vmem:[%s11730_s13 + $0x120] sm:$0xff] }
 0x1a2   : > { %10457 = vset.pattern.permute.xlu1 %v17568_v1  ;;  %1890 = vperm.xlu0 %10490, %v1016_v41  }
 0x1a3   : > { %1502 = vperm.xlu1 %10457, %v1016_v41  }
 0x1a6   : > { %1898 = vperm.xlu0 %10490, %v1018_v42  }
 0x1a7   : > { %1506 = vperm.xlu1 %10457, %v11750_v23  }
 0x1aa   : > { %1906 = vperm.xlu0 %10490, %v1020_v43  }
 0x1ab   : > { %10458 = vset.pattern.permute.xlu1 %v17563_v0 }
 0x1ac   : > { %1894 = vperm.xlu1 %10458, %v11750_v23  }
 0x1ae   : > { %1914 = vperm.xlu0 %10490, %v11824_v44  }
 0x1b0   : > { %10459 = vset.pattern.permute.xlu1 %v17561_v2 }
 0x1b1   : > { %1135 = vperm.xlu1 %10459, %v1018_v42  }
 0x1b2   : > { %1922 = vperm.xlu0 %10490, %v11829_v45  }
 0x1b5   : > { %10460 = vset.pattern.permute.xlu1 %v17568_v1 }
 0x1b6   : > { %1510 = vperm.xlu1 %10460, %v1018_v42   ;;  %1930 = vperm.xlu0 %10490, %v11834_v46  }
 0x1ba   : > { %1514 = vperm.xlu1 %10460, %v11756_v27   ;;  %1938 = vperm.xlu0 %10490, %v11838_v47  }
 0x1be   : > { %10461 = vset.pattern.permute.xlu1 %v17563_v0  ;;  %1946 = vperm.xlu0 %10490, %v11843_v49  }
 0x1bf   : > { %1902 = vperm.xlu1 %10461, %v11756_v27  }
 0x1c2   : > { %1954 = vperm.xlu0 %10490, %v11851_v51  }
 0x1c3   : > { %10462 = vset.pattern.permute.xlu1 %v17561_v2  ;;  %v1463_v52 = vpop.permute.xlu1 %1462  ;;  %v1851_v53 = vpop.permute.xlu0 %1850 }
 0x1c4   : > { %1145 = vperm.xlu1 %10462, %v1020_v43   ;;  %v1721_v5 = vmul.f32 %v11869_v60, %v1463_v52  ;;  %v2109_v6 = vmul.f32 %v11879_v63, %v1851_v53 }
 0x1c6   : > { %1962 = vperm.xlu0 %10490, %v11875_v62  }
 0x1c7   : > { %v1467_v58 = vpop.permute.xlu1 %1466  ;;  %v1859_v59 = vpop.permute.xlu0 %1858 }
 0x1c8   : > { %10463 = vset.pattern.permute.xlu1 %v17568_v1  ;;  %v1722_v12 = vmul.f32 %v11869_v60, %v1467_v58  ;;  %v2111_v26 = vmul.f32 %v11879_v63, %v1859_v59 }
 0x1c9   : > { %1518 = vperm.xlu1 %10463, %v1020_v43  }
 0x1ca   : > { %1970 = vperm.xlu0 %10490, %v11892_v8  }
 0x1cc   : > { %v1076_v3 = vpop.permute.xlu0 %1075  ;;  %v1855_v4 = vpop.permute.xlu1 %1854 }
 0x1cd   : > { %v1397_v7 = vmul.f32 %v11872_v61, %v1076_v3  ;;  %1522 = vperm.xlu1 %10463, %v11762_v29   ;;  %v2110_v19 = vmul.f32 %v11879_v63, %v1855_v4 }
 0x1ce   : > { %1978 = vperm.xlu0 %10490, %v11902_v16  }
 0x1cf   : > { %v1785_v9 = vadd.f32 %v1721_v5, %v1397_v7  ;;  %v11936_v5 = vld [vmem:[%s11730_s13 + $0x130] sm:$0xff] }
 0x1d0   : > { %v1081_v11 = vpop.permute.xlu0 %1080 }
 0x1d1   : > { %v2173_v13 = vadd.f32 %v2109_v6, %v1785_v9  ;;  %v1398_v14 = vmul.f32 %v11872_v61, %v1081_v11  ;;  %10464 = vset.pattern.permute.xlu1 %v17563_v0  ;;  %v1086_v15 = vpop.permute.xlu1 %1085 }
 0x1d2   : > { %1910 = vperm.xlu1 %10464, %v11762_v29   ;;  %1986 = vperm.xlu0 %10490, %v11913_v24   ;;  %v1399_v28 = vmul.f32 %v11872_v61, %v1086_v15 }
 0x1d3   : > { %v2243_v18 = vmul.f32 %v11896_v10, %v2173_v13  ;;  %v1786_v20 = vadd.f32 %v1722_v12, %v1398_v14  ;;  %v11946_v13 = vld [vmem:[%s11730_s13 + $0x148] sm:$0xff] }
 0x1d4   : > { %v1091_v21 = vpop.permute.xlu0 %1090 }
 0x1d5   : > { %v2174_v22 = vadd.f32 %v2110_v19, %v1786_v20  ;;  %v2313_v23 = vadd.f32 %v11906_v17, %v2243_v18  ;;  %v1400_v56 = vmul.f32 %v11872_v61, %v1091_v21  ;;  %v11958_v21 = vld [vmem:[%s11730_s13 + $0x150] sm:$0xff] }
 0x1d6   : > { %10465 = vset.pattern.permute.xlu1 %v17561_v2  ;;  %v1471_v25 = vpop.permute.xlu1 %1470  ;;  %1994 = vperm.xlu0 %10490, %v11925_v38  }
 0x1d7   : > { %v2244_v27 = vmul.f32 %v11896_v10, %v2174_v22  ;;  %v1723_v29 = vmul.f32 %v11869_v60, %v1471_v25  ;;  %1155 = vperm.xlu1 %10465, %v11824_v44   ;;  %v2441_v43 = vmul.f32 0.01, %v2313_v23  ;;  %vm2377_vm0 = vcmp.gt.f32.partialorder %v2313_v23, 0.0 }
 0x1d8   : > { %v11922_v32 = vpop.permute.xlu0 %1100 }
 0x1d9   : > { %v1787_v41 = vadd.f32 %v1723_v29, %v1399_v28  ;;  %v2314_v42 = vadd.f32 %v11906_v17, %v2244_v27  ;;  %v2505_v3 = vsel %vm2377_vm0, %v2313_v23, %v2441_v43  ;;  %v1057_v28 = vld [vmem:[%s11730_s13 + $0x198] sm:$0xff]  ;;  %v11972_v43 = vld [vmem:[%s11730_s13 + $0x168] sm:$0xff] }
 0x1da   : > { %v1475_v48 = vpop.permute.xlu1 %1474  ;;  %2002 = vperm.xlu0 %10490, %v11936_v5  }
 0x1db   : > { %v2175_v52 = vadd.f32 %v2111_v26, %v1787_v41  ;;  %10466 = vset.pattern.permute.xlu1 %v17568_v1  ;;  %vm2378_vm1 = vcmp.gt.f32.partialorder %v2314_v42, 0.0  ;;  %v2442_v53 = vmul.f32 0.01, %v2314_v42  ;;  %v1724_v58 = vmul.f32 %v11869_v60, %v1475_v48 }
 0x1dc   : > { %1526 = vperm.xlu1 %10466, %v11824_v44   ;;  %v11933_v59 = vpop.permute.xlu0 %1110 }
 0x1dd   : > { %v2506_v4 = vsel %vm2378_vm1, %v2314_v42, %v2442_v53  ;;  %v2245_v6 = vmul.f32 %v11896_v10, %v2175_v52  ;;  %v1788_v11 = vadd.f32 %v1724_v58, %v1400_v56  ;;  %v11981_v56 = vld [vmem:[%s11730_s13 + $0x180] sm:$0xff] }
 0x1de   : > { %v2571_v7 = vpack.c.bf16 %v2506_v4, %v2505_v3  ;;  %2014 = vperm.xlu0 %10490, %v11946_v13   ;;  %v1049_v3 = vld [vmem:[%s11730_s13 + $0x158] sm:$0xff] }
 0x1df   : > { %v1863_v9 = vpop.permute.xlu1 %1862  ;;  %v2315_v15 = vadd.f32 %v11906_v17, %v2245_v6  ;;  %v1056_v6 = vld [vmem:[%s11730_s13 + $0x190] sm:$0xff] }
 0x1e0   : > { %v2112_v12 = vmul.f32 %v11879_v63, %v1863_v9  ;;  %1530 = vperm.xlu1 %10466, %v11765_v30   ;;  %2732 = vmatmul.mubr.bf16.vlgmr.msra.gmra.mrb[0].mxu0 %v2571_v7  ;;  %v11942_v44 = vpop.permute.xlu0 %1120 }
 0x1e1   : > { %2741 = vmatprep.mubr.bf16.mxu0 %v17561_v2  ;;  %v2443_v23 = vmul.f32 0.01, %v2315_v15  ;;  %vm2379_vm2 = vcmp.gt.f32.partialorder %v2315_v15, 0.0 }
 0x1e2   : > { %v2176_v14 = vadd.f32 %v2112_v12, %v1788_v11  ;;  %2018 = vperm.xlu0 %10490, %v11958_v21   ;;  %v11999_v11 = vld [vmem:[%s11730_s13 + $0x1a0] sm:$0xff] }
 0x1e4   : > { %v2246_v18 = vmul.f32 %v11896_v10, %v2176_v14  ;;  %10467 = vset.pattern.permute.xlu1 %v17563_v0  ;;  %v11952_v19 = vpop.permute.xlu1 %1095  ;;  %v11954_v20 = vpop.permute.xlu0 %1130 }
 0x1e5   : > { %1918 = vperm.xlu1 %10467, %v11765_v30   ;;  %v2507_v30 = vsel %vm2379_vm2, %v2315_v15, %v2443_v23 }
 0x1e6   : > { %v2316_v22 = vadd.f32 %v11906_v17, %v2246_v18  ;;  %2054 = vperm.xlu0 %10490, %v1057_v28   ;;  %v1402_v28 = vmul.f32 %v11872_v61, %v11922_v32 }
 0x1e8   : > { %v11962_v25 = vpop.permute.xlu0 %1140  ;;  %vm2380_vm3 = vcmp.gt.f32.partialorder %v2316_v22, 0.0  ;;  %v2444_v26 = vmul.f32 0.01, %v2316_v22 }
 0x1e9   : > { %10468 = vset.pattern.permute.xlu1 %v17561_v2  ;;  %v11965_v27 = vpop.permute.xlu1 %1478 }
 0x1ea   : > { %1165 = vperm.xlu1 %10468, %v11829_v45   ;;  %v2508_v29 = vsel %vm2380_vm3, %v2316_v22, %v2444_v26  ;;  %2030 = vperm.xlu0 %10490, %v11972_v43   ;;  %v1060_v22 = vld [vmem:[%s11730_s13 + $0x1b0] sm:$0xff] }
 0x1eb   : > { %v2572_v41 = vpack.c.bf16 %v2508_v29, %v2507_v30 }
 0x1ec   : > { %v11969_v42 = vpop.permute.xlu0 %1150 }
 0x1ed   : > { %2742 = vmatmul.mubr.bf16.gmra.mrb[4].mxu0 %v2572_v41  ;;  %v1483_v48 = vpop.permute.xlu1 %1482 }
 0x1ee   : > { %10469 = vset.pattern.permute.xlu1 %v17568_v1  ;;  %2751 = vmatprep.mubr.bf16.mxu0 %v17561_v2  ;;  %v1726_v30 = vmul.f32 %v11869_v60, %v1483_v48 }
 0x1ef   : > { %1534 = vperm.xlu1 %10469, %v11829_v45   ;;  %10517 = vset.pattern.permute.xlu0 %v17568_v1 }
 0x1f0   : > { %v11978_v52 = vpop.permute.xlu0 %1160  ;;  %1654 = vperm.xlu0 %10517, %v11981_v56  }
 0x1f2   : > { %v1871_v53 = vpop.permute.xlu1 %1870 }
 0x1f3   : > { %1538 = vperm.xlu1 %10469, %v11769_v31   ;;  %v2114_v41 = vmul.f32 %v11879_v63, %v1871_v53 }
 0x1f4   : > { %v11985_v58 = vpop.permute.xlu0 %1170  ;;  %1634 = vperm.xlu0 %10517, %v1049_v3   ;;  %v1790_v3 = vadd.f32 %v1726_v30, %v1402_v28  ;;  %v1401_v28 = vmul.f32 %v11872_v61, %v11952_v19 }
 0x1f6   : > { %v2178_v48 = vadd.f32 %v2114_v41, %v1790_v3 }
 0x1f7   : > { %10470 = vset.pattern.permute.xlu1 %v17563_v0  ;;  %v1106_v45 = vpop.permute.xlu1 %1105 }
 0x1f8   : > { %1926 = vperm.xlu1 %10470, %v11769_v31   ;;  %v11991_v4 = vpop.permute.xlu0 %1180  ;;  %1662 = vperm.xlu0 %10517, %v1056_v6   ;;  %v1053_v31 = vld [vmem:[%s11730_s13 + $0x178] sm:$0xff]  ;;  %v2248_v30 = vmul.f32 %v11896_v10, %v2178_v48 }
 0x1fa   : > { %v2318_v19 = vadd.f32 %v11906_v17, %v2248_v30  ;;  %v17810_v30 = vmov 2  }
 0x1fc   : > { %10471 = vset.pattern.permute.xlu1 %v17561_v2  ;;  %v1487_v7 = vpop.permute.xlu1 %1486  ;;  %v11995_v9 = vpop.permute.xlu0 %1190  ;;  %1670 = vperm.xlu0 %10517, %v11999_v11   ;;  %vm2382_vm4 = vcmp.gt.f32.partialorder %v2318_v19, 0.0 }
 0x1fd   : > { %1175 = vperm.xlu1 %10471, %v11834_v46  }
 0x200   : > { %v1491_v12 = vpop.permute.xlu1 %1490  ;;  %v12001_v14 = vpop.permute.xlu0 %1200  ;;  %1650 = vperm.xlu0 %10517, %v1053_v31   ;;  %v1404_v31 = vmul.f32 %v11872_v61, %v11933_v59 }
 0x201   : > { %10472 = vset.pattern.permute.xlu1 %v17568_v1 }
 0x202   : > { %1542 = vperm.xlu1 %10472, %v11834_v46   ;;  %v12019_v46 = vld [vmem:[%s11730_s13 + $0x118] sm:$0xff] }
 0x204   : > { %v12007_v15 = vpop.permute.xlu0 %1210  ;;  %1678 = vperm.xlu0 %10517, %v1060_v22   ;;  %v1728_v22 = vmul.f32 %v11869_v60, %v1491_v12  ;;  %v1403_v12 = vmul.f32 %v11872_v61, %v1106_v45 }
 0x205   : > { %v1879_v18 = vpop.permute.xlu1 %1878 }
 0x206   : > { %1546 = vperm.xlu1 %10472, %v11775_v33   ;;  %v1792_v3 = vadd.f32 %v1728_v22, %v1404_v31 }
 0x208   : > { %v12011_v23 = vpop.permute.xlu0 %1220  ;;  %10521 = vset.pattern.permute.xlu0 %v17561_v2 }
 0x209   : > { %1250 = vperm.xlu0 %10521, %v12019_v46  }
 0x20a   : > { %10473 = vset.pattern.permute.xlu1 %v17563_v0  ;;  %v1116_v26 = vpop.permute.xlu1 %1115 }
 0x20b   : > { %1934 = vperm.xlu1 %10473, %v11775_v33   ;;  %v1725_v33 = vmul.f32 %v11869_v60, %v11965_v27  ;;  %v1727_v27 = vmul.f32 %v11869_v60, %v1487_v7 }
 0x20c   : > { %v12021_v29 = vpop.permute.xlu0 %1230 }
 0x20d   : > { %v1789_v41 = vadd.f32 %v1725_v33, %v1401_v28  ;;  %v1405_v33 = vmul.f32 %v11872_v61, %v1116_v26  ;;  %v12061_v26 = vld [vmem:[%s11730_s13 + $0x128] sm:$0xff] }
 0x20e   : > { %1260 = vperm.xlu0 %10521, %v12061_v26  }
 0x20f   : > { %10474 = vset.pattern.permute.xlu1 %v17561_v2  ;;  %v1495_v6 = vpop.permute.xlu1 %1494  ;;  %v2116_v2 = vmul.f32 %v11879_v63, %v1879_v18  ;;  %v1791_v18 = vadd.f32 %v1727_v27, %v1403_v12 }
 0x210   : > { %1185 = vperm.xlu1 %10474, %v11838_v47   ;;  %v12028_v32 = vpop.permute.xlu0 %1240  ;;  %v1729_v48 = vmul.f32 %v11869_v60, %v1495_v6 }
 0x211   : > { %17809 = vst [vmem:[#allocation25_spill] sm:$0xff] %v12028_v32 }
 0x213   : > { %v1499_v53 = vpop.permute.xlu1 %1498 }
 0x214   : > { %10475 = vset.pattern.permute.xlu1 %v17568_v1  ;;  %v2180_v1 = vadd.f32 %v2116_v2, %v1792_v3  ;;  %v1730_v45 = vmul.f32 %v11869_v60, %v1499_v53 }
 0x215   : > { %v1867_v0 = vpop.permute.xlu0 %1866  ;;  %1550 = vperm.xlu1 %10475, %v11838_v47  }
 0x216   : > { %v2113_v59 = vmul.f32 %v11879_v63, %v1867_v0  ;;  %v1406_v0 = vmul.f32 %v11872_v61, %v11942_v44  ;;  %v2250_v22 = vmul.f32 %v11896_v10, %v2180_v1 }
 0x218   : > { %v2177_v57 = vadd.f32 %v2113_v59, %v1789_v41  ;;  %v1887_v50 = vpop.permute.xlu1 %1886  ;;  %v1793_v41 = vadd.f32 %v1729_v48, %v1405_v33  ;;  %v1794_v27 = vadd.f32 %v1730_v45, %v1406_v0  ;;  %v2320_v3 = vadd.f32 %v11906_v17, %v2250_v22 }
 0x219   : > { %v1875_v32 = vpop.permute.xlu0 %1874  ;;  %1554 = vperm.xlu1 %10475, %v11780_v34   ;;  %v2118_v28 = vmul.f32 %v11879_v63, %v1887_v50 }
 0x21a   : > { %v2247_v47 = vmul.f32 %v11896_v10, %v2177_v57  ;;  %v2115_v7 = vmul.f32 %v11879_v63, %v1875_v32  ;;  %v2446_v32 = vmul.f32 0.01, %v2318_v19  ;;  %vm2384_vm7 = vcmp.gt.f32.partialorder %v2320_v3, 0.0 }
 0x21b   : > { %v2182_v12 = vadd.f32 %v2118_v28, %v1794_v27  ;;  %v2448_v28 = vmul.f32 0.01, %v2320_v3 }
 0x21c   : > { %v2317_v2 = vadd.f32 %v11906_v17, %v2247_v47  ;;  %v2179_v31 = vadd.f32 %v2115_v7, %v1791_v18  ;;  %v2510_v48 = vsel %vm2382_vm4, %v2318_v19, %v2446_v32  ;;  %v17811_v47 = vmov 0  }
 0x21d   : > { %v1883_v6 = vpop.permute.xlu0 %1882  ;;  %10476 = vset.pattern.permute.xlu1 %v17810_v30  ;;  %v1126_v57 = vpop.permute.xlu1 %1125 }
 0x21e   : > { %v2249_v44 = vmul.f32 %v11896_v10, %v2179_v31  ;;  %v2117_v53 = vmul.f32 %v11879_v63, %v1883_v6  ;;  %1942 = vperm.xlu1 %10476, %v11780_v34   ;;  %vm2381_vm5 = vcmp.gt.f32.partialorder %v2317_v2, 0.0  ;;  %v2445_v1 = vmul.f32 0.01, %v2317_v2 }
 0x21f   : > { %v1407_v0 = vmul.f32 %v11872_v61, %v1126_v57  ;;  %v17812_v57 = vmov 1  }
 0x220   : > { %v2319_v50 = vadd.f32 %v11906_v17, %v2249_v44  ;;  %v2181_v59 = vadd.f32 %v2117_v53, %v1793_v41  ;;  %v2509_v18 = vsel %vm2381_vm5, %v2317_v2, %v2445_v1  ;;  %v2252_v2 = vmul.f32 %v11896_v10, %v2182_v12 }
 0x221   : > { %v2573_v34 = vpack.c.bf16 %v2510_v48, %v2509_v18  ;;  %v1891_v33 = vpop.permute.xlu0 %1890  ;;  %v1408_v53 = vmul.f32 %v11872_v61, %v11954_v20  ;;  %v2512_v12 = vsel %vm2384_vm7, %v2320_v3, %v2448_v28 }
 0x222   : > { %10477 = vset.pattern.permute.xlu1 %v17811_v47  ;;  %v1503_v7 = vpop.permute.xlu1 %1502  ;;  %v2251_v31 = vmul.f32 %v11896_v10, %v2181_v59  ;;  %v2447_v6 = vmul.f32 0.01, %v2319_v50  ;;  %vm2383_vm6 = vcmp.gt.f32.partialorder %v2319_v50, 0.0  ;;  %v2119_v19 = vmul.f32 %v11879_v63, %v1891_v33 }
 0x223   : > { %v1731_v45 = vmul.f32 %v11869_v60, %v1503_v7  ;;  %1195 = vperm.xlu1 %10477, %v11843_v49   ;;  %2752 = vmatmul.mubr.bf16.gmra.mrb[8].mxu0 %v2573_v34  ;;  %v2322_v1 = vadd.f32 %v11906_v17, %v2252_v2  ;;  %v12091_v2 = vld [vmem:[%s11730_s13 + $0x138] sm:$0xff] }
 0x224   : > { %2761 = vmatprep.mubr.bf16.mxu0 %v17811_v47  ;;  %v2321_v41 = vadd.f32 %v11906_v17, %v2251_v31  ;;  %v2511_v44 = vsel %vm2383_vm6, %v2319_v50, %v2447_v6  ;;  %1270 = vperm.xlu0 %10521, %v12091_v2  }
 0x225   : > { %v1795_v22 = vadd.f32 %v1731_v45, %v1407_v0  ;;  %v2574_v18 = vpack.c.bf16 %v2512_v12, %v2511_v44  ;;  %vm2386_vm9 = vcmp.gt.f32.partialorder %v2322_v1, 0.0  ;;  %v1899_v28 = vpop.permute.xlu0 %1898 }
 0x226   : > { %v1507_v32 = vpop.permute.xlu1 %1506  ;;  %v2449_v7 = vmul.f32 0.01, %v2321_v41  ;;  %vm2385_vm8 = vcmp.gt.f32.partialorder %v2321_v41, 0.0 }
 0x227   : > { %10478 = vset.pattern.permute.xlu1 %v17812_v57  ;;  %v1732_v27 = vmul.f32 %v11869_v60, %v1507_v32  ;;  %v2183_v59 = vadd.f32 %v2119_v19, %v1795_v22 }
 0x228   : > { %1558 = vperm.xlu1 %10478, %v11843_v49   ;;  %v2450_v49 = vmul.f32 0.01, %v2322_v1  ;;  %v2513_v31 = vsel %vm2385_vm8, %v2321_v41, %v2449_v7  ;;  %1280 = vperm.xlu0 %10521, %v11946_v13  }
 0x229   : > { %v1796_v34 = vadd.f32 %v1732_v27, %v1408_v53  ;;  %v2253_v20 = vmul.f32 %v11896_v10, %v2183_v59  ;;  %v2121_v27 = vmul.f32 %v11879_v63, %v1899_v28 }
 0x22a   : > { %v2514_v6 = vsel %vm2386_vm9, %v2322_v1, %v2450_v49 }
 0x22b   : > { %v1895_v48 = vpop.permute.xlu1 %1894  ;;  %2762 = vmatmul.mubr.bf16.gmra.mrb[12].mxu0 %v2574_v18  ;;  %v2323_v45 = vadd.f32 %v11906_v17, %v2253_v20  ;;  %v2575_v19 = vpack.c.bf16 %v2514_v6, %v2513_v31 }
 0x22c   : > { %v2120_v33 = vmul.f32 %v11879_v63, %v1895_v48  ;;  %1562 = vperm.xlu1 %10478, %v11785_v35   ;;  %2771 = vmatprep.mubr.bf16.mxu0 %v17811_v47 }
 0x22d   : > { %v2451_v44 = vmul.f32 0.01, %v2323_v45  ;;  %vm2387_vm11 = vcmp.gt.f32.partialorder %v2323_v45, 0.0  ;;  %1315 = vperm.xlu0 %10521, %v11981_v56  }
 0x22e   : > { %v2184_v50 = vadd.f32 %v2120_v33, %v1796_v34  ;;  %v1410_v34 = vmul.f32 %v11872_v61, %v11962_v25 }
 0x22f   : > { %v2515_v18 = vsel %vm2387_vm11, %v2323_v45, %v2451_v44 }
 0x230   : > { %v2254_v3 = vmul.f32 %v11896_v10, %v2184_v50  ;;  %10479 = vset.pattern.permute.xlu1 %v17810_v30  ;;  %v1136_v0 = vpop.permute.xlu1 %1135 }
 0x231   : > { %1950 = vperm.xlu1 %10479, %v11785_v35   ;;  %v1409_v35 = vmul.f32 %v11872_v61, %v1136_v0  ;;  %1285 = vperm.xlu0 %10521, %v11958_v21   ;;  %v1907_v0 = vpop.permute.xlu0 %1906 }
 0x232   : > { %v2324_v22 = vadd.f32 %v11906_v17, %v2254_v3 }
 0x233   : > { %2772 = vmatmul.mubr.bf16.gmra.mrb[16].mxu0 %v2575_v19 }
 0x234   : > { %vm2388_vm10 = vcmp.gt.f32.partialorder %v2324_v22, 0.0  ;;  %v2452_v32 = vmul.f32 0.01, %v2324_v22  ;;  %2781 = vmatprep.mubr.bf16.mxu0 %v17811_v47 }
 0x235   : > { %10480 = vset.pattern.permute.xlu1 %v17811_v47  ;;  %v1511_v41 = vpop.permute.xlu1 %1510  ;;  %1300 = vperm.xlu0 %10521, %v11972_v43  }
 0x236   : > { %v1733_v53 = vmul.f32 %v11869_v60, %v1511_v41  ;;  %1205 = vperm.xlu1 %10480, %v11851_v51   ;;  %v2516_v1 = vsel %vm2388_vm10, %v2324_v22, %v2452_v32  ;;  %v2123_v22 = vmul.f32 %v11879_v63, %v1907_v0 }
 0x237   : > { %v2576_v7 = vpack.c.bf16 %v2516_v1, %v2515_v18 }
 0x238   : > { %v1797_v59 = vadd.f32 %v1733_v53, %v1409_v35 }
 0x239   : > { %v1515_v12 = vpop.permute.xlu1 %1514  ;;  %1335 = vperm.xlu0 %10521, %v11999_v11   ;;  %v1412_v11 = vmul.f32 %v11872_v61, %v11969_v42 }
 0x23a   : > { %v2185_v48 = vadd.f32 %v2121_v27, %v1797_v59  ;;  %10481 = vset.pattern.permute.xlu1 %v17812_v57  ;;  %v1734_v33 = vmul.f32 %v11869_v60, %v1515_v12 }
 0x23b   : > { %1566 = vperm.xlu1 %10481, %v11851_v51   ;;  %2782 = vmatmul.mubr.bf16.gmra.mrb[20].mxu0 %v2576_v7 }
 0x23c   : > { %v2255_v20 = vmul.f32 %v11896_v10, %v2185_v48  ;;  %2791 = vmatprep.mubr.bf16.mxu0 %v17811_v47  ;;  %v1798_v49 = vadd.f32 %v1734_v33, %v1410_v34  ;;  %v1915_v34 = vpop.permute.xlu0 %1914 }
 0x23e   : > { %v1903_v13 = vpop.permute.xlu1 %1902  ;;  %v2325_v25 = vadd.f32 %v11906_v17, %v2255_v20 }
 0x23f   : > { %v2122_v50 = vmul.f32 %v11879_v63, %v1903_v13  ;;  %1570 = vperm.xlu1 %10481, %v11789_v36  }
 0x240   : > { %v2453_v45 = vmul.f32 0.01, %v2325_v25  ;;  %vm2389_vm12 = vcmp.gt.f32.partialorder %v2325_v25, 0.0 }
 0x241   : > { %v2186_v31 = vadd.f32 %v2122_v50, %v1798_v49  ;;  %v2125_v49 = vmul.f32 %v11879_v63, %v1915_v34 }
 0x243   : > { %v2256_v51 = vmul.f32 %v11896_v10, %v2186_v31  ;;  %10482 = vset.pattern.permute.xlu1 %v17810_v30  ;;  %v1146_v56 = vpop.permute.xlu1 %1145 }
 0x244   : > { %1958 = vperm.xlu1 %10482, %v11789_v36   ;;  %v1411_v19 = vmul.f32 %v11872_v61, %v1146_v56  ;;  %v2517_v36 = vsel %vm2389_vm12, %v2325_v25, %v2453_v45  ;;  %v1414_v45 = vmul.f32 %v11872_v61, %v11978_v52 }
 0x245   : > { %v2326_v3 = vadd.f32 %v11906_v17, %v2256_v51 }
 0x247   : > { %vm2390_vm13 = vcmp.gt.f32.partialorder %v2326_v3, 0.0  ;;  %v2454_v6 = vmul.f32 0.01, %v2326_v3 }
 0x248   : > { %10483 = vset.pattern.permute.xlu1 %v17811_v47  ;;  %v1519_v21 = vpop.permute.xlu1 %1518 }
 0x249   : > { %v1735_v43 = vmul.f32 %v11869_v60, %v1519_v21  ;;  %1215 = vperm.xlu1 %10483, %v11875_v62   ;;  %v2518_v28 = vsel %vm2390_vm13, %v2326_v3, %v2454_v6 }
 0x24a   : > { %v2577_v32 = vpack.c.bf16 %v2518_v28, %v2517_v36 }
 0x24b   : > { %v1799_v41 = vadd.f32 %v1735_v43, %v1411_v19 }
 0x24c   : > { %2792 = vmatmul.mubr.bf16.gmra.mrb[24].mxu0 %v2577_v32  ;;  %v1523_v44 = vpop.permute.xlu1 %1522 }
 0x24d   : > { %v2187_v35 = vadd.f32 %v2123_v22, %v1799_v41  ;;  %10484 = vset.pattern.permute.xlu1 %v17812_v57  ;;  %2801 = vmatprep.mubr.bf16.mxu0 %v17811_v47  ;;  %v1736_v53 = vmul.f32 %v11869_v60, %v1523_v44  ;;  %v1923_v41 = vpop.permute.xlu0 %1922 }
 0x24e   : > { %1574 = vperm.xlu1 %10484, %v11875_v62  }
 0x24f   : > { %v2257_v27 = vmul.f32 %v11896_v10, %v2187_v35  ;;  %v1800_v59 = vadd.f32 %v1736_v53, %v1412_v11  ;;  %v2127_v53 = vmul.f32 %v11879_v63, %v1923_v41 }
 0x251   : > { %v1911_v1 = vpop.permute.xlu1 %1910  ;;  %v2327_v18 = vadd.f32 %v11906_v17, %v2257_v27 }
 0x252   : > { %v2124_v12 = vmul.f32 %v11879_v63, %v1911_v1  ;;  %1578 = vperm.xlu1 %10484, %v11794_v37  }
 0x253   : > { %v2455_v33 = vmul.f32 0.01, %v2327_v18  ;;  %vm2391_vm14 = vcmp.gt.f32.partialorder %v2327_v18, 0.0 }
 0x254   : > { %v2188_v48 = vadd.f32 %v2124_v12, %v1800_v59 }
 0x255   : > { %v2519_v31 = vsel %vm2391_vm14, %v2327_v18, %v2455_v33 }
 0x256   : > { %v2258_v7 = vmul.f32 %v11896_v10, %v2188_v48  ;;  %10485 = vset.pattern.permute.xlu1 %v17810_v30  ;;  %v1156_v42 = vpop.permute.xlu1 %1155 }
 0x257   : > { %1966 = vperm.xlu1 %10485, %v11794_v37   ;;  %v1413_v50 = vmul.f32 %v11872_v61, %v1156_v42  ;;  %v1416_v42 = vmul.f32 %v11872_v61, %v11985_v58 }
 0x258   : > { %v2328_v62 = vadd.f32 %v11906_v17, %v2258_v7 }
 0x25a   : > { %vm2392_vm15 = vcmp.gt.f32.partialorder %v2328_v62, 0.0  ;;  %v2456_v20 = vmul.f32 0.01, %v2328_v62 }
 0x25b   : > { %10486 = vset.pattern.permute.xlu1 %v17811_v47  ;;  %v1527_v13 = vpop.permute.xlu1 %1526 }
 0x25c   : > { %v1737_v25 = vmul.f32 %v11869_v60, %v1527_v13  ;;  %1225 = vperm.xlu1 %10486, %v11892_v8   ;;  %v2520_v37 = vsel %vm2392_vm15, %v2328_v62, %v2456_v20 }
 0x25d   : > { %v2578_v51 = vpack.c.bf16 %v2520_v37, %v2519_v31  ;;  %v1931_v31 = vpop.permute.xlu0 %1930 }
 0x25e   : > { %v1801_v56 = vadd.f32 %v1737_v25, %v1413_v50 }
 0x25f   : > { %2802 = vmatmul.mubr.bf16.gmra.mrb[28].mxu0 %v2578_v51  ;;  %v1531_v3 = vpop.permute.xlu1 %1530 }
 0x260   : > { %v2189_v0 = vadd.f32 %v2125_v49, %v1801_v56  ;;  %10487 = vset.pattern.permute.xlu1 %v17812_v57  ;;  %2811 = vmatprep.mubr.bf16.mxu0 %v17811_v47  ;;  %v1738_v6 = vmul.f32 %v11869_v60, %v1531_v3  ;;  %v2129_v3 = vmul.f32 %v11879_v63, %v1931_v31 }
 0x261   : > { %1582 = vperm.xlu1 %10487, %v11892_v8  }
 0x262   : > { %v2259_v21 = vmul.f32 %v11896_v10, %v2189_v0  ;;  %v1802_v19 = vadd.f32 %v1738_v6, %v1414_v45 }
 0x264   : > { %v1919_v22 = vpop.permute.xlu1 %1918  ;;  %v2329_v36 = vadd.f32 %v11906_v17, %v2259_v21 }
 0x265   : > { %v2126_v43 = vmul.f32 %v11879_v63, %v1919_v22  ;;  %1586 = vperm.xlu1 %10487, %v11801_v39  }
 0x266   : > { %v2457_v44 = vmul.f32 0.01, %v2329_v36  ;;  %vm2393_vm0 = vcmp.gt.f32.partialorder %v2329_v36, 0.0 }
 0x267   : > { %v2190_v28 = vadd.f32 %v2126_v43, %v1802_v19 }
 0x268   : > { %v2521_v59 = vsel %vm2393_vm0, %v2329_v36, %v2457_v44  ;;  %v1418_v36 = vmul.f32 %v11872_v61, %v11991_v4 }
 0x269   : > { %v2260_v32 = vmul.f32 %v11896_v10, %v2190_v28  ;;  %10488 = vset.pattern.permute.xlu1 %v17810_v30  ;;  %v1166_v52 = vpop.permute.xlu1 %1165 }
 0x26a   : > { %1974 = vperm.xlu1 %10488, %v11801_v39   ;;  %v1415_v27 = vmul.f32 %v11872_v61, %v1166_v52 }
 0x26b   : > { %v2330_v8 = vadd.f32 %v11906_v17, %v2260_v32 }
 0x26d   : > { %vm2394_vm1 = vcmp.gt.f32.partialorder %v2330_v8, 0.0  ;;  %v2458_v35 = vmul.f32 0.01, %v2330_v8 }
 0x26e   : > { %10489 = vset.pattern.permute.xlu1 %v17811_v47  ;;  %v1535_v11 = vpop.permute.xlu1 %1534 }
 0x26f   : > { %v1739_v1 = vmul.f32 %v11869_v60, %v1535_v11  ;;  %1235 = vperm.xlu1 %10489, %v11902_v16   ;;  %v2522_v39 = vsel %vm2394_vm1, %v2330_v8, %v2458_v35 }
 0x270   : > { %v2579_v12 = vpack.c.bf16 %v2522_v39, %v2521_v59 }
 0x271   : > { %v1803_v18 = vadd.f32 %v1739_v1, %v1415_v27 }
 0x272   : > { %2812 = vmatmul.mubr.bf16.gmra.mrb[32].mxu0 %v2579_v12  ;;  %v1539_v48 = vpop.permute.xlu1 %1538 }
 0x273   : > { %v2191_v7 = vadd.f32 %v2127_v53, %v1803_v18  ;;  %10491 = vset.pattern.permute.xlu1 %v17812_v57  ;;  %2821 = vmatprep.mubr.bf16.mxu0 %v17811_v47  ;;  %v1740_v62 = vmul.f32 %v11869_v60, %v1539_v48  ;;  %v1939_v53 = vpop.permute.xlu0 %1938 }
 0x274   : > { %1590 = vperm.xlu1 %10491, %v11902_v16   ;;  %v2131_v39 = vmul.f32 %v11879_v63, %v1939_v53 }
 0x275   : > { %v2261_v34 = vmul.f32 %v11896_v10, %v2191_v7  ;;  %v1804_v20 = vadd.f32 %v1740_v62, %v1416_v42 }
 0x277   : > { %v1927_v33 = vpop.permute.xlu1 %1926  ;;  %v2331_v49 = vadd.f32 %v11906_v17, %v2261_v34  ;;  %v1947_v31 = vpop.permute.xlu0 %1946 }
 0x278   : > { %v2128_v13 = vmul.f32 %v11879_v63, %v1927_v33  ;;  %1594 = vperm.xlu1 %10491, %v11806_v40   ;;  %v1420_v33 = vmul.f32 %v11872_v61, %v11995_v9 }
 0x279   : > { %v2459_v37 = vmul.f32 0.01, %v2331_v49  ;;  %vm2395_vm2 = vcmp.gt.f32.partialorder %v2331_v49, 0.0 }
 0x27a   : > { %v2192_v50 = vadd.f32 %v2128_v13, %v1804_v20 }
 0x27b   : > { %v2523_v6 = vsel %vm2395_vm2, %v2331_v49, %v2459_v37  ;;  %v12212_v37 = vld [vmem:[%s11730_s13 + $0x170] sm:$0xff] }
 0x27c   : > { %v2262_v25 = vmul.f32 %v11896_v10, %v2192_v50  ;;  %10492 = vset.pattern.permute.xlu1 %v17810_v30  ;;  %v1176_v58 = vpop.permute.xlu1 %1175  ;;  %1305 = vperm.xlu0 %10521, %v12212_v37  }
 0x27d   : > { %1982 = vperm.xlu1 %10492, %v11806_v40   ;;  %v1417_v0 = vmul.f32 %v11872_v61, %v1176_v58 }
 0x27e   : > { %v2332_v16 = vadd.f32 %v11906_v17, %v2262_v25 }
 0x280   : > { %vm2396_vm3 = vcmp.gt.f32.partialorder %v2332_v16, 0.0  ;;  %v2460_v51 = vmul.f32 0.01, %v2332_v16 }
 0x281   : > { %10493 = vset.pattern.permute.xlu1 %v17811_v47  ;;  %v1543_v56 = vpop.permute.xlu1 %1542 }
 0x282   : > { %v1741_v45 = vmul.f32 %v11869_v60, %v1543_v56  ;;  %1245 = vperm.xlu1 %10493, %v11913_v24   ;;  %v2524_v40 = vsel %vm2396_vm3, %v2332_v16, %v2460_v51 }
 0x283   : > { %v2580_v21 = vpack.c.bf16 %v2524_v40, %v2523_v6  ;;  %v2133_v40 = vmul.f32 %v11879_v63, %v1947_v31 }
 0x284   : > { %v1805_v22 = vadd.f32 %v1741_v45, %v1417_v0  ;;  %v1063_v0 = vld [vmem:[%s11730_s13 + $0x1c8] sm:$0xff] }
 0x285   : > { %2822 = vmatmul.mubr.bf16.gmra.mrb[36].mxu0 %v2580_v21  ;;  %v1547_v19 = vpop.permute.xlu1 %1546  ;;  %1360 = vperm.xlu0 %10521, %v1063_v0   ;;  %v12283_v0 = vld [vmem:[%s11730_s13 + $0x140] sm:$0xff] }
 0x286   : > { %v2193_v43 = vadd.f32 %v2129_v3, %v1805_v22  ;;  %10494 = vset.pattern.permute.xlu1 %v17812_v57  ;;  %2831 = vmatprep.mubr.bf16.mxu0 %v17811_v47  ;;  %v1742_v28 = vmul.f32 %v11869_v60, %v1547_v19  ;;  %v12219_v3 = vpop.permute.xlu0 %1954 }
 0x287   : > { %1598 = vperm.xlu1 %10494, %v11913_v24  }
 0x288   : > { %v2263_v32 = vmul.f32 %v11896_v10, %v2193_v43  ;;  %v1806_v8 = vadd.f32 %v1742_v28, %v1418_v36  ;;  %v1065_v36 = vld [vmem:[%s11730_s13 + $0x1d8] sm:$0xff] }
 0x289   : > { %1370 = vperm.xlu0 %10521, %v1065_v36  }
 0x28a   : > { %v1935_v52 = vpop.permute.xlu1 %1934  ;;  %v2333_v44 = vadd.f32 %v11906_v17, %v2263_v32  ;;  %v12227_v43 = vpop.permute.xlu0 %1962 }
 0x28b   : > { %v2130_v41 = vmul.f32 %v11879_v63, %v1935_v52  ;;  %1602 = vperm.xlu1 %10494, %v12019_v46  }
 0x28c   : > { %v2461_v27 = vmul.f32 0.01, %v2333_v44  ;;  %vm2397_vm4 = vcmp.gt.f32.partialorder %v2333_v44, 0.0 }
 0x28d   : > { %v2194_v35 = vadd.f32 %v2130_v41, %v1806_v8  ;;  %v1422_v41 = vmul.f32 %v11872_v61, %v12001_v14  ;;  %10528 = vset.pattern.permute.xlu0 %v17810_v30 }
 0x28e   : > { %v2525_v48 = vsel %vm2397_vm4, %v2333_v44, %v2461_v27  ;;  %2034 = vperm.xlu0 %10528, %v12212_v37  }
 0x28f   : > { %v2264_v11 = vmul.f32 %v11896_v10, %v2194_v35  ;;  %10495 = vset.pattern.permute.xlu1 %v17810_v30  ;;  %v1186_v4 = vpop.permute.xlu1 %1185  ;;  %v2569_v35 = vld [vmem:[%s801_s27] sm:$0x3] }
 0x290   : > { %1990 = vperm.xlu1 %10495, %v12019_v46   ;;  %v1419_v12 = vmul.f32 %v11872_v61, %v1186_v4  ;;  %v12240_v4 = vpop.permute.xlu0 %1970  ;;  %v12246_v27 = vrot.slane %v2569_v35, %v11859_v55 }
 0x291   : > { %v2334_v24 = vadd.f32 %v11906_v17, %v2264_v11 }
 0x293   : > { %vm2398_vm5 = vcmp.gt.f32.partialorder %v2334_v24, 0.0  ;;  %v2462_v1 = vmul.f32 0.01, %v2334_v24 }
 0x294   : > { %10496 = vset.pattern.permute.xlu1 %v17811_v47  ;;  %v1551_v59 = vpop.permute.xlu1 %1550 }
 0x295   : > { %v1743_v18 = vmul.f32 %v11869_v60, %v1551_v59  ;;  %1255 = vperm.xlu1 %10496, %v11925_v38   ;;  %v2526_v46 = vsel %vm2398_vm5, %v2334_v24, %v2462_v1  ;;  %v2570_v24 = vld [vmem:[%s810_s5] sm:$0x3]  ;;  %v12251_v59 = vrot.slane %v2569_v35, %v11856_v54 }
 0x296   : > { %v2581_v7 = vpack.c.bf16 %v2526_v46, %v2525_v48  ;;  %v12257_v48 = vrot.slane %v2570_v24, %v11856_v54 }
 0x297   : > { %v1807_v42 = vadd.f32 %v1743_v18, %v1419_v12 }
 0x298   : > { %2832 = vmatmul.mubr.bf16.gmra.mrb[40].mxu0 %v2581_v7  ;;  %v1555_v62 = vpop.permute.xlu1 %1554 }
 0x299   : > { %v2195_v34 = vadd.f32 %v2131_v39, %v1807_v42  ;;  %10497 = vset.pattern.permute.xlu1 %v17812_v57  ;;  %2841 = vmatprep.mubr.bf16.mxu0 %v17811_v47  ;;  %v1744_v20 = vmul.f32 %v11869_v60, %v1555_v62  ;;  %v12254_v39 = vrot.slane %v2570_v24, %v11859_v55  ;;  %v12260_v42 = vpop.permute.xlu0 %1978  ;;  %v12263_v62 = vld [vmem:[%s11730_s13 + $0x1b8] sm:$0xff] }
 0x29a   : > { %1606 = vperm.xlu1 %10497, %v11925_v38   ;;  %2070 = vperm.xlu0 %10528, %v12263_v62  }
 0x29b   : > { %v2265_v13 = vmul.f32 %v11896_v10, %v2195_v34  ;;  %v1808_v50 = vadd.f32 %v1744_v20, %v1420_v33 }
 0x29d   : > { %v1943_v49 = vpop.permute.xlu1 %1942  ;;  %v2335_v58 = vadd.f32 %v11906_v17, %v2265_v13 }
 0x29e   : > { %v2132_v25 = vmul.f32 %v11879_v63, %v1943_v49  ;;  %1610 = vperm.xlu1 %10497, %v12061_v26  }
 0x29f   : > { %v2463_v56 = vmul.f32 0.01, %v2335_v58  ;;  %vm2399_vm6 = vcmp.gt.f32.partialorder %v2335_v58, 0.0 }
 0x2a0   : > { %v2196_v16 = vadd.f32 %v2132_v25, %v1808_v50 }
 0x2a1   : > { %v2527_v22 = vsel %vm2399_vm6, %v2335_v58, %v2463_v56  ;;  %v12273_v58 = vld [vmem:[%s11698_s18] ss:$0 sm:$0xff] }
 0x2a2   : > { %v2266_v9 = vmul.f32 %v11896_v10, %v2196_v16  ;;  %10498 = vset.pattern.permute.xlu1 %v17810_v30  ;;  %v1196_v38 = vpop.permute.xlu1 %1195 }
 0x2a3   : > { %1998 = vperm.xlu1 %10498, %v12061_v26   ;;  %v1421_v21 = vmul.f32 %v11872_v61, %v1196_v38 }
 0x2a4   : > { %v2336_v51 = vadd.f32 %v11906_v17, %v2266_v9  ;;  %v2135_v9 = vmul.f32 %v11879_v63, %v12219_v3 }
 0x2a6   : > { %vm2400_vm7 = vcmp.gt.f32.partialorder %v2336_v51, 0.0  ;;  %v2464_v45 = vmul.f32 0.01, %v2336_v51 }
 0x2a7   : > { %10499 = vset.pattern.permute.xlu1 %v17811_v47  ;;  %v1559_v6 = vpop.permute.xlu1 %1558 }
 0x2a8   : > { %v1745_v26 = vmul.f32 %v11869_v60, %v1559_v6  ;;  %1265 = vperm.xlu1 %10499, %v11936_v5   ;;  %v2528_v19 = vsel %vm2400_vm7, %v2336_v51, %v2464_v45 }
 0x2a9   : > { %v2582_v28 = vpack.c.bf16 %v2528_v19, %v2527_v22 }
 0x2aa   : > { %v1809_v32 = vadd.f32 %v1745_v26, %v1421_v21  ;;  %v12287_v26 = vpop.permute.xlu0 %1986 }
 0x2ab   : > { %2842 = vmatmul.mubr.bf16.gmra.mrb[44].mxu0 %v2582_v28  ;;  %v1563_v52 = vpop.permute.xlu1 %1562 }
 0x2ac   : > { %v2197_v8 = vadd.f32 %v2133_v40, %v1809_v32  ;;  %10500 = vset.pattern.permute.xlu1 %v17812_v57  ;;  %2851 = vmatprep.mubr.bf16.mxu0 %v17811_v47  ;;  %v1746_v44 = vmul.f32 %v11869_v60, %v1563_v52 }
 0x2ad   : > { %1614 = vperm.xlu1 %10500, %v11936_v5  }
 0x2ae   : > { %v2267_v11 = vmul.f32 %v11896_v10, %v2197_v8  ;;  %v1810_v5 = vadd.f32 %v1746_v44, %v1422_v41 }
 0x2b0   : > { %v2337_v53 = vadd.f32 %v11906_v17, %v2267_v11  ;;  %v1951_v14 = vpop.permute.xlu1 %1950 }
 0x2b1   : > { %v2134_v1 = vmul.f32 %v11879_v63, %v1951_v14  ;;  %1618 = vperm.xlu1 %10500, %v12091_v2   ;;  %v1424_v14 = vmul.f32 %v11872_v61, %v12007_v15 }
 0x2b2   : > { %v2465_v7 = vmul.f32 0.01, %v2337_v53  ;;  %vm2401_vm8 = vcmp.gt.f32.partialorder %v2337_v53, 0.0 }
 0x2b3   : > { %v2198_v12 = vadd.f32 %v2134_v1, %v1810_v5  ;;  %v2733_v18 = vpop.f32.mrb[0].mxu0 }
 0x2b4   : > { %v3063_v17 = vmul.f32 %v12246_v27, %v2733_v18  ;;  %v2735_v46 = vpop.f32.mrb[1].mxu0  ;;  %v2529_v45 = vsel %vm2401_vm8, %v2337_v53, %v2465_v7  ;;  %v12305_v18 = vld [vmem:[%s11887_s2] ss:$0 sm:$0xff] }
 0x2b5   : > { %v2268_v34 = vmul.f32 %v11896_v10, %v2198_v12  ;;  %v3064_v33 = vmul.f32 %v12251_v59, %v2735_v46  ;;  %v2737_v20 = vpop.f32.mrb[2].mxu0  ;;  %10501 = vset.pattern.permute.xlu1 %v17810_v30  ;;  %v1206_v13 = vpop.permute.xlu1 %1205 }
 0x2b6   : > { %v3202_v49 = vadd.f32 %v12254_v39, %v3063_v17  ;;  %v3065_v50 = vmul.f32 %v12246_v27, %v2737_v20  ;;  %v2739_v25 = vpop.f32.mrb[3].mxu0  ;;  %2006 = vperm.xlu1 %10501, %v12091_v2   ;;  %v1423_v56 = vmul.f32 %v11872_v61, %v1206_v13  ;;  %v12302_v12 = vpop.permute.xlu0 %1994 }
 0x2b7   : > { %v2338_v10 = vadd.f32 %v12273_v58, %v2268_v34  ;;  %v3203_v16 = vadd.f32 %v12257_v48, %v3064_v33  ;;  %v3066_v31 = vmul.f32 %v12251_v59, %v2739_v25 }
 0x2b8   : > { %v3458_v38 = vmul.f32 0.01, %v3202_v49  ;;  %v3204_v51 = vadd.f32 %v12254_v39, %v3065_v50  ;;  %vm3330_vm9 = vcmp.gt.f32.partialorder %v3202_v49, 0.0 }
 0x2b9   : > { %v3205_v2 = vadd.f32 %v12257_v48, %v3066_v31  ;;  %vm2402_vm10 = vcmp.gt.f32.partialorder %v2338_v10, 0.0  ;;  %v2466_v6 = vmul.f32 0.01, %v2338_v10  ;;  %vm3331_vm12 = vcmp.gt.f32.partialorder %v3203_v16, 0.0  ;;  %v10781_v31 = vld [vmem:[%s11730_s13 + $0x148] sm:$0xff] }
 0x2ba   : > { %vm3332_vm11 = vcmp.gt.f32.partialorder %v3204_v51, 0.0  ;;  %v3460_v40 = vmul.f32 0.01, %v3204_v51  ;;  %10502 = vset.pattern.permute.xlu1 %v17811_v47  ;;  %v1567_v21 = vpop.permute.xlu1 %1566  ;;  %v3459_v3 = vmul.f32 0.01, %v3203_v16  ;;  %v3586_v28 = vsel %vm3330_vm9, %v3202_v49, %v3458_v38 }
 0x2bb   : > { %v1747_v22 = vmul.f32 %v11869_v60, %v1567_v21  ;;  %1275 = vperm.xlu1 %10502, %v12283_v0   ;;  %v2530_v19 = vsel %vm2402_vm10, %v2338_v10, %v2466_v6  ;;  %vm3333_vm13 = vcmp.gt.f32.partialorder %v3205_v2, 0.0  ;;  %v3461_v36 = vmul.f32 0.01, %v3205_v2 }
 0x2bc   : > { %v3588_v32 = vsel %vm3332_vm11, %v3204_v51, %v3460_v40  ;;  %v2583_v52 = vpack.c.bf16 %v2530_v19, %v2529_v45  ;;  %v3587_v44 = vsel %vm3331_vm12, %v3203_v16, %v3459_v3  ;;  %v1055_v45 = vld [vmem:[%s11730_s13 + $0x188] sm:$0xff]  ;;  %v12323_v40 = vld [vmem:[%s11730_s13 + $0x1c0] sm:$0xff] }
 0x2bd   : > { %v12292_v8 = vpack.c.bf16 %v3588_v32, %v3586_v28  ;;  %v1811_v41 = vadd.f32 %v1747_v22, %v1423_v56  ;;  %v3589_v35 = vsel %vm3333_vm13, %v3205_v2, %v3461_v36  ;;  %v12320_v2 = vpop.permute.xlu0 %2002  ;;  %2074 = vperm.xlu0 %10528, %v12323_v40  }
 0x2be   : > { %2852 = vmatmul.mubr.bf16.gmra.mrb[48].mxu0 %v2583_v52  ;;  %v1571_v11 = vpop.permute.xlu1 %1570  ;;  %v12294_v24 = vpack.c.bf16 %v3589_v35, %v3587_v44 }
 0x2bf   : > { %v2199_v53 = vadd.f32 %v2135_v9, %v1811_v41  ;;  %10503 = vset.pattern.permute.xlu1 %v17812_v57  ;;  %2861 = vmatprep.mubr.bf16.mxu0 %v17811_v47  ;;  %v1748_v5 = vmul.f32 %v11869_v60, %v1571_v11 }
 0x2c0   : > { %v2743_v1 = vpop.f32.mrb[4].mxu0  ;;  %1622 = vperm.xlu1 %10503, %v12283_v0  }
 0x2c1   : > { %v2269_v17 = vmul.f32 %v12305_v18, %v2199_v53  ;;  %v3067_v46 = vmul.f32 %v12246_v27, %v2743_v1  ;;  %v2745_v7 = vpop.f32.mrb[5].mxu0  ;;  %v1812_v50 = vadd.f32 %v1748_v5, %v1424_v14  ;;  %v12335_v5 = vpop.permute.xlu0 %2014  ;;  %v2137_v1 = vmul.f32 %v11879_v63, %v12227_v43 }
 0x2c2   : > { %v3068_v34 = vmul.f32 %v12251_v59, %v2745_v7  ;;  %v2747_v33 = vpop.f32.mrb[6].mxu0 }
 0x2c3   : > { %v3206_v15 = vadd.f32 %v12254_v39, %v3067_v46  ;;  %v3069_v20 = vmul.f32 %v12246_v27, %v2747_v33  ;;  %v2749_v13 = vpop.f32.mrb[7].mxu0  ;;  %v1959_v49 = vpop.permute.xlu1 %1958  ;;  %v2339_v9 = vadd.f32 %v12273_v58, %v2269_v17 }
 0x2c4   : > { %v3207_v25 = vadd.f32 %v12257_v48, %v3068_v34  ;;  %v3070_v10 = vmul.f32 %v12251_v59, %v2749_v13  ;;  %v2136_v16 = vmul.f32 %v11879_v63, %v1959_v49  ;;  %1626 = vperm.xlu1 %10503, %v10781_v31  }
 0x2c5   : > { %v3208_v38 = vadd.f32 %v12254_v39, %v3069_v20  ;;  %vm3334_vm14 = vcmp.gt.f32.partialorder %v3206_v15, 0.0  ;;  %v3462_v21 = vmul.f32 0.01, %v3206_v15  ;;  %v2467_v28 = vmul.f32 0.01, %v2339_v9  ;;  %v12344_v43 = vpop.permute.xlu0 %2018 }
 0x2c6   : > { %v3209_v51 = vadd.f32 %v12257_v48, %v3070_v10  ;;  %v2200_v56 = vadd.f32 %v2136_v16, %v1812_v50  ;;  %vm3335_vm15 = vcmp.gt.f32.partialorder %v3207_v25, 0.0  ;;  %v3463_v6 = vmul.f32 0.01, %v3207_v25 }
 0x2c7   : > { %vm3336_vm0 = vcmp.gt.f32.partialorder %v3208_v38, 0.0  ;;  %v3464_v3 = vmul.f32 0.01, %v3208_v38  ;;  %v3590_v32 = vsel %vm3334_vm14, %v3206_v15, %v3462_v21  ;;  %vm2403_vm2 = vcmp.gt.f32.partialorder %v2339_v9, 0.0  ;;  %v12357_v21 = vld [vmem:[%s11730_s13 + $0x1d0] sm:$0xff] }
 0x2c8   : > { %v2270_v22 = vmul.f32 %v12305_v18, %v2200_v56  ;;  %10504 = vset.pattern.permute.xlu1 %v17811_v47  ;;  %v1216_v19 = vpop.permute.xlu1 %1215  ;;  %vm3337_vm1 = vcmp.gt.f32.partialorder %v3209_v51, 0.0  ;;  %v3465_v36 = vmul.f32 0.01, %v3209_v51  ;;  %v3591_v44 = vsel %vm3335_vm15, %v3207_v25, %v3463_v6  ;;  %2082 = vperm.xlu0 %10528, %v12357_v21  }
 0x2c9   : > { %1320 = vperm.xlu1 %10504, %v1055_v45   ;;  %v3592_v52 = vsel %vm3336_vm0, %v3208_v38, %v3464_v3  ;;  %v1425_v46 = vmul.f32 %v11872_v61, %v1216_v19  ;;  %v2531_v34 = vsel %vm2403_vm2, %v2339_v9, %v2467_v28  ;;  %v1426_v50 = vmul.f32 %v11872_v61, %v12011_v23  ;;  %v10782_v38 = vld [vmem:[%s11730_s13 + $0x180] sm:$0xff] }
 0x2ca   : > { %v2340_v41 = vadd.f32 %v12273_v58, %v2270_v22  ;;  %v3593_v35 = vsel %vm3337_vm1, %v3209_v51, %v3465_v36  ;;  %v12331_v11 = vpack.c.bf16 %v3592_v52, %v3590_v32  ;;  %v12353_v51 = vpop.permute.xlu0 %2054  ;;  %v2139_v28 = vmul.f32 %v11879_v63, %v12240_v4  ;;  %v12368_v32 = vld [vmem:[%s11730_s13 + $0x158] sm:$0xff] }
 0x2cb   : > { %v12333_v53 = vpack.c.bf16 %v3593_v35, %v3591_v44 }
 0x2cc   : > { %vm2404_vm3 = vcmp.gt.f32.partialorder %v2340_v41, 0.0  ;;  %v2468_v14 = vmul.f32 0.01, %v2340_v41 }
 0x2cd   : > { %10505 = vset.pattern.permute.xlu1 %v17812_v57  ;;  %v1575_v17 = vpop.permute.xlu1 %1574 }
 0x2ce   : > { %v1749_v7 = vmul.f32 %v11869_v60, %v1575_v17  ;;  %1658 = vperm.xlu1 %10505, %v1055_v45   ;;  %v2532_v33 = vsel %vm2404_vm3, %v2340_v41, %v2468_v14  ;;  %v12362_v19 = vpop.permute.xlu0 %2030 }
 0x2cf   : > { %v2584_v15 = vpack.c.bf16 %v2532_v33, %v2531_v34  ;;  %v1428_v34 = vmul.f32 %v11872_v61, %v12021_v29 }
 0x2d0   : > { %v1813_v20 = vadd.f32 %v1749_v7, %v1425_v46  ;;  %v10784_v7 = vld [vmem:[%s11730_s13 + $0x150] sm:$0xff] }
 0x2d1   : > { %2862 = vmatmul.mubr.bf16.gmra.mrb[52].mxu0 %v2584_v15  ;;  %v1579_v13 = vpop.permute.xlu1 %1578 }
 0x2d2   : > { %v2201_v49 = vadd.f32 %v2137_v1, %v1813_v20  ;;  %10506 = vset.pattern.permute.xlu1 %v17810_v30  ;;  %2871 = vmatprep.mubr.bf16.mxu0 %v17811_v47  ;;  %v1750_v25 = vmul.f32 %v11869_v60, %v1579_v13  ;;  %v12374_v4 = vpop.permute.xlu0 %1654 }
 0x2d3   : > { %2010 = vperm.xlu1 %10506, %v12283_v0  }
 0x2d4   : > { %v2271_v10 = vmul.f32 %v12305_v18, %v2201_v49  ;;  %v1814_v31 = vadd.f32 %v1750_v25, %v1426_v50  ;;  %v10785_v50 = vld [vmem:[%s11730_s13 + $0x190] sm:$0xff] }
 0x2d6   : > { %v1967_v16 = vpop.permute.xlu1 %1966  ;;  %v2341_v6 = vadd.f32 %v12273_v58, %v2271_v10  ;;  %v12385_v25 = vpop.permute.xlu0 %1634  ;;  %v1066_v10 = vld [vmem:[%s11730_s13 + $0x1e0] sm:$0xff] }
 0x2d7   : > { %v2138_v9 = vmul.f32 %v11879_v63, %v1967_v16  ;;  %2042 = vperm.xlu1 %10506, %v10782_v38   ;;  %2090 = vperm.xlu0 %10528, %v1066_v10  }
 0x2d8   : > { %v2469_v22 = vmul.f32 0.01, %v2341_v6  ;;  %vm2405_vm4 = vcmp.gt.f32.partialorder %v2341_v6, 0.0 }
 0x2d9   : > { %v2202_v56 = vadd.f32 %v2138_v9, %v1814_v31  ;;  %v10786_v9 = vld [vmem:[%s11730_s13 + $0x198] sm:$0xff] }
 0x2da   : > { %v2533_v44 = vsel %vm2405_vm4, %v2341_v6, %v2469_v22 }
 0x2db   : > { %v2272_v23 = vmul.f32 %v12305_v18, %v2202_v56  ;;  %2046 = vperm.xlu1 %10506, %v1055_v45   ;;  %v1226_v0 = vpop.permute.xlu1 %1225  ;;  %10533 = vset.pattern.permute.xlu0 %v17811_v47 }
 0x2dc   : > { %v1427_v52 = vmul.f32 %v11872_v61, %v1226_v0 }
 0x2dd   : > { %v2342_v3 = vadd.f32 %v12273_v58, %v2272_v23  ;;  %v12393_v23 = vpop.permute.xlu0 %1662 }
 0x2df   : > { %10507 = vset.pattern.permute.xlu1 %v17811_v47  ;;  %vm2406_vm5 = vcmp.gt.f32.partialorder %v2342_v3, 0.0  ;;  %v2470_v36 = vmul.f32 0.01, %v2342_v3 }
 0x2e0   : > { %1290 = vperm.xlu1 %10507, %v12368_v32   ;;  %v1583_v45 = vpop.permute.xlu1 %1582 }
 0x2e1   : > { %v1751_v41 = vmul.f32 %v11869_v60, %v1583_v45  ;;  %v2534_v35 = vsel %vm2406_vm5, %v2342_v3, %v2470_v36  ;;  %v2141_v3 = vmul.f32 %v11879_v63, %v12260_v42 }
 0x2e2   : > { %v2585_v14 = vpack.c.bf16 %v2534_v35, %v2533_v44  ;;  %v12400_v35 = vpop.permute.xlu0 %1670 }
 0x2e3   : > { %v1815_v1 = vadd.f32 %v1751_v41, %v1427_v52 }
 0x2e4   : > { %10508 = vset.pattern.permute.xlu1 %v17812_v57  ;;  %2872 = vmatmul.mubr.bf16.gmra.mrb[56].mxu0 %v2585_v14  ;;  %v1587_v17 = vpop.permute.xlu1 %1586  ;;  %v1067_v14 = vld [vmem:[%s11730_s13 + $0x1e8] sm:$0xff] }
 0x2e5   : > { %v2203_v46 = vadd.f32 %v2139_v28, %v1815_v1  ;;  %1630 = vperm.xlu1 %10508, %v10784_v7   ;;  %2881 = vmatprep.mubr.bf16.mxu0 %v17811_v47  ;;  %v1752_v33 = vmul.f32 %v11869_v60, %v1587_v17  ;;  %v17813_v1 = vld [vmem:[#allocation25_spill] sm:$0xff] }
 0x2e6   : > { %v1430_v17 = vmul.f32 %v11872_v61, %v17813_v1  ;;  %1380 = vperm.xlu0 %10533, %v1067_v14  }
 0x2e7   : > { %v2273_v15 = vmul.f32 %v12305_v18, %v2203_v46  ;;  %v1816_v13 = vadd.f32 %v1752_v33, %v1428_v34 }
 0x2e9   : > { %10509 = vset.pattern.permute.xlu1 %v17811_v47  ;;  %v1975_v20 = vpop.permute.xlu1 %1974  ;;  %v2343_v31 = vadd.f32 %v12273_v58, %v2273_v15 }
 0x2ea   : > { %v2140_v49 = vmul.f32 %v11879_v63, %v1975_v20  ;;  %1325 = vperm.xlu1 %10509, %v10785_v50  }
 0x2eb   : > { %v2471_v6 = vmul.f32 0.01, %v2343_v31  ;;  %vm2407_vm6 = vcmp.gt.f32.partialorder %v2343_v31, 0.0 }
 0x2ec   : > { %v2204_v16 = vadd.f32 %v2140_v49, %v1816_v13 }
 0x2ed   : > { %v2535_v45 = vsel %vm2407_vm6, %v2343_v31, %v2471_v6 }
 0x2ee   : > { %v2274_v29 = vmul.f32 %v12305_v18, %v2204_v16  ;;  %1330 = vperm.xlu1 %10509, %v10786_v9   ;;  %v1236_v38 = vpop.permute.xlu1 %1235 }
 0x2ef   : > { %v1429_v36 = vmul.f32 %v11872_v61, %v1236_v38 }
 0x2f0   : > { %v2344_v56 = vadd.f32 %v12273_v58, %v2274_v29 }
 0x2f2   : > { %10510 = vset.pattern.permute.xlu1 %v17812_v57  ;;  %vm2408_vm7 = vcmp.gt.f32.partialorder %v2344_v56, 0.0  ;;  %v2472_v0 = vmul.f32 0.01, %v2344_v56 }
 0x2f3   : > { %1666 = vperm.xlu1 %10510, %v10786_v9   ;;  %v1591_v22 = vpop.permute.xlu1 %1590 }
 0x2f4   : > { %v1753_v28 = vmul.f32 %v11869_v60, %v1591_v22  ;;  %v2536_v52 = vsel %vm2408_vm7, %v2344_v56, %v2472_v0 }
 0x2f5   : > { %v2586_v41 = vpack.c.bf16 %v2536_v52, %v2535_v45  ;;  %v12423_v45 = vld [vmem:[%s11730_s13 + $0x160] sm:$0xff] }
 0x2f6   : > { %v1817_v44 = vadd.f32 %v1753_v28, %v1429_v36  ;;  %v2753_v46 = vpop.f32.mrb[8].mxu0  ;;  %v12420_v36 = vpop.permute.xlu0 %1650 }
 0x2f7   : > { %10511 = vset.pattern.permute.xlu1 %v17810_v30  ;;  %2882 = vmatmul.mubr.bf16.gmra.mrb[60].mxu0 %v2586_v41  ;;  %v1595_v42 = vpop.permute.xlu1 %1594  ;;  %v3071_v34 = vmul.f32 %v12246_v27, %v2753_v46  ;;  %v2755_v33 = vpop.f32.mrb[9].mxu0 }
 0x2f8   : > { %v2205_v7 = vadd.f32 %v2141_v3, %v1817_v44  ;;  %v1754_v15 = vmul.f32 %v11869_v60, %v1595_v42  ;;  %2022 = vperm.xlu1 %10511, %v12368_v32   ;;  %2891 = vmatprep.mubr.bf16.mxu0 %v17811_v47  ;;  %v3072_v20 = vmul.f32 %v12251_v59, %v2755_v33  ;;  %v2757_v13 = vpop.f32.mrb[10].mxu0 }
 0x2f9   : > { %v3210_v10 = vadd.f32 %v12254_v39, %v3071_v34  ;;  %v3073_v16 = vmul.f32 %v12246_v27, %v2757_v13  ;;  %v2759_v31 = vpop.f32.mrb[11].mxu0 }
 0x2fa   : > { %v2275_v49 = vmul.f32 %v12305_v18, %v2205_v7  ;;  %v3211_v29 = vadd.f32 %v12257_v48, %v3072_v20  ;;  %v1818_v9 = vadd.f32 %v1754_v15, %v1430_v17  ;;  %v3074_v38 = vmul.f32 %v12251_v59, %v2759_v31 }
 0x2fb   : > { %v3212_v32 = vadd.f32 %v12254_v39, %v3073_v16  ;;  %vm3338_vm8 = vcmp.gt.f32.partialorder %v3210_v10, 0.0  ;;  %v3466_v0 = vmul.f32 0.01, %v3210_v10 }
 0x2fc   : > { %2050 = vperm.xlu1 %10511, %v10785_v50   ;;  %v1983_v56 = vpop.permute.xlu1 %1982  ;;  %v2345_v6 = vadd.f32 %v12273_v58, %v2275_v49  ;;  %v3213_v3 = vadd.f32 %v12257_v48, %v3074_v38  ;;  %vm3339_vm9 = vcmp.gt.f32.partialorder %v3211_v29, 0.0  ;;  %v3467_v28 = vmul.f32 0.01, %v3211_v29 }
 0x2fd   : > { %v2142_v22 = vmul.f32 %v11879_v63, %v1983_v56  ;;  %vm3340_vm11 = vcmp.gt.f32.partialorder %v3212_v32, 0.0  ;;  %v3468_v52 = vmul.f32 0.01, %v3212_v32  ;;  %v3594_v42 = vsel %vm3338_vm8, %v3210_v10, %v3466_v0  ;;  %v12441_v0 = vpop.permute.xlu0 %1678 }
 0x2fe   : > { %vm2409_vm10 = vcmp.gt.f32.partialorder %v2345_v6, 0.0  ;;  %v2763_v50 = vpop.f32.mrb[12].mxu0  ;;  %v2473_v44 = vmul.f32 0.01, %v2345_v6  ;;  %vm3341_vm12 = vcmp.gt.f32.partialorder %v3213_v3, 0.0  ;;  %v3595_v46 = vsel %vm3339_vm9, %v3211_v29, %v3467_v28  ;;  %v1069_v29 = vld [vmem:[%s11730_s13 + $0x1f8] sm:$0xff] }
 0x2ff   : > { %v2206_v41 = vadd.f32 %v2142_v22, %v1818_v9  ;;  %v3469_v14 = vmul.f32 0.01, %v3213_v3  ;;  %v3075_v1 = vmul.f32 %v12246_v27, %v2763_v50  ;;  %v2765_v17 = vpop.f32.mrb[13].mxu0  ;;  %v3596_v7 = vsel %vm3340_vm11, %v3212_v32, %v3468_v52  ;;  %1390 = vperm.xlu0 %10533, %v1069_v29  }
 0x300   : > { %10512 = vset.pattern.permute.xlu1 %v17811_v47  ;;  %v3076_v33 = vmul.f32 %v12251_v59, %v2765_v17  ;;  %v2767_v15 = vpop.f32.mrb[14].mxu0  ;;  %v12431_v49 = vpack.c.bf16 %v3596_v7, %v3594_v42  ;;  %v2537_v28 = vsel %vm2409_vm10, %v2345_v6, %v2473_v44  ;;  %v12453_v42 = vld [vmem:[%s11730_s13 + $0x1f0] sm:$0xff] }
 0x301   : > { %v2276_v34 = vmul.f32 %v12305_v18, %v2206_v41  ;;  %1295 = vperm.xlu1 %10512, %v12423_v45   ;;  %v1246_v20 = vpop.permute.xlu1 %1245  ;;  %v3597_v13 = vsel %vm3341_vm12, %v3213_v3, %v3469_v14  ;;  %v3214_v16 = vadd.f32 %v12254_v39, %v3075_v1  ;;  %v3077_v31 = vmul.f32 %v12246_v27, %v2767_v15  ;;  %v2769_v9 = vpop.f32.mrb[15].mxu0 }
 0x302   : > { %v12436_v38 = vpack.c.bf16 %v3597_v13, %v3595_v46  ;;  %v3215_v32 = vadd.f32 %v12257_v48, %v3076_v33  ;;  %v3078_v56 = vmul.f32 %v12251_v59, %v2769_v9  ;;  %v2143_v3 = vmul.f32 %v11879_v63, %v12287_v26  ;;  %v1251_v29 = vpop.permute.xlu0 %1250 }
 0x303   : > { %v2346_v10 = vadd.f32 %v12273_v58, %v2276_v34  ;;  %v3216_v22 = vadd.f32 %v12254_v39, %v3077_v31  ;;  %v3470_v52 = vmul.f32 0.01, %v3214_v16  ;;  %v1431_v14 = vmul.f32 %v11872_v61, %v1246_v20  ;;  %10537 = vset.pattern.permute.xlu0 %v17810_v30 }
 0x304   : > { %v3217_v41 = vadd.f32 %v12257_v48, %v3078_v56  ;;  %vm3343_vm14 = vcmp.gt.f32.partialorder %v3215_v32, 0.0  ;;  %v3471_v17 = vmul.f32 0.01, %v3215_v32  ;;  %2098 = vperm.xlu0 %10537, %v12453_v42   ;;  %vm3342_vm1 = vcmp.gt.f32.partialorder %v3214_v16, 0.0 }
 0x305   : > { %10513 = vset.pattern.permute.xlu1 %v17812_v57  ;;  %vm2410_vm13 = vcmp.gt.f32.partialorder %v2346_v10, 0.0  ;;  %v2474_v50 = vmul.f32 0.01, %v2346_v10  ;;  %vm3344_vm15 = vcmp.gt.f32.partialorder %v3216_v22, 0.0  ;;  %v3472_v26 = vmul.f32 0.01, %v3216_v22 }
 0x306   : > { %1638 = vperm.xlu1 %10513, %v12423_v45   ;;  %v1599_v1 = vpop.permute.xlu1 %1598  ;;  %v2773_v46 = vpop.f32.mrb[16].mxu0  ;;  %vm3345_vm0 = vcmp.gt.f32.partialorder %v3217_v41, 0.0  ;;  %v3473_v7 = vmul.f32 0.01, %v3217_v41  ;;  %v3599_v20 = vsel %vm3343_vm14, %v3215_v32, %v3471_v17 }
 0x307   : > { %v1755_v6 = vmul.f32 %v11869_v60, %v1599_v1  ;;  %v2538_v44 = vsel %vm2410_vm13, %v2346_v10, %v2474_v50  ;;  %v3079_v34 = vmul.f32 %v12246_v27, %v2773_v46  ;;  %v2775_v33 = vpop.f32.mrb[17].mxu0  ;;  %v3600_v56 = vsel %vm3344_vm15, %v3216_v22, %v3472_v26 }
 0x308   : > { %v2587_v15 = vpack.c.bf16 %v2538_v44, %v2537_v28  ;;  %v3080_v31 = vmul.f32 %v12251_v59, %v2775_v33  ;;  %v2777_v9 = vpop.f32.mrb[18].mxu0  ;;  %v3601_v10 = vsel %vm3345_vm0, %v3217_v41, %v3473_v7  ;;  %v10787_v28 = vld [vmem:[%s11730_s13 + $0x168] sm:$0xff]  ;;  %v3598_v22 = vsel %vm3342_vm1, %v3214_v16, %v3470_v52 }
 0x309   : > { %v1819_v13 = vadd.f32 %v1755_v6, %v1431_v14  ;;  %v3218_v50 = vadd.f32 %v12254_v39, %v3079_v34  ;;  %v3081_v1 = vmul.f32 %v12246_v27, %v2777_v9  ;;  %v2779_v46 = vpop.f32.mrb[19].mxu0  ;;  %v12464_v32 = vpack.c.bf16 %v3601_v10, %v3599_v20  ;;  %v12474_v34 = vld [vmem:[%s11730_s13 + $0x1a8] sm:$0xff] }
 0x30a   : > { %1642 = vperm.xlu1 %10513, %v10787_v28   ;;  %2892 = vmatmul.mubr.bf16.gmra.mrb[64].mxu0 %v2587_v15  ;;  %v1603_v44 = vpop.permute.xlu1 %1602  ;;  %v3219_v17 = vadd.f32 %v12257_v48, %v3080_v31  ;;  %v3082_v6 = vmul.f32 %v12251_v59, %v2779_v46  ;;  %v1432_v26 = vmul.f32 %v11872_v61, %v1251_v29 }
 0x30b   : > { %v2207_v14 = vadd.f32 %v2143_v3, %v1819_v13  ;;  %2901 = vmatprep.mubr.bf16.mxu0 %v17811_v47  ;;  %v3220_v41 = vadd.f32 %v12254_v39, %v3081_v1  ;;  %v1756_v7 = vmul.f32 %v11869_v60, %v1603_v44  ;;  %v12476_v33 = vpack.c.bf16 %v3600_v56, %v3598_v22 }
 0x30c   : > { %v3221_v15 = vadd.f32 %v12257_v48, %v3082_v6  ;;  %vm3346_vm2 = vcmp.gt.f32.partialorder %v3218_v50, 0.0  ;;  %v3474_v20 = vmul.f32 0.01, %v3218_v50  ;;  %vm3347_vm3 = vcmp.gt.f32.partialorder %v3219_v17, 0.0 }
 0x30d   : > { %17814 = vst [vmem:[#allocation25_spill] sm:$0xff] %v12476_v33  ;;  %v2277_v3 = vmul.f32 %v12305_v18, %v2207_v14  ;;  %v3475_v16 = vmul.f32 0.01, %v3219_v17  ;;  %vm3348_vm4 = vcmp.gt.f32.partialorder %v3220_v41, 0.0  ;;  %v3476_v52 = vmul.f32 0.01, %v3220_v41 }
 0x30e   : > { %10514 = vset.pattern.permute.xlu1 %v17811_v47  ;;  %v2783_v13 = vpop.f32.mrb[20].mxu0  ;;  %vm3349_vm5 = vcmp.gt.f32.partialorder %v3221_v15, 0.0  ;;  %v3477_v29 = vmul.f32 0.01, %v3221_v15  ;;  %v1820_v10 = vadd.f32 %v1756_v7, %v1432_v26  ;;  %v3602_v54 = vsel %vm3346_vm2, %v3218_v50, %v3474_v20  ;;  %v10565_v7 = vld [vmem:[%s17815_s29 + $0xc] ss:$16 sps:$4 sm:$0xff]  }
 0x30f   : > { %1340 = vperm.xlu1 %10514, %v12474_v34   ;;  %v1991_v31 = vpop.permute.xlu1 %1990  ;;  %v2347_v9 = vadd.f32 %v12273_v58, %v2277_v3  ;;  %v3083_v56 = vmul.f32 %v12246_v27, %v2783_v13  ;;  %v2785_v1 = vpop.f32.mrb[21].mxu0  ;;  %v3604_v28 = vsel %vm3348_vm4, %v3220_v41, %v3476_v52  ;;  %v3603_v6 = vsel %vm3347_vm3, %v3219_v17, %v3475_v16  ;;  %v10563_v50 = vld [vmem:[%s17815_s29 + $0x8] ss:$16 sps:$4 sm:$0xff]  }
 0x310   : > { %v2144_v46 = vmul.f32 %v11879_v63, %v1991_v31  ;;  %v3084_v44 = vmul.f32 %v12251_v59, %v2785_v1  ;;  %v2787_v14 = vpop.f32.mrb[22].mxu0  ;;  %v3605_v22 = vsel %vm3349_vm5, %v3221_v15, %v3477_v29  ;;  %v12501_v15 = vpack.c.bf16 %v3604_v28, %v3602_v54  ;;  %4517 = vmatprep.subr.bf16.mxu0 %v10565_v7  ;;  %v10568_v54 = vld [vmem:[%s17815_s29 + $0x2c] ss:$16 sps:$4 sm:$0xff]  }
 0x311   : > { %v3222_v55 = vadd.f32 %v12254_v39, %v3083_v56  ;;  %v3085_v33 = vmul.f32 %v12246_v27, %v2787_v14  ;;  %v2789_v26 = vpop.f32.mrb[23].mxu0  ;;  %v12493_v13 = vpack.c.bf16 %v3605_v22, %v3603_v6  ;;  %v2475_v17 = vmul.f32 0.01, %v2347_v9  ;;  %4518 = vmatpush1.bf16.msra.mxu0 %v10563_v50 }
 0x312   : > { %v2208_v3 = vadd.f32 %v2144_v46, %v1820_v10  ;;  %v3223_v41 = vadd.f32 %v12257_v48, %v3084_v44  ;;  %v3086_v52 = vmul.f32 %v12251_v59, %v2789_v26  ;;  %vm2411_vm6 = vcmp.gt.f32.partialorder %v2347_v9, 0.0  ;;  %v10566_v44 = vld [vmem:[%s17815_s29 + $0x28] ss:$16 sps:$4 sm:$0xff]   ;;  %4519 = vmatprep.subr.bf16.mxu0 %v10568_v54 }
 0x313   : > { %10515 = vset.pattern.permute.xlu1 %v17812_v57  ;;  %v3224_v16 = vadd.f32 %v12254_v39, %v3085_v33  ;;  %v3478_v29 = vmul.f32 0.01, %v3222_v55  ;;  %vm3350_vm7 = vcmp.gt.f32.partialorder %v3222_v55, 0.0  ;;  %v2145_v46 = vmul.f32 %v11879_v63, %v12302_v12 }
 0x314   : > { %v2278_v20 = vmul.f32 %v12305_v18, %v2208_v3  ;;  %1674 = vperm.xlu1 %10515, %v12474_v34   ;;  %v1256_v31 = vpop.permute.xlu1 %1255  ;;  %v3225_v10 = vadd.f32 %v12257_v48, %v3086_v52  ;;  %v3479_v56 = vmul.f32 0.01, %v3223_v41  ;;  %vm3351_vm8 = vcmp.gt.f32.partialorder %v3223_v41, 0.0 }
 0x315   : > { %vm3352_vm9 = vcmp.gt.f32.partialorder %v3224_v16, 0.0  ;;  %v3480_v33 = vmul.f32 0.01, %v3224_v16  ;;  %v2539_v28 = vsel %vm2411_vm6, %v2347_v9, %v2475_v17  ;;  %v3606_v22 = vsel %vm3350_vm7, %v3222_v55, %v3478_v29  ;;  %4520 = vmatpush1.bf16.msra.mxu0 %v10566_v44  ;;  %v10571_v55 = vld [vmem:[%s17815_s29 + $0x4c] ss:$16 sps:$4 sm:$0xff]   ;;  %v1261_v29 = vpop.permute.xlu0 %1260 }
 0x316   : > { %v2348_v1 = vadd.f32 %v12273_v58, %v2278_v20  ;;  %vm3353_vm10 = vcmp.gt.f32.partialorder %v3225_v10, 0.0  ;;  %v3481_v14 = vmul.f32 0.01, %v3225_v10  ;;  %v3607_v12 = vsel %vm3351_vm8, %v3223_v41, %v3479_v56  ;;  %4521 = vmatprep.subr.bf16.mxu0 %v10571_v55  ;;  %v10572_v44 = vld [vmem:[%s17815_s29 + $0x68] ss:$16 sps:$4 sm:$0xff]  }
 0x317   : > { %v3608_v3 = vsel %vm3352_vm9, %v3224_v16, %v3480_v33  ;;  %v1433_v52 = vmul.f32 %v11872_v61, %v1256_v31  ;;  %v10569_v16 = vld [vmem:[%s17815_s29 + $0x48] ss:$16 sps:$4 sm:$0xff]   ;;  %v1434_v54 = vmul.f32 %v11872_v61, %v1261_v29 }
 0x318   : > { %10516 = vset.pattern.permute.xlu1 %v17810_v30  ;;  %vm2412_vm11 = vcmp.gt.f32.partialorder %v2348_v1, 0.0  ;;  %v2476_v6 = vmul.f32 0.01, %v2348_v1  ;;  %v3609_v9 = vsel %vm3353_vm10, %v3225_v10, %v3481_v14  ;;  %v12519_v7 = vpack.c.bf16 %v3608_v3, %v3606_v22  ;;  %v10788_v10 = vld [vmem:[%s11730_s13 + $0x1a0] sm:$0xff] }
 0x319   : > { %2026 = vperm.xlu1 %10516, %v12423_v45   ;;  %v1607_v26 = vpop.permute.xlu1 %1606  ;;  %v12526_v20 = vpack.c.bf16 %v3609_v9, %v3607_v12  ;;  %4522 = vmatpush1.bf16.msra.mxu0 %v10569_v16 }
 0x31a   : > { %v1757_v17 = vmul.f32 %v11869_v60, %v1607_v26  ;;  %v2540_v50 = vsel %vm2412_vm11, %v2348_v1, %v2476_v6  ;;  %v10574_v1 = vld [vmem:[%s17815_s29 + $0x6c] ss:$16 sps:$4 sm:$0xff]  }
 0x31b   : > { %v2588_v45 = vpack.c.bf16 %v2540_v50, %v2539_v28  ;;  %4523 = vmatprep.subr.bf16.mxu0 %v10574_v1  ;;  %v12561_v1 = vld [vmem:[%s11730_s13 + $0x178] sm:$0xff] }
 0x31c   : > { %v1821_v41 = vadd.f32 %v1757_v17, %v1433_v52  ;;  %v10577_v17 = vld [vmem:[%s17815_s29 + $0x8c] ss:$16 sps:$4 sm:$0xff]  }
 0x31d   : > { %2058 = vperm.xlu1 %10516, %v10788_v10   ;;  %2902 = vmatmul.mubr.bf16.gmra.mrb[68].mxu0 %v2588_v45  ;;  %v1611_v31 = vpop.permute.xlu1 %1610 }
 0x31e   : > { %v2209_v56 = vadd.f32 %v2145_v46, %v1821_v41  ;;  %2911 = vmatprep.mubr.bf16.mxu0 %v17811_v47  ;;  %v1758_v33 = vmul.f32 %v11869_v60, %v1611_v31  ;;  %4524 = vmatpush1.bf16.msra.mxu0 %v10572_v44 }
 0x31f   : > { %v2793_v28 = vpop.f32.mrb[24].mxu0  ;;  %4525 = vmatprep.subr.bf16.mxu0 %v10577_v17 }
 0x320   : > { %v3087_v14 = vmul.f32 %v12246_v27, %v2793_v28  ;;  %v2795_v6 = vpop.f32.mrb[25].mxu0  ;;  %v2279_v46 = vmul.f32 %v12305_v18, %v2209_v56  ;;  %v1822_v50 = vadd.f32 %v1758_v33, %v1434_v54  ;;  %v10580_v54 = vld [vmem:[%s17815_s29 + $0xac] ss:$16 sps:$4 sm:$0xff]  }
 0x321   : > { %v3088_v22 = vmul.f32 %v12251_v59, %v2795_v6  ;;  %v2797_v3 = vpop.f32.mrb[26].mxu0  ;;  %2062 = vperm.xlu1 %10516, %v12474_v34   ;;  %v10575_v34 = vld [vmem:[%s17815_s29 + $0x88] ss:$16 sps:$4 sm:$0xff]  }
 0x322   : > { %v3226_v26 = vadd.f32 %v12254_v39, %v3087_v14  ;;  %v3089_v12 = vmul.f32 %v12246_v27, %v2797_v3  ;;  %v2799_v9 = vpop.f32.mrb[27].mxu0  ;;  %v1999_v52 = vpop.permute.xlu1 %1998  ;;  %v2349_v31 = vadd.f32 %v12273_v58, %v2279_v46  ;;  %4526 = vmatpush1.bf16.msra.mxu0 %v10575_v34  ;;  %v10578_v14 = vld [vmem:[%s17815_s29 + $0xa8] ss:$16 sps:$4 sm:$0xff]  }
 0x323   : > { %v3227_v55 = vadd.f32 %v12257_v48, %v3088_v22  ;;  %v3090_v45 = vmul.f32 %v12251_v59, %v2799_v9  ;;  %v2146_v16 = vmul.f32 %v11879_v63, %v1999_v52  ;;  %4527 = vmatprep.subr.bf16.mxu0 %v10580_v54  ;;  %v10583_v52 = vld [vmem:[%s17815_s29 + $0xcc] ss:$16 sps:$4 sm:$0xff]  }
 0x324   : > { %v3228_v41 = vadd.f32 %v12254_v39, %v3089_v12  ;;  %vm3354_vm13 = vcmp.gt.f32.partialorder %v3226_v26, 0.0  ;;  %v3482_v33 = vmul.f32 0.01, %v3226_v26  ;;  %v2477_v3 = vmul.f32 0.01, %v2349_v31 }
 0x325   : > { %v3229_v29 = vadd.f32 %v12257_v48, %v3090_v45  ;;  %v2210_v10 = vadd.f32 %v2146_v16, %v1822_v50  ;;  %10518 = vset.pattern.permute.xlu1 %v17811_v47  ;;  %v3483_v56 = vmul.f32 0.01, %v3227_v55  ;;  %vm3355_vm12 = vcmp.gt.f32.partialorder %v3227_v55, 0.0 }
 0x326   : > { %1310 = vperm.xlu1 %10518, %v12561_v1   ;;  %vm3356_vm15 = vcmp.gt.f32.partialorder %v3228_v41, 0.0  ;;  %v3484_v46 = vmul.f32 0.01, %v3228_v41  ;;  %vm2413_vm0 = vcmp.gt.f32.partialorder %v2349_v31, 0.0  ;;  %4528 = vmatpush1.bf16.msra.mxu0 %v10578_v14  ;;  %v3610_v50 = vsel %vm3354_vm13, %v3226_v26, %v3482_v33  ;;  %v10586_v33 = vld [vmem:[%s17815_s29 + $0xec] ss:$16 sps:$4 sm:$0xff]   ;;  %v1271_v14 = vpop.permute.xlu0 %1270 }
 0x327   : > { %v2280_v28 = vmul.f32 %v12305_v18, %v2210_v10  ;;  %v1266_v44 = vpop.permute.xlu1 %1265  ;;  %vm3357_vm14 = vcmp.gt.f32.partialorder %v3229_v29, 0.0  ;;  %v3485_v6 = vmul.f32 0.01, %v3229_v29  ;;  %v3611_v12 = vsel %vm3355_vm12, %v3227_v55, %v3483_v56  ;;  %v10581_v55 = vld [vmem:[%s17815_s29 + $0xc8] ss:$16 sps:$4 sm:$0xff]   ;;  %4529 = vmatprep.subr.bf16.mxu0 %v10583_v52 }
 0x328   : > { %v3612_v45 = vsel %vm3356_vm15, %v3228_v41, %v3484_v46  ;;  %v1435_v56 = vmul.f32 %v11872_v61, %v1266_v44  ;;  %v12598_v44 = vld [vmem:[%s11730_s13 + $0x1b0] sm:$0xff]  ;;  %v1436_v46 = vmul.f32 %v11872_v61, %v1271_v14 }
 0x329   : > { %v2350_v22 = vadd.f32 %v12273_v58, %v2280_v28  ;;  %v3613_v9 = vsel %vm3357_vm14, %v3229_v29, %v3485_v6  ;;  %v12583_v34 = vpack.c.bf16 %v3612_v45, %v3610_v50  ;;  %v2147_v29 = vmul.f32 %v11879_v63, %v12320_v2  ;;  %v10584_v2 = vld [vmem:[%s17815_s29 + $0xe8] ss:$16 sps:$4 sm:$0xff]  }
 0x32a   : > { %10519 = vset.pattern.permute.xlu1 %v17812_v57  ;;  %v12576_v17 = vpack.c.bf16 %v3613_v9, %v3611_v12  ;;  %4530 = vmatpush1.bf16.msra.mxu0 %v10581_v55  ;;  %v10589_v12 = vld [vmem:[%s17815_s29 + $0x10c] ss:$16 sps:$4 sm:$0xff]   ;;  %v10587_v45 = vld [vmem:[%s17815_s29 + $0x108] ss:$16 sps:$4 sm:$0xff]  }
 0x32b   : > { %1646 = vperm.xlu1 %10519, %v12212_v37   ;;  %vm2414_vm1 = vcmp.gt.f32.partialorder %v2350_v22, 0.0  ;;  %v2478_v16 = vmul.f32 0.01, %v2350_v22  ;;  %v2541_v37 = vsel %vm2413_vm0, %v2349_v31, %v2477_v3  ;;  %4531 = vmatprep.subr.bf16.mxu0 %v10586_v33 }
 0x32c   : > { %v1615_v10 = vpop.permute.xlu1 %1614 }
 0x32d   : > { %v1759_v26 = vmul.f32 %v11869_v60, %v1615_v10  ;;  %v2542_v41 = vsel %vm2414_vm1, %v2350_v22, %v2478_v16 }
 0x32e   : > { %v2589_v54 = vpack.c.bf16 %v2542_v41, %v2541_v37  ;;  %4532 = vmatpush1.bf16.msra.mxu0 %v10584_v2 }
 0x32f   : > { %v1823_v28 = vadd.f32 %v1759_v26, %v1435_v56  ;;  %10520 = vset.pattern.permute.xlu1 %v17811_v47  ;;  %4533 = vmatprep.subr.bf16.mxu0 %v10589_v12 }
 0x330   : > { %1345 = vperm.xlu1 %10520, %v12598_v44   ;;  %2912 = vmatmul.mubr.bf16.gmra.mrb[72].mxu0 %v2589_v54  ;;  %v1619_v31 = vpop.permute.xlu1 %1618 }
 0x331   : > { %v2211_v6 = vadd.f32 %v2147_v29, %v1823_v28  ;;  %2921 = vmatprep.mubr.bf16.mxu0 %v17811_v47  ;;  %v1760_v22 = vmul.f32 %v11869_v60, %v1619_v31  ;;  %v10592_v28 = vld [vmem:[%s17815_s29 + $0x12c] ss:$16 sps:$4 sm:$0xff]   ;;  %v10590_v31 = vld [vmem:[%s17815_s29 + $0x128] ss:$16 sps:$4 sm:$0xff]  }
 0x332   : > { %v2803_v3 = vpop.f32.mrb[28].mxu0  ;;  %4534 = vmatpush1.bf16.msra.mxu0 %v10587_v45 }
 0x333   : > { %v2281_v9 = vmul.f32 %v12305_v18, %v2211_v6  ;;  %v3091_v52 = vmul.f32 %v12246_v27, %v2803_v3  ;;  %v2805_v50 = vpop.f32.mrb[29].mxu0  ;;  %v1824_v37 = vadd.f32 %v1760_v22, %v1436_v46  ;;  %4535 = vmatprep.subr.bf16.mxu0 %v10592_v28 }
 0x334   : > { %v3092_v16 = vmul.f32 %v12251_v59, %v2805_v50  ;;  %v2807_v55 = vpop.f32.mrb[30].mxu0  ;;  %1350 = vperm.xlu1 %10520, %v12263_v62   ;;  %v10595_v50 = vld [vmem:[%s17815_s29 + $0x14c] ss:$16 sps:$4 sm:$0xff]  }
 0x335   : > { %v3230_v29 = vadd.f32 %v12254_v39, %v3091_v52  ;;  %v3093_v10 = vmul.f32 %v12246_v27, %v2807_v55  ;;  %v2809_v56 = vpop.f32.mrb[31].mxu0  ;;  %v2007_v26 = vpop.permute.xlu1 %2006  ;;  %v2351_v14 = vadd.f32 %v12273_v58, %v2281_v9 }
 0x336   : > { %v3231_v41 = vadd.f32 %v12257_v48, %v3092_v16  ;;  %v3094_v54 = vmul.f32 %v12251_v59, %v2809_v56  ;;  %v2148_v33 = vmul.f32 %v11879_v63, %v2007_v26  ;;  %4536 = vmatpush1.bf16.msra.mxu0 %v10590_v31 }
 0x337   : > { %v3232_v2 = vadd.f32 %v12254_v39, %v3093_v10  ;;  %vm3358_vm2 = vcmp.gt.f32.partialorder %v3230_v29, 0.0  ;;  %v3486_v3 = vmul.f32 0.01, %v3230_v29  ;;  %v2479_v16 = vmul.f32 0.01, %v2351_v14  ;;  %4537 = vmatprep.subr.bf16.mxu0 %v10595_v50 }
 0x338   : > { %v3233_v6 = vadd.f32 %v12257_v48, %v3094_v54  ;;  %v2212_v46 = vadd.f32 %v2148_v33, %v1824_v37  ;;  %10522 = vset.pattern.permute.xlu1 %v17812_v57  ;;  %v3487_v22 = vmul.f32 0.01, %v3231_v41  ;;  %vm3359_vm3 = vcmp.gt.f32.partialorder %v3231_v41, 0.0  ;;  %v10604_v50 = vld [vmem:[%s17815_s29 + $0x1ac] ss:$16 sps:$4 sm:$0xff]  }
 0x339   : > { %1682 = vperm.xlu1 %10522, %v12263_v62   ;;  %vm3360_vm4 = vcmp.gt.f32.partialorder %v3232_v2, 0.0  ;;  %v3488_v12 = vmul.f32 0.01, %v3232_v2  ;;  %v10593_v62 = vld [vmem:[%s17815_s29 + $0x148] ss:$16 sps:$4 sm:$0xff]   ;;  %v3614_v55 = vsel %vm3358_vm2, %v3230_v29, %v3486_v3  ;;  %vm2415_vm6 = vcmp.gt.f32.partialorder %v2351_v14, 0.0 }
 0x33a   : > { %v2282_v9 = vmul.f32 %v12305_v18, %v2212_v46  ;;  %v12631_v52 = vpop.permute.xlu1 %1275  ;;  %vm3361_vm5 = vcmp.gt.f32.partialorder %v3233_v6, 0.0  ;;  %v3489_v45 = vmul.f32 0.01, %v3233_v6  ;;  %v3615_v18 = vsel %vm3359_vm3, %v3231_v41, %v3487_v22  ;;  %4538 = vmatpush1.bf16.msra.mxu0 %v10593_v62  ;;  %v10596_v41 = vld [vmem:[%s17815_s29 + $0x168] ss:$16 sps:$4 sm:$0xff]  }
 0x33b   : > { %v3616_v10 = vsel %vm3360_vm4, %v3232_v2, %v3488_v12  ;;  %v2543_v28 = vsel %vm2415_vm6, %v2351_v14, %v2479_v16  ;;  %v10599_v22 = vld [vmem:[%s17815_s29 + $0x188] ss:$16 sps:$4 sm:$0xff]  }
 0x33c   : > { %v2352_v56 = vadd.f32 %v12273_v58, %v2282_v9  ;;  %v3617_v26 = vsel %vm3361_vm5, %v3233_v6, %v3489_v45  ;;  %v12641_v37 = vpack.c.bf16 %v3616_v10, %v3614_v55  ;;  %v10598_v58 = vld [vmem:[%s17815_s29 + $0x16c] ss:$16 sps:$4 sm:$0xff]   ;;  %v1281_v6 = vpop.permute.xlu0 %1280  ;;  %v10602_v62 = vld [vmem:[%s17815_s29 + $0x1a8] ss:$16 sps:$4 sm:$0xff]  }
 0x33d   : > { %10523 = vset.pattern.permute.xlu1 %v17810_v30  ;;  %v12644_v54 = vpack.c.bf16 %v3617_v26, %v3615_v18  ;;  %4539 = vmatprep.subr.bf16.mxu0 %v10598_v58  ;;  %v1438_v3 = vmul.f32 %v11872_v61, %v1281_v6  ;;  %v2150_v58 = vmul.f32 %v11879_v63, %v12335_v5  ;;  %v10605_v6 = vld [vmem:[%s17815_s29 + $0x1c8] ss:$16 sps:$4 sm:$0xff]  }
 0x33e   : > { %2038 = vperm.xlu1 %10523, %v12561_v1   ;;  %vm2416_vm7 = vcmp.gt.f32.partialorder %v2352_v56, 0.0  ;;  %v2480_v33 = vmul.f32 0.01, %v2352_v56  ;;  %4540 = vmatpush1.bf16.msra.mxu0 %v10596_v41  ;;  %v10601_v1 = vld [vmem:[%s17815_s29 + $0x18c] ss:$16 sps:$4 sm:$0xff]  }
 0x33f   : > { %v1623_v29 = vpop.permute.xlu1 %1622  ;;  %4541 = vmatprep.subr.bf16.mxu0 %v10601_v1 }
 0x340   : > { %v2544_v2 = vsel %vm2416_vm7, %v2352_v56, %v2480_v33 }
 0x341   : > { %v2590_v31 = vpack.c.bf16 %v2544_v2, %v2543_v28  ;;  %v10607_v2 = vld [vmem:[%s17815_s29 + $0x1cc] ss:$16 sps:$4 sm:$0xff]  }
 0x342   : > { %2066 = vperm.xlu1 %10523, %v12598_v44   ;;  %4542 = vmatpush1.bf16.msra.mxu0 %v10599_v22 }
 0x343   : > { %2922 = vmatmul.mubr.bf16.gmra.mrb[76].mxu0 %v2590_v31  ;;  %v1627_v46 = vpop.permute.xlu1 %1626  ;;  %4543 = vmatprep.subr.bf16.mxu0 %v10604_v50 }
 0x344   : > { %2931 = vmatprep.mubr.bf16.mxu0 %v17811_v47  ;;  %v1762_v44 = vmul.f32 %v11869_v60, %v1627_v46 }
 0x345   : > { %v2813_v14 = vpop.f32.mrb[32].mxu0 }
 0x346   : > { %v3095_v12 = vmul.f32 %v12246_v27, %v2813_v14  ;;  %v2815_v9 = vpop.f32.mrb[33].mxu0  ;;  %10524 = vset.pattern.permute.xlu1 %v17811_v47  ;;  %v1826_v41 = vadd.f32 %v1762_v44, %v1438_v3  ;;  %4544 = vmatpush1.bf16.msra.mxu0 %v10602_v62  ;;  %v1316_v44 = vpop.permute.xlu0 %1315 }
 0x347   : > { %v3096_v45 = vmul.f32 %v12251_v59, %v2815_v9  ;;  %v2817_v16 = vpop.f32.mrb[34].mxu0  ;;  %1355 = vperm.xlu1 %10524, %v12323_v40   ;;  %4545 = vmatprep.subr.bf16.mxu0 %v10607_v2 }
 0x348   : > { %v3234_v55 = vadd.f32 %v12254_v39, %v3095_v12  ;;  %v3097_v10 = vmul.f32 %v12246_v27, %v2817_v16  ;;  %v2819_v56 = vpop.f32.mrb[35].mxu0  ;;  %v1321_v18 = vpop.permute.xlu1 %1320  ;;  %v2214_v3 = vadd.f32 %v2150_v58, %v1826_v41  ;;  %v10610_v12 = vld [vmem:[%s17815_s29 + $0x1ec] ss:$16 sps:$4 sm:$0xff]   ;;  %v1445_v58 = vmul.f32 %v11872_v61, %v1316_v44  ;;  %v12707_v41 = vld [vmem:[%s11887_s2] ss:$0 sm:$0xff] }
 0x349   : > { %v3235_v26 = vadd.f32 %v12257_v48, %v3096_v45  ;;  %v3098_v33 = vmul.f32 %v12251_v59, %v2819_v56  ;;  %v10608_v45 = vld [vmem:[%s17815_s29 + $0x1e8] ss:$16 sps:$4 sm:$0xff]   ;;  %v1446_v44 = vmul.f32 %v11872_v61, %v1321_v18 }
 0x34a   : > { %v3236_v28 = vadd.f32 %v12254_v39, %v3097_v10  ;;  %v3490_v31 = vmul.f32 0.01, %v3234_v55  ;;  %vm3362_vm8 = vcmp.gt.f32.partialorder %v3234_v55, 0.0  ;;  %4546 = vmatpush1.bf16.msra.mxu0 %v10605_v6  ;;  %v10791_v56 = vld [vmem:[%s11730_s13 + $0x1c8] sm:$0xff]  ;;  %v12714_v6 = vld [vmem:[%s11698_s18] ss:$0 sm:$0xff] }
 0x34b   : > { %v3237_v1 = vadd.f32 %v12257_v48, %v3098_v33  ;;  %10525 = vset.pattern.permute.xlu1 %v17812_v57  ;;  %v3491_v46 = vmul.f32 0.01, %v3235_v26  ;;  %vm3363_vm9 = vcmp.gt.f32.partialorder %v3235_v26, 0.0  ;;  %4547 = vmatprep.subr.bf16.mxu0 %v10610_v12 }
 0x34c   : > { %1686 = vperm.xlu1 %10525, %v12323_v40   ;;  %vm3364_vm10 = vcmp.gt.f32.partialorder %v3236_v28, 0.0  ;;  %v3492_v5 = vmul.f32 0.01, %v3236_v28  ;;  %v3618_v9 = vsel %vm3362_vm8, %v3234_v55, %v3490_v31  ;;  %v1761_v40 = vmul.f32 %v11869_v60, %v1623_v29 }
 0x34d   : > { %v1659_v22 = vpop.permute.xlu1 %1658  ;;  %vm3365_vm11 = vcmp.gt.f32.partialorder %v3237_v1, 0.0  ;;  %v3493_v14 = vmul.f32 0.01, %v3237_v1  ;;  %v3619_v16 = vsel %vm3363_vm9, %v3235_v26, %v3491_v46  ;;  %v1769_v55 = vmul.f32 %v11869_v60, %v12374_v4 }
 0x34e   : > { %v3620_v50 = vsel %vm3364_vm10, %v3236_v28, %v3492_v5  ;;  %v1437_v29 = vmul.f32 %v11872_v61, %v12631_v52  ;;  %v2284_v26 = vmul.f32 %v12707_v41, %v2214_v3  ;;  %4548 = vmatpush1.bf16.msra.mxu0 %v10608_v45  ;;  %v1770_v46 = vmul.f32 %v11869_v60, %v1659_v22 }
 0x34f   : > { %v3621_v62 = vsel %vm3365_vm11, %v3237_v1, %v3493_v14  ;;  %v12696_v10 = vpack.c.bf16 %v3620_v50, %v3618_v9  ;;  %8268 = vmatprep.subr.bf16.mxu0 %v17811_v47  ;;  %v1833_v4 = vadd.f32 %v1769_v55, %v1445_v58 }
 0x350   : > { %1690 = vperm.xlu1 %10525, %v10791_v56   ;;  %v12699_v33 = vpack.c.bf16 %v3621_v62, %v3619_v16  ;;  %v1825_v2 = vadd.f32 %v1761_v40, %v1437_v29  ;;  %v2354_v52 = vadd.f32 %v12714_v6, %v2284_v26  ;;  %v1834_v16 = vadd.f32 %v1770_v46, %v1446_v44 }
 0x352   : > { %v2011_v28 = vpop.permute.xlu1 %2010  ;;  %vm2418_vm12 = vcmp.gt.f32.partialorder %v2354_v52, 0.0  ;;  %v2482_v55 = vmul.f32 0.01, %v2354_v52 }
 0x353   : > { %v2149_v31 = vmul.f32 %v11879_v63, %v2011_v28 }
 0x354   : > { %10526 = vset.pattern.permute.xlu1 %v17810_v30 }
 0x355   : > { %v2213_v1 = vadd.f32 %v2149_v31, %v1825_v2  ;;  %2078 = vperm.xlu1 %10526, %v10791_v56  }
 0x356   : > { %v2043_v5 = vpop.permute.xlu1 %2042 }
 0x357   : > { %v2283_v14 = vmul.f32 %v12707_v41, %v2213_v1  ;;  %v2157_v3 = vmul.f32 %v11879_v63, %v2043_v5 }
 0x358   : > { %v2823_v12 = vpop.f32.mrb[36].mxu0 }
 0x359   : > { %v2353_v9 = vadd.f32 %v12714_v6, %v2283_v14  ;;  %v2221_v50 = vadd.f32 %v2157_v3, %v1833_v4  ;;  %v3099_v40 = vmul.f32 %v12246_v27, %v2823_v12  ;;  %v2825_v45 = vpop.f32.mrb[37].mxu0  ;;  %10527 = vset.pattern.permute.xlu1 %v17811_v47  ;;  %v2546_v3 = vsel %vm2418_vm12, %v2354_v52, %v2482_v55 }
 0x35a   : > { %v3100_v62 = vmul.f32 %v12251_v59, %v2825_v45  ;;  %v2827_v22 = vpop.f32.mrb[38].mxu0  ;;  %1365 = vperm.xlu1 %10527, %v12357_v21   ;;  %v2047_v56 = vpop.permute.xlu1 %2046 }
 0x35b   : > { %v2291_v18 = vmul.f32 %v12707_v41, %v2221_v50  ;;  %v3238_v29 = vadd.f32 %v12254_v39, %v3099_v40  ;;  %v3101_v58 = vmul.f32 %v12246_v27, %v2827_v22  ;;  %v2158_v26 = vmul.f32 %v11879_v63, %v2047_v56  ;;  %v2829_v28 = vpop.f32.mrb[39].mxu0  ;;  %v10794_v50 = vld [vmem:[%s11730_s13 + $0x1d0] sm:$0xff] }
 0x35c   : > { %v3239_v2 = vadd.f32 %v12257_v48, %v3100_v62  ;;  %v3102_v31 = vmul.f32 %v12251_v59, %v2829_v28  ;;  %vm2417_vm13 = vcmp.gt.f32.partialorder %v2353_v9, 0.0  ;;  %v2481_v1 = vmul.f32 0.01, %v2353_v9 }
 0x35d   : > { %v2361_v21 = vadd.f32 %v12714_v6, %v2291_v18  ;;  %v3240_v4 = vadd.f32 %v12254_v39, %v3101_v58  ;;  %v2222_v46 = vadd.f32 %v2158_v26, %v1834_v16  ;;  %vm3366_vm0 = vcmp.gt.f32.partialorder %v3238_v29, 0.0  ;;  %v10795_v18 = vld [vmem:[%s11730_s13 + $0x1d8] sm:$0xff]  ;;  %v10613_v26 = vld [vmem:[%s17815_s29 + $0x4] ss:$16 sps:$4 sm:$0xff]  }
 0x35e   : > { %v3241_v5 = vadd.f32 %v12257_v48, %v3102_v31  ;;  %10529 = vset.pattern.permute.xlu1 %v17812_v57  ;;  %v2545_v14 = vsel %vm2417_vm13, %v2353_v9, %v2481_v1  ;;  %v3495_v44 = vmul.f32 0.01, %v3239_v2  ;;  %vm3367_vm14 = vcmp.gt.f32.partialorder %v3239_v2, 0.0  ;;  %4164 = vmatprep.subr.bf16.mxu1 %v10613_v26  ;;  %v10617_v26 = vld [vmem:[%s17815_s29 + $0x40] ss:$16 sps:$4 sm:$0xff]  }
 0x35f   : > { %v2292_v12 = vmul.f32 %v12707_v41, %v2222_v46  ;;  %1694 = vperm.xlu1 %10529, %v10794_v50   ;;  %v12739_v40 = vpop.permute.xlu1 %1290  ;;  %v2591_v45 = vpack.c.bf16 %v2546_v3, %v2545_v14  ;;  %v2489_v22 = vmul.f32 0.01, %v2361_v21  ;;  %vm3368_vm1 = vcmp.gt.f32.partialorder %v3240_v4, 0.0  ;;  %v1286_v14 = vpop.permute.xlu0 %1285  ;;  %v10616_v50 = vld [vmem:[%s17815_s29 + $0x24] ss:$16 sps:$4 sm:$0xff]  }
 0x360   : > { %vm3369_vm15 = vcmp.gt.f32.partialorder %v3241_v5, 0.0  ;;  %v3497_v62 = vmul.f32 0.01, %v3241_v5  ;;  %v3494_v9 = vmul.f32 0.01, %v3238_v29  ;;  %vm2425_vm2 = vcmp.gt.f32.partialorder %v2361_v21, 0.0 }
 0x361   : > { %v2362_v16 = vadd.f32 %v12714_v6, %v2292_v12  ;;  %2932 = vmatmul.mubr.bf16.gmra.mrb[80].mxu0 %v2591_v45  ;;  %v3623_v52 = vsel %vm3367_vm14, %v3239_v2, %v3495_v44  ;;  %v3496_v55 = vmul.f32 0.01, %v3240_v4  ;;  %v2553_v3 = vsel %vm2425_vm2, %v2361_v21, %v2489_v22  ;;  %v10611_v2 = vld [vmem:[%s17815_s29] ss:$16 sps:$4 sm:$0xff]  }
 0x362   : > { %2941 = vmatprep.mubr.bf16.mxu0 %v17811_v47  ;;  %v3625_v56 = vsel %vm3369_vm15, %v3241_v5, %v3497_v62  ;;  %v3622_v1 = vsel %vm3366_vm0, %v3238_v29, %v3494_v9  ;;  %v1439_v29 = vmul.f32 %v11872_v61, %v1286_v14  ;;  %v10614_v45 = vld [vmem:[%s17815_s29 + $0x20] ss:$16 sps:$4 sm:$0xff]  }
 0x363   : > { %1698 = vperm.xlu1 %10529, %v10795_v18   ;;  %vm2426_vm3 = vcmp.gt.f32.partialorder %v2362_v16, 0.0  ;;  %v2490_v58 = vmul.f32 0.01, %v2362_v16  ;;  %v12747_v28 = vpack.c.bf16 %v3625_v56, %v3623_v52  ;;  %v3624_v46 = vsel %vm3368_vm1, %v3240_v4, %v3496_v55  ;;  %v10619_v52 = vld [vmem:[%s17815_s29 + $0x44] ss:$16 sps:$4 sm:$0xff]  }
 0x364   : > { %v1631_v31 = vpop.permute.xlu1 %1630  ;;  %v12753_v5 = vpack.c.bf16 %v3624_v46, %v3622_v1 }
 0x365   : > { %v2554_v12 = vsel %vm2426_vm3, %v2362_v16, %v2490_v58  ;;  %v1763_v4 = vmul.f32 %v11869_v60, %v1631_v31  ;;  %v2151_v31 = vmul.f32 %v11879_v63, %v12344_v43  ;;  %v2160_v43 = vmul.f32 %v11879_v63, %v12353_v51 }
 0x366   : > { %v2595_v44 = vpack.c.bf16 %v2554_v12, %v2553_v3  ;;  %v10622_v3 = vld [vmem:[%s17815_s29 + $0x64] ss:$16 sps:$4 sm:$0xff]  }
 0x367   : > { %10530 = vset.pattern.permute.xlu1 %v17810_v30  ;;  %v1827_v16 = vadd.f32 %v1763_v4, %v1439_v29 }
 0x368   : > { %2086 = vperm.xlu1 %10530, %v10795_v18   ;;  %2972 = vmatmul.mubr.bf16.vlgmr.msra.gmra.mrb[0].mxu1 %v2595_v44  ;;  %v10796_v18 = vld [vmem:[%s11730_s13 + $0x1e0] sm:$0xff] }
 0x369   : > { %v12761_v21 = vpop.permute.xlu1 %1325  ;;  %2981 = vmatprep.mubr.bf16.mxu1 %v17811_v47  ;;  %4165 = vmatpush1.bf16.msra.mxu1 %v10611_v2  ;;  %v2215_v44 = vadd.f32 %v2151_v31, %v1827_v16  ;;  %v1764_v16 = vmul.f32 %v11869_v60, %v12385_v25 }
 0x36a   : > { %4166 = vmatprep.subr.bf16.mxu1 %v10616_v50 }
 0x36b   : > { %v2833_v62 = vpop.f32.mrb[40].mxu0 }
 0x36c   : > { %v3103_v22 = vmul.f32 %v12246_v27, %v2833_v62  ;;  %v2835_v9 = vpop.f32.mrb[41].mxu0  ;;  %10531 = vset.pattern.permute.xlu1 %v17811_v47 }
 0x36d   : > { %v3104_v56 = vmul.f32 %v12251_v59, %v2835_v9  ;;  %v2837_v55 = vpop.f32.mrb[42].mxu0  ;;  %1375 = vperm.xlu1 %10531, %v10796_v18   ;;  %v1331_v58 = vpop.permute.xlu1 %1330  ;;  %4167 = vmatpush1.bf16.msra.mxu1 %v10614_v45  ;;  %v10620_v45 = vld [vmem:[%s17815_s29 + $0x60] ss:$16 sps:$4 sm:$0xff]  }
 0x36e   : > { %v3242_v1 = vadd.f32 %v12254_v39, %v3103_v22  ;;  %v3105_v46 = vmul.f32 %v12246_v27, %v2837_v55  ;;  %v2839_v14 = vpop.f32.mrb[43].mxu0  ;;  %4168 = vmatprep.subr.bf16.mxu1 %v10619_v52  ;;  %v1448_v9 = vmul.f32 %v11872_v61, %v1331_v58  ;;  %v1440_v55 = vmul.f32 %v11872_v61, %v12739_v40  ;;  %v10623_v40 = vld [vmem:[%s17815_s29 + $0x80] ss:$16 sps:$4 sm:$0xff]  }
 0x36f   : > { %v3243_v12 = vadd.f32 %v12257_v48, %v3104_v56  ;;  %v3106_v2 = vmul.f32 %v12251_v59, %v2839_v14 }
 0x370   : > { %v3244_v50 = vadd.f32 %v12254_v39, %v3105_v46  ;;  %v3498_v29 = vmul.f32 0.01, %v3242_v1  ;;  %vm3370_vm4 = vcmp.gt.f32.partialorder %v3242_v1, 0.0  ;;  %v10625_v46 = vld [vmem:[%s17815_s29 + $0x84] ss:$16 sps:$4 sm:$0xff]  }
 0x371   : > { %v3245_v4 = vadd.f32 %v12257_v48, %v3106_v2  ;;  %10532 = vset.pattern.permute.xlu1 %v17812_v57  ;;  %4169 = vmatpush1.bf16.msra.mxu1 %v10617_v26  ;;  %v3499_v62 = vmul.f32 0.01, %v3243_v12  ;;  %vm3371_vm5 = vcmp.gt.f32.partialorder %v3243_v12, 0.0  ;;  %v2285_v26 = vmul.f32 %v12707_v41, %v2215_v44  ;;  %v10797_v2 = vld [vmem:[%s11730_s13 + $0x1e8] sm:$0xff] }
 0x372   : > { %1702 = vperm.xlu1 %10532, %v10796_v18   ;;  %v1667_v22 = vpop.permute.xlu1 %1666  ;;  %4170 = vmatprep.subr.bf16.mxu1 %v10622_v3  ;;  %vm3372_vm6 = vcmp.gt.f32.partialorder %v3244_v50, 0.0  ;;  %v3500_v51 = vmul.f32 0.01, %v3244_v50  ;;  %v3626_v31 = vsel %vm3370_vm4, %v3242_v1, %v3498_v29  ;;  %v1828_v29 = vadd.f32 %v1764_v16, %v1440_v55 }
 0x373   : > { %v1772_v52 = vmul.f32 %v11869_v60, %v1667_v22  ;;  %vm3373_vm7 = vcmp.gt.f32.partialorder %v3245_v4, 0.0  ;;  %v3501_v56 = vmul.f32 0.01, %v3245_v4  ;;  %v3627_v14 = vsel %vm3371_vm5, %v3243_v12, %v3499_v62 }
 0x374   : > { %v3628_v25 = vsel %vm3372_vm6, %v3244_v50, %v3500_v51  ;;  %v1771_v50 = vmul.f32 %v11869_v60, %v12393_v23  ;;  %v1447_v12 = vmul.f32 %v11872_v61, %v12761_v21  ;;  %v10626_v23 = vld [vmem:[%s17815_s29 + $0xa0] ss:$16 sps:$4 sm:$0xff]   ;;  %v10631_v21 = vld [vmem:[%s17815_s29 + $0xc4] ss:$16 sps:$4 sm:$0xff]  }
 0x375   : > { %v1836_v18 = vadd.f32 %v1772_v52, %v1448_v9  ;;  %4171 = vmatpush1.bf16.msra.mxu1 %v10620_v45  ;;  %v3629_v3 = vsel %vm3373_vm7, %v3245_v4, %v3501_v56  ;;  %v12804_v58 = vpack.c.bf16 %v3628_v25, %v3626_v31  ;;  %v2355_v45 = vadd.f32 %v12714_v6, %v2285_v26  ;;  %v10629_v31 = vld [vmem:[%s17815_s29 + $0xc0] ss:$16 sps:$4 sm:$0xff]  }
 0x376   : > { %1706 = vperm.xlu1 %10532, %v10797_v2   ;;  %v12810_v22 = vpack.c.bf16 %v3629_v3, %v3627_v14  ;;  %4172 = vmatprep.subr.bf16.mxu1 %v10625_v46  ;;  %v1835_v52 = vadd.f32 %v1771_v50, %v1447_v12 }
 0x377   : > { %v2224_v1 = vadd.f32 %v2160_v43, %v1836_v18  ;;  %v2023_v44 = vpop.permute.xlu1 %2022  ;;  %v10628_v43 = vld [vmem:[%s17815_s29 + $0xa4] ss:$16 sps:$4 sm:$0xff]   ;;  %v2483_v26 = vmul.f32 0.01, %v2355_v45  ;;  %vm2419_vm8 = vcmp.gt.f32.partialorder %v2355_v45, 0.0 }
 0x378   : > { %v2152_v4 = vmul.f32 %v11879_v63, %v2023_v44 }
 0x379   : > { %v2294_v62 = vmul.f32 %v12707_v41, %v2224_v1  ;;  %4173 = vmatpush1.bf16.msra.mxu1 %v10623_v40 }
 0x37a   : > { %v2216_v51 = vadd.f32 %v2152_v4, %v1828_v29  ;;  %10534 = vset.pattern.permute.xlu1 %v17810_v30  ;;  %4174 = vmatprep.subr.bf16.mxu1 %v10628_v43  ;;  %v2547_v43 = vsel %vm2419_vm8, %v2355_v45, %v2483_v26 }
 0x37b   : > { %v2364_v16 = vadd.f32 %v12714_v6, %v2294_v62  ;;  %2094 = vperm.xlu1 %10534, %v10797_v2   ;;  %v2051_v9 = vpop.permute.xlu1 %2050 }
 0x37c   : > { %v2286_v56 = vmul.f32 %v12707_v41, %v2216_v51  ;;  %v2159_v55 = vmul.f32 %v11879_v63, %v2051_v9  ;;  %v10634_v51 = vld [vmem:[%s17815_s29 + $0xe4] ss:$16 sps:$4 sm:$0xff]  }
 0x37d   : > { %4175 = vmatpush1.bf16.msra.mxu1 %v10626_v23  ;;  %v2492_v2 = vmul.f32 0.01, %v2364_v16  ;;  %vm2428_vm10 = vcmp.gt.f32.partialorder %v2364_v16, 0.0 }
 0x37e   : > { %v2356_v25 = vadd.f32 %v12714_v6, %v2286_v56  ;;  %v2223_v18 = vadd.f32 %v2159_v55, %v1835_v52  ;;  %v2843_v46 = vpop.f32.mrb[44].mxu0  ;;  %4176 = vmatprep.subr.bf16.mxu1 %v10631_v21  ;;  %v10632_v52 = vld [vmem:[%s17815_s29 + $0xe0] ss:$16 sps:$4 sm:$0xff]   ;;  %v10637_v55 = vld [vmem:[%s17815_s29 + $0x104] ss:$16 sps:$4 sm:$0xff]  }
 0x37f   : > { %v3107_v14 = vmul.f32 %v12246_v27, %v2843_v46  ;;  %v2845_v3 = vpop.f32.mrb[45].mxu0  ;;  %10535 = vset.pattern.permute.xlu1 %v17811_v47 }
 0x380   : > { %v2293_v40 = vmul.f32 %v12707_v41, %v2223_v18  ;;  %v3108_v1 = vmul.f32 %v12251_v59, %v2845_v3  ;;  %v2847_v44 = vpop.f32.mrb[46].mxu0  ;;  %1385 = vperm.xlu1 %10535, %v12453_v42   ;;  %v12841_v50 = vpop.permute.xlu1 %1295  ;;  %vm2420_vm9 = vcmp.gt.f32.partialorder %v2356_v25, 0.0  ;;  %v2484_v29 = vmul.f32 0.01, %v2356_v25  ;;  %v10798_v18 = vld [vmem:[%s11730_s13 + $0x1f0] sm:$0xff] }
 0x381   : > { %v3246_v12 = vadd.f32 %v12254_v39, %v3107_v14  ;;  %v3109_v4 = vmul.f32 %v12246_v27, %v2847_v44  ;;  %v2849_v62 = vpop.f32.mrb[47].mxu0  ;;  %4177 = vmatpush1.bf16.msra.mxu1 %v10629_v31  ;;  %v1301_v44 = vpop.permute.xlu0 %1300 }
 0x382   : > { %v2363_v42 = vadd.f32 %v12714_v6, %v2293_v40  ;;  %v3247_v23 = vadd.f32 %v12257_v48, %v3108_v1  ;;  %v3110_v21 = vmul.f32 %v12251_v59, %v2849_v62  ;;  %v2548_v9 = vsel %vm2420_vm9, %v2356_v25, %v2484_v29  ;;  %4178 = vmatprep.subr.bf16.mxu1 %v10634_v51  ;;  %v10799_v62 = vld [vmem:[%s11730_s13 + $0x1f8] sm:$0xff]  ;;  %v10640_v51 = vld [vmem:[%s17815_s29 + $0x124] ss:$16 sps:$4 sm:$0xff]  }
 0x383   : > { %v3248_v45 = vadd.f32 %v12254_v39, %v3109_v4  ;;  %v2592_v56 = vpack.c.bf16 %v2548_v9, %v2547_v43  ;;  %v2556_v25 = vsel %vm2428_vm10, %v2364_v16, %v2492_v2  ;;  %vm3374_vm13 = vcmp.gt.f32.partialorder %v3246_v12, 0.0 }
 0x384   : > { %v3249_v26 = vadd.f32 %v12257_v48, %v3110_v21  ;;  %10536 = vset.pattern.permute.xlu1 %v17812_v57  ;;  %vm2427_vm11 = vcmp.gt.f32.partialorder %v2363_v42, 0.0  ;;  %v2491_v31 = vmul.f32 0.01, %v2363_v42  ;;  %vm3375_vm12 = vcmp.gt.f32.partialorder %v3247_v23, 0.0  ;;  %v10635_v57 = vld [vmem:[%s17815_s29 + $0x100] ss:$16 sps:$4 sm:$0xff]  }
 0x385   : > { %1710 = vperm.xlu1 %10536, %v10798_v18   ;;  %2942 = vmatmul.mubr.bf16.gmra.mrb[84].mxu0 %v2592_v56  ;;  %v1639_v46 = vpop.permute.xlu1 %1638  ;;  %v3503_v14 = vmul.f32 0.01, %v3247_v23  ;;  %v3502_v3 = vmul.f32 0.01, %v3246_v12  ;;  %vm3376_vm15 = vcmp.gt.f32.partialorder %v3248_v45, 0.0  ;;  %v1442_v56 = vmul.f32 %v11872_v61, %v1301_v44 }
 0x386   : > { %v2555_v40 = vsel %vm2427_vm11, %v2363_v42, %v2491_v31  ;;  %2951 = vmatprep.mubr.bf16.mxu0 %v17811_v47  ;;  %4179 = vmatpush1.bf16.msra.mxu1 %v10632_v52  ;;  %vm3377_vm14 = vcmp.gt.f32.partialorder %v3249_v26, 0.0  ;;  %v3505_v1 = vmul.f32 0.01, %v3249_v26  ;;  %v3504_v2 = vmul.f32 0.01, %v3248_v45 }
 0x387   : > { %v2596_v16 = vpack.c.bf16 %v2556_v25, %v2555_v40  ;;  %4180 = vmatprep.subr.bf16.mxu1 %v10637_v55  ;;  %v3631_v29 = vsel %vm3375_vm12, %v3247_v23, %v3503_v14  ;;  %v3630_v21 = vsel %vm3374_vm13, %v3246_v12, %v3502_v3  ;;  %v10638_v23 = vld [vmem:[%s17815_s29 + $0x120] ss:$16 sps:$4 sm:$0xff]   ;;  %v10643_v12 = vld [vmem:[%s17815_s29 + $0x144] ss:$16 sps:$4 sm:$0xff]   ;;  %v2154_v25 = vmul.f32 %v11879_v63, %v12362_v19  ;;  %v1336_v40 = vpop.permute.xlu0 %1335 }
 0x388   : > { %v3633_v4 = vsel %vm3377_vm14, %v3249_v26, %v3505_v1  ;;  %v3632_v9 = vsel %vm3376_vm15, %v3248_v45, %v3504_v2  ;;  %v10641_v26 = vld [vmem:[%s17815_s29 + $0x140] ss:$16 sps:$4 sm:$0xff]  }
 0x389   : > { %1714 = vperm.xlu1 %10536, %v10799_v62   ;;  %2982 = vmatmul.mubr.bf16.gmra.mrb[4].mxu1 %v2596_v16  ;;  %v1643_v43 = vpop.permute.xlu1 %1642  ;;  %v12871_v42 = vpack.c.bf16 %v3633_v4, %v3631_v29  ;;  %v12878_v52 = vpack.c.bf16 %v3632_v9, %v3630_v21  ;;  %v1773_v9 = vmul.f32 %v11869_v60, %v12400_v35 }
 0x38a   : > { %2991 = vmatprep.mubr.bf16.mxu1 %v17811_v47  ;;  %4181 = vmatpush1.bf16.msra.mxu1 %v10635_v57  ;;  %v1766_v55 = vmul.f32 %v11869_v60, %v1643_v43  ;;  %v10644_v57 = vld [vmem:[%s17815_s29 + $0x160] ss:$16 sps:$4 sm:$0xff]   ;;  %v1765_v43 = vmul.f32 %v11869_v60, %v1639_v46  ;;  %v1441_v46 = vmul.f32 %v11872_v61, %v12841_v50 }
 0x38b   : > { %4182 = vmatprep.subr.bf16.mxu1 %v10640_v51  ;;  %v10650_v50 = vld [vmem:[%s17815_s29 + $0x1a0] ss:$16 sps:$4 sm:$0xff]  }
 0x38c   : > { %v1830_v31 = vadd.f32 %v1766_v55, %v1442_v56  ;;  %v1449_v56 = vmul.f32 %v11872_v61, %v1336_v40  ;;  %v10647_v55 = vld [vmem:[%s17815_s29 + $0x180] ss:$16 sps:$4 sm:$0xff]  }
 0x38d   : > { %10538 = vset.pattern.permute.xlu1 %v17810_v30  ;;  %v10646_v30 = vld [vmem:[%s17815_s29 + $0x164] ss:$16 sps:$4 sm:$0xff]  }
 0x38e   : > { %2102 = vperm.xlu1 %10538, %v10799_v62   ;;  %v12886_v45 = vpop.permute.xlu1 %1340  ;;  %4183 = vmatpush1.bf16.msra.mxu1 %v10638_v23  ;;  %v2218_v1 = vadd.f32 %v2154_v25, %v1830_v31  ;;  %v10649_v62 = vld [vmem:[%s17815_s29 + $0x184] ss:$16 sps:$4 sm:$0xff]  }
 0x38f   : > { %4184 = vmatprep.subr.bf16.mxu1 %v10643_v12 }
 0x391   : > { %v2853_v18 = vpop.f32.mrb[48].mxu0 }
 0x392   : > { %v3111_v14 = vmul.f32 %v12246_v27, %v2853_v18  ;;  %v2855_v3 = vpop.f32.mrb[49].mxu0  ;;  %4185 = vmatpush1.bf16.msra.mxu1 %v10641_v26  ;;  %v2288_v26 = vmul.f32 %v12707_v41, %v2218_v1 }
 0x393   : > { %v3112_v16 = vmul.f32 %v12251_v59, %v2855_v3  ;;  %v2857_v2 = vpop.f32.mrb[50].mxu0  ;;  %v1675_v44 = vpop.permute.xlu1 %1674  ;;  %4186 = vmatprep.subr.bf16.mxu1 %v10646_v30  ;;  %v1829_v30 = vadd.f32 %v1765_v43, %v1441_v46  ;;  %v10652_v3 = vld [vmem:[%s17815_s29 + $0x1a4] ss:$16 sps:$4 sm:$0xff]  }
 0x394   : > { %v3250_v19 = vadd.f32 %v12254_v39, %v3111_v14  ;;  %v3113_v29 = vmul.f32 %v12246_v27, %v2857_v2  ;;  %v2859_v4 = vpop.f32.mrb[51].mxu0 }
 0x395   : > { %v3251_v51 = vadd.f32 %v12257_v48, %v3112_v16  ;;  %v3114_v21 = vmul.f32 %v12251_v59, %v2859_v4  ;;  %v2358_v16 = vadd.f32 %v12714_v6, %v2288_v26 }
 0x396   : > { %v3252_v23 = vadd.f32 %v12254_v39, %v3113_v29  ;;  %4187 = vmatpush1.bf16.msra.mxu1 %v10644_v57  ;;  %v3506_v12 = vmul.f32 0.01, %v3250_v19  ;;  %vm3378_vm0 = vcmp.gt.f32.partialorder %v3250_v19, 0.0  ;;  %v1837_v29 = vadd.f32 %v1773_v9, %v1449_v56  ;;  %v12940_v56 = vpop.permute.xlu0 %1305 }
 0x397   : > { %v3253_v31 = vadd.f32 %v12257_v48, %v3114_v21  ;;  %4188 = vmatprep.subr.bf16.mxu1 %v10649_v62  ;;  %v3507_v25 = vmul.f32 0.01, %v3251_v51  ;;  %vm3379_vm2 = vcmp.gt.f32.partialorder %v3251_v51, 0.0  ;;  %v1774_v62 = vmul.f32 %v11869_v60, %v1675_v44  ;;  %v10655_v21 = vld [vmem:[%s17815_s29 + $0x1c4] ss:$16 sps:$4 sm:$0xff]  }
 0x398   : > { %v2027_v35 = vpop.permute.xlu1 %2026  ;;  %vm3380_vm1 = vcmp.gt.f32.partialorder %v3252_v23, 0.0  ;;  %v3508_v18 = vmul.f32 0.01, %v3252_v23  ;;  %v3634_v57 = vsel %vm3378_vm0, %v3250_v19, %v3506_v12  ;;  %v1450_v9 = vmul.f32 %v11872_v61, %v12886_v45  ;;  %v10653_v44 = vld [vmem:[%s17815_s29 + $0x1c0] ss:$16 sps:$4 sm:$0xff]  }
 0x399   : > { %v2153_v14 = vmul.f32 %v11879_v63, %v2027_v35  ;;  %vm3381_vm3 = vcmp.gt.f32.partialorder %v3253_v31, 0.0  ;;  %v3509_v40 = vmul.f32 0.01, %v3253_v31  ;;  %v2486_v26 = vmul.f32 0.01, %v2358_v16 }
 0x39a   : > { %4189 = vmatpush1.bf16.msra.mxu1 %v10647_v55  ;;  %v3636_v1 = vsel %vm3380_vm1, %v3252_v23, %v3508_v18  ;;  %v3635_v55 = vsel %vm3379_vm2, %v3251_v51, %v3507_v25  ;;  %v1838_v25 = vadd.f32 %v1774_v62, %v1450_v9  ;;  %vm2422_vm4 = vcmp.gt.f32.partialorder %v2358_v16, 0.0 }
 0x39b   : > { %v2217_v2 = vadd.f32 %v2153_v14, %v1829_v30  ;;  %4190 = vmatprep.subr.bf16.mxu1 %v10652_v3  ;;  %v12928_v4 = vpack.c.bf16 %v3636_v1, %v3634_v57  ;;  %v3637_v46 = vsel %vm3381_vm3, %v3253_v31, %v3509_v40  ;;  %v10658_v31 = vld [vmem:[%s17815_s29 + $0x1e4] ss:$16 sps:$4 sm:$0xff]   ;;  %v10656_v3 = vld [vmem:[%s17815_s29 + $0x1e0] ss:$16 sps:$4 sm:$0xff]   ;;  %v2550_v1 = vsel %vm2422_vm4, %v2358_v16, %v2486_v26 }
 0x39c   : > { %v2059_v43 = vpop.permute.xlu1 %2058  ;;  %v12936_v23 = vpack.c.bf16 %v3637_v46, %v3635_v55 }
 0x39d   : > { %17816 = vst [vmem:[#allocation26_spill] sm:$0xff] %v12928_v4  ;;  %v2287_v35 = vmul.f32 %v12707_v41, %v2217_v2  ;;  %v2161_v19 = vmul.f32 %v11879_v63, %v2059_v43  ;;  %v12955_v2 = vpop.permute.xlu0 %1360  ;;  %v10661_v43 = vld [vmem:[%s17817_s7 + $0x4] ss:$8 sps:$4 sm:$0xff]  }
 0x39e   : > { %4191 = vmatpush1.bf16.msra.mxu1 %v10650_v50 }
 0x39f   : > { %v2357_v12 = vadd.f32 %v12714_v6, %v2287_v35  ;;  %v2225_v51 = vadd.f32 %v2161_v19, %v1837_v29  ;;  %4192 = vmatprep.subr.bf16.mxu1 %v10655_v21 }
 0x3a0   : > { %v2063_v18 = vpop.permute.xlu1 %2062 }
 0x3a1   : > { %v2295_v45 = vmul.f32 %v12707_v41, %v2225_v51  ;;  %v2162_v30 = vmul.f32 %v11879_v63, %v2063_v18  ;;  %vm2421_vm5 = vcmp.gt.f32.partialorder %v2357_v12, 0.0  ;;  %v2485_v14 = vmul.f32 0.01, %v2357_v12 }
 0x3a2   : > { %4193 = vmatpush1.bf16.msra.mxu1 %v10653_v44 }
 0x3a3   : > { %v2365_v50 = vadd.f32 %v12714_v6, %v2295_v45  ;;  %v2226_v40 = vadd.f32 %v2162_v30, %v1838_v25  ;;  %v2549_v57 = vsel %vm2421_vm5, %v2357_v12, %v2485_v14  ;;  %4194 = vmatprep.subr.bf16.mxu1 %v10658_v31 }
 0x3a4   : > { %v2863_v29 = vpop.f32.mrb[52].mxu0  ;;  %v2593_v62 = vpack.c.bf16 %v2550_v1, %v2549_v57  ;;  %v12971_v57 = vpop.permute.xlu0 %1370 }
 0x3a5   : > { %v2296_v21 = vmul.f32 %v12707_v41, %v2226_v40  ;;  %v3115_v55 = vmul.f32 %v12246_v27, %v2863_v29  ;;  %v2865_v46 = vpop.f32.mrb[53].mxu0  ;;  %v1311_v35 = vpop.permute.xlu1 %1310  ;;  %v2493_v16 = vmul.f32 0.01, %v2365_v50  ;;  %vm2429_vm6 = vcmp.gt.f32.partialorder %v2365_v50, 0.0 }
 0x3a6   : > { %v3116_v19 = vmul.f32 %v12251_v59, %v2865_v46  ;;  %v2867_v9 = vpop.f32.mrb[54].mxu0  ;;  %2952 = vmatmul.mubr.bf16.gmra.mrb[88].mxu0 %v2593_v62  ;;  %4195 = vmatpush1.bf16.msra.mxu1 %v10656_v3 }
 0x3a7   : > { %v2366_v44 = vadd.f32 %v12714_v6, %v2296_v21  ;;  %v3254_v12 = vadd.f32 %v12254_v39, %v3115_v55  ;;  %v3117_v51 = vmul.f32 %v12246_v27, %v2867_v9  ;;  %v2869_v26 = vpop.f32.mrb[55].mxu0  ;;  %2961 = vmatprep.mubr.bf16.mxu0 %v17811_v47  ;;  %6706 = vmatprep.subr.bf16.mxu1 %v10661_v43 }
 0x3a8   : > { %v3255_v31 = vadd.f32 %v12257_v48, %v3116_v19  ;;  %v3118_v25 = vmul.f32 %v12251_v59, %v2869_v26  ;;  %v2557_v3 = vsel %vm2429_vm6, %v2365_v50, %v2493_v16 }
 0x3a9   : > { %v3256_v18 = vadd.f32 %v12254_v39, %v3117_v51  ;;  %vm2430_vm7 = vcmp.gt.f32.partialorder %v2366_v44, 0.0  ;;  %v2494_v45 = vmul.f32 0.01, %v2366_v44  ;;  %vm3382_vm8 = vcmp.gt.f32.partialorder %v3254_v12, 0.0 }
 0x3aa   : > { %v3257_v30 = vadd.f32 %v12257_v48, %v3118_v25  ;;  %v1647_v14 = vpop.permute.xlu1 %1646  ;;  %v3510_v40 = vmul.f32 0.01, %v3254_v12  ;;  %v3511_v29 = vmul.f32 0.01, %v3255_v31  ;;  %vm3383_vm10 = vcmp.gt.f32.partialorder %v3255_v31, 0.0  ;;  %v2035_v25 = vpop.permute.xlu0 %2034 }
 0x3ab   : > { %v2558_v1 = vsel %vm2430_vm7, %v2366_v44, %v2494_v45  ;;  %vm3384_vm9 = vcmp.gt.f32.partialorder %v3256_v18, 0.0  ;;  %v3512_v62 = vmul.f32 0.01, %v3256_v18  ;;  %v1443_v44 = vmul.f32 %v11872_v61, %v12940_v56 }
 0x3ac   : > { %v2597_v21 = vpack.c.bf16 %v2558_v1, %v2557_v3  ;;  %vm3385_vm11 = vcmp.gt.f32.partialorder %v3257_v30, 0.0  ;;  %v3513_v43 = vmul.f32 0.01, %v3257_v30  ;;  %v3638_v55 = vsel %vm3382_vm8, %v3254_v12, %v3510_v40 }
 0x3ad   : > { %v3640_v46 = vsel %vm3384_vm9, %v3256_v18, %v3512_v62  ;;  %v3639_v50 = vsel %vm3383_vm10, %v3255_v31, %v3511_v29  ;;  %v1767_v51 = vmul.f32 %v11869_v60, %v1647_v14  ;;  %v2155_v12 = vmul.f32 %v11879_v63, %v2035_v25 }
 0x3ae   : > { %2992 = vmatmul.mubr.bf16.gmra.mrb[8].mxu1 %v2597_v21  ;;  %v12973_v19 = vpack.c.bf16 %v3640_v46, %v3638_v55  ;;  %v3641_v16 = vsel %vm3385_vm11, %v3257_v30, %v3513_v43  ;;  %v2071_v18 = vpop.permute.xlu0 %2070  ;;  %v1444_v40 = vmul.f32 %v11872_v61, %v1311_v35  ;;  %v1768_v31 = vmul.f32 %v11869_v60, %v12420_v36 }
 0x3af   : > { %v1346_v9 = vpop.permute.xlu1 %1345  ;;  %3001 = vmatprep.mubr.bf16.mxu1 %v17811_v47  ;;  %v12979_v26 = vpack.c.bf16 %v3641_v16, %v3639_v50  ;;  %v1831_v3 = vadd.f32 %v1767_v51, %v1443_v44  ;;  %v2164_v46 = vmul.f32 %v11879_v63, %v2071_v18 }
 0x3b0   : > { %17818 = vst [vmem:[#allocation27_spill] sm:$0xff] %v12973_v19  ;;  %v1832_v36 = vadd.f32 %v1768_v31, %v1444_v40 }
 0x3b1   : > { %17819 = vst [vmem:[#allocation28_spill] sm:$0xff] %v12979_v26  ;;  %v2219_v30 = vadd.f32 %v2155_v12, %v1831_v3  ;;  %v1451_v3 = vmul.f32 %v11872_v61, %v1346_v9 }
 0x3b3   : > { %v1351_v45 = vpop.permute.xlu1 %1350 }
 0x3b4   : > { %v1452_v14 = vmul.f32 %v11872_v61, %v1351_v45  ;;  %v2289_v45 = vmul.f32 %v12707_v41, %v2219_v30 }
 0x3b7   : > { %v2873_v1 = vpop.f32.mrb[56].mxu0 }
 0x3b8   : > { %v3119_v29 = vmul.f32 %v12246_v27, %v2873_v1  ;;  %v2875_v56 = vpop.f32.mrb[57].mxu0  ;;  %v1683_v62 = vpop.permute.xlu1 %1682 }
 0x3b9   : > { %v3120_v21 = vmul.f32 %v12251_v59, %v2875_v56  ;;  %v1776_v43 = vmul.f32 %v11869_v60, %v1683_v62  ;;  %v2877_v55 = vpop.f32.mrb[58].mxu0 }
 0x3ba   : > { %v3258_v35 = vadd.f32 %v12254_v39, %v3119_v29  ;;  %v3121_v50 = vmul.f32 %v12246_v27, %v2877_v55  ;;  %v2879_v16 = vpop.f32.mrb[59].mxu0 }
 0x3bb   : > { %v3259_v44 = vadd.f32 %v12257_v48, %v3120_v21  ;;  %v1840_v51 = vadd.f32 %v1776_v43, %v1452_v14  ;;  %v3122_v25 = vmul.f32 %v12251_v59, %v2879_v16  ;;  %v1775_v14 = vmul.f32 %v11869_v60, %v12441_v0 }
 0x3bc   : > { %v3260_v12 = vadd.f32 %v12254_v39, %v3121_v50  ;;  %v3514_v1 = vmul.f32 0.01, %v3258_v35  ;;  %vm3386_vm12 = vcmp.gt.f32.partialorder %v3258_v35, 0.0  ;;  %v2359_v21 = vadd.f32 %v12714_v6, %v2289_v45 }
 0x3bd   : > { %v2228_v56 = vadd.f32 %v2164_v46, %v1840_v51  ;;  %v3261_v18 = vadd.f32 %v12257_v48, %v3122_v25  ;;  %v2039_v29 = vpop.permute.xlu1 %2038  ;;  %v3515_v62 = vmul.f32 0.01, %v3259_v44  ;;  %vm3387_vm13 = vcmp.gt.f32.partialorder %v3259_v44, 0.0 }
 0x3be   : > { %v2156_v40 = vmul.f32 %v11879_v63, %v2039_v29  ;;  %vm3388_vm14 = vcmp.gt.f32.partialorder %v3260_v12, 0.0  ;;  %v3516_v31 = vmul.f32 0.01, %v3260_v12  ;;  %v3642_v55 = vsel %vm3386_vm12, %v3258_v35, %v3514_v1 }
 0x3bf   : > { %v2298_v30 = vmul.f32 %v12707_v41, %v2228_v56  ;;  %vm3389_vm15 = vcmp.gt.f32.partialorder %v3261_v18, 0.0  ;;  %v3517_v9 = vmul.f32 0.01, %v3261_v18  ;;  %v3643_v16 = vsel %vm3387_vm13, %v3259_v44, %v3515_v62 }
 0x3c0   : > { %v2220_v43 = vadd.f32 %v2156_v40, %v1832_v36  ;;  %v3644_v46 = vsel %vm3388_vm14, %v3260_v12, %v3516_v31  ;;  %v1839_v29 = vadd.f32 %v1775_v14, %v1451_v3  ;;  %v2487_v36 = vmul.f32 0.01, %v2359_v21  ;;  %v2075_v40 = vpop.permute.xlu0 %2074 }
 0x3c1   : > { %v2067_v50 = vpop.permute.xlu1 %2066  ;;  %v3645_v51 = vsel %vm3389_vm15, %v3261_v18, %v3517_v9  ;;  %v13003_v25 = vpack.c.bf16 %v3644_v46, %v3642_v55  ;;  %v2368_v56 = vadd.f32 %v12714_v6, %v2298_v30  ;;  %vm2423_vm0 = vcmp.gt.f32.partialorder %v2359_v21, 0.0 }
 0x3c2   : > { %v2290_v19 = vmul.f32 %v12707_v41, %v2220_v43  ;;  %v2163_v26 = vmul.f32 %v11879_v63, %v2067_v50  ;;  %v13007_v0 = vpack.c.bf16 %v3645_v51, %v3643_v16  ;;  %v2551_v18 = vsel %vm2423_vm0, %v2359_v21, %v2487_v36 }
 0x3c3   : > { %v2496_v1 = vmul.f32 0.01, %v2368_v56  ;;  %vm2432_vm2 = vcmp.gt.f32.partialorder %v2368_v56, 0.0  ;;  %v2165_v43 = vmul.f32 %v11879_v63, %v2075_v40 }
 0x3c4   : > { %v2360_v4 = vadd.f32 %v12714_v6, %v2290_v19  ;;  %v2227_v45 = vadd.f32 %v2163_v26, %v1839_v29 }
 0x3c5   : > { %v2560_v55 = vsel %vm2432_vm2, %v2368_v56, %v2496_v1 }
 0x3c6   : > { %v2297_v35 = vmul.f32 %v12707_v41, %v2227_v45  ;;  %v1356_v44 = vpop.permute.xlu1 %1355  ;;  %vm2424_vm1 = vcmp.gt.f32.partialorder %v2360_v4, 0.0  ;;  %v2488_v12 = vmul.f32 0.01, %v2360_v4 }
 0x3c7   : > { %v1453_v46 = vmul.f32 %v11872_v61, %v1356_v44 }
 0x3c8   : > { %v2367_v3 = vadd.f32 %v12714_v6, %v2297_v35  ;;  %v2552_v62 = vsel %vm2424_vm1, %v2360_v4, %v2488_v12 }
 0x3c9   : > { %v2594_v31 = vpack.c.bf16 %v2552_v62, %v2551_v18 }
 0x3ca   : > { %v2883_v14 = vpop.f32.mrb[60].mxu0  ;;  %vm2431_vm3 = vcmp.gt.f32.partialorder %v2367_v3, 0.0  ;;  %v2495_v30 = vmul.f32 0.01, %v2367_v3 }
 0x3cb   : > { %v3123_v19 = vmul.f32 %v12246_v27, %v2883_v14  ;;  %v2885_v26 = vpop.f32.mrb[61].mxu0  ;;  %2962 = vmatmul.mubr.bf16.gmra.mrb[92].mxu0 %v2594_v31  ;;  %v1687_v9 = vpop.permute.xlu1 %1686 }
 0x3cc   : > { %v3124_v50 = vmul.f32 %v12251_v59, %v2885_v26  ;;  %v1777_v4 = vmul.f32 %v11869_v60, %v1687_v9  ;;  %v2887_v21 = vpop.f32.mrb[62].mxu0  ;;  %4549 = vmatprep.mubr.bf16.mxu0 %v12294_v24  ;;  %v2559_v16 = vsel %vm2431_vm3, %v2367_v3, %v2495_v30  ;;  %v1454_v26 = vmul.f32 %v11872_v61, %v12955_v2 }
 0x3cd   : > { %v3262_v51 = vadd.f32 %v12254_v39, %v3123_v19  ;;  %v3125_v29 = vmul.f32 %v12246_v27, %v2887_v21  ;;  %v2889_v45 = vpop.f32.mrb[63].mxu0  ;;  %v2598_v36 = vpack.c.bf16 %v2560_v55, %v2559_v16 }
 0x3ce   : > { %v3263_v35 = vadd.f32 %v12257_v48, %v3124_v50  ;;  %v1841_v12 = vadd.f32 %v1777_v4, %v1453_v46  ;;  %v3126_v56 = vmul.f32 %v12251_v59, %v2889_v45 }
 0x3cf   : > { %v3264_v44 = vadd.f32 %v12254_v39, %v3125_v29  ;;  %3002 = vmatmul.mubr.bf16.gmra.mrb[12].mxu1 %v2598_v36  ;;  %v1691_v1 = vpop.permute.xlu1 %1690  ;;  %v3518_v18 = vmul.f32 0.01, %v3262_v51  ;;  %vm3390_vm4 = vcmp.gt.f32.partialorder %v3262_v51, 0.0 }
 0x3d0   : > { %v2229_v62 = vadd.f32 %v2165_v43, %v1841_v12  ;;  %v3265_v40 = vadd.f32 %v12257_v48, %v3126_v56  ;;  %v1778_v3 = vmul.f32 %v11869_v60, %v1691_v1  ;;  %3011 = vmatprep.mubr.bf16.mxu1 %v17811_v47  ;;  %vm3391_vm5 = vcmp.gt.f32.partialorder %v3263_v35, 0.0 }
 0x3d1   : > { %v3519_v31 = vmul.f32 0.01, %v3263_v35  ;;  %vm3392_vm6 = vcmp.gt.f32.partialorder %v3264_v44, 0.0  ;;  %v3520_v14 = vmul.f32 0.01, %v3264_v44  ;;  %v3646_v9 = vsel %vm3390_vm4, %v3262_v51, %v3518_v18 }
 0x3d2   : > { %v2299_v30 = vmul.f32 %v12707_v41, %v2229_v62  ;;  %vm3393_vm7 = vcmp.gt.f32.partialorder %v3265_v40, 0.0  ;;  %v3521_v19 = vmul.f32 0.01, %v3265_v40  ;;  %v1842_v21 = vadd.f32 %v1778_v3, %v1454_v26 }
 0x3d3   : > { %4550 = vmatmul.mubr.bf16.vlgmr.msra.gmra.mrb[96].mxu0 %v12292_v8  ;;  %v3648_v43 = vsel %vm3392_vm6, %v3264_v44, %v3520_v14  ;;  %v3647_v46 = vsel %vm3391_vm5, %v3263_v35, %v3519_v31  ;;  %v2083_v35 = vpop.permute.xlu0 %2082 }
 0x3d4   : > { %4559 = vmatprep.mubr.bf16.mxu0 %v12333_v53  ;;  %v2079_v55 = vpop.permute.xlu1 %2078  ;;  %v3649_v50 = vsel %vm3393_vm7, %v3265_v40, %v3521_v19  ;;  %v13032_v4 = vpack.c.bf16 %v3648_v43, %v3646_v9  ;;  %v2369_v45 = vadd.f32 %v12714_v6, %v2299_v30  ;;  %v2167_v3 = vmul.f32 %v11879_v63, %v2083_v35 }
 0x3d5   : > { %v2166_v16 = vmul.f32 %v11879_v63, %v2079_v55  ;;  %v13035_v29 = vpack.c.bf16 %v3649_v50, %v3647_v46 }
 0x3d6   : > { %v2497_v51 = vmul.f32 0.01, %v2369_v45  ;;  %vm2433_vm8 = vcmp.gt.f32.partialorder %v2369_v45, 0.0 }
 0x3d7   : > { %v2230_v36 = vadd.f32 %v2166_v16, %v1842_v21 }
 0x3d9   : > { %v2300_v2 = vmul.f32 %v12707_v41, %v2230_v36  ;;  %v1366_v12 = vpop.permute.xlu1 %1365  ;;  %v2561_v41 = vsel %vm2433_vm8, %v2369_v45, %v2497_v51 }
 0x3da   : > { %v1455_v31 = vmul.f32 %v11872_v61, %v1366_v12 }
 0x3db   : > { %v2370_v56 = vadd.f32 %v12714_v6, %v2300_v2  ;;  %4560 = vmatmul.mubr.bf16.gmra.mrb[100].mxu0 %v12331_v11 }
 0x3dc   : > { %4569 = vmatprep.mubr.bf16.mxu0 %v12436_v38 }
 0x3dd   : > { %v2893_v44 = vpop.f32.mrb[64].mxu0  ;;  %vm2434_vm9 = vcmp.gt.f32.partialorder %v2370_v56, 0.0  ;;  %v2498_v1 = vmul.f32 0.01, %v2370_v56 }
 0x3de   : > { %v3127_v18 = vmul.f32 %v12246_v27, %v2893_v44  ;;  %v2895_v62 = vpop.f32.mrb[65].mxu0  ;;  %v1695_v40 = vpop.permute.xlu1 %1694  ;;  %v13058_v44 = vld [vmem:[%s11887_s2] ss:$0 sm:$0xff]  ;;  %s18359_s2 = sld [smem:[#allocation192_spill]] }
 0x3df   : > { %v3128_v6 = vmul.f32 %v12251_v59, %v2895_v62  ;;  %v1779_v14 = vmul.f32 %v11869_v60, %v1695_v40  ;;  %v2897_v30 = vpop.f32.mrb[66].mxu0  ;;  %v2562_v19 = vsel %vm2434_vm9, %v2370_v56, %v2498_v1  ;;  %v1456_v62 = vmul.f32 %v11872_v61, %v12971_v57 }
 0x3e0   : > { %v3266_v26 = vadd.f32 %v12254_v39, %v3127_v18  ;;  %v3129_v9 = vmul.f32 %v12246_v27, %v2897_v30  ;;  %v2899_v43 = vpop.f32.mrb[67].mxu0  ;;  %v2599_v55 = vpack.c.bf16 %v2562_v19, %v2561_v41 }
 0x3e1   : > { %v3267_v46 = vadd.f32 %v12257_v48, %v3128_v6  ;;  %v1843_v50 = vadd.f32 %v1779_v14, %v1455_v31  ;;  %v3130_v21 = vmul.f32 %v12251_v59, %v2899_v43  ;;  %v13069_v43 = vld [vmem:[%s11698_s18] ss:$0 sm:$0xff]  ;;  %s18394_s18 = sld [smem:[#allocation195_spill]] }
 0x3e2   : > { %v3268_v16 = vadd.f32 %v12254_v39, %v3129_v9  ;;  %3012 = vmatmul.mubr.bf16.gmra.mrb[16].mxu1 %v2599_v55  ;;  %v1699_v45 = vpop.permute.xlu1 %1698  ;;  %v3522_v36 = vmul.f32 0.01, %v3266_v26  ;;  %vm3394_vm10 = vcmp.gt.f32.partialorder %v3266_v26, 0.0 }
 0x3e3   : > { %v2231_v2 = vadd.f32 %v2167_v3, %v1843_v50  ;;  %v3269_v12 = vadd.f32 %v12257_v48, %v3130_v21  ;;  %v1780_v51 = vmul.f32 %v11869_v60, %v1699_v45  ;;  %4570 = vmatmul.mubr.bf16.gmra.mrb[104].mxu0 %v12431_v49  ;;  %3021 = vmatprep.mubr.bf16.mxu1 %v17811_v47  ;;  %vm3395_vm11 = vcmp.gt.f32.partialorder %v3267_v46, 0.0  ;;  %v17820_v21 = vld [vmem:[#allocation25_spill] sm:$0xff]  ;;  %v2091_v45 = vpop.permute.xlu0 %2090 }
 0x3e4   : > { %4579 = vmatprep.mubr.bf16.mxu0 %v12464_v32  ;;  %v3523_v56 = vmul.f32 0.01, %v3267_v46  ;;  %vm3396_vm12 = vcmp.gt.f32.partialorder %v3268_v16, 0.0  ;;  %v3524_v35 = vmul.f32 0.01, %v3268_v16  ;;  %v3650_v40 = vsel %vm3394_vm10, %v3266_v26, %v3522_v36 }
 0x3e5   : > { %v2301_v1 = vmul.f32 %v13058_v44, %v2231_v2  ;;  %vm3397_vm13 = vcmp.gt.f32.partialorder %v3269_v12, 0.0  ;;  %v3525_v18 = vmul.f32 0.01, %v3269_v12  ;;  %v1844_v30 = vadd.f32 %v1780_v51, %v1456_v62 }
 0x3e6   : > { %v3652_v3 = vsel %vm3396_vm12, %v3268_v16, %v3524_v35  ;;  %v3651_v31 = vsel %vm3395_vm11, %v3267_v46, %v3523_v56 }
 0x3e7   : > { %v2087_v41 = vpop.permute.xlu1 %2086  ;;  %v3653_v6 = vsel %vm3397_vm13, %v3269_v12, %v3525_v18  ;;  %v13063_v14 = vpack.c.bf16 %v3652_v3, %v3650_v40  ;;  %v2371_v55 = vadd.f32 %v13069_v43, %v2301_v1  ;;  %v1381_v3 = vpop.permute.xlu0 %1380 }
 0x3e8   : > { %v2168_v19 = vmul.f32 %v11879_v63, %v2087_v41  ;;  %v13066_v9 = vpack.c.bf16 %v3653_v6, %v3651_v31 }
 0x3e9   : > { %v2499_v46 = vmul.f32 0.01, %v2371_v55  ;;  %vm2435_vm14 = vcmp.gt.f32.partialorder %v2371_v55, 0.0 }
 0x3ea   : > { %v2232_v50 = vadd.f32 %v2168_v19, %v1844_v30 }
 0x3eb   : > { %4580 = vmatmul.mubr.bf16.gmra.mrb[108].mxu0 %v17820_v21  ;;  %v2563_v35 = vsel %vm2435_vm14, %v2371_v55, %v2499_v46 }
 0x3ec   : > { %v2302_v57 = vmul.f32 %v13058_v44, %v2232_v50  ;;  %4589 = vmatprep.mubr.bf16.mxu0 %v12493_v13  ;;  %v1376_v26 = vpop.permute.xlu1 %1375  ;;  %v2169_v50 = vmul.f32 %v11879_v63, %v2091_v45 }
 0x3ed   : > { %v1457_v1 = vmul.f32 %v11872_v61, %v1376_v26 }
 0x3ee   : > { %v2372_v16 = vadd.f32 %v13069_v43, %v2302_v57 }
 0x3f0   : > { %v2903_v36 = vpop.f32.mrb[68].mxu0  ;;  %vm2436_vm15 = vcmp.gt.f32.partialorder %v2372_v16, 0.0  ;;  %v2500_v2 = vmul.f32 0.01, %v2372_v16 }
 0x3f1   : > { %v3131_v12 = vmul.f32 %v12246_v27, %v2903_v36  ;;  %v2905_v51 = vpop.f32.mrb[69].mxu0  ;;  %v1703_v56 = vpop.permute.xlu1 %1702 }
 0x3f2   : > { %v3132_v18 = vmul.f32 %v12251_v59, %v2905_v51  ;;  %v1781_v62 = vmul.f32 %v11869_v60, %v1703_v56  ;;  %v2907_v40 = vpop.f32.mrb[70].mxu0  ;;  %v2564_v41 = vsel %vm2436_vm15, %v2372_v16, %v2500_v2  ;;  %v1458_v16 = vmul.f32 %v11872_v61, %v1381_v3 }
 0x3f3   : > { %v3270_v31 = vadd.f32 %v12254_v39, %v3131_v12  ;;  %v3133_v6 = vmul.f32 %v12246_v27, %v2907_v40  ;;  %v2909_v30 = vpop.f32.mrb[71].mxu0  ;;  %4590 = vmatmul.mubr.bf16.gmra.mrb[112].mxu0 %v12501_v15  ;;  %v2600_v19 = vpack.c.bf16 %v2564_v41, %v2563_v35 }
 0x3f4   : > { %v3271_v55 = vadd.f32 %v12257_v48, %v3132_v18  ;;  %v1845_v57 = vadd.f32 %v1781_v62, %v1457_v1  ;;  %v3134_v26 = vmul.f32 %v12251_v59, %v2909_v30  ;;  %4599 = vmatprep.mubr.bf16.mxu0 %v12526_v20 }
 0x3f5   : > { %v3272_v46 = vadd.f32 %v12254_v39, %v3133_v6  ;;  %3022 = vmatmul.mubr.bf16.gmra.mrb[20].mxu1 %v2600_v19  ;;  %v1707_v36 = vpop.permute.xlu1 %1706  ;;  %v3526_v2 = vmul.f32 0.01, %v3270_v31  ;;  %vm3398_vm0 = vcmp.gt.f32.partialorder %v3270_v31, 0.0 }
 0x3f6   : > { %v2233_v12 = vadd.f32 %v2169_v50, %v1845_v57  ;;  %v3273_v51 = vadd.f32 %v12257_v48, %v3134_v26  ;;  %v1782_v56 = vmul.f32 %v11869_v60, %v1707_v36  ;;  %3031 = vmatprep.mubr.bf16.mxu1 %v17811_v47  ;;  %vm3399_vm1 = vcmp.gt.f32.partialorder %v3271_v55, 0.0  ;;  %v1391_v57 = vpop.permute.xlu0 %1390 }
 0x3f7   : > { %v3527_v45 = vmul.f32 0.01, %v3271_v55  ;;  %vm3400_vm2 = vcmp.gt.f32.partialorder %v3272_v46, 0.0  ;;  %v3528_v35 = vmul.f32 0.01, %v3272_v46  ;;  %v3654_v62 = vsel %vm3398_vm0, %v3270_v31, %v3526_v2 }
 0x3f8   : > { %v2303_v1 = vmul.f32 %v13058_v44, %v2233_v12  ;;  %vm3401_vm3 = vcmp.gt.f32.partialorder %v3273_v51, 0.0  ;;  %v3529_v18 = vmul.f32 0.01, %v3273_v51  ;;  %v1846_v19 = vadd.f32 %v1782_v56, %v1458_v16 }
 0x3f9   : > { %v3656_v40 = vsel %vm3400_vm2, %v3272_v46, %v3528_v35  ;;  %v3655_v41 = vsel %vm3399_vm1, %v3271_v55, %v3527_v45 }
 0x3fa   : > { %v2095_v3 = vpop.permute.xlu1 %2094  ;;  %v3657_v6 = vsel %vm3401_vm3, %v3273_v51, %v3529_v18  ;;  %v13093_v30 = vpack.c.bf16 %v3656_v40, %v3654_v62  ;;  %v2373_v36 = vadd.f32 %v13069_v43, %v2303_v1  ;;  %v2099_v51 = vpop.permute.xlu0 %2098 }
 0x3fb   : > { %v2170_v50 = vmul.f32 %v11879_v63, %v2095_v3  ;;  %4600 = vmatmul.mubr.bf16.gmra.mrb[116].mxu0 %v12519_v7  ;;  %v13097_v26 = vpack.c.bf16 %v3657_v6, %v3655_v41  ;;  %v2171_v18 = vmul.f32 %v11879_v63, %v2099_v51 }
 0x3fc   : > { %17821 = vst [vmem:[#allocation25_spill] sm:$0xff] %v13093_v30  ;;  %4609 = vmatprep.mubr.bf16.mxu0 %v12576_v17  ;;  %v2501_v55 = vmul.f32 0.01, %v2373_v36  ;;  %vm2437_vm4 = vcmp.gt.f32.partialorder %v2373_v36, 0.0 }
 0x3fd   : > { %17822 = vst [vmem:[#allocation29_spill] sm:$0xff] %v13097_v26  ;;  %v2234_v12 = vadd.f32 %v2170_v50, %v1846_v19 }
 0x3fe   : > { %v2565_v62 = vsel %vm2437_vm4, %v2373_v36, %v2501_v55 }
 0x3ff   : > { %v2304_v31 = vmul.f32 %v13058_v44, %v2234_v12  ;;  %v1386_v46 = vpop.permute.xlu1 %1385 }
 0x400   : > { %v1459_v40 = vmul.f32 %v11872_v61, %v1386_v46 }
 0x401   : > { %v2374_v2 = vadd.f32 %v13069_v43, %v2304_v31 }
 0x403   : > { %v2913_v16 = vpop.f32.mrb[72].mxu0  ;;  %4610 = vmatmul.mubr.bf16.gmra.mrb[120].mxu0 %v12583_v34  ;;  %vm2438_vm5 = vcmp.gt.f32.partialorder %v2374_v2, 0.0  ;;  %v2502_v56 = vmul.f32 0.01, %v2374_v2 }
 0x404   : > { %v3135_v45 = vmul.f32 %v12246_v27, %v2913_v16  ;;  %v2915_v35 = vpop.f32.mrb[73].mxu0  ;;  %4619 = vmatprep.mubr.bf16.mxu0 %v12644_v54  ;;  %v1711_v1 = vpop.permute.xlu1 %1710 }
 0x405   : > { %v3136_v3 = vmul.f32 %v12251_v59, %v2915_v35  ;;  %v1783_v41 = vmul.f32 %v11869_v60, %v1711_v1  ;;  %v2917_v6 = vpop.f32.mrb[74].mxu0  ;;  %v2566_v19 = vsel %vm2438_vm5, %v2374_v2, %v2502_v56 }
 0x406   : > { %v3274_v50 = vadd.f32 %v12254_v39, %v3135_v45  ;;  %v3137_v12 = vmul.f32 %v12246_v27, %v2917_v6  ;;  %v2919_v31 = vpop.f32.mrb[75].mxu0  ;;  %v2601_v16 = vpack.c.bf16 %v2566_v19, %v2565_v62 }
 0x407   : > { %v3275_v30 = vadd.f32 %v12257_v48, %v3136_v3  ;;  %v1847_v26 = vadd.f32 %v1783_v41, %v1459_v40  ;;  %v3138_v51 = vmul.f32 %v12251_v59, %v2919_v31  ;;  %v1460_v40 = vmul.f32 %v11872_v61, %v1391_v57 }
 0x408   : > { %v3276_v36 = vadd.f32 %v12254_v39, %v3137_v12  ;;  %3032 = vmatmul.mubr.bf16.gmra.mrb[24].mxu1 %v2601_v16  ;;  %v1715_v46 = vpop.permute.xlu1 %1714  ;;  %v3530_v55 = vmul.f32 0.01, %v3274_v50  ;;  %vm3402_vm6 = vcmp.gt.f32.partialorder %v3274_v50, 0.0 }
 0x409   : > { %v2235_v35 = vadd.f32 %v2171_v18, %v1847_v26  ;;  %v3277_v1 = vadd.f32 %v12257_v48, %v3138_v51  ;;  %v1784_v2 = vmul.f32 %v11869_v60, %v1715_v46  ;;  %3041 = vmatprep.mubr.bf16.mxu1 %v17811_v47  ;;  %vm3403_vm7 = vcmp.gt.f32.partialorder %v3275_v30, 0.0 }
 0x40a   : > { %v3531_v56 = vmul.f32 0.01, %v3275_v30  ;;  %vm3404_vm8 = vcmp.gt.f32.partialorder %v3276_v36, 0.0  ;;  %v3532_v45 = vmul.f32 0.01, %v3276_v36  ;;  %v3658_v26 = vsel %vm3402_vm6, %v3274_v50, %v3530_v55 }
 0x40b   : > { %4620 = vmatmul.mubr.bf16.gmra.mrb[124].mxu0 %v12641_v37  ;;  %vm3405_vm9 = vcmp.gt.f32.partialorder %v3277_v1, 0.0  ;;  %v3533_v62 = vmul.f32 0.01, %v3277_v1  ;;  %v2305_v3 = vmul.f32 %v13058_v44, %v2235_v35  ;;  %v1848_v12 = vadd.f32 %v1784_v2, %v1460_v40 }
 0x40c   : > { %4629 = vmatprep.mubr.bf16.mxu0 %v12699_v33  ;;  %v3660_v18 = vsel %vm3404_vm8, %v3276_v36, %v3532_v45  ;;  %v3659_v41 = vsel %vm3403_vm7, %v3275_v30, %v3531_v56 }
 0x40d   : > { %v2103_v60 = vpop.permute.xlu1 %2102  ;;  %v3661_v6 = vsel %vm3405_vm9, %v3277_v1, %v3533_v62  ;;  %v13122_v19 = vpack.c.bf16 %v3660_v18, %v3658_v26  ;;  %v2375_v51 = vadd.f32 %v13069_v43, %v2305_v3 }
 0x40e   : > { %v2172_v31 = vmul.f32 %v11879_v63, %v2103_v60  ;;  %v13125_v16 = vpack.c.bf16 %v3661_v6, %v3659_v41 }
 0x40f   : > { %v2503_v30 = vmul.f32 0.01, %v2375_v51  ;;  %vm2439_vm10 = vcmp.gt.f32.partialorder %v2375_v51, 0.0 }
 0x410   : > { %v2236_v46 = vadd.f32 %v2172_v31, %v1848_v12 }
 0x411   : > { %v2567_v2 = vsel %vm2439_vm10, %v2375_v51, %v2503_v30 }
 0x412   : > { %v2306_v61 = vmul.f32 %v13058_v44, %v2236_v46  ;;  %v10659_v46 = vld [vmem:[%s17817_s7] ss:$8 sps:$4 sm:$0xff]  }
 0x413   : > { %4630 = vmatmul.mubr.bf16.gmra.mrb[128].mxu0 %v12696_v10 }
 0x414   : > { %v2376_v57 = vadd.f32 %v13069_v43, %v2306_v61  ;;  %4639 = vmatprep.mubr.bf16.mxu0 %v12747_v28 }
 0x416   : > { %v2923_v50 = vpop.f32.mrb[76].mxu0  ;;  %vm2440_vm11 = vcmp.gt.f32.partialorder %v2376_v57, 0.0  ;;  %v2504_v36 = vmul.f32 0.01, %v2376_v57 }
 0x417   : > { %v3139_v63 = vmul.f32 %v12246_v27, %v2923_v50  ;;  %v2925_v55 = vpop.f32.mrb[77].mxu0 }
 0x418   : > { %v3140_v35 = vmul.f32 %v12251_v59, %v2925_v55  ;;  %v2927_v1 = vpop.f32.mrb[78].mxu0  ;;  %v2568_v56 = vsel %vm2440_vm11, %v2376_v57, %v2504_v36  ;;  %v10662_v36 = vld [vmem:[%s17817_s7 + $0x10] ss:$8 sps:$4 sm:$0xff]  }
 0x419   : > { %v3278_v44 = vadd.f32 %v12254_v39, %v3139_v63  ;;  %v3141_v45 = vmul.f32 %v12246_v27, %v2927_v1  ;;  %v2929_v43 = vpop.f32.mrb[79].mxu0  ;;  %v2602_v62 = vpack.c.bf16 %v2568_v56, %v2567_v2  ;;  %v10667_v63 = vld [vmem:[%s17817_s7 + $0x24] ss:$8 sps:$4 sm:$0xff]   ;;  %v10668_v55 = vld [vmem:[%s17817_s7 + $0x30] ss:$8 sps:$4 sm:$0xff]  }
 0x41a   : > { %v3279_v40 = vadd.f32 %v12257_v48, %v3140_v35  ;;  %v3142_v3 = vmul.f32 %v12251_v59, %v2929_v43  ;;  %v10673_v35 = vld [vmem:[%s17817_s7 + $0x44] ss:$8 sps:$4 sm:$0xff]   ;;  %v10674_v43 = vld [vmem:[%s17817_s7 + $0x50] ss:$8 sps:$4 sm:$0xff]  }
 0x41b   : > { %v3280_v26 = vadd.f32 %v12254_v39, %v3141_v45  ;;  %3042 = vmatmul.mubr.bf16.gmra.mrb[28].mxu1 %v2602_v62  ;;  %4640 = vmatmul.mubr.bf16.gmra.mrb[132].mxu0 %v12753_v5  ;;  %v3534_v18 = vmul.f32 0.01, %v3278_v44  ;;  %vm3406_vm12 = vcmp.gt.f32.partialorder %v3278_v44, 0.0  ;;  %v17823_v1 = vld [vmem:[#allocation26_spill] sm:$0xff]  ;;  %v17824_v56 = vld [vmem:[#allocation28_spill] sm:$0xff] }
 0x41c   : > { %v3281_v60 = vadd.f32 %v12257_v48, %v3142_v3  ;;  %4196 = vmatprep.mubr.bf16.mxu1 %v12294_v24  ;;  %4649 = vmatprep.mubr.bf16.mxu0 %v12810_v22  ;;  %v3535_v41 = vmul.f32 0.01, %v3279_v40  ;;  %vm3407_vm13 = vcmp.gt.f32.partialorder %v3279_v40, 0.0  ;;  %v10664_v24 = vld [vmem:[%s17817_s7 + $0x14] ss:$8 sps:$4 sm:$0xff]  }
 0x41d   : > { %vm3408_vm14 = vcmp.gt.f32.partialorder %v3280_v26, 0.0  ;;  %v3536_v6 = vmul.f32 0.01, %v3280_v26  ;;  %v3662_v31 = vsel %vm3406_vm12, %v3278_v44, %v3534_v18 }
 0x41e   : > { %vm3409_vm15 = vcmp.gt.f32.partialorder %v3281_v60, 0.0  ;;  %v3537_v12 = vmul.f32 0.01, %v3281_v60  ;;  %v3663_v61 = vsel %vm3407_vm13, %v3279_v40, %v3535_v41 }
 0x41f   : > { %v3664_v51 = vsel %vm3408_vm14, %v3280_v26, %v3536_v6 }
 0x420   : > { %v3665_v57 = vsel %vm3409_vm15, %v3281_v60, %v3537_v12  ;;  %v13146_v30 = vpack.c.bf16 %v3664_v51, %v3662_v31  ;;  %v10677_v12 = vld [vmem:[%s17817_s7 + $0x60] ss:$8 sps:$4 sm:$0xff]  }
 0x421   : > { %v13151_v50 = vpack.c.bf16 %v3665_v57, %v3663_v61  ;;  %v17825_v57 = vld [vmem:[#allocation27_spill] sm:$0xff] }
 0x423   : > { %4197 = vmatmul.mubr.bf16.vlgmr.msra.gmra.mrb[32].mxu1 %v12292_v8  ;;  %4650 = vmatmul.mubr.bf16.gmra.mrb[136].mxu0 %v12804_v58  ;;  %v10665_v8 = vld [vmem:[%s17817_s7 + $0x20] ss:$8 sps:$4 sm:$0xff]  }
 0x424   : > { %6707 = vmatpush1.bf16.msra.mxu1 %v10659_v46  ;;  %4206 = vmatprep.mubr.bf16.mxu1 %v12333_v53  ;;  %v10670_v53 = vld [vmem:[%s17817_s7 + $0x34] ss:$8 sps:$4 sm:$0xff]  }
 0x425   : > { %4659 = vmatprep.mubr.bf16.mxu0 %v12871_v42  ;;  %6708 = vmatprep.subr.bf16.mxu1 %v10664_v24  ;;  %v10682_v46 = vld [vmem:[%s17817_s7 + $0x74] ss:$8 sps:$4 sm:$0xff]  }
 0x428   : > { %6709 = vmatpush1.bf16.msra.mxu1 %v10662_v36 }
 0x429   : > { %6710 = vmatprep.subr.bf16.mxu1 %v10667_v63 }
 0x42b   : > { %4207 = vmatmul.mubr.bf16.gmra.mrb[36].mxu1 %v12331_v11  ;;  %4660 = vmatmul.mubr.bf16.gmra.mrb[140].mxu0 %v12878_v52  ;;  %v10671_v11 = vld [vmem:[%s17817_s7 + $0x40] ss:$8 sps:$4 sm:$0xff]  }
 0x42c   : > { %4216 = vmatprep.mubr.bf16.mxu1 %v12436_v38  ;;  %4669 = vmatprep.mubr.bf16.mxu0 %v12936_v23  ;;  %v10676_v38 = vld [vmem:[%s17817_s7 + $0x54] ss:$8 sps:$4 sm:$0xff]  }
 0x42d   : > { %6711 = vmatpush1.bf16.msra.mxu1 %v10665_v8 }
 0x42e   : > { %6712 = vmatprep.subr.bf16.mxu1 %v10670_v53 }
 0x431   : > { %6713 = vmatpush1.bf16.msra.mxu1 %v10668_v55 }
 0x432   : > { %6714 = vmatprep.subr.bf16.mxu1 %v10673_v35 }
 0x433   : > { %4217 = vmatmul.mubr.bf16.gmra.mrb[40].mxu1 %v12431_v49  ;;  %4670 = vmatmul.mubr.bf16.gmra.mrb[144].mxu0 %v17823_v1  ;;  %v10679_v49 = vld [vmem:[%s17817_s7 + $0x64] ss:$8 sps:$4 sm:$0xff]  }
 0x434   : > { %v2933_v2 = vpop.f32.mrb[80].mxu0  ;;  %4226 = vmatprep.mubr.bf16.mxu1 %v12464_v32  ;;  %4679 = vmatprep.mubr.bf16.mxu0 %v17824_v56 }
 0x435   : > { %v3143_v44 = vmul.f32 %v12246_v27, %v2933_v2  ;;  %v2935_v45 = vpop.f32.mrb[81].mxu0  ;;  %6715 = vmatpush1.bf16.msra.mxu1 %v10671_v11 }
 0x436   : > { %v3144_v62 = vmul.f32 %v12251_v59, %v2935_v45  ;;  %v2937_v40 = vpop.f32.mrb[82].mxu0  ;;  %6716 = vmatprep.subr.bf16.mxu1 %v10676_v38  ;;  %v10680_v38 = vld [vmem:[%s17817_s7 + $0x70] ss:$8 sps:$4 sm:$0xff]  }
 0x437   : > { %v3282_v32 = vadd.f32 %v12254_v39, %v3143_v44  ;;  %v3145_v3 = vmul.f32 %v12246_v27, %v2937_v40  ;;  %v2939_v26 = vpop.f32.mrb[83].mxu0 }
 0x438   : > { %v3283_v18 = vadd.f32 %v12257_v48, %v3144_v62  ;;  %v3146_v60 = vmul.f32 %v12251_v59, %v2939_v26  ;;  %v10685_v62 = vld [vmem:[%s17817_s7 + $0x84] ss:$8 sps:$4 sm:$0xff]  }
 0x439   : > { %v3284_v41 = vadd.f32 %v12254_v39, %v3145_v3  ;;  %v3538_v6 = vmul.f32 0.01, %v3282_v32  ;;  %6717 = vmatpush1.bf16.msra.mxu1 %v10674_v43  ;;  %vm3410_vm1 = vcmp.gt.f32.partialorder %v3282_v32, 0.0 }
 0x43a   : > { %v3285_v31 = vadd.f32 %v12257_v48, %v3146_v60  ;;  %vm3411_vm0 = vcmp.gt.f32.partialorder %v3283_v18, 0.0  ;;  %v3539_v51 = vmul.f32 0.01, %v3283_v18  ;;  %6718 = vmatprep.subr.bf16.mxu1 %v10679_v49  ;;  %v10683_v60 = vld [vmem:[%s17817_s7 + $0x80] ss:$8 sps:$4 sm:$0xff]  }
 0x43b   : > { %v2973_v61 = vpop.f32.mrb[0].mxu1  ;;  %4227 = vmatmul.mubr.bf16.gmra.mrb[44].mxu1 %v17820_v21  ;;  %4680 = vmatmul.mubr.bf16.gmra.mrb[148].mxu0 %v17825_v57  ;;  %vm3412_vm2 = vcmp.gt.f32.partialorder %v3284_v41, 0.0  ;;  %v3540_v24 = vmul.f32 0.01, %v3284_v41  ;;  %v3666_v21 = vsel %vm3410_vm1, %v3282_v32, %v3538_v6  ;;  %v10688_v6 = vld [vmem:[%s17817_s7 + $0x94] ss:$8 sps:$4 sm:$0xff]  }
 0x43c   : > { %v3159_v36 = vmul.f32 %v12246_v27, %v2973_v61  ;;  %v2975_v63 = vpop.f32.mrb[1].mxu1  ;;  %4236 = vmatprep.mubr.bf16.mxu1 %v12493_v13  ;;  %4689 = vmatprep.mubr.bf16.mxu0 %v13007_v0  ;;  %vm3413_vm3 = vcmp.gt.f32.partialorder %v3285_v31, 0.0  ;;  %v3541_v8 = vmul.f32 0.01, %v3285_v31  ;;  %v3667_v35 = vsel %vm3411_vm0, %v3283_v18, %v3539_v51 }
 0x43d   : > { %v3160_v53 = vmul.f32 %v12251_v59, %v2975_v63  ;;  %v2977_v55 = vpop.f32.mrb[2].mxu1  ;;  %v3668_v11 = vsel %vm3412_vm2, %v3284_v41, %v3540_v24  ;;  %6719 = vmatpush1.bf16.msra.mxu1 %v10677_v12 }
 0x43e   : > { %v3298_v2 = vadd.f32 %v12254_v39, %v3159_v36  ;;  %v3161_v13 = vmul.f32 %v12246_v27, %v2977_v55  ;;  %v2979_v44 = vpop.f32.mrb[3].mxu1  ;;  %v3669_v45 = vsel %vm3413_vm3, %v3285_v31, %v3541_v8  ;;  %v13222_v43 = vpack.c.bf16 %v3668_v11, %v3666_v21  ;;  %6720 = vmatprep.subr.bf16.mxu1 %v10682_v46  ;;  %v10686_v36 = vld [vmem:[%s17817_s7 + $0x90] ss:$8 sps:$4 sm:$0xff]   ;;  %v10689_v8 = vld [vmem:[%s17817_s7 + $0xa0] ss:$8 sps:$4 sm:$0xff]  }
 0x43f   : > { %v3299_v40 = vadd.f32 %v12257_v48, %v3160_v53  ;;  %v3162_v49 = vmul.f32 %v12251_v59, %v2979_v44  ;;  %v13229_v32 = vpack.c.bf16 %v3669_v45, %v3667_v35  ;;  %v17826_v53 = vld [vmem:[#allocation29_spill] sm:$0xff]  ;;  %v10692_v55 = vld [vmem:[%s17817_s7 + $0xb0] ss:$8 sps:$4 sm:$0xff]  }
 0x440   : > { %v3300_v3 = vadd.f32 %v12254_v39, %v3161_v13  ;;  %v3554_v26 = vmul.f32 0.01, %v3298_v2  ;;  %vm3426_vm4 = vcmp.gt.f32.partialorder %v3298_v2, 0.0  ;;  %v17827_v13 = vld [vmem:[#allocation25_spill] sm:$0xff] }
 0x441   : > { %v3301_v18 = vadd.f32 %v12257_v48, %v3162_v49  ;;  %6721 = vmatpush1.bf16.msra.mxu1 %v10680_v38  ;;  %v3555_v41 = vmul.f32 0.01, %v3299_v40  ;;  %vm3427_vm5 = vcmp.gt.f32.partialorder %v3299_v40, 0.0 }
 0x442   : > { %6722 = vmatprep.subr.bf16.mxu1 %v10685_v62  ;;  %vm3428_vm6 = vcmp.gt.f32.partialorder %v3300_v3, 0.0  ;;  %v3556_v12 = vmul.f32 0.01, %v3300_v3  ;;  %v3682_v51 = vsel %vm3426_vm4, %v3298_v2, %v3554_v26 }
 0x443   : > { %4237 = vmatmul.mubr.bf16.gmra.mrb[48].mxu1 %v12501_v15  ;;  %4690 = vmatmul.mubr.bf16.gmra.mrb[152].mxu0 %v13003_v25  ;;  %vm3429_vm7 = vcmp.gt.f32.partialorder %v3301_v18, 0.0  ;;  %v3557_v31 = vmul.f32 0.01, %v3301_v18  ;;  %v3683_v61 = vsel %vm3427_vm5, %v3299_v40, %v3555_v41 }
 0x444   : > { %4246 = vmatprep.mubr.bf16.mxu1 %v12526_v20  ;;  %4699 = vmatprep.mubr.bf16.mxu0 %v13035_v29  ;;  %v3684_v46 = vsel %vm3428_vm6, %v3300_v3, %v3556_v12  ;;  %v10691_v20 = vld [vmem:[%s17817_s7 + $0xa4] ss:$8 sps:$4 sm:$0xff]  }
 0x445   : > { %6723 = vmatpush1.bf16.msra.mxu1 %v10683_v60  ;;  %v3685_v24 = vsel %vm3429_vm7, %v3301_v18, %v3557_v31  ;;  %v13246_v63 = vpack.c.bf16 %v3684_v46, %v3682_v51 }
 0x446   : > { %v13248_v15 = vpack.c.bf16 %v3685_v24, %v3683_v61  ;;  %6724 = vmatprep.subr.bf16.mxu1 %v10688_v6 }
 0x449   : > { %6725 = vmatpush1.bf16.msra.mxu1 %v10686_v36 }
 0x44a   : > { %6726 = vmatprep.subr.bf16.mxu1 %v10691_v20 }
 0x44b   : > { %4247 = vmatmul.mubr.bf16.gmra.mrb[52].mxu1 %v12519_v7  ;;  %4700 = vmatmul.mubr.bf16.gmra.mrb[156].mxu0 %v13032_v4  ;;  %v10694_v7 = vld [vmem:[%s17817_s7 + $0xb4] ss:$8 sps:$4 sm:$0xff]  }
 0x44c   : > { %4256 = vmatprep.mubr.bf16.mxu1 %v12576_v17  ;;  %4709 = vmatprep.mubr.bf16.mxu0 %v13066_v9 }
 0x44d   : > { %6727 = vmatpush1.bf16.msra.mxu1 %v10689_v8 }
 0x44e   : > { %6728 = vmatprep.subr.bf16.mxu1 %v10694_v7 }
 0x451   : > { %6729 = vmatpush1.bf16.msra.mxu1 %v10692_v55 }
 0x453   : > { %4257 = vmatmul.mubr.bf16.gmra.mrb[56].mxu1 %v12583_v34  ;;  %4710 = vmatmul.mubr.bf16.gmra.mrb[160].mxu0 %v13063_v14 }
 0x454   : > { %4266 = vmatprep.mubr.bf16.mxu1 %v12644_v54  ;;  %4719 = vmatprep.mubr.bf16.mxu0 %v17826_v53 }
 0x458   : > { %v2943_v17 = vpop.f32.mrb[84].mxu0 }
 0x459   : > { %v3147_v35 = vmul.f32 %v12246_v27, %v2943_v17  ;;  %v2945_v34 = vpop.f32.mrb[85].mxu0 }
 0x45a   : > { %v3148_v21 = vmul.f32 %v12251_v59, %v2945_v34  ;;  %v2947_v11 = vpop.f32.mrb[86].mxu0 }
 0x45b   : > { %v3286_v54 = vadd.f32 %v12254_v39, %v3147_v35  ;;  %v3149_v38 = vmul.f32 %v12246_v27, %v2947_v11  ;;  %v2949_v2 = vpop.f32.mrb[87].mxu0  ;;  %4267 = vmatmul.mubr.bf16.gmra.mrb[60].mxu1 %v12641_v37  ;;  %4720 = vmatmul.mubr.bf16.gmra.mrb[164].mxu0 %v17827_v13 }
 0x45c   : > { %v3287_v44 = vadd.f32 %v12257_v48, %v3148_v21  ;;  %v3150_v45 = vmul.f32 %v12251_v59, %v2949_v2  ;;  %v2983_v62 = vpop.f32.mrb[4].mxu1  ;;  %4276 = vmatprep.mubr.bf16.mxu1 %v12699_v33  ;;  %4729 = vmatprep.mubr.bf16.mxu0 %v13125_v16 }
 0x45d   : > { %v3288_v40 = vadd.f32 %v12254_v39, %v3149_v38  ;;  %v3163_v49 = vmul.f32 %v12246_v27, %v2983_v62  ;;  %v2985_v3 = vpop.f32.mrb[5].mxu1  ;;  %vm3414_vm8 = vcmp.gt.f32.partialorder %v3286_v54, 0.0  ;;  %v3542_v26 = vmul.f32 0.01, %v3286_v54  ;;  %v10697_v38 = vld [vmem:[%s17817_s7 + $0xc4] ss:$8 sps:$4 sm:$0xff]  }
 0x45e   : > { %v3289_v37 = vadd.f32 %v12257_v48, %v3150_v45  ;;  %v3164_v18 = vmul.f32 %v12251_v59, %v2985_v3  ;;  %v2987_v60 = vpop.f32.mrb[6].mxu1  ;;  %vm3415_vm9 = vcmp.gt.f32.partialorder %v3287_v44, 0.0  ;;  %v3543_v41 = vmul.f32 0.01, %v3287_v44  ;;  %6730 = vmatprep.subr.bf16.mxu1 %v10697_v38 }
 0x45f   : > { %v3302_v6 = vadd.f32 %v12254_v39, %v3163_v49  ;;  %v3165_v33 = vmul.f32 %v12246_v27, %v2987_v60  ;;  %v2989_v12 = vpop.f32.mrb[7].mxu1  ;;  %vm3416_vm10 = vcmp.gt.f32.partialorder %v3288_v40, 0.0  ;;  %v3544_v31 = vmul.f32 0.01, %v3288_v40  ;;  %v10698_v49 = vld [vmem:[%s17817_s7 + $0xd0] ss:$8 sps:$4 sm:$0xff]  }
 0x460   : > { %v3303_v51 = vadd.f32 %v12257_v48, %v3164_v18  ;;  %v3166_v46 = vmul.f32 %v12251_v59, %v2989_v12  ;;  %vm3417_vm11 = vcmp.gt.f32.partialorder %v3289_v37, 0.0  ;;  %v3545_v61 = vmul.f32 0.01, %v3289_v37 }
 0x461   : > { %v3304_v24 = vadd.f32 %v12254_v39, %v3165_v33  ;;  %v3670_v36 = vsel %vm3414_vm8, %v3286_v54, %v3542_v26  ;;  %v3672_v20 = vsel %vm3416_vm10, %v3288_v40, %v3544_v31  ;;  %v3671_v55 = vsel %vm3415_vm9, %v3287_v44, %v3543_v41 }
 0x462   : > { %v3305_v8 = vadd.f32 %v12257_v48, %v3166_v46  ;;  %v3673_v7 = vsel %vm3417_vm11, %v3289_v37, %v3545_v61  ;;  %v13291_v17 = vpack.c.bf16 %v3672_v20, %v3670_v36  ;;  %vm3431_vm12 = vcmp.gt.f32.partialorder %v3303_v51, 0.0 }
 0x463   : > { %4277 = vmatmul.mubr.bf16.gmra.mrb[64].mxu1 %v12696_v10  ;;  %4730 = vmatmul.mubr.bf16.gmra.mrb[168].mxu0 %v13122_v19  ;;  %v13295_v35 = vpack.c.bf16 %v3673_v7, %v3671_v55  ;;  %v3559_v34 = vmul.f32 0.01, %v3303_v51  ;;  %vm3430_vm13 = vcmp.gt.f32.partialorder %v3302_v6, 0.0  ;;  %vm3432_vm15 = vcmp.gt.f32.partialorder %v3304_v24, 0.0  ;;  %v10695_v10 = vld [vmem:[%s17817_s7 + $0xc0] ss:$8 sps:$4 sm:$0xff]  }
 0x464   : > { %4286 = vmatprep.mubr.bf16.mxu1 %v12747_v28  ;;  %4739 = vmatprep.mubr.bf16.mxu0 %v13151_v50  ;;  %vm3433_vm14 = vcmp.gt.f32.partialorder %v3305_v8, 0.0  ;;  %v3561_v21 = vmul.f32 0.01, %v3305_v8  ;;  %v3558_v11 = vmul.f32 0.01, %v3302_v6 }
 0x465   : > { %v3560_v54 = vmul.f32 0.01, %v3304_v24  ;;  %v3687_v2 = vsel %vm3431_vm12, %v3303_v51, %v3559_v34  ;;  %6731 = vmatpush1.bf16.msra.mxu1 %v10695_v10 }
 0x466   : > { %v3689_v44 = vsel %vm3433_vm14, %v3305_v8, %v3561_v21  ;;  %v3686_v28 = vsel %vm3430_vm13, %v3302_v6, %v3558_v11 }
 0x467   : > { %v13305_v45 = vpack.c.bf16 %v3689_v44, %v3687_v2  ;;  %v3688_v62 = vsel %vm3432_vm15, %v3304_v24, %v3560_v54 }
 0x468   : > { %v13307_v40 = vpack.c.bf16 %v3688_v62, %v3686_v28  ;;  %v10701_v62 = vld [vmem:[%s17817_s7 + $0xe0] ss:$8 sps:$4 sm:$0xff]  }
 0x46b   : > { %4287 = vmatmul.mubr.bf16.gmra.mrb[68].mxu1 %v12753_v5  ;;  %4740 = vmatmul.mubr.bf16.gmra.mrb[172].mxu0 %v13146_v30  ;;  %v10700_v5 = vld [vmem:[%s17817_s7 + $0xd4] ss:$8 sps:$4 sm:$0xff]  }
 0x46c   : > { %4296 = vmatprep.mubr.bf16.mxu1 %v12810_v22  ;;  %4749 = vmatprep.mubr.bf16.mxu0 %v13229_v32 }
 0x46d   : > { %6732 = vmatprep.subr.bf16.mxu1 %v10700_v5  ;;  %v10703_v5 = vld [vmem:[%s17817_s7 + $0xe4] ss:$8 sps:$4 sm:$0xff]  }
 0x46e   : > { %6733 = vmatpush1.bf16.msra.mxu1 %v10698_v49 }
 0x46f   : > { %6734 = vmatprep.subr.bf16.mxu1 %v10703_v5 }
 0x472   : > { %6735 = vmatpush1.bf16.msra.mxu1 %v10701_v62 }
 0x473   : > { %4297 = vmatmul.mubr.bf16.gmra.mrb[72].mxu1 %v12804_v58  ;;  %4750 = vmatmul.mubr.bf16.gmra.mrb[176].mxu0 %v13222_v43 }
 0x474   : > { %4306 = vmatprep.mubr.bf16.mxu1 %v12871_v42  ;;  %4759 = vmatprep.mubr.bf16.mxu0 %v13295_v35 }
 0x479   : > { %v2953_v22 = vpop.f32.mrb[88].mxu0 }
 0x47a   : > { %v3151_v3 = vmul.f32 %v12246_v27, %v2953_v22  ;;  %v2955_v58 = vpop.f32.mrb[89].mxu0 }
 0x47b   : > { %v3152_v26 = vmul.f32 %v12251_v59, %v2955_v58  ;;  %v2957_v37 = vpop.f32.mrb[90].mxu0  ;;  %4307 = vmatmul.mubr.bf16.gmra.mrb[76].mxu1 %v12878_v52  ;;  %4760 = vmatmul.mubr.bf16.gmra.mrb[180].mxu0 %v13291_v17 }
 0x47c   : > { %v3290_v42 = vadd.f32 %v12254_v39, %v3151_v3  ;;  %v3153_v18 = vmul.f32 %v12246_v27, %v2957_v37  ;;  %v2959_v60 = vpop.f32.mrb[91].mxu0  ;;  %4316 = vmatprep.mubr.bf16.mxu1 %v12936_v23 }
 0x47d   : > { %v3291_v41 = vadd.f32 %v12257_v48, %v3152_v26  ;;  %v3154_v6 = vmul.f32 %v12251_v59, %v2959_v60 }
 0x47e   : > { %v3292_v33 = vadd.f32 %v12254_v39, %v3153_v18  ;;  %v3546_v12 = vmul.f32 0.01, %v3290_v42  ;;  %vm3418_vm0 = vcmp.gt.f32.partialorder %v3290_v42, 0.0 }
 0x47f   : > { %v3293_v31 = vadd.f32 %v12257_v48, %v3154_v6  ;;  %v3547_v51 = vmul.f32 0.01, %v3291_v41  ;;  %vm3419_vm1 = vcmp.gt.f32.partialorder %v3291_v41, 0.0  ;;  %v17828_v6 = vld [vmem:[#allocation21_spill] sm:$0xff] }
 0x480   : > { %vm3420_vm2 = vcmp.gt.f32.partialorder %v3292_v33, 0.0  ;;  %v3548_v52 = vmul.f32 0.01, %v3292_v33  ;;  %v3674_v36 = vsel %vm3418_vm0, %v3290_v42, %v3546_v12 }
 0x481   : > { %v2993_v46 = vpop.f32.mrb[8].mxu1  ;;  %vm3421_vm3 = vcmp.gt.f32.partialorder %v3293_v31, 0.0  ;;  %v3549_v61 = vmul.f32 0.01, %v3293_v31  ;;  %v3675_v7 = vsel %vm3419_vm1, %v3291_v41, %v3547_v51  ;;  %v10704_v41 = vld [vmem:[%s17817_s7 + $0xf0] ss:$8 sps:$4 sm:$0xff]  }
 0x482   : > { %v3167_v24 = vmul.f32 %v12246_v27, %v2993_v46  ;;  %v2995_v23 = vpop.f32.mrb[9].mxu1  ;;  %v3676_v20 = vsel %vm3420_vm2, %v3292_v33, %v3548_v52  ;;  %v4885_v33 = vsub.s32 3, %v17828_v6 }
 0x483   : > { %v3168_v8 = vmul.f32 %v12251_v59, %v2995_v23  ;;  %v2997_v55 = vpop.f32.mrb[10].mxu1  ;;  %4317 = vmatmul.mubr.bf16.gmra.mrb[80].mxu1 %v17823_v1  ;;  %v3677_v34 = vsel %vm3421_vm3, %v3293_v31, %v3549_v61  ;;  %v13337_v21 = vpack.c.bf16 %v3676_v20, %v3674_v36  ;;  %v17829_v61 = vld [vmem:[#allocation24_spill] sm:$0xff] }
 0x484   : > { %v3306_v11 = vadd.f32 %v12254_v39, %v3167_v24  ;;  %v3169_v54 = vmul.f32 %v12246_v27, %v2997_v55  ;;  %v2999_v10 = vpop.f32.mrb[11].mxu1  ;;  %4326 = vmatprep.mubr.bf16.mxu1 %v17824_v56  ;;  %v13342_v38 = vpack.c.bf16 %v3677_v34, %v3675_v7 }
 0x485   : > { %v3307_v2 = vadd.f32 %v12257_v48, %v3168_v8  ;;  %v3170_v44 = vmul.f32 %v12251_v59, %v2999_v10 }
 0x486   : > { %v3308_v28 = vadd.f32 %v12254_v39, %v3169_v54  ;;  %4769 = vmatprep.mubr.bf16.mxu0 %v13342_v38  ;;  %v3562_v1 = vmul.f32 0.01, %v3306_v11  ;;  %vm3434_vm4 = vcmp.gt.f32.partialorder %v3306_v11, 0.0 }
 0x487   : > { %v3309_v49 = vadd.f32 %v12257_v48, %v3170_v44  ;;  %4770 = vmatmul.mubr.bf16.gmra.mrb[184].mxu0 %v13337_v21  ;;  %v3563_v56 = vmul.f32 0.01, %v3307_v2  ;;  %vm3435_vm5 = vcmp.gt.f32.partialorder %v3307_v2, 0.0 }
 0x488   : > { %vm3436_vm6 = vcmp.gt.f32.partialorder %v3308_v28, 0.0  ;;  %v3564_v22 = vmul.f32 0.01, %v3308_v28  ;;  %v3690_v58 = vsel %vm3434_vm4, %v3306_v11, %v3562_v1 }
 0x489   : > { %vm3437_vm7 = vcmp.gt.f32.partialorder %v3309_v49, 0.0  ;;  %v3565_v3 = vmul.f32 0.01, %v3309_v49  ;;  %v3691_v37 = vsel %vm3435_vm5, %v3307_v2, %v3563_v56 }
 0x48a   : > { %v3692_v26 = vsel %vm3436_vm6, %v3308_v28, %v3564_v22 }
 0x48b   : > { %4327 = vmatmul.mubr.bf16.gmra.mrb[84].mxu1 %v17825_v57  ;;  %v3693_v42 = vsel %vm3437_vm7, %v3309_v49, %v3565_v3  ;;  %v13357_v18 = vpack.c.bf16 %v3692_v26, %v3690_v58  ;;  %v10706_v57 = vld [vmem:[%s17817_s7 + $0xf4] ss:$8 sps:$4 sm:$0xff]  }
 0x48c   : > { %4336 = vmatprep.mubr.bf16.mxu1 %v13007_v0  ;;  %v13360_v60 = vpack.c.bf16 %v3693_v42, %v3691_v37  ;;  %6736 = vmatprep.subr.bf16.mxu1 %v10706_v57  ;;  %v10709_v57 = vld [vmem:[%s17817_s7 + $0x104] ss:$8 sps:$4 sm:$0xff]  }
 0x48d   : > { %6737 = vmatpush1.bf16.msra.mxu1 %v10704_v41 }
 0x48e   : > { %7059 = vmatprep.subr.bf16.mxu1 %v10709_v57 }
 0x493   : > { %4337 = vmatmul.mubr.bf16.gmra.mrb[88].mxu1 %v13003_v25  ;;  %v13373_v25 = vld [vmem:[%s819_s10] sm:$0xf]  ;;  %s846_s10 = scalar_lea.vmem [#allocation11], %s11709_s17  ;;  %s854_s17 = scalar_lea.vmem [#allocation12], %s11695_s28 }
 0x494   : > { %4346 = vmatprep.mubr.bf16.mxu1 %v13035_v29  ;;  %v13375_v29 = vld [vmem:[%s828_s6] sm:$0xf]  ;;  %v13384_v24 = vrot.slane %v13373_v25, %v17829_v61  ;;  %v13393_v55 = vrot.slane %v13373_v25, %v4885_v33  ;;  %s862_s6 = scalar_lea.vmem [#allocation13], %s11695_s28 }
 0x495   : > { %v13388_v23 = vrot.slane %v13375_v29, %v17829_v61  ;;  %v13396_v7 = vrot.slane %v13375_v29, %v4885_v33 }
 0x496   : > { %17830 = vst [vmem:[#allocation26_spill] sm:$0xff] %v13384_v24  ;;  %17831 = vst [vmem:[#allocation28_spill] sm:$0xff] %v13393_v55 }
 0x49b   : > { %4347 = vmatmul.mubr.bf16.gmra.mrb[92].mxu1 %v13032_v4 }
 0x49c   : > { %4356 = vmatprep.mubr.bf16.mxu1 %v13066_v9 }
 0x49e   : > { %v2963_v0 = vpop.f32.mrb[92].mxu0 }
 0x49f   : > { %v3155_v12 = vmul.f32 %v12246_v27, %v2963_v0  ;;  %v2965_v31 = vpop.f32.mrb[93].mxu0 }
 0x4a0   : > { %v3156_v51 = vmul.f32 %v12251_v59, %v2965_v31  ;;  %v2967_v52 = vpop.f32.mrb[94].mxu0 }
 0x4a1   : > { %v3294_v46 = vadd.f32 %v12254_v39, %v3155_v12  ;;  %v3157_v4 = vmul.f32 %v12246_v27, %v2967_v52  ;;  %v2969_v9 = vpop.f32.mrb[95].mxu0 }
 0x4a2   : > { %v3295_v36 = vadd.f32 %v12257_v48, %v3156_v51  ;;  %v3158_v20 = vmul.f32 %v12251_v59, %v2969_v9  ;;  %v3003_v8 = vpop.f32.mrb[12].mxu1 }
 0x4a3   : > { %v3296_v34 = vadd.f32 %v12254_v39, %v3157_v4  ;;  %v3171_v11 = vmul.f32 %v12246_v27, %v3003_v8  ;;  %v3005_v54 = vpop.f32.mrb[13].mxu1  ;;  %4357 = vmatmul.mubr.bf16.gmra.mrb[96].mxu1 %v13063_v14  ;;  %vm3422_vm8 = vcmp.gt.f32.partialorder %v3294_v46, 0.0  ;;  %v3550_v10 = vmul.f32 0.01, %v3294_v46 }
 0x4a4   : > { %v3297_v2 = vadd.f32 %v12257_v48, %v3158_v20  ;;  %v3172_v44 = vmul.f32 %v12251_v59, %v3005_v54  ;;  %v3007_v28 = vpop.f32.mrb[14].mxu1  ;;  %4366 = vmatprep.mubr.bf16.mxu1 %v17826_v53  ;;  %vm3423_vm9 = vcmp.gt.f32.partialorder %v3295_v36, 0.0  ;;  %v3551_v1 = vmul.f32 0.01, %v3295_v36 }
 0x4a5   : > { %v3310_v62 = vadd.f32 %v12254_v39, %v3171_v11  ;;  %v3173_v49 = vmul.f32 %v12246_v27, %v3007_v28  ;;  %v3009_v56 = vpop.f32.mrb[15].mxu1  ;;  %vm3424_vm10 = vcmp.gt.f32.partialorder %v3296_v34, 0.0  ;;  %v3552_v5 = vmul.f32 0.01, %v3296_v34 }
 0x4a6   : > { %v3311_v14 = vadd.f32 %v12257_v48, %v3172_v44  ;;  %v3174_v22 = vmul.f32 %v12251_v59, %v3009_v56  ;;  %v4551_v3 = vpop.f32.mrb[96].mxu0  ;;  %vm3425_vm11 = vcmp.gt.f32.partialorder %v3297_v2, 0.0  ;;  %v3553_v58 = vmul.f32 0.01, %v3297_v2 }
 0x4a7   : > { %v3312_v26 = vadd.f32 %v12254_v39, %v3173_v49  ;;  %v4893_v53 = vmul.f32 %v13384_v24, %v4551_v3  ;;  %v4553_v37 = vpop.f32.mrb[97].mxu0  ;;  %v3679_v42 = vsel %vm3423_vm9, %v3295_v36, %v3551_v1  ;;  %v3678_v41 = vsel %vm3422_vm8, %v3294_v46, %v3550_v10 }
 0x4a8   : > { %v3313_v0 = vadd.f32 %v12257_v48, %v3174_v22  ;;  %v4894_v6 = vmul.f32 %v13393_v55, %v4553_v37  ;;  %v4555_v33 = vpop.f32.mrb[98].mxu0  ;;  %v3681_v12 = vsel %vm3425_vm11, %v3297_v2, %v3553_v58  ;;  %v3680_v31 = vsel %vm3424_vm10, %v3296_v34, %v3552_v5 }
 0x4a9   : > { %v5170_v51 = vadd.f32 %v13388_v23, %v4893_v53  ;;  %v4897_v52 = vmul.f32 %v13384_v24, %v4555_v33  ;;  %v4557_v4 = vpop.f32.mrb[99].mxu0  ;;  %v13419_v9 = vpack.c.bf16 %v3681_v12, %v3679_v42  ;;  %v13421_v46 = vpack.c.bf16 %v3680_v31, %v3678_v41 }
 0x4aa   : > { %v5171_v61 = vadd.f32 %v13396_v7, %v4894_v6  ;;  %v4898_v36 = vmul.f32 %v13393_v55, %v4557_v4  ;;  %vm3439_vm12 = vcmp.gt.f32.partialorder %v3311_v14, 0.0  ;;  %vm3441_vm13 = vcmp.gt.f32.partialorder %v3313_v0, 0.0 }
 0x4ab   : > { %vm5426_vm14 = vcmp.gt.f32.partialorder %v5170_v51, 0.0  ;;  %v5682_v20 = vmul.f32 0.01, %v5170_v51  ;;  %v5174_v8 = vadd.f32 %v13388_v23, %v4897_v52  ;;  %4367 = vmatmul.mubr.bf16.gmra.mrb[100].mxu1 %v17827_v13  ;;  %4779 = vmatprep.mubr.bf16.mxu0 %v13419_v9  ;;  %v3567_v34 = vmul.f32 0.01, %v3311_v14 }
 0x4ac   : > { %v5175_v11 = vadd.f32 %v13396_v7, %v4898_v36  ;;  %4376 = vmatprep.mubr.bf16.mxu1 %v13125_v16  ;;  %4780 = vmatmul.mubr.bf16.gmra.mrb[188].mxu0 %v13421_v46  ;;  %v3569_v54 = vmul.f32 0.01, %v3313_v0  ;;  %vm3438_vm15 = vcmp.gt.f32.partialorder %v3310_v62, 0.0  ;;  %vm3440_vm0 = vcmp.gt.f32.partialorder %v3312_v26, 0.0 }
 0x4ad   : > { %v13431_v10 = vsel %vm5426_vm14, %v5170_v51, %v5682_v20  ;;  %vm5430_vm1 = vcmp.gt.f32.partialorder %v5174_v8, 0.0  ;;  %v5686_v2 = vmul.f32 0.01, %v5174_v8  ;;  %4789 = vmatprep.mubr.bf16.mxu0 %v13248_v15  ;;  %v3695_v13 = vsel %vm3439_vm12, %v3311_v14, %v3567_v34 }
 0x4ae   : > { %17832 = vst [vmem:[#allocation27_spill] sm:$0xff] %v13431_v10  ;;  %v4561_v44 = vpop.f32.mrb[100].mxu0  ;;  %v3697_v28 = vsel %vm3441_vm13, %v3313_v0, %v3569_v54  ;;  %v3566_v1 = vmul.f32 0.01, %v3310_v62  ;;  %v3568_v49 = vmul.f32 0.01, %v3312_v26 }
 0x4af   : > { %vm5427_vm2 = vcmp.gt.f32.partialorder %v5171_v61, 0.0  ;;  %v13436_v16 = vsel %vm5430_vm1, %v5174_v8, %v5686_v2  ;;  %v4901_v56 = vmul.f32 %v13384_v24, %v4561_v44  ;;  %v4563_v5 = vpop.f32.mrb[101].mxu0  ;;  %v13439_v22 = vpack.c.bf16 %v3697_v28, %v3695_v13 }
 0x4b0   : > { %17833 = vst [vmem:[#allocation29_spill] sm:$0xff] %v13436_v16  ;;  %vm5431_vm3 = vcmp.gt.f32.partialorder %v5175_v11, 0.0  ;;  %v4902_v58 = vmul.f32 %v13393_v55, %v4563_v5  ;;  %v4565_v14 = vpop.f32.mrb[102].mxu0  ;;  %v3694_v53 = vsel %vm3438_vm15, %v3310_v62, %v3566_v1  ;;  %v3696_v37 = vsel %vm3440_vm0, %v3312_v26, %v3568_v49 }
 0x4b1   : > { %v5178_v42 = vadd.f32 %v13388_v23, %v4901_v56  ;;  %v4905_v41 = vmul.f32 %v13384_v24, %v4565_v14  ;;  %v4567_v57 = vpop.f32.mrb[103].mxu0  ;;  %v13448_v0 = vpack.c.bf16 %v3696_v37, %v3694_v53  ;;  %v5683_v6 = vmul.f32 0.01, %v5171_v61 }
 0x4b2   : > { %v5179_v33 = vadd.f32 %v13396_v7, %v4902_v58  ;;  %v4906_v12 = vmul.f32 %v13393_v55, %v4567_v57  ;;  %v5687_v31 = vmul.f32 0.01, %v5175_v11 }
 0x4b3   : > { %v5182_v51 = vadd.f32 %v13388_v23, %v4905_v41  ;;  %4377 = vmatmul.mubr.bf16.gmra.mrb[104].mxu1 %v13122_v19  ;;  %v13455_v62 = vsel %vm5427_vm2, %v5171_v61, %v5683_v6  ;;  %vm5434_vm4 = vcmp.gt.f32.partialorder %v5178_v42, 0.0  ;;  %v5690_v26 = vmul.f32 0.01, %v5178_v42 }
 0x4b4   : > { %17834 = vst [vmem:[#allocation25_spill] sm:$0xff] %v13455_v62  ;;  %v5183_v52 = vadd.f32 %v13396_v7, %v4906_v12  ;;  %4386 = vmatprep.mubr.bf16.mxu1 %v13151_v50  ;;  %4790 = vmatmul.mubr.bf16.gmra.mrb[192].mxu0 %v13246_v63  ;;  %v13461_v4 = vsel %vm5431_vm3, %v5175_v11, %v5687_v31  ;;  %vm5435_vm5 = vcmp.gt.f32.partialorder %v5179_v33, 0.0  ;;  %v5691_v36 = vmul.f32 0.01, %v5179_v33 }
 0x4b5   : > { %17835 = vst [vmem:[#allocation21_spill] sm:$0xff] %v13461_v4  ;;  %v3013_v20 = vpop.f32.mrb[16].mxu1  ;;  %4799 = vmatprep.mubr.bf16.mxu0 %v13305_v45  ;;  %vm5438_vm6 = vcmp.gt.f32.partialorder %v5182_v51, 0.0  ;;  %v5694_v61 = vmul.f32 0.01, %v5182_v51  ;;  %v13468_v2 = vsel %vm5434_vm4, %v5178_v42, %v5690_v26 }
 0x4b6   : > { %v3175_v8 = vmul.f32 %v12246_v27, %v3013_v20  ;;  %v3015_v34 = vpop.f32.mrb[17].mxu1  ;;  %v4571_v54 = vpop.f32.mrb[104].mxu0  ;;  %vm5439_vm7 = vcmp.gt.f32.partialorder %v5183_v52, 0.0  ;;  %v5695_v50 = vmul.f32 0.01, %v5183_v52  ;;  %17836 = vst [vmem:[#allocation24_spill] sm:$0xff] %v13468_v2  ;;  %v13473_v1 = vsel %vm5435_vm5, %v5179_v33, %v5691_v36 }
 0x4b7   : > { %v3176_v11 = vmul.f32 %v12251_v59, %v3015_v34  ;;  %v4909_v13 = vmul.f32 %v13384_v24, %v4571_v54  ;;  %v3017_v44 = vpop.f32.mrb[18].mxu1  ;;  %v4573_v28 = vpop.f32.mrb[105].mxu0  ;;  %17837 = vst [vmem:[#allocation30_spill] sm:$0xff] %v13473_v1  ;;  %v13475_v49 = vsel %vm5438_vm6, %v5182_v51, %v5694_v61 }
 0x4b8   : > { %17838 = vst [vmem:[#allocation31_spill] sm:$0xff] %v13475_v49  ;;  %v3314_v56 = vadd.f32 %v12254_v39, %v3175_v8  ;;  %v3177_v5 = vmul.f32 %v12246_v27, %v3017_v44  ;;  %v4910_v58 = vmul.f32 %v13393_v55, %v4573_v28  ;;  %v3019_v14 = vpop.f32.mrb[19].mxu1  ;;  %v4575_v53 = vpop.f32.mrb[106].mxu0  ;;  %v13480_v37 = vsel %vm5439_vm7, %v5183_v52, %v5695_v50 }
 0x4b9   : > { %17839 = vst [vmem:[#allocation32_spill] sm:$0xff] %v13480_v37  ;;  %v3315_v42 = vadd.f32 %v12257_v48, %v3176_v11  ;;  %v5186_v41 = vadd.f32 %v13388_v23, %v4909_v13  ;;  %v3178_v57 = vmul.f32 %v12251_v59, %v3019_v14  ;;  %v4913_v6 = vmul.f32 %v13384_v24, %v4575_v53  ;;  %v4577_v33 = vpop.f32.mrb[107].mxu0 }
 0x4ba   : > { %v3316_v12 = vadd.f32 %v12254_v39, %v3177_v5  ;;  %v5187_v31 = vadd.f32 %v13396_v7, %v4910_v58  ;;  %v4914_v51 = vmul.f32 %v13393_v55, %v4577_v33  ;;  %vm3442_vm8 = vcmp.gt.f32.partialorder %v3314_v56, 0.0 }
 0x4bb   : > { %v3317_v26 = vadd.f32 %v12257_v48, %v3178_v57  ;;  %v5190_v52 = vadd.f32 %v13388_v23, %v4913_v6  ;;  %4387 = vmatmul.mubr.bf16.gmra.mrb[108].mxu1 %v13146_v30  ;;  %vm3443_vm9 = vcmp.gt.f32.partialorder %v3315_v42, 0.0  ;;  %v3571_v36 = vmul.f32 0.01, %v3315_v42 }
 0x4bc   : > { %v5191_v20 = vadd.f32 %v13396_v7, %v4914_v51  ;;  %4396 = vmatprep.mubr.bf16.mxu1 %v13229_v32  ;;  %4800 = vmatmul.mubr.bf16.gmra.mrb[196].mxu0 %v13307_v40  ;;  %vm3444_vm10 = vcmp.gt.f32.partialorder %v3316_v12, 0.0  ;;  %v3570_v61 = vmul.f32 0.01, %v3314_v56  ;;  %v3572_v8 = vmul.f32 0.01, %v3316_v12 }
 0x4bd   : > { %4809 = vmatprep.mubr.bf16.mxu0 %v13360_v60  ;;  %vm3445_vm11 = vcmp.gt.f32.partialorder %v3317_v26, 0.0  ;;  %v3573_v34 = vmul.f32 0.01, %v3317_v26  ;;  %v3699_v54 = vsel %vm3443_vm9, %v3315_v42, %v3571_v36  ;;  %vm5443_vm12 = vcmp.gt.f32.partialorder %v5187_v31, 0.0 }
 0x4be   : > { %v4581_v30 = vpop.f32.mrb[108].mxu0  ;;  %v3698_v11 = vsel %vm3442_vm8, %v3314_v56, %v3570_v61  ;;  %v3700_v13 = vsel %vm3444_vm10, %v3316_v12, %v3572_v8  ;;  %vm5447_vm13 = vcmp.gt.f32.partialorder %v5191_v20, 0.0  ;;  %v5699_v57 = vmul.f32 0.01, %v5187_v31 }
 0x4bf   : > { %v4917_v44 = vmul.f32 %v13384_v24, %v4581_v30  ;;  %v4583_v28 = vpop.f32.mrb[109].mxu0  ;;  %v3701_v5 = vsel %vm3445_vm11, %v3317_v26, %v3573_v34  ;;  %v13502_v58 = vpack.c.bf16 %v3700_v13, %v3698_v11  ;;  %v5703_v6 = vmul.f32 0.01, %v5191_v20 }
 0x4c0   : > { %v4918_v14 = vmul.f32 %v13393_v55, %v4583_v28  ;;  %v4585_v53 = vpop.f32.mrb[110].mxu0  ;;  %v13505_v42 = vpack.c.bf16 %v3701_v5, %v3699_v54  ;;  %vm5442_vm14 = vcmp.gt.f32.partialorder %v5186_v41, 0.0  ;;  %vm5446_vm15 = vcmp.gt.f32.partialorder %v5190_v52, 0.0 }
 0x4c1   : > { %v5194_v56 = vadd.f32 %v13388_v23, %v4917_v44  ;;  %v4921_v33 = vmul.f32 %v13384_v24, %v4585_v53  ;;  %v4587_v12 = vpop.f32.mrb[111].mxu0  ;;  %v13512_v36 = vsel %vm5443_vm12, %v5187_v31, %v5699_v57  ;;  %v13514_v61 = vsel %vm5447_vm13, %v5191_v20, %v5703_v6 }
 0x4c2   : > { %v5195_v51 = vadd.f32 %v13396_v7, %v4918_v14  ;;  %v4922_v26 = vmul.f32 %v13393_v55, %v4587_v12  ;;  %17840 = vst [vmem:[#allocation33_spill] sm:$0xff] %v13512_v36  ;;  %17841 = vst [vmem:[#allocation34_spill] sm:$0xff] %v13514_v61  ;;  %v5698_v54 = vmul.f32 0.01, %v5186_v41  ;;  %v5702_v30 = vmul.f32 0.01, %v5190_v52 }
 0x4c3   : > { %v5198_v8 = vadd.f32 %v13388_v23, %v4921_v33  ;;  %4397 = vmatmul.mubr.bf16.gmra.mrb[112].mxu1 %v13222_v43  ;;  %vm5450_vm1 = vcmp.gt.f32.partialorder %v5194_v56, 0.0  ;;  %v5706_v13 = vmul.f32 0.01, %v5194_v56 }
 0x4c4   : > { %v5199_v11 = vadd.f32 %v13396_v7, %v4922_v26  ;;  %4406 = vmatprep.mubr.bf16.mxu1 %v13295_v35  ;;  %4810 = vmatmul.mubr.bf16.gmra.mrb[200].mxu0 %v13357_v18  ;;  %vm5451_vm0 = vcmp.gt.f32.partialorder %v5195_v51, 0.0  ;;  %v5707_v31 = vmul.f32 0.01, %v5195_v51  ;;  %v13525_v20 = vsel %vm5442_vm14, %v5186_v41, %v5698_v54 }
 0x4c5   : > { %4819 = vmatprep.mubr.bf16.mxu0 %v13439_v22  ;;  %17842 = vst [vmem:[#allocation35_spill] sm:$0xff] %v13525_v20  ;;  %v13528_v43 = vsel %vm5446_vm15, %v5190_v52, %v5702_v30  ;;  %vm5454_vm3 = vcmp.gt.f32.partialorder %v5198_v8, 0.0  ;;  %v5710_v53 = vmul.f32 0.01, %v5198_v8  ;;  %v13539_v12 = vsel %vm5450_vm1, %v5194_v56, %v5706_v13 }
 0x4c6   : > { %17843 = vst [vmem:[#allocation36_spill] sm:$0xff] %v13528_v43  ;;  %v4591_v44 = vpop.f32.mrb[112].mxu0  ;;  %vm5455_vm2 = vcmp.gt.f32.partialorder %v5199_v11, 0.0  ;;  %v5711_v35 = vmul.f32 0.01, %v5199_v11  ;;  %v13535_v52 = vsel %vm5451_vm0, %v5195_v51, %v5707_v31  ;;  %17846 = vst [vmem:[#allocation39_spill] sm:$0xff] %v13539_v12 }
 0x4c7   : > { %v4925_v5 = vmul.f32 %v13384_v24, %v4591_v44  ;;  %v4593_v14 = vpop.f32.mrb[113].mxu0  ;;  %17844 = vst [vmem:[#allocation37_spill] sm:$0xff] %v13535_v52  ;;  %v13552_v31 = vsel %vm5454_vm3, %v5198_v8, %v5710_v53 }
 0x4c8   : > { %v4926_v57 = vmul.f32 %v13393_v55, %v4593_v14  ;;  %v3023_v41 = vpop.f32.mrb[20].mxu1  ;;  %v4595_v6 = vpop.f32.mrb[114].mxu0  ;;  %v13537_v33 = vsel %vm5455_vm2, %v5199_v11, %v5711_v35  ;;  %17847 = vst [vmem:[#allocation40_spill] sm:$0xff] %v13552_v31 }
 0x4c9   : > { %17845 = vst [vmem:[#allocation38_spill] sm:$0xff] %v13537_v33  ;;  %v13542_v26 = vadd.f32 %v13388_v23, %v4925_v5  ;;  %v3179_v54 = vmul.f32 %v12246_v27, %v3023_v41  ;;  %v4929_v30 = vmul.f32 %v13384_v24, %v4595_v6  ;;  %v3025_v44 = vpop.f32.mrb[21].mxu1  ;;  %v4597_v28 = vpop.f32.mrb[115].mxu0 }
 0x4ca   : > { %v5203_v34 = vadd.f32 %v13396_v7, %v4926_v57  ;;  %v3180_v51 = vmul.f32 %v12251_v59, %v3025_v44  ;;  %v4930_v11 = vmul.f32 %v13393_v55, %v4597_v28  ;;  %v3027_v56 = vpop.f32.mrb[22].mxu1 }
 0x4cb   : > { %v3318_v13 = vadd.f32 %v12254_v39, %v3179_v54  ;;  %v13556_v35 = vadd.f32 %v13388_v23, %v4929_v30  ;;  %v3181_v5 = vmul.f32 %v12246_v27, %v3027_v56  ;;  %v3029_v41 = vpop.f32.mrb[23].mxu1  ;;  %4407 = vmatmul.mubr.bf16.gmra.mrb[116].mxu1 %v13291_v17  ;;  %vm5458_vm10 = vcmp.gt.f32.partialorder %v13542_v26, 0.0 }
 0x4cc   : > { %v3319_v6 = vadd.f32 %v12257_v48, %v3180_v51  ;;  %v5207_v28 = vadd.f32 %v13396_v7, %v4930_v11  ;;  %v3182_v8 = vmul.f32 %v12251_v59, %v3029_v41  ;;  %4416 = vmatprep.mubr.bf16.mxu1 %v13342_v38  ;;  %4820 = vmatmul.mubr.bf16.gmra.mrb[204].mxu0 %v13448_v0  ;;  %vm5459_vm4 = vcmp.gt.f32.partialorder %v5203_v34, 0.0 }
 0x4cd   : > { %v3320_v53 = vadd.f32 %v12254_v39, %v3181_v5  ;;  %4829 = vmatprep.mubr.bf16.mxu0 %v13505_v42  ;;  %vm3446_vm5 = vcmp.gt.f32.partialorder %v3318_v13, 0.0  ;;  %v3574_v17 = vmul.f32 0.01, %v3318_v13  ;;  %v5715_v54 = vmul.f32 0.01, %v5203_v34 }
 0x4ce   : > { %v3321_v30 = vadd.f32 %v12257_v48, %v3182_v8  ;;  %v4601_v44 = vpop.f32.mrb[116].mxu0  ;;  %vm3447_vm6 = vcmp.gt.f32.partialorder %v3319_v6, 0.0  ;;  %v3575_v51 = vmul.f32 0.01, %v3319_v6  ;;  %vm5463_vm7 = vcmp.gt.f32.partialorder %v5207_v28, 0.0 }
 0x4cf   : > { %v4933_v11 = vmul.f32 %v13384_v24, %v4601_v44  ;;  %v4603_v56 = vpop.f32.mrb[117].mxu0  ;;  %vm3448_vm8 = vcmp.gt.f32.partialorder %v3320_v53, 0.0  ;;  %v3576_v38 = vmul.f32 0.01, %v3320_v53  ;;  %v3702_v41 = vsel %vm3446_vm5, %v3318_v13, %v3574_v17 }
 0x4d0   : > { %v4934_v57 = vmul.f32 %v13393_v55, %v4603_v56  ;;  %v4605_v5 = vpop.f32.mrb[118].mxu0  ;;  %vm3449_vm9 = vcmp.gt.f32.partialorder %v3321_v30, 0.0  ;;  %v3577_v14 = vmul.f32 0.01, %v3321_v30  ;;  %v3703_v32 = vsel %vm3447_vm6, %v3319_v6, %v3575_v51 }
 0x4d1   : > { %v5210_v50 = vadd.f32 %v13388_v23, %v4933_v11  ;;  %v4937_v8 = vmul.f32 %v13384_v24, %v4605_v5  ;;  %v4607_v3 = vpop.f32.mrb[119].mxu0  ;;  %v3704_v19 = vsel %vm3448_vm8, %v3320_v53, %v3576_v38  ;;  %v5719_v12 = vmul.f32 0.01, %v5207_v28 }
 0x4d2   : > { %v5211_v31 = vadd.f32 %v13396_v7, %v4934_v57  ;;  %v4938_v44 = vmul.f32 %v13393_v55, %v4607_v3  ;;  %v3705_v52 = vsel %vm3449_vm9, %v3321_v30, %v3577_v14  ;;  %v13576_v33 = vpack.c.bf16 %v3704_v19, %v3702_v41 }
 0x4d3   : > { %v5214_v13 = vadd.f32 %v13388_v23, %v4937_v8  ;;  %4417 = vmatmul.mubr.bf16.gmra.mrb[120].mxu1 %v13337_v21  ;;  %v13580_v17 = vpack.c.bf16 %v3705_v52, %v3703_v32  ;;  %v13583_v6 = vsel %vm5459_vm4, %v5203_v34, %v5715_v54  ;;  %v13586_v51 = vsel %vm5463_vm7, %v5207_v28, %v5719_v12 }
 0x4d4   : > { %17848 = vst [vmem:[#allocation41_spill] sm:$0xff] %v13583_v6  ;;  %17849 = vst [vmem:[#allocation42_spill] sm:$0xff] %v13586_v51  ;;  %v5215_v53 = vadd.f32 %v13396_v7, %v4938_v44  ;;  %4426 = vmatprep.mubr.bf16.mxu1 %v13419_v9  ;;  %4830 = vmatmul.mubr.bf16.gmra.mrb[208].mxu0 %v13502_v58  ;;  %vm5462_vm11 = vcmp.gt.f32.partialorder %v13556_v35, 0.0  ;;  %v5714_v21 = vmul.f32 0.01, %v13542_v26  ;;  %vm5467_vm12 = vcmp.gt.f32.partialorder %v5211_v31, 0.0 }
 0x4d5   : > { %4839 = vmatprep.mubr.bf16.mxu0 %v13580_v17  ;;  %v5718_v19 = vmul.f32 0.01, %v13556_v35  ;;  %vm5466_vm13 = vcmp.gt.f32.partialorder %v5210_v50, 0.0  ;;  %v5723_v9 = vmul.f32 0.01, %v5211_v31  ;;  %vm5470_vm15 = vcmp.gt.f32.partialorder %v5214_v13, 0.0 }
 0x4d6   : > { %v4611_v32 = vpop.f32.mrb[120].mxu0  ;;  %vm5471_vm14 = vcmp.gt.f32.partialorder %v5215_v53, 0.0  ;;  %v5727_v34 = vmul.f32 0.01, %v5215_v53  ;;  %v13600_v14 = vsel %vm5458_vm10, %v13542_v26, %v5714_v21  ;;  %v5722_v5 = vmul.f32 0.01, %v5210_v50 }
 0x4d7   : > { %v4941_v52 = vmul.f32 %v13384_v24, %v4611_v32  ;;  %v4613_v12 = vpop.f32.mrb[121].mxu0  ;;  %17850 = vst [vmem:[#allocation43_spill] sm:$0xff] %v13600_v14  ;;  %v13603_v57 = vsel %vm5462_vm11, %v13556_v35, %v5718_v19  ;;  %v13608_v11 = vsel %vm5467_vm12, %v5211_v31, %v5723_v9  ;;  %v5726_v21 = vmul.f32 0.01, %v5214_v13 }
 0x4d8   : > { %17851 = vst [vmem:[#allocation44_spill] sm:$0xff] %v13603_v57  ;;  %v4942_v28 = vmul.f32 %v13393_v55, %v4613_v12  ;;  %v4615_v54 = vpop.f32.mrb[122].mxu0  ;;  %17852 = vst [vmem:[#allocation45_spill] sm:$0xff] %v13608_v11  ;;  %v13610_v56 = vsel %vm5471_vm14, %v5215_v53, %v5727_v34  ;;  %v13625_v19 = vsel %vm5466_vm13, %v5210_v50, %v5722_v5 }
 0x4d9   : > { %17853 = vst [vmem:[#allocation46_spill] sm:$0xff] %v13610_v56  ;;  %v13613_v38 = vadd.f32 %v13388_v23, %v4941_v52  ;;  %v4945_v26 = vmul.f32 %v13384_v24, %v4615_v54  ;;  %v4617_v41 = vpop.f32.mrb[123].mxu0  ;;  %17854 = vst [vmem:[#allocation47_spill] sm:$0xff] %v13625_v19  ;;  %v13634_v12 = vsel %vm5470_vm15, %v5214_v13, %v5726_v21 }
 0x4da   : > { %v5219_v8 = vadd.f32 %v13396_v7, %v4942_v28  ;;  %v4946_v44 = vmul.f32 %v13393_v55, %v4617_v41  ;;  %17855 = vst [vmem:[#allocation48_spill] sm:$0xff] %v13634_v12 }
 0x4db   : > { %v13621_v31 = vadd.f32 %v13388_v23, %v4945_v26  ;;  %v3033_v53 = vpop.f32.mrb[24].mxu1  ;;  %4427 = vmatmul.mubr.bf16.gmra.mrb[124].mxu1 %v13421_v46  ;;  %vm5474_vm0 = vcmp.gt.f32.partialorder %v13613_v38, 0.0  ;;  %v5730_v32 = vmul.f32 0.01, %v13613_v38 }
 0x4dc   : > { %v5223_v9 = vadd.f32 %v13396_v7, %v4946_v44  ;;  %v3183_v34 = vmul.f32 %v12246_v27, %v3033_v53  ;;  %v3035_v52 = vpop.f32.mrb[25].mxu1  ;;  %4436 = vmatprep.mubr.bf16.mxu1 %v13248_v15  ;;  %4840 = vmatmul.mubr.bf16.gmra.mrb[212].mxu0 %v13576_v33  ;;  %vm5475_vm1 = vcmp.gt.f32.partialorder %v5219_v8, 0.0  ;;  %v5731_v54 = vmul.f32 0.01, %v5219_v8 }
 0x4dd   : > { %v3184_v46 = vmul.f32 %v12251_v59, %v3035_v52  ;;  %v3037_v50 = vpop.f32.mrb[26].mxu1  ;;  %vm5478_vm2 = vcmp.gt.f32.partialorder %v13621_v31, 0.0 }
 0x4de   : > { %v3322_v26 = vadd.f32 %v12254_v39, %v3183_v34  ;;  %v3185_v41 = vmul.f32 %v12246_v27, %v3037_v50  ;;  %v3039_v15 = vpop.f32.mrb[27].mxu1  ;;  %v4621_v5 = vpop.f32.mrb[124].mxu0  ;;  %vm5479_vm3 = vcmp.gt.f32.partialorder %v5223_v9, 0.0  ;;  %v5735_v44 = vmul.f32 0.01, %v5223_v9 }
 0x4df   : > { %v3323_v13 = vadd.f32 %v12257_v48, %v3184_v46  ;;  %v3186_v21 = vmul.f32 %v12251_v59, %v3039_v15  ;;  %v4949_v53 = vmul.f32 %v13384_v24, %v4621_v5  ;;  %v4623_v52 = vpop.f32.mrb[125].mxu0  ;;  %v13646_v28 = vsel %vm5475_vm1, %v5219_v8, %v5731_v54 }
 0x4e0   : > { %17856 = vst [vmem:[#allocation49_spill] sm:$0xff] %v13646_v28  ;;  %v3324_v35 = vadd.f32 %v12254_v39, %v3185_v41  ;;  %v4950_v34 = vmul.f32 %v13393_v55, %v4623_v52  ;;  %v4625_v30 = vpop.f32.mrb[126].mxu0  ;;  %vm3450_vm4 = vcmp.gt.f32.partialorder %v3322_v26, 0.0  ;;  %v3578_v50 = vmul.f32 0.01, %v3322_v26 }
 0x4e1   : > { %v3325_v3 = vadd.f32 %v12257_v48, %v3186_v21  ;;  %v5226_v19 = vadd.f32 %v13388_v23, %v4949_v53  ;;  %v4953_v46 = vmul.f32 %v13384_v24, %v4625_v30  ;;  %v4627_v15 = vpop.f32.mrb[127].mxu0  ;;  %vm3451_vm5 = vcmp.gt.f32.partialorder %v3323_v13, 0.0 }
 0x4e2   : > { %v5227_v5 = vadd.f32 %v13396_v7, %v4950_v34  ;;  %v4954_v8 = vmul.f32 %v13393_v55, %v4627_v15  ;;  %v3579_v54 = vmul.f32 0.01, %v3323_v13  ;;  %vm3452_vm6 = vcmp.gt.f32.partialorder %v3324_v35, 0.0 }
 0x4e3   : > { %v5230_v41 = vadd.f32 %v13388_v23, %v4953_v46  ;;  %4437 = vmatmul.mubr.bf16.gmra.mrb[128].mxu1 %v13246_v63  ;;  %vm3453_vm7 = vcmp.gt.f32.partialorder %v3325_v3, 0.0  ;;  %v3581_v52 = vmul.f32 0.01, %v3325_v3  ;;  %v3580_v12 = vmul.f32 0.01, %v3324_v35 }
 0x4e4   : > { %v5231_v21 = vadd.f32 %v13396_v7, %v4954_v8  ;;  %4446 = vmatprep.mubr.bf16.mxu1 %v13305_v45  ;;  %v3707_v30 = vsel %vm3451_vm5, %v3323_v13, %v3579_v54  ;;  %v3706_v53 = vsel %vm3450_vm4, %v3322_v26, %v3578_v50  ;;  %v13661_v34 = vsel %vm5479_vm3, %v5223_v9, %v5735_v44 }
 0x4e5   : > { %17857 = vst [vmem:[#allocation50_spill] sm:$0xff] %v13661_v34  ;;  %v3709_v15 = vsel %vm3453_vm7, %v3325_v3, %v3581_v52  ;;  %v3708_v11 = vsel %vm3452_vm6, %v3324_v35, %v3580_v12  ;;  %v5734_v63 = vmul.f32 0.01, %v13621_v31  ;;  %v13673_v45 = vsel %vm5474_vm0, %v13613_v38, %v5730_v32 }
 0x4e6   : > { %v4631_v56 = vpop.f32.mrb[128].mxu0  ;;  %v13666_v14 = vpack.c.bf16 %v3709_v15, %v3707_v30  ;;  %v13668_v57 = vpack.c.bf16 %v3708_v11, %v3706_v53  ;;  %17858 = vst [vmem:[#allocation51_spill] sm:$0xff] %v13673_v45  ;;  %vm5483_vm8 = vcmp.gt.f32.partialorder %v5227_v5, 0.0  ;;  %vm5487_vm9 = vcmp.gt.f32.partialorder %v5231_v21, 0.0 }
 0x4e7   : > { %v4957_v9 = vmul.f32 %v13384_v24, %v4631_v56  ;;  %v4633_v3 = vpop.f32.mrb[129].mxu0  ;;  %v13679_v35 = vsel %vm5478_vm2, %v13621_v31, %v5734_v63  ;;  %v5739_v12 = vmul.f32 0.01, %v5227_v5  ;;  %v5743_v32 = vmul.f32 0.01, %v5231_v21 }
 0x4e8   : > { %17859 = vst [vmem:[#allocation52_spill] sm:$0xff] %v13679_v35  ;;  %v4958_v26 = vmul.f32 %v13393_v55, %v4633_v3  ;;  %v4635_v11 = vpop.f32.mrb[130].mxu0  ;;  %4849 = vmatprep.mubr.bf16.mxu0 %v13666_v14  ;;  %vm5482_vm10 = vcmp.gt.f32.partialorder %v5226_v19, 0.0  ;;  %vm5486_vm11 = vcmp.gt.f32.partialorder %v5230_v41, 0.0  ;;  %v5738_v54 = vmul.f32 0.01, %v5226_v19 }
 0x4e9   : > { %v5234_v44 = vadd.f32 %v13388_v23, %v4957_v9  ;;  %v4961_v56 = vmul.f32 %v13384_v24, %v4635_v11  ;;  %v4637_v13 = vpop.f32.mrb[131].mxu0  ;;  %4850 = vmatmul.mubr.bf16.gmra.mrb[216].mxu0 %v13668_v57  ;;  %v13688_v31 = vsel %vm5483_vm8, %v5227_v5, %v5739_v12  ;;  %v13691_v8 = vsel %vm5487_vm9, %v5231_v21, %v5743_v32  ;;  %v17868_v11 = vld [vmem:[#allocation22_spill] sm:$0xff] }
 0x4ea   : > { %17860 = vst [vmem:[#allocation53_spill] sm:$0xff] %v13688_v31  ;;  %v4962_v50 = vmul.f32 %v13393_v55, %v4637_v13  ;;  %17861 = vst [vmem:[#allocation54_spill] sm:$0xff] %v13691_v8  ;;  %v5742_v53 = vmul.f32 0.01, %v5230_v41  ;;  %v5235_v15 = vadd.f32 %v13396_v7, %v4958_v26  ;;  %v13700_v63 = vsel %vm5482_vm10, %v5226_v19, %v5738_v54 }
 0x4eb   : > { %v5238_v52 = vadd.f32 %v13388_v23, %v4961_v56  ;;  %4447 = vmatmul.mubr.bf16.gmra.mrb[132].mxu1 %v13307_v40  ;;  %17862 = vst [vmem:[#allocation55_spill] sm:$0xff] %v13700_v63  ;;  %vm5490_vm12 = vcmp.gt.f32.partialorder %v5234_v44, 0.0  ;;  %v5746_v9 = vmul.f32 0.01, %v5234_v44 }
 0x4ec   : > { %v5239_v5 = vadd.f32 %v13396_v7, %v4962_v50  ;;  %4456 = vmatprep.mubr.bf16.mxu1 %v13360_v60  ;;  %v13702_v21 = vsel %vm5486_vm11, %v5230_v41, %v5742_v53  ;;  %v5747_v53 = vmul.f32 0.01, %v5235_v15  ;;  %vm5491_vm15 = vcmp.gt.f32.partialorder %v5235_v15, 0.0 }
 0x4ed   : > { %17863 = vst [vmem:[#allocation56_spill] sm:$0xff] %v13702_v21  ;;  %vm5494_vm13 = vcmp.gt.f32.partialorder %v5238_v52, 0.0  ;;  %v5750_v3 = vmul.f32 0.01, %v5238_v52  ;;  %v13711_v60 = vsel %vm5490_vm12, %v5234_v44, %v5746_v9 }
 0x4ee   : > { %v3043_v12 = vpop.f32.mrb[28].mxu1  ;;  %v13704_v40 = vpop.f32.mrb[132].mxu0  ;;  %v5751_v32 = vmul.f32 0.01, %v5239_v5  ;;  %vm5495_vm14 = vcmp.gt.f32.partialorder %v5239_v5, 0.0  ;;  %17864 = vst [vmem:[#allocation57_spill] sm:$0xff] %v13711_v60 }
 0x4ef   : > { %v3187_v26 = vmul.f32 %v12246_v27, %v3043_v12  ;;  %v3045_v56 = vpop.f32.mrb[29].mxu1  ;;  %v13709_v13 = vpop.f32.mrb[133].mxu0  ;;  %v13713_v19 = vsel %vm5494_vm13, %v5238_v52, %v5750_v3  ;;  %v17867_v3 = vld [vmem:[#allocation23_spill] sm:$0xff] }
 0x4f0   : > { %17865 = vst [vmem:[#allocation58_spill] sm:$0xff] %v13713_v19  ;;  %v3188_v41 = vmul.f32 %v12251_v59, %v3045_v56  ;;  %v3047_v50 = vpop.f32.mrb[30].mxu1  ;;  %v13716_v54 = vpop.f32.mrb[134].mxu0  ;;  %v13725_v52 = vsel %vm5495_vm14, %v5239_v5, %v5751_v32  ;;  %v13731_v56 = vrot.slane %v13373_v25, %v17867_v3 }
 0x4f1   : > { %v3326_v30 = vadd.f32 %v12254_v39, %v3187_v26  ;;  %v3189_v12 = vmul.f32 %v12246_v27, %v3047_v50  ;;  %v3049_v38 = vpop.f32.mrb[31].mxu1  ;;  %v13722_v46 = vpop.f32.mrb[135].mxu0  ;;  %17866 = vst [vmem:[#allocation59_spill] sm:$0xff] %v13725_v52  ;;  %v13735_v26 = vrot.slane %v13373_v25, %v17868_v11 }
 0x4f2   : > { %v3190_v44 = vmul.f32 %v12251_v59, %v3049_v38  ;;  %v3327_v50 = vadd.f32 %v12257_v48, %v3188_v41  ;;  %v13740_v59 = vsel %vm5491_vm15, %v5235_v15, %v5747_v53 }
 0x4f3   : > { %v3328_v9 = vadd.f32 %v12254_v39, %v3189_v12  ;;  %4457 = vmatmul.mubr.bf16.gmra.mrb[136].mxu1 %v13357_v18  ;;  %v3582_v27 = vmul.f32 0.01, %v3326_v30  ;;  %vm3454_vm0 = vcmp.gt.f32.partialorder %v3326_v30, 0.0  ;;  %17869 = vst [vmem:[#allocation60_spill] sm:$0xff] %v13740_v59  ;;  %v13744_v39 = vrot.slane %v13375_v29, %v17867_v3 }
 0x4f4   : > { %v3329_v60 = vadd.f32 %v12257_v48, %v3190_v44  ;;  %4466 = vmatprep.mubr.bf16.mxu1 %v13439_v22  ;;  %v13756_v44 = vrot.slane %v13375_v29, %v17868_v11  ;;  %v3583_v19 = vmul.f32 0.01, %v3327_v50  ;;  %vm3455_vm3 = vcmp.gt.f32.partialorder %v3327_v50, 0.0 }
 0x4f5   : > { %17870 = vst [vmem:[#allocation61_spill] sm:$0xff] %v13744_v39  ;;  %vm3456_vm1 = vcmp.gt.f32.partialorder %v3328_v9, 0.0  ;;  %v3584_v18 = vmul.f32 0.01, %v3328_v9  ;;  %v3710_v15 = vsel %vm3454_vm0, %v3326_v30, %v3582_v27 }
 0x4f6   : > { %v4198_v38 = vpop.f32.mrb[32].mxu1  ;;  %v13748_v5 = vpop.f32.mrb[136].mxu0  ;;  %v3585_v32 = vmul.f32 0.01, %v3329_v60  ;;  %vm3457_vm2 = vcmp.gt.f32.partialorder %v3329_v60, 0.0 }
 0x4f7   : > { %v4891_v48 = vmul.f32 %v13731_v56, %v4198_v38  ;;  %v4200_v41 = vpop.f32.mrb[33].mxu1  ;;  %v13751_v22 = vpop.f32.mrb[137].mxu0  ;;  %v3712_v53 = vsel %vm3456_vm1, %v3328_v9, %v3584_v18 }
 0x4f8   : > { %v4892_v12 = vmul.f32 %v13735_v26, %v4200_v41  ;;  %v4202_v3 = vpop.f32.mrb[34].mxu1  ;;  %v13758_v25 = vpop.f32.mrb[138].mxu0  ;;  %v13760_v59 = vpack.c.bf16 %v3712_v53, %v3710_v15  ;;  %v3713_v9 = vsel %vm3457_vm2, %v3329_v60, %v3585_v32 }
 0x4f9   : > { %v5168_v38 = vadd.f32 %v13744_v39, %v4891_v48  ;;  %v4895_v52 = vmul.f32 %v13731_v56, %v4202_v3  ;;  %v4204_v63 = vpop.f32.mrb[35].mxu1  ;;  %v13764_v21 = vpop.f32.mrb[139].mxu0  ;;  %v3711_v48 = vsel %vm3455_vm3, %v3327_v50, %v3583_v19 }
 0x4fa   : > { %v4896_v30 = vmul.f32 %v13735_v26, %v4204_v63  ;;  %v5169_v18 = vadd.f32 %v13756_v44, %v4892_v12  ;;  %v13772_v15 = vpack.c.bf16 %v3713_v9, %v3711_v48  ;;  %v4970_v12 = vmul.f32 %v13393_v55, %v13722_v46 }
 0x4fb   : > { %v5680_v27 = vmul.f32 0.01, %v5168_v38  ;;  %v5172_v29 = vadd.f32 %v13744_v39, %v4895_v52  ;;  %4467 = vmatmul.mubr.bf16.gmra.mrb[140].mxu1 %v13448_v0  ;;  %vm5424_vm4 = vcmp.gt.f32.partialorder %v5168_v38, 0.0 }
 0x4fc   : > { %v5173_v41 = vadd.f32 %v13756_v44, %v4896_v30  ;;  %4476 = vmatprep.mubr.bf16.mxu1 %v13505_v42  ;;  %4859 = vmatprep.mubr.bf16.mxu0 %v13772_v15  ;;  %v5681_v42 = vmul.f32 0.01, %v5169_v18  ;;  %vm5425_vm7 = vcmp.gt.f32.partialorder %v5169_v18, 0.0 }
 0x4fd   : > { %vm5428_vm5 = vcmp.gt.f32.partialorder %v5172_v29, 0.0  ;;  %v5684_v3 = vmul.f32 0.01, %v5172_v29  ;;  %v13776_v32 = vsel %vm5424_vm4, %v5168_v38, %v5680_v27  ;;  %4860 = vmatmul.mubr.bf16.gmra.mrb[220].mxu0 %v13760_v59  ;;  %v4966_v27 = vmul.f32 %v13393_v55, %v13709_v13 }
 0x4fe   : > { %v5685_v53 = vmul.f32 0.01, %v5173_v41  ;;  %v4208_v63 = vpop.f32.mrb[36].mxu1  ;;  %v13774_v60 = vpop.f32.mrb[140].mxu0  ;;  %vm5429_vm6 = vcmp.gt.f32.partialorder %v5173_v41, 0.0 }
 0x4ff   : > { %v13778_v52 = vsel %vm5428_vm5, %v5172_v29, %v5684_v3  ;;  %v4899_v0 = vmul.f32 %v13731_v56, %v4208_v63  ;;  %v4210_v19 = vpop.f32.mrb[37].mxu1  ;;  %v13782_v50 = vpop.f32.mrb[141].mxu0  ;;  %v5243_v46 = vadd.f32 %v13396_v7, %v4966_v27 }
 0x500   : > { %v4900_v30 = vmul.f32 %v13735_v26, %v4210_v19  ;;  %v4212_v38 = vpop.f32.mrb[38].mxu1  ;;  %v13788_v9 = vpop.f32.mrb[142].mxu0  ;;  %v13800_v19 = vsel %vm5429_vm6, %v5173_v41, %v5685_v53  ;;  %v5247_v53 = vadd.f32 %v13396_v7, %v4970_v12 }
 0x501   : > { %v5176_v29 = vadd.f32 %v13744_v39, %v4899_v0  ;;  %v4903_v48 = vmul.f32 %v13731_v56, %v4212_v38  ;;  %v4214_v3 = vpop.f32.mrb[39].mxu1  ;;  %v13794_v63 = vpop.f32.mrb[143].mxu0  ;;  %v13807_v38 = vsel %vm5425_vm7, %v5169_v18, %v5681_v42  ;;  %vm5499_vm12 = vcmp.gt.f32.partialorder %v5243_v46, 0.0 }
 0x502   : > { %v4904_v11 = vmul.f32 %v13735_v26, %v4214_v3  ;;  %v5177_v13 = vadd.f32 %v13756_v44, %v4900_v30  ;;  %vm5503_vm14 = vcmp.gt.f32.partialorder %v5247_v53, 0.0 }
 0x503   : > { %v5688_v31 = vmul.f32 0.01, %v5176_v29  ;;  %v5180_v8 = vadd.f32 %v13744_v39, %v4903_v48  ;;  %4477 = vmatmul.mubr.bf16.gmra.mrb[144].mxu1 %v13502_v58  ;;  %vm5432_vm8 = vcmp.gt.f32.partialorder %v5176_v29, 0.0 }
 0x504   : > { %v5181_v0 = vadd.f32 %v13756_v44, %v4904_v11  ;;  %4486 = vmatprep.mubr.bf16.mxu1 %v13580_v17  ;;  %v5689_v27 = vmul.f32 0.01, %v5177_v13  ;;  %vm5433_vm11 = vcmp.gt.f32.partialorder %v5177_v13, 0.0 }
 0x505   : > { %vm5436_vm9 = vcmp.gt.f32.partialorder %v5180_v8, 0.0  ;;  %v5692_v3 = vmul.f32 0.01, %v5180_v8  ;;  %v13819_v18 = vsel %vm5432_vm8, %v5176_v29, %v5688_v31  ;;  %v5755_v29 = vmul.f32 0.01, %v5243_v46 }
 0x506   : > { %v5693_v48 = vmul.f32 0.01, %v5181_v0  ;;  %v4218_v58 = vpop.f32.mrb[40].mxu1  ;;  %v13813_v45 = vpop.f32.mrb[144].mxu0  ;;  %vm5437_vm10 = vcmp.gt.f32.partialorder %v5181_v0, 0.0 }
 0x507   : > { %v4907_v11 = vmul.f32 %v13731_v56, %v4218_v58  ;;  %v4220_v30 = vpop.f32.mrb[41].mxu1  ;;  %v13816_v17 = vpop.f32.mrb[145].mxu0  ;;  %v13821_v42 = vsel %vm5436_vm9, %v5180_v8, %v5692_v3  ;;  %v5759_v3 = vmul.f32 0.01, %v5247_v53 }
 0x508   : > { %v4908_v41 = vmul.f32 %v13735_v26, %v4220_v30  ;;  %v4222_v35 = vpop.f32.mrb[42].mxu1  ;;  %v13824_v12 = vpop.f32.mrb[146].mxu0  ;;  %v13834_v8 = vsel %vm5437_vm10, %v5181_v0, %v5693_v48 }
 0x509   : > { %v5184_v58 = vadd.f32 %v13744_v39, %v4907_v11  ;;  %v4911_v34 = vmul.f32 %v13731_v56, %v4222_v35  ;;  %v4224_v6 = vpop.f32.mrb[43].mxu1  ;;  %v13830_v51 = vpop.f32.mrb[147].mxu0 }
 0x50a   : > { %v4912_v31 = vmul.f32 %v13735_v26, %v4224_v6  ;;  %v5185_v35 = vadd.f32 %v13756_v44, %v4908_v41  ;;  %v13842_v6 = vsel %vm5433_vm11, %v5177_v13, %v5689_v27  ;;  %v13851_v41 = vsel %vm5499_vm12, %v5243_v46, %v5755_v29 }
 0x50b   : > { %vm5440_vm13 = vcmp.gt.f32.partialorder %v5184_v58, 0.0  ;;  %v5696_v30 = vmul.f32 0.01, %v5184_v58  ;;  %v5188_v28 = vadd.f32 %v13744_v39, %v4911_v34  ;;  %4487 = vmatmul.mubr.bf16.gmra.mrb[148].mxu1 %v13576_v33  ;;  %17871 = vst [vmem:[#allocation62_spill] sm:$0xff] %v13851_v41 }
 0x50c   : > { %v5189_v11 = vadd.f32 %v13756_v44, %v4912_v31  ;;  %4496 = vmatprep.mubr.bf16.mxu1 %v13666_v14  ;;  %v13853_v31 = vsel %vm5503_vm14, %v5247_v53, %v5759_v3  ;;  %v5697_v61 = vmul.f32 0.01, %v5185_v35  ;;  %vm5441_vm1 = vcmp.gt.f32.partialorder %v5185_v35, 0.0 }
 0x50d   : > { %vm5444_vm15 = vcmp.gt.f32.partialorder %v5188_v28, 0.0  ;;  %v5700_v0 = vmul.f32 0.01, %v5188_v28  ;;  %v13848_v33 = vsel %vm5440_vm13, %v5184_v58, %v5696_v30  ;;  %17872 = vst [vmem:[#allocation63_spill] sm:$0xff] %v13853_v31 }
 0x50e   : > { %v5701_v20 = vmul.f32 0.01, %v5189_v11  ;;  %v4228_v43 = vpop.f32.mrb[44].mxu1  ;;  %v13846_v34 = vpop.f32.mrb[148].mxu0  ;;  %vm5445_vm0 = vcmp.gt.f32.partialorder %v5189_v11, 0.0 }
 0x50f   : > { %v4915_v14 = vmul.f32 %v13731_v56, %v4228_v43  ;;  %v4230_v13 = vpop.f32.mrb[45].mxu1  ;;  %v13856_v27 = vpop.f32.mrb[149].mxu0  ;;  %v13858_v36 = vsel %vm5444_vm15, %v5188_v28, %v5700_v0 }
 0x510   : > { %v4916_v58 = vmul.f32 %v13735_v26, %v4230_v13  ;;  %v4232_v30 = vpop.f32.mrb[46].mxu1  ;;  %v13863_v2 = vpop.f32.mrb[150].mxu0  ;;  %v13873_v0 = vsel %vm5445_vm0, %v5189_v11, %v5701_v20 }
 0x511   : > { %v5192_v43 = vadd.f32 %v13744_v39, %v4915_v14  ;;  %v4919_v53 = vmul.f32 %v13731_v56, %v4232_v30  ;;  %v4234_v29 = vpop.f32.mrb[47].mxu1  ;;  %v13869_v28 = vpop.f32.mrb[151].mxu0  ;;  %v13880_v30 = vsel %vm5441_vm1, %v5185_v35, %v5697_v61 }
 0x512   : > { %v4920_v3 = vmul.f32 %v13735_v26, %v4234_v29  ;;  %v5193_v46 = vadd.f32 %v13756_v44, %v4916_v58 }
 0x513   : > { %v5704_v13 = vmul.f32 0.01, %v5192_v43  ;;  %v5196_v48 = vadd.f32 %v13744_v39, %v4919_v53  ;;  %4497 = vmatmul.mubr.bf16.gmra.mrb[152].mxu1 %v13668_v57  ;;  %vm5448_vm2 = vcmp.gt.f32.partialorder %v5192_v43, 0.0 }
 0x514   : > { %v5197_v14 = vadd.f32 %v13756_v44, %v4920_v3  ;;  %4506 = vmatprep.mubr.bf16.mxu1 %v13772_v15  ;;  %v5705_v61 = vmul.f32 0.01, %v5193_v46  ;;  %vm5449_vm5 = vcmp.gt.f32.partialorder %v5193_v46, 0.0 }
 0x515   : > { %vm5452_vm3 = vcmp.gt.f32.partialorder %v5196_v48, 0.0  ;;  %v5708_v41 = vmul.f32 0.01, %v5196_v48  ;;  %v13889_v3 = vsel %vm5448_vm2, %v5192_v43, %v5704_v13 }
 0x516   : > { %v5709_v11 = vmul.f32 0.01, %v5197_v14  ;;  %v4238_v29 = vpop.f32.mrb[48].mxu1  ;;  %v13884_v31 = vpop.f32.mrb[152].mxu0  ;;  %vm5453_vm4 = vcmp.gt.f32.partialorder %v5197_v14, 0.0  ;;  %v13913_v20 = vsel %vm5449_vm5, %v5193_v46, %v5705_v61 }
 0x517   : > { %v4923_v57 = vmul.f32 %v13731_v56, %v4238_v29  ;;  %v4240_v53 = vpop.f32.mrb[49].mxu1  ;;  %v13887_v58 = vpop.f32.mrb[153].mxu0  ;;  %v13891_v15 = vsel %vm5452_vm3, %v5196_v48, %v5708_v41 }
 0x518   : > { %v4924_v35 = vmul.f32 %v13735_v26, %v4240_v53  ;;  %v4242_v49 = vpop.f32.mrb[50].mxu1  ;;  %v13894_v1 = vpop.f32.mrb[154].mxu0  ;;  %v13904_v41 = vsel %vm5453_vm4, %v5197_v14, %v5709_v11 }
 0x519   : > { %v5200_v37 = vadd.f32 %v13744_v39, %v4923_v57  ;;  %v4927_v29 = vmul.f32 %v13731_v56, %v4242_v49  ;;  %v4244_v10 = vpop.f32.mrb[51].mxu1  ;;  %v13900_v16 = vpop.f32.mrb[155].mxu0  ;;  %v17873_v49 = vpack.c.bf16 %v13800_v19, %v13807_v38 }
 0x51a   : > { %v4928_v48 = vmul.f32 %v13735_v26, %v4244_v10  ;;  %v5201_v53 = vadd.f32 %v13756_v44, %v4924_v35 }
 0x51b   : > { %v5712_v43 = vmul.f32 0.01, %v5200_v37  ;;  %v5204_v13 = vadd.f32 %v13744_v39, %v4927_v29  ;;  %4507 = vmatmul.mubr.bf16.gmra.mrb[156].mxu1 %v13760_v59  ;;  %vm5456_vm6 = vcmp.gt.f32.partialorder %v5200_v37, 0.0 }
 0x51c   : > { %v5205_v57 = vadd.f32 %v13756_v44, %v4928_v48  ;;  %6738 = vmatprep.mubr.bf16.mxu1 %v17873_v49  ;;  %v5713_v38 = vmul.f32 0.01, %v5201_v53  ;;  %v10707_v49 = vld [vmem:[%s17817_s7 + $0x100] ss:$8 sps:$4 sm:$0xff]   ;;  %vm5457_vm9 = vcmp.gt.f32.partialorder %v5201_v53, 0.0 }
 0x51d   : > { %vm5460_vm7 = vcmp.gt.f32.partialorder %v5204_v13, 0.0  ;;  %v5716_v10 = vmul.f32 0.01, %v5204_v13  ;;  %v13922_v4 = vsel %vm5456_vm6, %v5200_v37, %v5712_v43 }
 0x51e   : > { %v5717_v11 = vmul.f32 0.01, %v5205_v57  ;;  %v4248_v29 = vpop.f32.mrb[52].mxu1  ;;  %v13917_v62 = vpop.f32.mrb[156].mxu0  ;;  %vm5461_vm8 = vcmp.gt.f32.partialorder %v5205_v57, 0.0 }
 0x51f   : > { %17874 = vst [vmem:[#allocation64_spill] sm:$0xff] %v13917_v62  ;;  %v4931_v59 = vmul.f32 %v13731_v56, %v4248_v29  ;;  %v4250_v35 = vpop.f32.mrb[53].mxu1  ;;  %v13920_v48 = vpop.f32.mrb[157].mxu0  ;;  %v13924_v19 = vsel %vm5460_vm7, %v5204_v13, %v5716_v10  ;;  %v10712_v10 = vld [vmem:[%s17817_s7 + $0x114] ss:$8 sps:$4 sm:$0xff]  }
 0x520   : > { %17875 = vst [vmem:[#allocation65_spill] sm:$0xff] %v13920_v48  ;;  %v4252_v46 = vpop.f32.mrb[54].mxu1  ;;  %v13926_v61 = vpop.f32.mrb[158].mxu0  ;;  %v4932_v47 = vmul.f32 %v13735_v26, %v4250_v35  ;;  %v13945_v14 = vsel %vm5461_vm8, %v5205_v57, %v5717_v11  ;;  %v10710_v57 = vld [vmem:[%s17817_s7 + $0x110] ss:$8 sps:$4 sm:$0xff]   ;;  %v13961_v11 = vsel %vm5457_vm9, %v5201_v53, %v5713_v38 }
 0x521   : > { %17876 = vst [vmem:[#allocation66_spill] sm:$0xff] %v13926_v61  ;;  %v5208_v29 = vadd.f32 %v13744_v39, %v4931_v59  ;;  %v4935_v37 = vmul.f32 %v13731_v56, %v4252_v46  ;;  %v4254_v43 = vpop.f32.mrb[55].mxu1  ;;  %v13936_v13 = vpop.f32.mrb[159].mxu0  ;;  %v4969_v61 = vmul.f32 %v13384_v24, %v13716_v54  ;;  %v17878_v46 = vpack.c.bf16 %v13778_v52, %v13776_v32 }
 0x522   : > { %17877 = vst [vmem:[#allocation67_spill] sm:$0xff] %v13936_v13  ;;  %v4936_v48 = vmul.f32 %v13735_v26, %v4254_v43  ;;  %v4965_v13 = vmul.f32 %v13384_v24, %v13704_v40  ;;  %v17879_v54 = vpack.c.bf16 %v13834_v8, %v13842_v6  ;;  %v5209_v32 = vadd.f32 %v13756_v44, %v4932_v47  ;;  %v10715_v8 = vld [vmem:[%s17817_s7 + $0x124] ss:$8 sps:$4 sm:$0xff]  }
 0x523   : > { %v5720_v59 = vmul.f32 0.01, %v5208_v29  ;;  %v5212_v35 = vadd.f32 %v13744_v39, %v4935_v37  ;;  %6739 = vmatmul.mubr.bf16.vlgmr.msra.gmra.mrb[160].mxu1 %v17878_v46  ;;  %vm5464_vm10 = vcmp.gt.f32.partialorder %v5208_v29, 0.0  ;;  %v5246_v6 = vadd.f32 %v13388_v23, %v4969_v61  ;;  %v10713_v61 = vld [vmem:[%s17817_s7 + $0x120] ss:$8 sps:$4 sm:$0xff]  }
 0x524   : > { %v5213_v62 = vadd.f32 %v13756_v44, %v4936_v48  ;;  %7060 = vmatpush1.bf16.msra.mxu1 %v10707_v49  ;;  %6748 = vmatprep.mubr.bf16.mxu1 %v17879_v54  ;;  %v5242_v46 = vadd.f32 %v13388_v23, %v4965_v13  ;;  %v10718_v13 = vld [vmem:[%s17817_s7 + $0x134] ss:$8 sps:$4 sm:$0xff]   ;;  %vm5465_vm13 = vcmp.gt.f32.partialorder %v5209_v32, 0.0 }
 0x525   : > { %vm5468_vm11 = vcmp.gt.f32.partialorder %v5212_v35, 0.0  ;;  %v5724_v52 = vmul.f32 0.01, %v5212_v35  ;;  %7061 = vmatprep.subr.bf16.mxu1 %v10712_v10  ;;  %v13976_v43 = vsel %vm5464_vm10, %v5208_v29, %v5720_v59  ;;  %vm5502_vm14 = vcmp.gt.f32.partialorder %v5246_v6, 0.0 }
 0x526   : > { %v4258_v48 = vpop.f32.mrb[56].mxu1  ;;  %v13970_v49 = vpop.f32.mrb[160].mxu0  ;;  %v5725_v37 = vmul.f32 0.01, %v5213_v62  ;;  %vm5469_vm12 = vcmp.gt.f32.partialorder %v5213_v62, 0.0  ;;  %vm5498_vm15 = vcmp.gt.f32.partialorder %v5242_v46, 0.0 }
 0x527   : > { %17880 = vst [vmem:[#allocation68_spill] sm:$0xff] %v13970_v49  ;;  %v4939_v53 = vmul.f32 %v13731_v56, %v4258_v48  ;;  %v4260_v38 = vpop.f32.mrb[57].mxu1  ;;  %v13973_v47 = vpop.f32.mrb[161].mxu0  ;;  %v13978_v10 = vsel %vm5468_vm11, %v5212_v35, %v5724_v52  ;;  %v17884_v48 = vpack.c.bf16 %v13821_v42, %v13819_v18 }
 0x528   : > { %17881 = vst [vmem:[#allocation69_spill] sm:$0xff] %v13973_v47  ;;  %v4262_v54 = vpop.f32.mrb[58].mxu1  ;;  %v13981_v40 = vpop.f32.mrb[162].mxu0  ;;  %7062 = vmatpush1.bf16.msra.mxu1 %v10710_v57  ;;  %v5721_v47 = vmul.f32 0.01, %v5209_v32  ;;  %v4940_v49 = vmul.f32 %v13735_v26, %v4260_v38 }
 0x529   : > { %17882 = vst [vmem:[#allocation70_spill] sm:$0xff] %v13981_v40  ;;  %v5216_v29 = vadd.f32 %v13744_v39, %v4939_v53  ;;  %v4943_v59 = vmul.f32 %v13731_v56, %v4262_v54  ;;  %v4264_v35 = vpop.f32.mrb[59].mxu1  ;;  %v13990_v52 = vpop.f32.mrb[163].mxu0  ;;  %7063 = vmatprep.subr.bf16.mxu1 %v10715_v8  ;;  %v5758_v40 = vmul.f32 0.01, %v5246_v6  ;;  %v14001_v53 = vsel %vm5469_vm12, %v5213_v62, %v5725_v37 }
 0x52a   : > { %17883 = vst [vmem:[#allocation71_spill] sm:$0xff] %v13990_v52  ;;  %v4944_v57 = vmul.f32 %v13735_v26, %v4264_v35  ;;  %v17885_v8 = vpack.c.bf16 %v13873_v0, %v13880_v30  ;;  %v10716_v54 = vld [vmem:[%s17817_s7 + $0x130] ss:$8 sps:$4 sm:$0xff]   ;;  %v5754_v35 = vmul.f32 0.01, %v5242_v46  ;;  %v14011_v42 = vsel %vm5465_vm13, %v5209_v32, %v5721_v47 }
 0x52b   : > { %6749 = vmatmul.mubr.bf16.gmra.mrb[164].mxu1 %v17884_v48  ;;  %v5728_v38 = vmul.f32 0.01, %v5216_v29  ;;  %v5220_v52 = vadd.f32 %v13744_v39, %v4943_v59  ;;  %v10721_v62 = vld [vmem:[%s17817_s7 + $0x144] ss:$8 sps:$4 sm:$0xff]   ;;  %vm5472_vm0 = vcmp.gt.f32.partialorder %v5216_v29, 0.0  ;;  %v5217_v48 = vadd.f32 %v13756_v44, %v4940_v49 }
 0x52c   : > { %6758 = vmatprep.mubr.bf16.mxu1 %v17885_v8  ;;  %7064 = vmatpush1.bf16.msra.mxu1 %v10713_v61  ;;  %v5221_v18 = vadd.f32 %v13756_v44, %v4944_v57  ;;  %v14023_v61 = vsel %vm5502_vm14, %v5246_v6, %v5758_v40  ;;  %v14027_v47 = vsel %vm5498_vm15, %v5242_v46, %v5754_v35  ;;  %v10719_v40 = vld [vmem:[%s17817_s7 + $0x140] ss:$8 sps:$4 sm:$0xff]   ;;  %v10727_v37 = vld [vmem:[%s17817_s7 + $0x164] ss:$8 sps:$4 sm:$0xff]  }
 0x52d   : > { %7065 = vmatprep.subr.bf16.mxu1 %v10718_v13  ;;  %17886 = vst [vmem:[#allocation72_spill] sm:$0xff] %v14023_v61  ;;  %vm5476_vm1 = vcmp.gt.f32.partialorder %v5220_v52, 0.0  ;;  %v5732_v32 = vmul.f32 0.01, %v5220_v52  ;;  %17887 = vst [vmem:[#allocation73_spill] sm:$0xff] %v14027_v47  ;;  %v14033_v8 = vsel %vm5472_vm0, %v5216_v29, %v5728_v38  ;;  %vm5473_vm3 = vcmp.gt.f32.partialorder %v5217_v48, 0.0 }
 0x52e   : > { %v14016_v0 = vpop.f32.mrb[60].mxu1  ;;  %v14018_v30 = vpop.f32.mrb[164].mxu0  ;;  %v5733_v59 = vmul.f32 0.01, %v5221_v18  ;;  %vm5477_vm2 = vcmp.gt.f32.partialorder %v5221_v18, 0.0 }
 0x52f   : > { %v14029_v13 = vpop.f32.mrb[61].mxu1  ;;  %v14031_v57 = vpop.f32.mrb[165].mxu0  ;;  %v14035_v39 = vsel %vm5476_vm1, %v5220_v52, %v5732_v32  ;;  %v10724_v29 = vld [vmem:[%s17817_s7 + $0x154] ss:$8 sps:$4 sm:$0xff]   ;;  %v5729_v52 = vmul.f32 0.01, %v5217_v48  ;;  %v17889_v32 = vpack.c.bf16 %v13904_v41, %v13913_v20 }
 0x530   : > { %7066 = vmatpush1.bf16.msra.mxu1 %v10716_v54  ;;  %v14042_v49 = vpop.f32.mrb[62].mxu1  ;;  %v14044_v46 = vpop.f32.mrb[166].mxu0  ;;  %v14061_v6 = vsel %vm5477_vm2, %v5221_v18, %v5733_v59  ;;  %v10722_v54 = vld [vmem:[%s17817_s7 + $0x150] ss:$8 sps:$4 sm:$0xff]   ;;  %v10725_v59 = vld [vmem:[%s17817_s7 + $0x160] ss:$8 sps:$4 sm:$0xff]  }
 0x531   : > { %7067 = vmatprep.subr.bf16.mxu1 %v10721_v62  ;;  %v14051_v35 = vpop.f32.mrb[63].mxu1  ;;  %v14053_v38 = vpop.f32.mrb[167].mxu0  ;;  %v17888_v62 = vpack.c.bf16 %v13858_v36, %v13848_v33  ;;  %v14073_v33 = vsel %vm5473_vm3, %v5217_v48, %v5729_v52  ;;  %v17893_v52 = vpack.c.bf16 %v13891_v15, %v13889_v3  ;;  %v10733_v3 = vld [vmem:[%s17817_s7 + $0x184] ss:$8 sps:$4 sm:$0xff]   ;;  %v4973_v15 = vmul.f32 %v13384_v24, %v13748_v5 }
 0x532   : > { %v4985_v5 = vmul.f32 %v13384_v24, %v13788_v9  ;;  %v4989_v9 = vmul.f32 %v13384_v24, %v13813_v45  ;;  %v4993_v45 = vmul.f32 %v13384_v24, %v13824_v12  ;;  %v10734_v12 = vld [vmem:[%s17817_s7 + $0x190] ss:$8 sps:$4 sm:$0xff]  }
 0x533   : > { %6759 = vmatmul.mubr.bf16.gmra.mrb[168].mxu1 %v17888_v62 }
 0x534   : > { %6768 = vmatprep.mubr.bf16.mxu1 %v17889_v32  ;;  %7068 = vmatpush1.bf16.msra.mxu1 %v10719_v40  ;;  %v10730_v40 = vld [vmem:[%s17817_s7 + $0x174] ss:$8 sps:$4 sm:$0xff]   ;;  %v17895_v32 = vpack.c.bf16 %v13945_v14, %v13961_v11  ;;  %v4974_v11 = vmul.f32 %v13393_v55, %v13751_v22  ;;  %v10731_v22 = vld [vmem:[%s17817_s7 + $0x180] ss:$8 sps:$4 sm:$0xff]  }
 0x535   : > { %7069 = vmatprep.subr.bf16.mxu1 %v10724_v29 }
 0x536   : > { %v14069_v47 = vpop.f32.mrb[64].mxu1  ;;  %v14071_v36 = vpop.f32.mrb[168].mxu0 }
 0x537   : > { %17890 = vst [vmem:[#allocation74_spill] sm:$0xff] %v14071_v36  ;;  %v14075_v20 = vpop.f32.mrb[65].mxu1  ;;  %v14077_v41 = vpop.f32.mrb[169].mxu0 }
 0x538   : > { %17891 = vst [vmem:[#allocation75_spill] sm:$0xff] %v14077_v41  ;;  %7070 = vmatpush1.bf16.msra.mxu1 %v10722_v54  ;;  %v14087_v29 = vpop.f32.mrb[66].mxu1  ;;  %v14089_v48 = vpop.f32.mrb[170].mxu0 }
 0x539   : > { %7071 = vmatprep.subr.bf16.mxu1 %v10727_v37  ;;  %17892 = vst [vmem:[#allocation76_spill] sm:$0xff] %v14089_v48  ;;  %v14094_v62 = vpop.f32.mrb[67].mxu1  ;;  %v14096_v54 = vpop.f32.mrb[171].mxu0  ;;  %v10728_v37 = vld [vmem:[%s17817_s7 + $0x170] ss:$8 sps:$4 sm:$0xff]  }
 0x53a   : > { %17894 = vst [vmem:[#allocation77_spill] sm:$0xff] %v14096_v54  ;;  %v10742_v48 = vld [vmem:[%s17817_s7 + $0x1b4] ss:$8 sps:$4 sm:$0xff]  }
 0x53b   : > { %6769 = vmatmul.mubr.bf16.gmra.mrb[172].mxu1 %v17893_v52 }
 0x53c   : > { %6778 = vmatprep.mubr.bf16.mxu1 %v17895_v32  ;;  %7072 = vmatpush1.bf16.msra.mxu1 %v10725_v59  ;;  %v4977_v59 = vmul.f32 %v13384_v24, %v13758_v25  ;;  %v4981_v32 = vmul.f32 %v13384_v24, %v13774_v60  ;;  %v4986_v25 = vmul.f32 %v13393_v55, %v13794_v63  ;;  %v10736_v60 = vld [vmem:[%s17817_s7 + $0x194] ss:$8 sps:$4 sm:$0xff]  }
 0x53d   : > { %7073 = vmatprep.subr.bf16.mxu1 %v10730_v40  ;;  %v4978_v40 = vmul.f32 %v13393_v55, %v13764_v21 }
 0x53e   : > { %v14104_v18 = vpop.f32.mrb[68].mxu1  ;;  %v14106_v61 = vpop.f32.mrb[172].mxu0 }
 0x53f   : > { %17896 = vst [vmem:[#allocation78_spill] sm:$0xff] %v14106_v61  ;;  %v14113_v52 = vpop.f32.mrb[69].mxu1  ;;  %v14115_v14 = vpop.f32.mrb[173].mxu0  ;;  %v4982_v61 = vmul.f32 %v13393_v55, %v13782_v50  ;;  %v14142_v50 = vadd.f32 %v13388_v23, %v4973_v15  ;;  %v14159_v15 = vadd.f32 %v13388_v23, %v4977_v59  ;;  %v5001_v59 = vmul.f32 %v13384_v24, %v13863_v2 }
 0x540   : > { %17897 = vst [vmem:[#allocation79_spill] sm:$0xff] %v14115_v14  ;;  %7074 = vmatpush1.bf16.msra.mxu1 %v10728_v37  ;;  %v14134_v14 = vpop.f32.mrb[70].mxu1  ;;  %v14136_v21 = vpop.f32.mrb[174].mxu0  ;;  %v4990_v37 = vmul.f32 %v13393_v55, %v13816_v17  ;;  %v17905_v17 = vpack.c.bf16 %v14001_v53, %v14011_v42  ;;  %v14184_v53 = vadd.f32 %v13396_v7, %v4986_v25 }
 0x541   : > { %17898 = vst [vmem:[#allocation80_spill] sm:$0xff] %v14136_v21  ;;  %7075 = vmatprep.subr.bf16.mxu1 %v10733_v3  ;;  %17899 = vst [vmem:[#allocation81_spill] sm:$0xff] %v14142_v50  ;;  %v14148_v54 = vpop.f32.mrb[71].mxu1  ;;  %v14150_v63 = vpop.f32.mrb[175].mxu0  ;;  %v17901_v3 = vpack.c.bf16 %v13924_v19, %v13922_v4  ;;  %v14156_v21 = vadd.f32 %v13396_v7, %v4974_v11  ;;  %v14162_v50 = vadd.f32 %v13396_v7, %v4978_v40 }
 0x542   : > { %17900 = vst [vmem:[#allocation82_spill] sm:$0xff] %v14150_v63  ;;  %17903 = vst [vmem:[#allocation84_spill] sm:$0xff] %v14159_v15  ;;  %v14170_v63 = vadd.f32 %v13388_v23, %v4981_v32  ;;  %v14173_v4 = vadd.f32 %v13396_v7, %v4982_v61  ;;  %v14176_v19 = vadd.f32 %v13388_v23, %v4985_v5 }
 0x543   : > { %6779 = vmatmul.mubr.bf16.gmra.mrb[176].mxu1 %v17901_v3  ;;  %17902 = vst [vmem:[#allocation83_spill] sm:$0xff] %v14156_v21  ;;  %17904 = vst [vmem:[#allocation85_spill] sm:$0xff] %v14162_v50  ;;  %v4994_v11 = vmul.f32 %v13393_v55, %v13830_v51  ;;  %v4997_v42 = vmul.f32 %v13384_v24, %v13846_v34  ;;  %v4998_v61 = vmul.f32 %v13393_v55, %v13856_v27  ;;  %v17916_v3 = vld [vmem:[#allocation64_spill] sm:$0xff] }
 0x544   : > { %6788 = vmatprep.mubr.bf16.mxu1 %v17905_v17  ;;  %17906 = vst [vmem:[#allocation86_spill] sm:$0xff] %v14170_v63  ;;  %17907 = vst [vmem:[#allocation87_spill] sm:$0xff] %v14173_v4  ;;  %7076 = vmatpush1.bf16.msra.mxu1 %v10731_v22  ;;  %v14197_v32 = vadd.f32 %v13388_v23, %v4989_v9  ;;  %v14200_v5 = vadd.f32 %v13396_v7, %v4990_v37 }
 0x545   : > { %17908 = vst [vmem:[#allocation88_spill] sm:$0xff] %v14176_v19  ;;  %17909 = vst [vmem:[#allocation89_spill] sm:$0xff] %v14184_v53  ;;  %7077 = vmatprep.subr.bf16.mxu1 %v10736_v60  ;;  %v5002_v34 = vmul.f32 %v13393_v55, %v13869_v28  ;;  %v5005_v27 = vmul.f32 %v13384_v24, %v13884_v31  ;;  %v14211_v25 = vadd.f32 %v13388_v23, %v4993_v45 }
 0x546   : > { %v14192_v40 = vpop.f32.mrb[72].mxu1  ;;  %v14194_v51 = vpop.f32.mrb[176].mxu0  ;;  %17911 = vst [vmem:[#allocation91_spill] sm:$0xff] %v14197_v32  ;;  %17912 = vst [vmem:[#allocation92_spill] sm:$0xff] %v14200_v5  ;;  %v5006_v60 = vmul.f32 %v13393_v55, %v13887_v58  ;;  %v5009_v9 = vmul.f32 %v13384_v24, %v13894_v1  ;;  %v4952_v37 = vmul.f32 %v13735_v26, %v14051_v35  ;;  %v10737_v5 = vld [vmem:[%s17817_s7 + $0x1a0] ss:$8 sps:$4 sm:$0xff]  }
 0x547   : > { %17910 = vst [vmem:[#allocation90_spill] sm:$0xff] %v14194_v51  ;;  %v14206_v22 = vpop.f32.mrb[73].mxu1  ;;  %v14208_v2 = vpop.f32.mrb[177].mxu0  ;;  %17914 = vst [vmem:[#allocation94_spill] sm:$0xff] %v14211_v25  ;;  %v14220_v28 = vadd.f32 %v13396_v7, %v4994_v11  ;;  %v5010_v31 = vmul.f32 %v13393_v55, %v13900_v16  ;;  %v5013_v17 = vmul.f32 %v13384_v24, %v17916_v3  ;;  %v17920_v11 = vld [vmem:[#allocation65_spill] sm:$0xff] }
 0x548   : > { %17913 = vst [vmem:[#allocation93_spill] sm:$0xff] %v14208_v2  ;;  %v4948_v45 = vmul.f32 %v13735_v26, %v14029_v13  ;;  %7078 = vmatpush1.bf16.msra.mxu1 %v10734_v12  ;;  %v14229_v58 = vadd.f32 %v13388_v23, %v4997_v42  ;;  %v14232_v1 = vadd.f32 %v13396_v7, %v4998_v61  ;;  %v14239_v16 = vpop.f32.mrb[74].mxu1  ;;  %v14241_v32 = vpop.f32.mrb[178].mxu0  ;;  %v17924_v12 = vld [vmem:[#allocation68_spill] sm:$0xff]  ;;  %v17925_v61 = vld [vmem:[#allocation69_spill] sm:$0xff] }
 0x549   : > { %17915 = vst [vmem:[#allocation95_spill] sm:$0xff] %v14220_v28  ;;  %v14235_v35 = vadd.f32 %v13388_v23, %v5001_v59  ;;  %v5014_v25 = vmul.f32 %v13393_v55, %v17920_v11  ;;  %17921 = vst [vmem:[#allocation65_spill] sm:$0xff] %v14241_v32  ;;  %v14244_v3 = vadd.f32 %v13396_v7, %v5002_v34 }
 0x54a   : > { %17917 = vst [vmem:[#allocation64_spill] sm:$0xff] %v14229_v58  ;;  %17918 = vst [vmem:[#allocation96_spill] sm:$0xff] %v14232_v1  ;;  %v14247_v13 = vadd.f32 %v13388_v23, %v5005_v27  ;;  %v5021_v42 = vmul.f32 %v13384_v24, %v17924_v12  ;;  %v5022_v59 = vmul.f32 %v13393_v55, %v17925_v61  ;;  %v14255_v58 = vpop.f32.mrb[179].mxu0 }
 0x54b   : > { %17919 = vst [vmem:[#allocation97_spill] sm:$0xff] %v14235_v35  ;;  %17922 = vst [vmem:[#allocation98_spill] sm:$0xff] %v14244_v3  ;;  %v14253_v35 = vpop.f32.mrb[75].mxu1  ;;  %v17927_v11 = vpack.c.bf16 %v13978_v10, %v13976_v43  ;;  %v14261_v34 = vadd.f32 %v13396_v7, %v5006_v60  ;;  %v14264_v27 = vadd.f32 %v13388_v23, %v5009_v9  ;;  %v17933_v10 = vld [vmem:[#allocation70_spill] sm:$0xff] }
 0x54c   : > { %17923 = vst [vmem:[#allocation99_spill] sm:$0xff] %v14247_v13  ;;  %17926 = vst [vmem:[#allocation68_spill] sm:$0xff] %v14255_v58  ;;  %v4947_v12 = vmul.f32 %v13731_v56, %v14016_v0  ;;  %v5229_v13 = vadd.f32 %v13756_v44, %v4952_v37  ;;  %v17930_v61 = vpack.c.bf16 %v14061_v6, %v14073_v33  ;;  %v17935_v0 = vld [vmem:[#allocation66_spill] sm:$0xff]  ;;  %v17936_v6 = vld [vmem:[#allocation71_spill] sm:$0xff] }
 0x54d   : > { %6789 = vmatmul.mubr.bf16.gmra.mrb[180].mxu1 %v17927_v11  ;;  %17928 = vst [vmem:[#allocation69_spill] sm:$0xff] %v14261_v34  ;;  %17929 = vst [vmem:[#allocation100_spill] sm:$0xff] %v14264_v27  ;;  %v14273_v3 = vadd.f32 %v13396_v7, %v5010_v31  ;;  %v14276_v43 = vadd.f32 %v13388_v23, %v5013_v17  ;;  %v5025_v60 = vmul.f32 %v13384_v24, %v17933_v10  ;;  %v17938_v10 = vld [vmem:[#allocation67_spill] sm:$0xff] }
 0x54e   : > { %6798 = vmatprep.mubr.bf16.mxu1 %v17930_v61  ;;  %v5225_v9 = vadd.f32 %v13756_v44, %v4948_v45  ;;  %v14282_v11 = vadd.f32 %v13396_v7, %v5014_v25  ;;  %v14286_v37 = vmul.f32 %v13384_v24, %v17935_v0  ;;  %v5026_v33 = vmul.f32 %v13393_v55, %v17936_v6  ;;  %v14292_v17 = vpop.f32.mrb[76].mxu1  ;;  %v14294_v61 = vpop.f32.mrb[180].mxu0 }
 0x54f   : > { %17931 = vst [vmem:[#allocation101_spill] sm:$0xff] %v14273_v3  ;;  %17932 = vst [vmem:[#allocation102_spill] sm:$0xff] %v14276_v43  ;;  %v4951_v31 = vmul.f32 %v13731_v56, %v14042_v49  ;;  %v14298_v45 = vmul.f32 %v13393_v55, %v17938_v10  ;;  %v14301_v25 = vadd.f32 %v13388_v23, %v5021_v42  ;;  %v14308_v43 = vpop.f32.mrb[77].mxu1  ;;  %v14310_v49 = vpop.f32.mrb[181].mxu0  ;;  %v5741_v3 = vmul.f32 0.01, %v5229_v13 }
 0x550   : > { %17934 = vst [vmem:[#allocation70_spill] sm:$0xff] %v14282_v11  ;;  %17937 = vst [vmem:[#allocation66_spill] sm:$0xff] %v14294_v61  ;;  %v14304_v0 = vadd.f32 %v13396_v7, %v5022_v59  ;;  %v5029_v6 = vmul.f32 %v13384_v24, %v14018_v30  ;;  %v17943_v11 = vld [vmem:[#allocation61_spill] sm:$0xff]  ;;  %v4955_v10 = vmul.f32 %v13731_v56, %v14069_v47  ;;  %v5737_v59 = vmul.f32 0.01, %v5225_v9  ;;  %v4312_v28 = vpop.f32.mrb[78].mxu1 }
 0x551   : > { %17939 = vst [vmem:[#allocation71_spill] sm:$0xff] %v14298_v45  ;;  %17940 = vst [vmem:[#allocation67_spill] sm:$0xff] %v14301_v25  ;;  %v5224_v27 = vadd.f32 %v17943_v11, %v4947_v12  ;;  %v4956_v42 = vmul.f32 %v13735_v26, %v14075_v20  ;;  %v14318_v34 = vadd.f32 %v13388_v23, %v5025_v60  ;;  %vm5485_vm4 = vcmp.gt.f32.partialorder %v5229_v13, 0.0  ;;  %v14332_v60 = vpop.f32.mrb[182].mxu0 }
 0x552   : > { %17941 = vst [vmem:[#allocation103_spill] sm:$0xff] %v14304_v0  ;;  %17942 = vst [vmem:[#allocation104_spill] sm:$0xff] %v14310_v49  ;;  %v4959_v30 = vmul.f32 %v13731_v56, %v14087_v29  ;;  %v14323_v1 = vadd.f32 %v13396_v7, %v5026_v33  ;;  %v14327_v12 = vmul.f32 %v13393_v55, %v14031_v57  ;;  %v10739_v29 = vld [vmem:[%s17817_s7 + $0x1a4] ss:$8 sps:$4 sm:$0xff]   ;;  %vm5481_vm5 = vcmp.gt.f32.partialorder %v5225_v9, 0.0  ;;  %v14347_v19 = vpop.f32.mrb[183].mxu0 }
 0x553   : > { %17944 = vst [vmem:[#allocation61_spill] sm:$0xff] %v14318_v34  ;;  %v5228_v47 = vadd.f32 %v17943_v11, %v4951_v31  ;;  %v4960_v20 = vmul.f32 %v13735_v26, %v14094_v62  ;;  %17946 = vst [vmem:[#allocation106_spill] sm:$0xff] %v14332_v60  ;;  %v14341_v33 = vadd.f32 %v13388_v23, %v5029_v6  ;;  %v4314_v31 = vpop.f32.mrb[79].mxu1  ;;  %v5736_v53 = vmul.f32 0.01, %v5224_v27 }
 0x554   : > { %17945 = vst [vmem:[#allocation105_spill] sm:$0xff] %v14323_v1  ;;  %v4963_v57 = vmul.f32 %v13731_v56, %v14104_v18  ;;  %v4964_v62 = vmul.f32 %v13735_v26, %v14113_v52  ;;  %17948 = vst [vmem:[#allocation108_spill] sm:$0xff] %v14347_v19  ;;  %v17949_v63 = vpack.c.bf16 %v14035_v39, %v14033_v8  ;;  %7079 = vmatprep.subr.bf16.mxu1 %v10739_v29 }
 0x555   : > { %17947 = vst [vmem:[#allocation107_spill] sm:$0xff] %v14341_v33  ;;  %v14353_v4 = vadd.f32 %v17943_v11, %v4955_v10  ;;  %v14356_v6 = vadd.f32 %v13756_v44, %v4956_v42  ;;  %v5997_v15 = vsel %vm5485_vm4, %v5229_v13, %v5741_v3  ;;  %vm5480_vm6 = vcmp.gt.f32.partialorder %v5224_v27, 0.0  ;;  %7080 = vmatpush1.bf16.msra.mxu1 %v10737_v5 }
 0x556   : > { %6799 = vmatmul.mubr.bf16.gmra.mrb[184].mxu1 %v17949_v63  ;;  %v14360_v18 = vadd.f32 %v17943_v11, %v4959_v30  ;;  %v4967_v52 = vmul.f32 %v13731_v56, %v14134_v14  ;;  %v4968_v39 = vmul.f32 %v13735_v26, %v14148_v54  ;;  %vm5484_vm7 = vcmp.gt.f32.partialorder %v5228_v47, 0.0  ;;  %v4318_v3 = vpop.f32.mrb[80].mxu1  ;;  %7081 = vmatprep.subr.bf16.mxu1 %v10742_v48 }
 0x557   : > { %v5740_v8 = vmul.f32 0.01, %v5228_v47  ;;  %v14367_v63 = vadd.f32 %v13756_v44, %v4960_v20  ;;  %v5993_v10 = vsel %vm5481_vm5, %v5225_v9, %v5737_v59  ;;  %v14371_v13 = vadd.f32 %v17943_v11, %v4963_v57  ;;  %v4320_v54 = vpop.f32.mrb[81].mxu1 }
 0x558   : > { %v14374_v42 = vadd.f32 %v13756_v44, %v4964_v62  ;;  %v4971_v14 = vmul.f32 %v13731_v56, %v14192_v40  ;;  %v6223_v30 = vpack.c.bf16 %v5997_v15, %v5993_v10  ;;  %v14379_v5 = vmul.f32 0.01, %v14353_v4 }
 0x559   : > { %vm5489_vm8 = vcmp.gt.f32.partialorder %v14356_v6, 0.0  ;;  %v4972_v9 = vmul.f32 %v13735_v26, %v14206_v22  ;;  %v5992_v59 = vsel %vm5480_vm6, %v5224_v27, %v5736_v53  ;;  %v5745_v20 = vmul.f32 0.01, %v14356_v6  ;;  %v4322_v27 = vpop.f32.mrb[82].mxu1 }
 0x55a   : > { %v14387_v29 = vmul.f32 0.01, %v14360_v18  ;;  %v14390_v57 = vadd.f32 %v17943_v11, %v4967_v52  ;;  %v14393_v15 = vadd.f32 %v13756_v44, %v4968_v39  ;;  %6808 = vmatprep.mubr.bf16.mxu1 %v6223_v30  ;;  %vm5493_vm9 = vcmp.gt.f32.partialorder %v14367_v63, 0.0  ;;  %v14401_v62 = vpop.f32.mrb[184].mxu0  ;;  %v4324_v30 = vpop.f32.mrb[83].mxu1 }
 0x55b   : > { %v5749_v40 = vmul.f32 0.01, %v14367_v63  ;;  %v4975_v22 = vmul.f32 %v13731_v56, %v14239_v16  ;;  %v4976_v53 = vmul.f32 %v13735_v26, %v14253_v35  ;;  %17950 = vst [vmem:[#allocation109_spill] sm:$0xff] %v14401_v62  ;;  %v14404_v52 = vmul.f32 0.01, %v14371_v13  ;;  %v14412_v50 = vpop.f32.mrb[185].mxu0 }
 0x55c   : > { %v14407_v39 = vmul.f32 0.01, %v14374_v42  ;;  %v14410_v10 = vadd.f32 %v17943_v11, %v4971_v14  ;;  %17951 = vst [vmem:[#allocation110_spill] sm:$0xff] %v14412_v50  ;;  %v5996_v16 = vsel %vm5484_vm7, %v5228_v47, %v5740_v8  ;;  %vm5492_vm10 = vcmp.gt.f32.partialorder %v14360_v18, 0.0 }
 0x55d   : > { %v14417_v35 = vadd.f32 %v13756_v44, %v4972_v9  ;;  %v4979_v21 = vmul.f32 %v13731_v56, %v14292_v17  ;;  %v4980_v45 = vmul.f32 %v13735_v26, %v14308_v43  ;;  %v4983_v62 = vmul.f32 %v13731_v56, %v4312_v28  ;;  %v14432_v9 = vpop.f32.mrb[186].mxu0 }
 0x55e   : > { %vm5488_vm11 = vcmp.gt.f32.partialorder %v14353_v4, 0.0  ;;  %vm5497_vm12 = vcmp.gt.f32.partialorder %v14374_v42, 0.0  ;;  %v14427_v14 = vmul.f32 0.01, %v14390_v57  ;;  %vm5501_vm13 = vcmp.gt.f32.partialorder %v14393_v15, 0.0  ;;  %17952 = vst [vmem:[#allocation111_spill] sm:$0xff] %v14432_v9 }
 0x55f   : > { %v4984_v47 = vmul.f32 %v13735_v26, %v4314_v31  ;;  %v4987_v8 = vmul.f32 %v13731_v56, %v4318_v3  ;;  %v14435_v17 = vadd.f32 %v17943_v11, %v4975_v22  ;;  %v14438_v28 = vadd.f32 %v13756_v44, %v4976_v53  ;;  %v14441_v19 = vpop.f32.mrb[187].mxu0  ;;  %v4328_v60 = vpop.f32.mrb[84].mxu1 }
 0x560   : > { %v4988_v43 = vmul.f32 %v13735_v26, %v4320_v54  ;;  %v6222_v50 = vpack.c.bf16 %v5996_v16, %v5992_v59  ;;  %17953 = vst [vmem:[#allocation112_spill] sm:$0xff] %v14441_v19  ;;  %v5757_v49 = vmul.f32 0.01, %v14393_v15  ;;  %v14445_v31 = vmul.f32 0.01, %v14410_v10 }
 0x561   : > { %v4991_v3 = vmul.f32 %v13731_v56, %v4322_v27  ;;  %v4992_v9 = vmul.f32 %v13735_v26, %v4324_v30  ;;  %vm5496_vm14 = vcmp.gt.f32.partialorder %v14371_v13, 0.0  ;;  %vm5500_vm15 = vcmp.gt.f32.partialorder %v14390_v57, 0.0  ;;  %v4330_v27 = vpop.f32.mrb[85].mxu1 }
 0x562   : > { %v14452_v22 = vmul.f32 0.01, %v14417_v35  ;;  %v14455_v54 = vadd.f32 %v17943_v11, %v4979_v21  ;;  %v14458_v59 = vadd.f32 %v13756_v44, %v4980_v45  ;;  %v14461_v53 = vadd.f32 %v17943_v11, %v4983_v62  ;;  %6809 = vmatmul.mubr.bf16.gmra.mrb[188].mxu1 %v6222_v50  ;;  %v4332_v19 = vpop.f32.mrb[86].mxu1 }
 0x563   : > { %vm5505_vm0 = vcmp.gt.f32.partialorder %v14417_v35, 0.0  ;;  %v14465_v30 = vadd.f32 %v13756_v44, %v4984_v47  ;;  %v14468_v16 = vadd.f32 %v17943_v11, %v4987_v8  ;;  %v6005_v21 = vsel %vm5493_vm9, %v14367_v63, %v5749_v40  ;;  %v4334_v61 = vpop.f32.mrb[87].mxu1 }
 0x564   : > { %v4995_v45 = vmul.f32 %v13731_v56, %v4328_v60  ;;  %vm5508_vm1 = vcmp.gt.f32.partialorder %v14435_v17, 0.0  ;;  %v14476_v50 = vmul.f32 0.01, %v14435_v17  ;;  %vm5509_vm2 = vcmp.gt.f32.partialorder %v14438_v28, 0.0 }
 0x565   : > { %v14480_v62 = vadd.f32 %v13756_v44, %v4988_v43  ;;  %v6001_v47 = vsel %vm5489_vm8, %v14356_v6, %v5745_v20  ;;  %v5765_v8 = vmul.f32 0.01, %v14438_v28  ;;  %v14487_v63 = vadd.f32 %v17943_v11, %v4991_v3 }
 0x566   : > { %v14490_v60 = vadd.f32 %v13756_v44, %v4992_v9  ;;  %v6227_v40 = vpack.c.bf16 %v6005_v21, %v6001_v47  ;;  %vm5504_vm3 = vcmp.gt.f32.partialorder %v14410_v10, 0.0  ;;  %v14494_v58 = vmul.f32 0.01, %v14455_v54  ;;  %v4338_v51 = vpop.f32.mrb[88].mxu1 }
 0x567   : > { %v14497_v43 = vmul.f32 0.01, %v14458_v59  ;;  %v14500_v6 = vmul.f32 0.01, %v14461_v53  ;;  %v4996_v20 = vmul.f32 %v13735_v26, %v4330_v27  ;;  %vm5513_vm5 = vcmp.gt.f32.partialorder %v14458_v59, 0.0 }
 0x568   : > { %vm5517_vm6 = vcmp.gt.f32.partialorder %v14465_v30, 0.0  ;;  %v14507_v9 = vmul.f32 0.01, %v14465_v30  ;;  %v14510_v3 = vmul.f32 0.01, %v14468_v16  ;;  %6818 = vmatprep.mubr.bf16.mxu1 %v6227_v40  ;;  %v14513_v21 = vadd.f32 %v17943_v11, %v4995_v45  ;;  %v4340_v40 = vpop.f32.mrb[89].mxu1 }
 0x569   : > { %v4999_v47 = vmul.f32 %v13731_v56, %v4332_v19  ;;  %v14518_v27 = vmul.f32 %v13384_v24, %v14044_v46  ;;  %vm5516_vm7 = vcmp.gt.f32.partialorder %v14461_v53, 0.0  ;;  %vm5521_vm8 = vcmp.gt.f32.partialorder %v14480_v62, 0.0  ;;  %v10740_v45 = vld [vmem:[%s17817_s7 + $0x1b0] ss:$8 sps:$4 sm:$0xff]  }
 0x56a   : > { %v5777_v32 = vmul.f32 0.01, %v14480_v62  ;;  %v5000_v2 = vmul.f32 %v13735_v26, %v4334_v61  ;;  %v14529_v19 = vmul.f32 0.01, %v14487_v63  ;;  %vm5525_vm4 = vcmp.gt.f32.partialorder %v14490_v60, 0.0  ;;  %7082 = vmatpush1.bf16.msra.mxu1 %v10740_v45 }
 0x56b   : > { %v6004_v46 = vsel %vm5492_vm10, %v14360_v18, %v14387_v29  ;;  %v6013_v61 = vsel %vm5501_vm13, %v14393_v15, %v5757_v49  ;;  %vm5524_vm9 = vcmp.gt.f32.partialorder %v14487_v63, 0.0  ;;  %v5781_v33 = vmul.f32 0.01, %v14490_v60 }
 0x56c   : > { %v14545_v1 = vadd.f32 %v13756_v44, %v4996_v20  ;;  %v6000_v18 = vsel %vm5488_vm11, %v14353_v4, %v14379_v5  ;;  %v6009_v49 = vsel %vm5497_vm12, %v14374_v42, %v14407_v39  ;;  %v14556_v29 = vmul.f32 0.01, %v14513_v21  ;;  %v4342_v20 = vpop.f32.mrb[90].mxu1 }
 0x56d   : > { %v14559_v15 = vadd.f32 %v17943_v11, %v4999_v47  ;;  %v6226_v41 = vpack.c.bf16 %v6004_v46, %v6000_v18  ;;  %v6231_v24 = vpack.c.bf16 %v6013_v61, %v6009_v49  ;;  %v5277_v36 = vadd.f32 %v13756_v44, %v5000_v2  ;;  %v4344_v0 = vpop.f32.mrb[91].mxu1 }
 0x56e   : > { %v5003_v34 = vmul.f32 %v13731_v56, %v4338_v51  ;;  %v5004_v4 = vmul.f32 %v13735_v26, %v4340_v40  ;;  %v5007_v5 = vmul.f32 %v13731_v56, %v4342_v20  ;;  %v5008_v42 = vmul.f32 %v13735_v26, %v4344_v0 }
 0x56f   : > { %6819 = vmatmul.mubr.bf16.gmra.mrb[192].mxu1 %v6226_v41  ;;  %v6008_v39 = vsel %vm5496_vm14, %v14371_v13, %v14404_v52  ;;  %v6012_v48 = vsel %vm5500_vm15, %v14390_v57, %v14427_v14  ;;  %v6021_v51 = vsel %vm5509_vm2, %v14438_v28, %v5765_v8  ;;  %vm5529_vm10 = vcmp.gt.f32.partialorder %v14545_v1, 0.0 }
 0x570   : > { %6828 = vmatprep.mubr.bf16.mxu1 %v6231_v24  ;;  %v14579_v41 = vadd.f32 %v17943_v11, %v5003_v34  ;;  %v6230_v2 = vpack.c.bf16 %v6012_v48, %v6008_v39  ;;  %v6017_v0 = vsel %vm5505_vm0, %v14417_v35, %v14452_v22  ;;  %vm5528_vm11 = vcmp.gt.f32.partialorder %v14513_v21, 0.0 }
 0x571   : > { %v5785_v13 = vmul.f32 0.01, %v14545_v1  ;;  %vm5532_vm12 = vcmp.gt.f32.partialorder %v14559_v15, 0.0  ;;  %v6235_v57 = vpack.c.bf16 %v6021_v51, %v6017_v0  ;;  %v14592_v24 = vsel %vm5508_vm1, %v14435_v17, %v14476_v50  ;;  %v4348_v50 = vpop.f32.mrb[92].mxu1 }
 0x572   : > { %v5788_v34 = vmul.f32 0.01, %v14559_v15  ;;  %vm5533_vm13 = vcmp.gt.f32.partialorder %v5277_v36, 0.0  ;;  %v5789_v52 = vmul.f32 0.01, %v5277_v36  ;;  %v14596_v14 = vadd.f32 %v13756_v44, %v5004_v4 }
 0x573   : > { %v14599_v35 = vmul.f32 0.01, %v14579_v41  ;;  %v14602_v28 = vadd.f32 %v17943_v11, %v5007_v5  ;;  %v5285_v22 = vadd.f32 %v13756_v44, %v5008_v42  ;;  %v6016_v17 = vsel %vm5504_vm3, %v14410_v10, %v14445_v31  ;;  %v4350_v31 = vpop.f32.mrb[93].mxu1 }
 0x574   : > { %v6234_v8 = vpack.c.bf16 %v14592_v24, %v6016_v17  ;;  %v6025_v47 = vsel %vm5513_vm5, %v14458_v59, %v14497_v43  ;;  %v6029_v45 = vsel %vm5517_vm6, %v14465_v30, %v14507_v9  ;;  %vm17954_vm14 = vcmp.gt.f32.partialorder %v14455_v54, 0.0  ;;  %v4352_v43 = vpop.f32.mrb[94].mxu1 }
 0x575   : > { %v14622_v46 = vsel %vm17954_vm14, %v14455_v54, %v14494_v58  ;;  %vm5536_vm15 = vcmp.gt.f32.partialorder %v14579_v41, 0.0  ;;  %v5011_v10 = vmul.f32 %v13731_v56, %v4348_v50  ;;  %v6239_v61 = vpack.c.bf16 %v6029_v45, %v6025_v47  ;;  %v10745_v58 = vld [vmem:[%s17817_s7 + $0x1c4] ss:$8 sps:$4 sm:$0xff]   ;;  %v4354_v18 = vpop.f32.mrb[95].mxu1 }
 0x576   : > { %v14630_v59 = vsel %vm5516_vm7, %v14461_v53, %v14500_v6  ;;  %v14635_v30 = vsel %vm5521_vm8, %v14480_v62, %v5777_v32  ;;  %v5012_v54 = vmul.f32 %v13735_v26, %v4350_v31  ;;  %v14646_v53 = vsel %vm5525_vm4, %v14490_v60, %v5781_v33  ;;  %v10743_v62 = vld [vmem:[%s17817_s7 + $0x1c0] ss:$8 sps:$4 sm:$0xff]   ;;  %7083 = vmatprep.subr.bf16.mxu1 %v10745_v58  ;;  %v4358_v48 = vpop.f32.mrb[96].mxu1 }
 0x577   : > { %v6238_v9 = vpack.c.bf16 %v14630_v59, %v14622_v46  ;;  %vm17955_vm0 = vcmp.gt.f32.partialorder %v14468_v16, 0.0  ;;  %6829 = vmatmul.mubr.bf16.gmra.mrb[196].mxu1 %v6230_v2  ;;  %v14658_v6 = vadd.f32 %v17943_v11, %v5011_v10  ;;  %v5015_v40 = vmul.f32 %v13731_v56, %v4352_v43  ;;  %v17975_v50 = vld [vmem:[#allocation77_spill] sm:$0xff] }
 0x578   : > { %v14652_v32 = vsel %vm17955_vm0, %v14468_v16, %v14510_v3  ;;  %v6243_v33 = vpack.c.bf16 %v14646_v53, %v14635_v30  ;;  %v14667_v16 = vsel %vm5524_vm9, %v14487_v63, %v14529_v19  ;;  %vm5537_vm1 = vcmp.gt.f32.partialorder %v14596_v14, 0.0  ;;  %6838 = vmatprep.mubr.bf16.mxu1 %v6235_v57  ;;  %7084 = vmatpush1.bf16.msra.mxu1 %v10743_v62  ;;  %v10748_v62 = vld [vmem:[%s17817_s7 + $0x1d4] ss:$8 sps:$4 sm:$0xff]  }
 0x579   : > { %v5289_v60 = vadd.f32 %v13756_v44, %v5012_v54  ;;  %v5016_v3 = vmul.f32 %v13735_v26, %v4354_v18  ;;  %v5793_v20 = vmul.f32 0.01, %v14596_v14  ;;  %v5292_v4 = vadd.f32 %v17943_v11, %v5015_v40  ;;  %7085 = vmatprep.subr.bf16.mxu1 %v10748_v62  ;;  %v17966_v62 = vld [vmem:[#allocation75_spill] sm:$0xff] }
 0x57a   : > { %v14679_v5 = vsel %vm5529_vm10, %v14545_v1, %v5785_v13  ;;  %v14682_v63 = vsel %vm5533_vm13, %v5277_v36, %v5789_v52  ;;  %v5796_v19 = vmul.f32 0.01, %v14602_v28  ;;  %v5797_v42 = vmul.f32 0.01, %v5285_v22  ;;  %v4360_v36 = vpop.f32.mrb[97].mxu1 }
 0x57b   : > { %v5293_v39 = vadd.f32 %v13756_v44, %v5016_v3  ;;  %vm5540_vm2 = vcmp.gt.f32.partialorder %v14602_v28, 0.0  ;;  %vm5541_vm3 = vcmp.gt.f32.partialorder %v5285_v22, 0.0  ;;  %vm5544_vm4 = vcmp.gt.f32.partialorder %v14658_v6, 0.0  ;;  %v4362_v0 = vpop.f32.mrb[98].mxu1 }
 0x57c   : > { %v5800_v1 = vmul.f32 0.01, %v14658_v6  ;;  %vm5545_vm5 = vcmp.gt.f32.partialorder %v5289_v60, 0.0  ;;  %v5020_v2 = vmul.f32 %v13735_v26, %v4360_v36  ;;  %v14696_v13 = vsel %vm5528_vm11, %v14513_v21, %v14556_v29  ;;  %v4364_v17 = vpop.f32.mrb[99].mxu1 }
 0x57d   : > { %v14701_v57 = vsel %vm5532_vm12, %v14559_v15, %v5788_v34  ;;  %v5801_v24 = vmul.f32 0.01, %v5289_v60  ;;  %vm5548_vm6 = vcmp.gt.f32.partialorder %v5292_v4, 0.0  ;;  %v5805_v52 = vmul.f32 0.01, %v5293_v39 }
 0x57e   : > { %v5297_v47 = vadd.f32 %v13756_v44, %v5020_v2  ;;  %v5024_v45 = vmul.f32 %v13735_v26, %v4364_v17  ;;  %v14710_v21 = vsel %vm5537_vm1, %v14596_v14, %v5793_v20  ;;  %v14713_v29 = vsel %vm5541_vm3, %v5285_v22, %v5797_v42  ;;  %v14740_v43 = vpop.f32.mrb[100].mxu1  ;;  %v17967_v17 = vld [vmem:[#allocation105_spill] sm:$0xff] }
 0x57f   : > { %v5804_v15 = vmul.f32 0.01, %v5292_v4  ;;  %vm5549_vm7 = vcmp.gt.f32.partialorder %v5293_v39, 0.0  ;;  %6839 = vmatmul.mubr.bf16.gmra.mrb[200].mxu1 %v6234_v8  ;;  %v5023_v34 = vmul.f32 %v13731_v56, %v4362_v0  ;;  %v14723_v14 = vsel %vm5536_vm15, %v14579_v41, %v14599_v35  ;;  %v10746_v41 = vld [vmem:[%s17817_s7 + $0x1d0] ss:$8 sps:$4 sm:$0xff]   ;;  %v4370_v18 = vpop.f32.mrb[101].mxu1 }
 0x580   : > { %6848 = vmatprep.mubr.bf16.mxu1 %v6239_v61  ;;  %v5809_v31 = vmul.f32 0.01, %v5297_v47  ;;  %v5301_v58 = vadd.f32 %v13756_v44, %v5024_v45  ;;  %v14728_v22 = vsel %vm5540_vm2, %v14602_v28, %v5796_v19  ;;  %v14732_v8 = vadd.f32 %v13396_v7, %v14327_v12  ;;  %v14752_v3 = vpop.f32.mrb[188].mxu0  ;;  %7086 = vmatpush1.bf16.msra.mxu1 %v10746_v41 }
 0x581   : > { %v5019_v61 = vmul.f32 %v13731_v56, %v4358_v48  ;;  %vm5553_vm8 = vcmp.gt.f32.partialorder %v5297_v47, 0.0  ;;  %v14743_v28 = vsel %vm5545_vm5, %v5289_v60, %v5801_v24  ;;  %v14746_v12 = vsel %vm5549_vm7, %v5293_v39, %v5805_v52  ;;  %v14765_v39 = vpop.f32.mrb[102].mxu1  ;;  %v14767_v48 = vpop.f32.mrb[189].mxu0 }
 0x582   : > { %17956 = vst [vmem:[#allocation113_spill] sm:$0xff] %v14732_v8  ;;  %vm5557_vm9 = vcmp.gt.f32.partialorder %v5301_v58, 0.0  ;;  %v5813_v35 = vmul.f32 0.01, %v5301_v58  ;;  %v5300_v40 = vadd.f32 %v17943_v11, %v5023_v34  ;;  %v14759_v60 = vsel %vm5544_vm4, %v14658_v6, %v5800_v1  ;;  %v4374_v24 = vpop.f32.mrb[103].mxu1  ;;  %v14784_v52 = vpop.f32.mrb[190].mxu0 }
 0x583   : > { %v14762_v19 = vsel %vm5548_vm6, %v5292_v4, %v5804_v15  ;;  %v5028_v42 = vmul.f32 %v13735_v26, %v4370_v18  ;;  %v14772_v2 = vsel %vm5553_vm8, %v5297_v47, %v5809_v31  ;;  %v14779_v6 = vadd.f32 %v13388_v23, %v14518_v27  ;;  %v17960_v27 = vld [vmem:[#allocation103_spill] sm:$0xff]  ;;  %v14799_v34 = vpop.f32.mrb[191].mxu0  ;;  %v17962_v31 = vld [vmem:[#allocation61_spill] sm:$0xff] }
 0x584   : > { %v14775_v0 = vsel %vm5557_vm9, %v5301_v58, %v5813_v35  ;;  %v5034_v4 = vmul.f32 %v13393_v55, %v14053_v38  ;;  %v5296_v1 = vadd.f32 %v17943_v11, %v5019_v61  ;;  %v14790_v47 = vadd.f32 %v13388_v23, %v14286_v37  ;;  %v17964_v61 = vld [vmem:[#allocation74_spill] sm:$0xff] }
 0x585   : > { %17957 = vst [vmem:[#allocation114_spill] sm:$0xff] %v14779_v6  ;;  %v14793_v45 = vmul.f32 0.01, %v14301_v25  ;;  %v14796_v15 = vmul.f32 0.01, %v17960_v27  ;;  %v5032_v38 = vmul.f32 %v13735_v26, %v4374_v24  ;;  %v17965_v35 = vld [vmem:[#allocation26_spill] sm:$0xff]  ;;  %v5038_v37 = vmul.f32 %v13393_v55, %v17966_v62 }
 0x586   : > { %17958 = vst [vmem:[#allocation115_spill] sm:$0xff] %v14790_v47  ;;  %v14802_v58 = vmul.f32 0.01, %v17962_v31  ;;  %v5037_v41 = vmul.f32 %v17965_v35, %v17964_v61  ;;  %v5812_v18 = vmul.f32 0.01, %v5300_v40  ;;  %v17969_v24 = vld [vmem:[#allocation107_spill] sm:$0xff]  ;;  %v5305_v61 = vadd.f32 %v13756_v44, %v5028_v42 }
 0x587   : > { %17959 = vst [vmem:[#allocation116_spill] sm:$0xff] %v14793_v45  ;;  %17961 = vst [vmem:[#allocation117_spill] sm:$0xff] %v14796_v15  ;;  %6849 = vmatmul.mubr.bf16.gmra.mrb[204].mxu1 %v6238_v9  ;;  %v14812_v36 = vmul.f32 0.01, %v17967_v17  ;;  %v14815_v20 = vmul.f32 0.01, %v17969_v24  ;;  %v14828_v46 = vadd.f32 %v13396_v7, %v5034_v4  ;;  %v5042_v51 = vmul.f32 %v13393_v55, %v17975_v50 }
 0x588   : > { %17963 = vst [vmem:[#allocation118_spill] sm:$0xff] %v14802_v58  ;;  %vm5556_vm10 = vcmp.gt.f32.partialorder %v5300_v40, 0.0  ;;  %6858 = vmatprep.mubr.bf16.mxu1 %v6243_v33  ;;  %v14822_v62 = vmul.f32 0.01, %v14732_v8  ;;  %v14825_v54 = vmul.f32 0.01, %v14779_v6  ;;  %v5309_v30 = vadd.f32 %v13756_v44, %v5032_v38 }
 0x589   : > { %17968 = vst [vmem:[#allocation74_spill] sm:$0xff] %v14812_v36  ;;  %17970 = vst [vmem:[#allocation26_spill] sm:$0xff] %v14815_v20  ;;  %v5808_v59 = vmul.f32 0.01, %v5296_v1  ;;  %v17974_v9 = vld [vmem:[#allocation76_spill] sm:$0xff]  ;;  %vm5552_vm11 = vcmp.gt.f32.partialorder %v5296_v1, 0.0  ;;  %v14838_v33 = vadd.f32 %v13388_v23, %v5037_v41  ;;  %v14841_v42 = vadd.f32 %v13396_v7, %v5038_v37 }
 0x58a   : > { %17971 = vst [vmem:[#allocation75_spill] sm:$0xff] %v14822_v62  ;;  %17972 = vst [vmem:[#allocation119_spill] sm:$0xff] %v14825_v54  ;;  %v5041_v10 = vmul.f32 %v17965_v35, %v17974_v9  ;;  %v14835_v53 = vpop.f32.mrb[104].mxu1  ;;  %v17978_v4 = vld [vmem:[#allocation78_spill] sm:$0xff]  ;;  %v4791_v9 = vpop.f32.mrb[192].mxu0  ;;  %v14848_v20 = vsel %vm5556_vm10, %v5300_v40, %v5812_v18  ;;  %v17979_v50 = vld [vmem:[#allocation79_spill] sm:$0xff]  ;;  %v14866_v18 = vadd.f32 %v13396_v7, %v5042_v51 }
 0x58b   : > { %17973 = vst [vmem:[#allocation120_spill] sm:$0xff] %v14828_v46  ;;  %17976 = vst [vmem:[#allocation76_spill] sm:$0xff] %v14838_v33  ;;  %v5045_v49 = vmul.f32 %v17965_v35, %v17978_v4  ;;  %v14845_v54 = vpop.f32.mrb[105].mxu1  ;;  %v5046_v38 = vmul.f32 %v13393_v55, %v17979_v50  ;;  %v5817_v62 = vmul.f32 0.01, %v5305_v61  ;;  %vm5565_vm12 = vcmp.gt.f32.partialorder %v5309_v30, 0.0 }
 0x58c   : > { %17977 = vst [vmem:[#allocation77_spill] sm:$0xff] %v14841_v42  ;;  %v5821_v58 = vmul.f32 0.01, %v5309_v30  ;;  %v17980_v41 = vld [vmem:[#allocation80_spill] sm:$0xff]  ;;  %vm5561_vm13 = vcmp.gt.f32.partialorder %v5305_v61, 0.0  ;;  %v5085_v37 = vmul.f32 %v17965_v35, %v4791_v9  ;;  %v14855_v36 = vpop.f32.mrb[106].mxu1  ;;  %v14860_v15 = vsel %vm5552_vm11, %v5296_v1, %v5808_v59 }
 0x58d   : > { %v5049_v45 = vmul.f32 %v17965_v35, %v17980_v41  ;;  %v14857_v4 = vpop.f32.mrb[193].mxu0  ;;  %v14863_v40 = vadd.f32 %v13388_v23, %v5041_v10  ;;  %17982 = vst [vmem:[#allocation79_spill] sm:$0xff] %v14866_v18  ;;  %v14868_v50 = vpop.f32.mrb[107].mxu1  ;;  %v14875_v6 = vmul.f32 0.01, %v14828_v46  ;;  %v14881_v10 = vadd.f32 %v13388_v23, %v5045_v49  ;;  %v17986_v59 = vld [vmem:[#allocation82_spill] sm:$0xff] }
 0x58e   : > { %v4795_v47 = vpop.f32.mrb[194].mxu0  ;;  %v14872_v9 = vsel %vm5565_vm12, %v5309_v30, %v5821_v58  ;;  %v14878_v1 = vmul.f32 0.01, %v14838_v33  ;;  %v5050_v51 = vmul.f32 %v13393_v55, %v17986_v59  ;;  %v17987_v24 = vpack.c.bf16 %v14667_v16, %v14652_v32  ;;  %v17992_v16 = vld [vmem:[#allocation90_spill] sm:$0xff] }
 0x58f   : > { %17981 = vst [vmem:[#allocation78_spill] sm:$0xff] %v14863_v40  ;;  %17983 = vst [vmem:[#allocation80_spill] sm:$0xff] %v14875_v6  ;;  %v14889_v41 = vmul.f32 0.01, %v14841_v42  ;;  %v14892_v58 = vadd.f32 %v13396_v7, %v5046_v38  ;;  %v17990_v30 = vpack.c.bf16 %v14682_v63, %v14679_v5  ;;  %v5362_v49 = vadd.f32 %v13388_v23, %v5085_v37  ;;  %v10749_v5 = vld [vmem:[%s17817_s7 + $0x1e0] ss:$8 sps:$4 sm:$0xff]  }
 0x590   : > { %17984 = vst [vmem:[#allocation121_spill] sm:$0xff] %v14878_v1  ;;  %17985 = vst [vmem:[#allocation122_spill] sm:$0xff] %v14881_v10  ;;  %6859 = vmatmul.mubr.bf16.gmra.mrb[208].mxu1 %v17987_v24  ;;  %v14898_v1 = vpop.f32.mrb[195].mxu0  ;;  %v14901_v59 = vsel %vm5561_vm13, %v5305_v61, %v5817_v62  ;;  %v14904_v32 = vadd.f32 %v13388_v23, %v5049_v45  ;;  %v5053_v24 = vmul.f32 %v17965_v35, %v17992_v16  ;;  %v10751_v63 = vld [vmem:[%s17817_s7 + $0x1e4] ss:$8 sps:$4 sm:$0xff]  }
 0x591   : > { %17988 = vst [vmem:[#allocation82_spill] sm:$0xff] %v14889_v41  ;;  %17989 = vst [vmem:[#allocation123_spill] sm:$0xff] %v14892_v58  ;;  %6868 = vmatprep.mubr.bf16.mxu1 %v17990_v30  ;;  %v5089_v38 = vmul.f32 %v17965_v35, %v4795_v47  ;;  %v14918_v61 = vmul.f32 0.01, %v14863_v40  ;;  %v14921_v45 = vmul.f32 0.01, %v14866_v18  ;;  %v14931_v41 = vadd.f32 %v13396_v7, %v5050_v51 }
 0x592   : > { %17991 = vst [vmem:[#allocation124_spill] sm:$0xff] %v14904_v32  ;;  %v17995_v62 = vld [vmem:[#allocation93_spill] sm:$0xff]  ;;  %v14928_v16 = vmul.f32 0.01, %v14881_v10  ;;  %v17999_v6 = vld [vmem:[#allocation68_spill] sm:$0xff]  ;;  %v18000_v40 = vld [vmem:[#allocation66_spill] sm:$0xff]  ;;  %7087 = vmatprep.subr.bf16.mxu1 %v10751_v63  ;;  %v18032_v31 = vpack.c.bf16 %v14728_v22, %v14723_v14  ;;  %v5081_v27 = vmul.f32 %v17965_v35, %v14784_v52 }
 0x593   : > { %17993 = vst [vmem:[#allocation90_spill] sm:$0xff] %v14918_v61  ;;  %17994 = vst [vmem:[#allocation125_spill] sm:$0xff] %v14921_v45  ;;  %v5054_v47 = vmul.f32 %v13393_v55, %v17995_v62  ;;  %v17996_v37 = vld [vmem:[#allocation65_spill] sm:$0xff]  ;;  %v5058_v33 = vmul.f32 %v13393_v55, %v17999_v6  ;;  %v5061_v61 = vmul.f32 %v17965_v35, %v18000_v40  ;;  %v14938_v45 = vmul.f32 0.01, %v14892_v58  ;;  %v18002_v62 = vld [vmem:[#allocation104_spill] sm:$0xff] }
 0x594   : > { %v5057_v30 = vmul.f32 %v17965_v35, %v17996_v37  ;;  %17997 = vst [vmem:[#allocation93_spill] sm:$0xff] %v14928_v16  ;;  %17998 = vst [vmem:[#allocation65_spill] sm:$0xff] %v14931_v41  ;;  %v5062_v18 = vmul.f32 %v13393_v55, %v18002_v62  ;;  %v5874_v37 = vmul.f32 0.01, %v5362_v49  ;;  %v5366_v10 = vadd.f32 %v13388_v23, %v5089_v38  ;;  %v14943_v16 = vpop.f32.mrb[108].mxu1  ;;  %v4801_v51 = vpop.f32.mrb[196].mxu0 }
 0x595   : > { %18001 = vst [vmem:[#allocation68_spill] sm:$0xff] %v14938_v45  ;;  %7088 = vmatpush1.bf16.msra.mxu1 %v10749_v5  ;;  %v14946_v42 = vmul.f32 0.01, %v14904_v32  ;;  %v14949_v6 = vadd.f32 %v13388_v23, %v5053_v24  ;;  %vm5618_vm14 = vcmp.gt.f32.partialorder %v5362_v49, 0.0  ;;  %v14951_v40 = vpop.f32.mrb[109].mxu1  ;;  %v5093_v63 = vmul.f32 %v17965_v35, %v4801_v51  ;;  %v14954_v45 = vpop.f32.mrb[197].mxu0 }
 0x596   : > { %v14957_v62 = vadd.f32 %v13396_v7, %v5054_v47  ;;  %v14960_v38 = vadd.f32 %v13388_v23, %v5057_v30  ;;  %vm5622_vm15 = vcmp.gt.f32.partialorder %v5366_v10, 0.0  ;;  %v5878_v5 = vmul.f32 0.01, %v5366_v10  ;;  %v18010_v51 = vld [vmem:[#allocation106_spill] sm:$0xff]  ;;  %v14976_v30 = vpop.f32.mrb[110].mxu1  ;;  %v4805_v46 = vpop.f32.mrb[198].mxu0 }
 0x597   : > { %18003 = vst [vmem:[#allocation66_spill] sm:$0xff] %v14946_v42  ;;  %18004 = vst [vmem:[#allocation104_spill] sm:$0xff] %v14949_v6  ;;  %v14963_v42 = vmul.f32 0.01, %v14931_v41  ;;  %v14966_v24 = vadd.f32 %v13396_v7, %v5058_v33  ;;  %v14969_v32 = vadd.f32 %v13388_v23, %v5061_v61  ;;  %v5065_v58 = vmul.f32 %v17965_v35, %v18010_v51  ;;  %v10755_v52 = vld [vmem:[%s17817_s7 + $0x1f4] ss:$8 sps:$4 sm:$0xff]  }
 0x598   : > { %18005 = vst [vmem:[#allocation126_spill] sm:$0xff] %v14957_v62  ;;  %18006 = vst [vmem:[#allocation127_spill] sm:$0xff] %v14960_v38  ;;  %v18011_v47 = vpack.c.bf16 %v14701_v57, %v14696_v13  ;;  %v14979_v8 = vadd.f32 %v13396_v7, %v5062_v18  ;;  %v14984_v41 = vsel %vm5618_vm14, %v5362_v49, %v5874_v37  ;;  %v14991_v13 = vpop.f32.mrb[111].mxu1  ;;  %v14993_v57 = vpop.f32.mrb[199].mxu0  ;;  %v18018_v18 = vld [vmem:[#allocation109_spill] sm:$0xff]  ;;  %v18022_v37 = vld [vmem:[#allocation110_spill] sm:$0xff]  ;;  %7089 = vmatprep.subr.bf16.mxu1 %v10755_v52 }
 0x599   : > { %18007 = vst [vmem:[#allocation128_spill] sm:$0xff] %v14963_v42  ;;  %18008 = vst [vmem:[#allocation129_spill] sm:$0xff] %v14966_v24  ;;  %v18013_v42 = vld [vmem:[#allocation108_spill] sm:$0xff]  ;;  %v14986_v61 = vsel %vm5622_vm15, %v5366_v10, %v5878_v5  ;;  %v18016_v51 = vpack.c.bf16 %v14713_v29, %v14710_v21  ;;  %v5069_v17 = vmul.f32 %v17965_v35, %v18018_v18  ;;  %v15007_v29 = vmul.f32 0.01, %v14957_v62 }
 0x59a   : > { %18009 = vst [vmem:[#allocation130_spill] sm:$0xff] %v14969_v32  ;;  %6869 = vmatmul.mubr.bf16.gmra.mrb[212].mxu1 %v18011_v47  ;;  %18012 = vst [vmem:[#allocation106_spill] sm:$0xff] %v14979_v8  ;;  %v5066_v33 = vmul.f32 %v13393_v55, %v18013_v42  ;;  %v14996_v47 = vmul.f32 0.01, %v14949_v6  ;;  %v5370_v10 = vadd.f32 %v13388_v23, %v5093_v63  ;;  %v10752_v21 = vld [vmem:[%s18019_s23] sm:$0xff]  }
 0x59b   : > { %18014 = vst [vmem:[#allocation108_spill] sm:$0xff] %v14984_v41  ;;  %18015 = vst [vmem:[#allocation131_spill] sm:$0xff] %v14986_v61  ;;  %6878 = vmatprep.mubr.bf16.mxu1 %v18016_v51  ;;  %v15010_v49 = vmul.f32 0.01, %v14960_v38  ;;  %v5070_v5 = vmul.f32 %v13393_v55, %v18022_v37  ;;  %v18023_v51 = vld [vmem:[#allocation111_spill] sm:$0xff]  ;;  %v15025_v41 = vadd.f32 %v13388_v23, %v5065_v58  ;;  %8269 = vmatpush1.bf16.msra.mxu0 %v10752_v21  ;;  %v18027_v38 = vld [vmem:[#allocation112_spill] sm:$0xff] }
 0x59c   : > { %18017 = vst [vmem:[#allocation132_spill] sm:$0xff] %v14996_v47  ;;  %18020 = vst [vmem:[#allocation109_spill] sm:$0xff] %v15007_v29  ;;  %v5073_v18 = vmul.f32 %v17965_v35, %v18023_v51  ;;  %v15016_v47 = vpop.f32.mrb[112].mxu1  ;;  %v15019_v63 = vmul.f32 0.01, %v14966_v24  ;;  %v5097_v61 = vmul.f32 %v17965_v35, %v4805_v46  ;;  %v4811_v29 = vpop.f32.mrb[200].mxu0  ;;  %v15034_v51 = vadd.f32 %v13396_v7, %v5066_v33 }
 0x59d   : > { %18021 = vst [vmem:[#allocation133_spill] sm:$0xff] %v15010_v49  ;;  %v15022_v42 = vmul.f32 0.01, %v14969_v32  ;;  %v15028_v49 = vpop.f32.mrb[113].mxu1  ;;  %v15031_v37 = vmul.f32 0.01, %v14979_v8  ;;  %v15046_v21 = vadd.f32 %v13388_v23, %v5069_v17  ;;  %v5031_v62 = vmul.f32 %v13731_v56, %v14765_v39 }
 0x59e   : > { %18024 = vst [vmem:[#allocation110_spill] sm:$0xff] %v15019_v63  ;;  %v5074_v63 = vmul.f32 %v13393_v55, %v18027_v38  ;;  %v15040_v58 = vpop.f32.mrb[114].mxu1  ;;  %v15042_v32 = vpop.f32.mrb[201].mxu0  ;;  %v18028_v46 = vmov 0   ;;  %v5882_v33 = vmul.f32 0.01, %v5370_v10  ;;  %v5374_v8 = vadd.f32 %v13388_v23, %v5097_v61 }
 0x59f   : > { %18025 = vst [vmem:[#allocation111_spill] sm:$0xff] %v15022_v42  ;;  %18026 = vst [vmem:[#allocation134_spill] sm:$0xff] %v15031_v37  ;;  %v5027_v42 = vmul.f32 %v13731_v56, %v14740_v43  ;;  %8270 = vmatprep.subr.bf16.mxu0 %v18028_v46  ;;  %v5077_v37 = vmul.f32 %v17965_v35, %v14752_v3  ;;  %v15051_v6 = vpop.f32.mrb[115].mxu1  ;;  %v4815_v38 = vpop.f32.mrb[202].mxu0  ;;  %v15054_v43 = vadd.f32 %v13396_v7, %v5070_v5 }
 0x5a0   : > { %18029 = vst [vmem:[#allocation112_spill] sm:$0xff] %v15046_v21  ;;  %v15057_v24 = vadd.f32 %v13388_v23, %v5073_v18  ;;  %vm5626_vm0 = vcmp.gt.f32.partialorder %v5370_v10, 0.0  ;;  %v15061_v17 = vpop.f32.mrb[203].mxu0  ;;  %v5078_v3 = vmul.f32 %v13393_v55, %v14767_v48  ;;  %vm5630_vm1 = vcmp.gt.f32.partialorder %v5374_v8, 0.0 }
 0x5a1   : > { %18030 = vst [vmem:[#allocation135_spill] sm:$0xff] %v15054_v43  ;;  %v5886_v61 = vmul.f32 0.01, %v5374_v8  ;;  %v5101_v5 = vmul.f32 %v17965_v35, %v4811_v29  ;;  %v15070_v18 = vmul.f32 0.01, %v15025_v41  ;;  %v15073_v25 = vadd.f32 %v13396_v7, %v5074_v63  ;;  %v15107_v63 = vpop.f32.mrb[116].mxu1 }
 0x5a2   : > { %18031 = vst [vmem:[#allocation136_spill] sm:$0xff] %v15057_v24  ;;  %6879 = vmatmul.mubr.bf16.gmra.mrb[216].mxu1 %v18032_v31  ;;  %v5304_v39 = vadd.f32 %v17943_v11, %v5027_v42  ;;  %v18035_v48 = vpack.c.bf16 %v14746_v12, %v14743_v28  ;;  %v15082_v14 = vmul.f32 0.01, %v15034_v51  ;;  %v15085_v22 = vadd.f32 %v13388_v23, %v5077_v37  ;;  %v10753_v42 = vld [vmem:[%s17817_s7 + $0x1f0] ss:$8 sps:$4 sm:$0xff]  }
 0x5a3   : > { %18033 = vst [vmem:[#allocation137_spill] sm:$0xff] %v15070_v18  ;;  %18034 = vst [vmem:[#allocation138_spill] sm:$0xff] %v15073_v25  ;;  %v15087_v31 = vsel %vm5626_vm0, %v5370_v10, %v5882_v33  ;;  %v15089_v29 = vsel %vm5630_vm1, %v5374_v8, %v5886_v61  ;;  %v15098_v28 = vmul.f32 0.01, %v15046_v21  ;;  %v15101_v12 = vadd.f32 %v17943_v11, %v5031_v62 }
 0x5a4   : > { %6888 = vmatprep.mubr.bf16.mxu1 %v18035_v48  ;;  %18036 = vst [vmem:[#allocation139_spill] sm:$0xff] %v15082_v14  ;;  %18037 = vst [vmem:[#allocation140_spill] sm:$0xff] %v15085_v22  ;;  %v5082_v10 = vmul.f32 %v13393_v55, %v14799_v34  ;;  %v15110_v37 = vmul.f32 0.01, %v15054_v43  ;;  %v15113_v33 = vmul.f32 0.01, %v15057_v24  ;;  %v15116_v61 = vadd.f32 %v13396_v7, %v5078_v3 }
 0x5a5   : > { %18038 = vst [vmem:[#allocation141_spill] sm:$0xff] %v15087_v31  ;;  %18039 = vst [vmem:[#allocation142_spill] sm:$0xff] %v15089_v29  ;;  %v5378_v62 = vadd.f32 %v13388_v23, %v5101_v5  ;;  %v15120_v48 = vmul.f32 0.01, %v15073_v25  ;;  %vm5560_vm2 = vcmp.gt.f32.partialorder %v5304_v39, 0.0  ;;  %v15123_v8 = vadd.f32 %v13388_v23, %v5081_v27  ;;  %v15125_v31 = vpop.f32.mrb[117].mxu1  ;;  %7090 = vmatpush1.bf16.msra.mxu1 %v10753_v42 }
 0x5a6   : > { %18040 = vst [vmem:[#allocation143_spill] sm:$0xff] %v15098_v28  ;;  %18041 = vst [vmem:[#allocation144_spill] sm:$0xff] %v15110_v37  ;;  %v5816_v34 = vmul.f32 0.01, %v5304_v39  ;;  %v15128_v29 = vmul.f32 0.01, %v15085_v22  ;;  %v5035_v3 = vmul.f32 %v13731_v56, %v14835_v53  ;;  %v5036_v5 = vmul.f32 %v13735_v26, %v14845_v54 }
 0x5a7   : > { %18042 = vst [vmem:[#allocation145_spill] sm:$0xff] %v15113_v33  ;;  %18043 = vst [vmem:[#allocation146_spill] sm:$0xff] %v15116_v61  ;;  %v5105_v52 = vmul.f32 %v17965_v35, %v4815_v38  ;;  %v4821_v33 = vpop.f32.mrb[204].mxu0  ;;  %v15135_v28 = vpop.f32.mrb[118].mxu1  ;;  %v15138_v27 = vmul.f32 0.01, %v15101_v12  ;;  %v5039_v42 = vmul.f32 %v13731_v56, %v14855_v36  ;;  %v5086_v53 = vmul.f32 %v13393_v55, %v14857_v4 }
 0x5a8   : > { %18044 = vst [vmem:[#allocation147_spill] sm:$0xff] %v15120_v48  ;;  %18045 = vst [vmem:[#allocation148_spill] sm:$0xff] %v15123_v8  ;;  %v15141_v48 = vadd.f32 %v13396_v7, %v5082_v10  ;;  %v15149_v54 = vpop.f32.mrb[119].mxu1  ;;  %vm5564_vm3 = vcmp.gt.f32.partialorder %v15101_v12, 0.0  ;;  %v15153_v38 = vmul.f32 0.01, %v15116_v61  ;;  %v18050_v10 = vpack.c.bf16 %v14762_v19, %v14759_v60 }
 0x5a9   : > { %18046 = vst [vmem:[#allocation149_spill] sm:$0xff] %v15128_v29  ;;  %v15147_v29 = vpop.f32.mrb[205].mxu0  ;;  %v5890_v37 = vmul.f32 0.01, %v5378_v62  ;;  %v5382_v18 = vadd.f32 %v13388_v23, %v5105_v52  ;;  %v15160_v14 = vmul.f32 0.01, %v15123_v8  ;;  %v18052_v4 = vpack.c.bf16 %v14775_v0, %v14772_v2 }
 0x5aa   : > { %18047 = vst [vmem:[#allocation150_spill] sm:$0xff] %v15141_v48  ;;  %18048 = vst [vmem:[#allocation151_spill] sm:$0xff] %v15147_v29  ;;  %6889 = vmatmul.mubr.bf16.gmra.mrb[220].mxu1 %v18050_v10  ;;  %v4825_v36 = vpop.f32.mrb[206].mxu0  ;;  %vm5634_vm4 = vcmp.gt.f32.partialorder %v5378_v62, 0.0  ;;  %v5109_v29 = vmul.f32 %v17965_v35, %v4821_v33  ;;  %v15172_v52 = vadd.f32 %v17943_v11, %v5035_v3  ;;  %v15176_v10 = vmul.f32 0.01, %v15141_v48 }
 0x5ab   : > { %18049 = vst [vmem:[#allocation152_spill] sm:$0xff] %v15153_v38  ;;  %18051 = vst [vmem:[#allocation153_spill] sm:$0xff] %v15160_v14  ;;  %6898 = vmatprep.mubr.bf16.mxu1 %v18052_v4  ;;  %v15166_v22 = vpop.f32.mrb[207].mxu0  ;;  %v15169_v38 = vsel %vm5560_vm2, %v5304_v39, %v5816_v34  ;;  %v5313_v60 = vadd.f32 %v13756_v44, %v5036_v5  ;;  %vm5638_vm5 = vcmp.gt.f32.partialorder %v5382_v18, 0.0  ;;  %v5894_v19 = vmul.f32 0.01, %v5382_v18 }
 0x5ac   : > { %18053 = vst [vmem:[#allocation154_spill] sm:$0xff] %v15166_v22  ;;  %18054 = vst [vmem:[#allocation155_spill] sm:$0xff] %v15176_v10  ;;  %v15179_v2 = vadd.f32 %v17943_v11, %v5039_v42  ;;  %v15182_v0 = vadd.f32 %v13396_v7, %v5086_v53  ;;  %v5040_v39 = vmul.f32 %v13735_v26, %v14868_v50  ;;  %v15193_v4 = vpop.f32.mrb[120].mxu1  ;;  %v4831_v22 = vpop.f32.mrb[208].mxu0  ;;  %v10756_v42 = vld [vmem:[%s18019_s23 + $0x8] sm:$0xff]   ;;  %vm5568_vm11 = vcmp.gt.f32.partialorder %v15172_v52, 0.0 }
 0x5ad   : > { %v5090_v33 = vmul.f32 %v13393_v55, %v14898_v1  ;;  %v15188_v34 = vsel %vm5634_vm4, %v5378_v62, %v5890_v37  ;;  %v15190_v3 = vsel %vm5638_vm5, %v5382_v18, %v5894_v19  ;;  %v5386_v5 = vadd.f32 %v13388_v23, %v5109_v29  ;;  %v15205_v37 = vpop.f32.mrb[121].mxu1  ;;  %v15207_v29 = vpop.f32.mrb[209].mxu0  ;;  %8271 = vmatpush1.bf16.msra.mxu0 %v10756_v42 }
 0x5ae   : > { %18055 = vst [vmem:[#allocation156_spill] sm:$0xff] %v15182_v0  ;;  %18056 = vst [vmem:[#allocation157_spill] sm:$0xff] %v15188_v34  ;;  %v5043_v53 = vmul.f32 %v13731_v56, %v14943_v16  ;;  %v5044_v50 = vmul.f32 %v13735_v26, %v14951_v40  ;;  %v5113_v18 = vmul.f32 %v17965_v35, %v4825_v36  ;;  %v15210_v62 = vmul.f32 0.01, %v15172_v52 }
 0x5af   : > { %18057 = vst [vmem:[#allocation158_spill] sm:$0xff] %v15190_v3  ;;  %18058 = vst [vmem:[#allocation159_spill] sm:$0xff] %v15207_v29  ;;  %vm5569_vm6 = vcmp.gt.f32.partialorder %v5313_v60, 0.0  ;;  %v5825_v19 = vmul.f32 0.01, %v5313_v60  ;;  %v5047_v16 = vmul.f32 %v13731_v56, %v14976_v30  ;;  %v15218_v1 = vadd.f32 %v13756_v44, %v5040_v39  ;;  %v15223_v3 = vpop.f32.mrb[122].mxu1  ;;  %8272 = vmatprep.subr.bf16.mxu0 %v18028_v46 }
 0x5b0   : > { %v15215_v40 = vmul.f32 0.01, %v15179_v2  ;;  %v5094_v36 = vmul.f32 %v13393_v55, %v14954_v45  ;;  %v5390_v34 = vadd.f32 %v13388_v23, %v5113_v18  ;;  %v4835_v29 = vpop.f32.mrb[210].mxu0  ;;  %v15227_v14 = vmul.f32 0.01, %v15182_v0  ;;  %v15236_v10 = vpop.f32.mrb[123].mxu1 }
 0x5b1   : > { %v15230_v30 = vadd.f32 %v13396_v7, %v5090_v33  ;;  %v5898_v42 = vmul.f32 0.01, %v5386_v5  ;;  %v18061_v39 = vpack.c.bf16 %v14848_v20, %v14860_v15  ;;  %v5117_v45 = vmul.f32 %v17965_v35, %v4831_v22  ;;  %v15238_v18 = vpop.f32.mrb[211].mxu0 }
 0x5b2   : > { %18059 = vst [vmem:[#allocation160_spill] sm:$0xff] %v15227_v14  ;;  %18062 = vst [vmem:[#allocation162_spill] sm:$0xff] %v15238_v18  ;;  %v15241_v48 = vadd.f32 %v17943_v11, %v5043_v53  ;;  %v15244_v0 = vadd.f32 %v13756_v44, %v5044_v50  ;;  %vm5642_vm7 = vcmp.gt.f32.partialorder %v5386_v5, 0.0  ;;  %v18063_v33 = vpack.c.bf16 %v14872_v9, %v14901_v59  ;;  %v4841_v14 = vpop.f32.mrb[212].mxu0 }
 0x5b3   : > { %18060 = vst [vmem:[#allocation161_spill] sm:$0xff] %v15230_v30  ;;  %6899 = vmatmul.mubr.bf16.gmra.mrb[224].mxu1 %v18061_v39  ;;  %v6076_v20 = vsel %vm5564_vm3, %v15101_v12, %v15138_v27  ;;  %v15254_v15 = vadd.f32 %v17943_v11, %v5047_v16  ;;  %v5048_v22 = vmul.f32 %v13735_v26, %v14991_v13  ;;  %vm5646_vm8 = vcmp.gt.f32.partialorder %v5390_v34, 0.0 }
 0x5b4   : > { %6908 = vmatprep.mubr.bf16.mxu1 %v18063_v33  ;;  %v5902_v53 = vmul.f32 0.01, %v5390_v34  ;;  %v5829_v50 = vmul.f32 0.01, %v15218_v1  ;;  %v15260_v39 = vadd.f32 %v13396_v7, %v5094_v36  ;;  %v5098_v9 = vmul.f32 %v13393_v55, %v14993_v57  ;;  %v15265_v33 = vpop.f32.mrb[124].mxu1 }
 0x5b5   : > { %v6081_v59 = vsel %vm5569_vm6, %v5313_v60, %v5825_v19  ;;  %v15267_v12 = vsel %vm5642_vm7, %v5386_v5, %v5898_v42  ;;  %v5394_v13 = vadd.f32 %v13388_v23, %v5117_v45  ;;  %v5121_v16 = vmul.f32 %v17965_v35, %v4835_v29  ;;  %v15273_v18 = vpop.f32.mrb[125].mxu1  ;;  %v15287_v19 = vpop.f32.mrb[213].mxu0 }
 0x5b6   : > { %18064 = vst [vmem:[#allocation163_spill] sm:$0xff] %v15260_v39  ;;  %18065 = vst [vmem:[#allocation164_spill] sm:$0xff] %v15267_v12  ;;  %v15269_v27 = vsel %vm5646_vm8, %v5390_v34, %v5902_v53  ;;  %v15276_v36 = vmul.f32 0.01, %v15230_v30  ;;  %v15279_v57 = vmul.f32 0.01, %v15241_v48  ;;  %v5051_v60 = vmul.f32 %v13731_v56, %v15016_v47 }
 0x5b7   : > { %18066 = vst [vmem:[#allocation165_spill] sm:$0xff] %v15269_v27  ;;  %v15285_v5 = vpop.f32.mrb[126].mxu1  ;;  %18068 = vst [vmem:[#allocation167_spill] sm:$0xff] %v15287_v19  ;;  %vm5573_vm9 = vcmp.gt.f32.partialorder %v15218_v1, 0.0  ;;  %v15291_v29 = vmul.f32 0.01, %v15244_v0  ;;  %v15297_v45 = vadd.f32 %v13756_v44, %v5048_v22  ;;  %v5052_v34 = vmul.f32 %v13735_v26, %v15028_v49 }
 0x5b8   : > { %18067 = vst [vmem:[#allocation166_spill] sm:$0xff] %v15276_v36  ;;  %v15294_v42 = vmul.f32 0.01, %v15254_v15  ;;  %v15299_v53 = vpop.f32.mrb[127].mxu1  ;;  %vm5572_vm10 = vcmp.gt.f32.partialorder %v15179_v2, 0.0  ;;  %v5055_v12 = vmul.f32 %v13731_v56, %v15040_v58  ;;  %v5398_v27 = vadd.f32 %v13388_v23, %v5121_v16  ;;  %v4845_v19 = vpop.f32.mrb[214].mxu0 }
 0x5b9   : > { %v15303_v47 = vmul.f32 0.01, %v15260_v39  ;;  %v15312_v22 = vadd.f32 %v13396_v7, %v5098_v9  ;;  %v5056_v36 = vmul.f32 %v13735_v26, %v15051_v6  ;;  %v5906_v30 = vmul.f32 0.01, %v5394_v13  ;;  %v15317_v39 = vpop.f32.mrb[215].mxu0 }
 0x5ba   : > { %18071 = vst [vmem:[#allocation170_spill] sm:$0xff] %v15317_v39  ;;  %v15320_v49 = vadd.f32 %v17943_v11, %v5051_v60  ;;  %v5059_v58 = vmul.f32 %v13731_v56, %v15107_v63  ;;  %v5060_v16 = vmul.f32 %v13735_v26, %v15125_v31  ;;  %vm5650_vm12 = vcmp.gt.f32.partialorder %v5394_v13, 0.0  ;;  %v10757_v63 = vld [vmem:[%s18019_s23 + $0x10] sm:$0xff]   ;;  %v4438_v39 = vpop.f32.mrb[128].mxu1 }
 0x5bb   : > { %18069 = vst [vmem:[#allocation168_spill] sm:$0xff] %v15303_v47  ;;  %18070 = vst [vmem:[#allocation169_spill] sm:$0xff] %v15312_v22  ;;  %v6262_v47 = vpack.c.bf16 %v6076_v20, %v15169_v38  ;;  %vm5577_vm13 = vcmp.gt.f32.partialorder %v15244_v0, 0.0  ;;  %vm5581_vm14 = vcmp.gt.f32.partialorder %v15297_v45, 0.0  ;;  %v5063_v6 = vmul.f32 %v13731_v56, %v15135_v28  ;;  %8273 = vmatpush1.bf16.msra.mxu0 %v10757_v63 }
 0x5bc   : > { %vm5654_vm15 = vcmp.gt.f32.partialorder %v5398_v27, 0.0  ;;  %v5910_v38 = vmul.f32 0.01, %v5398_v27  ;;  %v6085_v20 = vsel %vm5573_vm9, %v15218_v1, %v5829_v50  ;;  %v15337_v31 = vadd.f32 %v13756_v44, %v5052_v34  ;;  %v15353_v34 = vpop.f32.mrb[129].mxu1  ;;  %8274 = vmatprep.subr.bf16.mxu0 %v18028_v46 }
 0x5bd   : > { %6909 = vmatmul.mubr.bf16.gmra.mrb[228].mxu1 %v6262_v47  ;;  %v15340_v9 = vadd.f32 %v17943_v11, %v5055_v12  ;;  %v6267_v60 = vpack.c.bf16 %v6085_v20, %v6081_v59  ;;  %v5125_v28 = vmul.f32 %v17965_v35, %v4841_v14  ;;  %v5102_v47 = vmul.f32 %v13393_v55, %v15042_v32 }
 0x5be   : > { %v15346_v8 = vadd.f32 %v13756_v44, %v5056_v36  ;;  %v15349_v1 = vsel %vm5650_vm12, %v5394_v13, %v5906_v30  ;;  %v15351_v50 = vsel %vm5654_vm15, %v5398_v27, %v5910_v38  ;;  %vm5580_vm0 = vcmp.gt.f32.partialorder %v15254_v15, 0.0  ;;  %v4442_v30 = vpop.f32.mrb[130].mxu1 }
 0x5bf   : > { %18072 = vst [vmem:[#allocation171_spill] sm:$0xff] %v15349_v1  ;;  %18073 = vst [vmem:[#allocation172_spill] sm:$0xff] %v15351_v50  ;;  %v5837_v59 = vmul.f32 0.01, %v15297_v45  ;;  %v15358_v14 = vadd.f32 %v17943_v11, %v5059_v58  ;;  %v15361_v32 = vadd.f32 %v13756_v44, %v5060_v16  ;;  %6918 = vmatprep.mubr.bf16.mxu1 %v6267_v60  ;;  %vm5576_vm1 = vcmp.gt.f32.partialorder %v15241_v48, 0.0  ;;  %v15374_v38 = vpop.f32.mrb[131].mxu1 }
 0x5c0   : > { %v15367_v27 = vmul.f32 0.01, %v15312_v22  ;;  %v15370_v13 = vadd.f32 %v17943_v11, %v5063_v6  ;;  %v5402_v36 = vadd.f32 %v13388_v23, %v5125_v28  ;;  %v5129_v58 = vmul.f32 %v17965_v35, %v4845_v19  ;;  %v18075_v16 = vld [vmem:[#allocation71_spill] sm:$0xff] }
 0x5c1   : > { %v15379_v20 = vadd.f32 %v13396_v7, %v18075_v16  ;;  %v15382_v63 = vmul.f32 0.01, %v15320_v49  ;;  %v15385_v60 = vmul.f32 0.01, %v15337_v31  ;;  %v15388_v6 = vmul.f32 0.01, %v15340_v9 }
 0x5c2   : > { %18074 = vst [vmem:[#allocation173_spill] sm:$0xff] %v15367_v27  ;;  %vm5585_vm2 = vcmp.gt.f32.partialorder %v15337_v31, 0.0  ;;  %v15392_v19 = vadd.f32 %v13396_v7, %v5102_v47  ;;  %vm5589_vm3 = vcmp.gt.f32.partialorder %v15346_v8, 0.0  ;;  %v5845_v28 = vmul.f32 0.01, %v15346_v8 }
 0x5c3   : > { %v15398_v16 = vmul.f32 %v13393_v55, %v15061_v17  ;;  %v15401_v12 = vmul.f32 0.01, %v15358_v14  ;;  %v15404_v1 = vmul.f32 0.01, %v15361_v32  ;;  %v5064_v50 = vmul.f32 %v13735_v26, %v15149_v54 }
 0x5c4   : > { %18076 = vst [vmem:[#allocation71_spill] sm:$0xff] %v15392_v19  ;;  %v5406_v47 = vadd.f32 %v13388_v23, %v5129_v58  ;;  %v4851_v19 = vpop.f32.mrb[216].mxu0  ;;  %v15410_v27 = vmul.f32 0.01, %v15370_v13  ;;  %v5067_v22 = vmul.f32 %v13731_v56, %v15193_v4  ;;  %v5914_v17 = vmul.f32 0.01, %v5402_v36 }
 0x5c5   : > { %v6084_v55 = vsel %vm5572_vm10, %v15179_v2, %v15215_v40  ;;  %v15418_v61 = vpop.f32.mrb[217].mxu0  ;;  %v5068_v54 = vmul.f32 %v13735_v26, %v15205_v37  ;;  %v5071_v58 = vmul.f32 %v13731_v56, %v15223_v3  ;;  %vm5658_vm4 = vcmp.gt.f32.partialorder %v5402_v36, 0.0  ;;  %v4448_v40 = vpop.f32.mrb[132].mxu1 }
 0x5c6   : > { %18077 = vst [vmem:[#allocation174_spill] sm:$0xff] %v15418_v61  ;;  %v6080_v4 = vsel %vm5568_vm11, %v15172_v52, %v15210_v62  ;;  %v5072_v24 = vmul.f32 %v13735_v26, %v15236_v10  ;;  %vm5662_vm5 = vcmp.gt.f32.partialorder %v5406_v47, 0.0  ;;  %v5918_v21 = vmul.f32 0.01, %v5406_v47  ;;  %v4855_v61 = vpop.f32.mrb[218].mxu0  ;;  %v15439_v62 = vpop.f32.mrb[133].mxu1 }
 0x5c7   : > { %v6266_v2 = vpack.c.bf16 %v6084_v55, %v6080_v4  ;;  %v6089_v37 = vsel %vm5577_vm13, %v15244_v0, %v15291_v29  ;;  %v6093_v3 = vsel %vm5581_vm14, %v15297_v45, %v5837_v59  ;;  %v5083_v25 = vmul.f32 %v13731_v56, %v4438_v39  ;;  %v15441_v10 = vpop.f32.mrb[219].mxu0  ;;  %v4452_v29 = vpop.f32.mrb[134].mxu1 }
 0x5c8   : > { %v5087_v52 = vmul.f32 %v13731_v56, %v4442_v30  ;;  %18078 = vst [vmem:[#allocation175_spill] sm:$0xff] %v15441_v10  ;;  %v15444_v55 = vadd.f32 %v13756_v44, %v5064_v50  ;;  %v15446_v4 = vsel %vm5658_vm4, %v5402_v36, %v5914_v17  ;;  %v15448_v43 = vsel %vm5662_vm5, %v5406_v47, %v5918_v21  ;;  %v15457_v10 = vpop.f32.mrb[135].mxu1 }
 0x5c9   : > { %18079 = vst [vmem:[#allocation176_spill] sm:$0xff] %v15446_v4  ;;  %18080 = vst [vmem:[#allocation177_spill] sm:$0xff] %v15448_v43  ;;  %6919 = vmatmul.mubr.bf16.gmra.mrb[232].mxu1 %v6266_v2  ;;  %v6271_v0 = vpack.c.bf16 %v6093_v3, %v6089_v37  ;;  %v15451_v45 = vadd.f32 %v17943_v11, %v5067_v22  ;;  %v5360_v59 = vadd.f32 %v17943_v11, %v5083_v25 }
 0x5ca   : > { %v5364_v30 = vadd.f32 %v17943_v11, %v5087_v52  ;;  %v15460_v50 = vadd.f32 %v13756_v44, %v5068_v54  ;;  %v15463_v21 = vadd.f32 %v17943_v11, %v5071_v58  ;;  %v6092_v22 = vsel %vm5580_vm0, %v15254_v15, %v15294_v42 }
 0x5cb   : > { %6928 = vmatprep.mubr.bf16.mxu1 %v6271_v0  ;;  %v5133_v36 = vmul.f32 %v17965_v35, %v4851_v19  ;;  %v15471_v25 = vadd.f32 %v13756_v44, %v5072_v24  ;;  %vm5616_vm6 = vcmp.gt.f32.partialorder %v5360_v59, 0.0  ;;  %v5872_v47 = vmul.f32 0.01, %v5360_v59  ;;  %v10758_v24 = vld [vmem:[%s18019_s23 + $0x18] sm:$0xff]   ;;  %v4458_v19 = vpop.f32.mrb[136].mxu1 }
 0x5cc   : > { %v6088_v17 = vsel %vm5576_vm1, %v15241_v48, %v15279_v57  ;;  %vm5584_vm7 = vcmp.gt.f32.partialorder %v15320_v49, 0.0  ;;  %v5075_v54 = vmul.f32 %v13731_v56, %v15265_v33  ;;  %vm5620_vm8 = vcmp.gt.f32.partialorder %v5364_v30, 0.0  ;;  %v15502_v52 = vpop.f32.mrb[137].mxu1  ;;  %8275 = vmatpush1.bf16.msra.mxu0 %v10758_v24 }
 0x5cd   : > { %v5876_v58 = vmul.f32 0.01, %v5364_v30  ;;  %v6270_v15 = vpack.c.bf16 %v6092_v22, %v6088_v17  ;;  %vm5588_vm9 = vcmp.gt.f32.partialorder %v15340_v9, 0.0  ;;  %vm5593_vm10 = vcmp.gt.f32.partialorder %v15361_v32, 0.0  ;;  %8276 = vmatprep.subr.bf16.mxu0 %v18028_v46 }
 0x5ce   : > { %v5076_v42 = vmul.f32 %v13735_v26, %v15273_v18  ;;  %v5079_v48 = vmul.f32 %v13731_v56, %v15285_v5  ;;  %v6097_v33 = vsel %vm5585_vm2, %v15337_v31, %v15385_v60  ;;  %v6101_v57 = vsel %vm5589_vm3, %v15346_v8, %v5845_v28  ;;  %v4462_v60 = vpop.f32.mrb[138].mxu1 }
 0x5cf   : > { %v15497_v2 = vsel %vm5616_vm6, %v5360_v59, %v5872_v47  ;;  %v15499_v37 = vsel %vm5620_vm8, %v5364_v30, %v5876_v58  ;;  %v5410_v18 = vadd.f32 %v13388_v23, %v5133_v36  ;;  %v6275_v3 = vpack.c.bf16 %v6101_v57, %v6097_v33  ;;  %v15522_v22 = vpop.f32.mrb[139].mxu1 }
 0x5d0   : > { %vm5597_vm11 = vcmp.gt.f32.partialorder %v15444_v55, 0.0  ;;  %v5853_v5 = vmul.f32 0.01, %v15444_v55  ;;  %v15507_v31 = vmul.f32 0.01, %v15451_v45  ;;  %vm5592_vm12 = vcmp.gt.f32.partialorder %v15358_v14, 0.0 }
 0x5d1   : > { %vm5596_vm13 = vcmp.gt.f32.partialorder %v15370_v13, 0.0  ;;  %v15515_v28 = vmul.f32 0.01, %v15460_v50  ;;  %v15518_v0 = vmul.f32 0.01, %v15463_v21  ;;  %6929 = vmatmul.mubr.bf16.gmra.mrb[236].mxu1 %v6270_v15  ;;  %v5091_v59 = vmul.f32 %v13731_v56, %v4448_v40  ;;  %v4468_v39 = vpop.f32.mrb[140].mxu1 }
 0x5d2   : > { %v5137_v30 = vmul.f32 %v17965_v35, %v4855_v61  ;;  %vm5601_vm14 = vcmp.gt.f32.partialorder %v15460_v50, 0.0  ;;  %v15526_v36 = vadd.f32 %v17943_v11, %v5075_v54  ;;  %v15529_v47 = vadd.f32 %v13756_v44, %v5076_v42  ;;  %6938 = vmatprep.mubr.bf16.mxu1 %v6275_v3 }
 0x5d3   : > { %v15532_v17 = vadd.f32 %v17943_v11, %v5079_v48  ;;  %v5095_v58 = vmul.f32 %v13731_v56, %v4452_v29  ;;  %vm5605_vm15 = vcmp.gt.f32.partialorder %v15471_v25, 0.0  ;;  %v5922_v40 = vmul.f32 0.01, %v5410_v18 }
 0x5d4   : > { %v5368_v61 = vadd.f32 %v17943_v11, %v5091_v59  ;;  %v5414_v15 = vadd.f32 %v13388_v23, %v5137_v30  ;;  %v5861_v24 = vmul.f32 0.01, %v15471_v25  ;;  %v5080_v54 = vmul.f32 %v13735_v26, %v15299_v53 }
 0x5d5   : > { %vm5666_vm0 = vcmp.gt.f32.partialorder %v5410_v18, 0.0  ;;  %v5372_v42 = vadd.f32 %v17943_v11, %v5095_v58  ;;  %v15544_v29 = vadd.f32 %v13396_v7, %v15398_v16  ;;  %v15547_v57 = vmul.f32 0.01, %v15526_v36 }
 0x5d6   : > { %vm5624_vm1 = vcmp.gt.f32.partialorder %v5368_v61, 0.0  ;;  %v5880_v48 = vmul.f32 0.01, %v5368_v61  ;;  %vm5670_vm2 = vcmp.gt.f32.partialorder %v5414_v15, 0.0  ;;  %v5926_v33 = vmul.f32 0.01, %v5414_v15 }
 0x5d7   : > { %v15550_v3 = vmul.f32 0.01, %v15529_v47  ;;  %v15553_v59 = vmul.f32 0.01, %v15532_v17  ;;  %v15555_v53 = vsel %vm5666_vm0, %v5410_v18, %v5922_v40  ;;  %vm5628_vm3 = vcmp.gt.f32.partialorder %v5372_v42, 0.0  ;;  %v4470_v18 = vpop.f32.mrb[141].mxu1 }
 0x5d8   : > { %18081 = vst [vmem:[#allocation178_spill] sm:$0xff] %v15555_v53  ;;  %v15557_v30 = vsel %vm5670_vm2, %v5414_v15, %v5926_v33  ;;  %v5884_v58 = vmul.f32 0.01, %v5372_v42  ;;  %v15560_v8 = vadd.f32 %v13756_v44, %v5080_v54  ;;  %v15562_v16 = vsel %vm5624_vm1, %v5368_v61, %v5880_v48  ;;  %v4472_v48 = vpop.f32.mrb[142].mxu1 }
 0x5d9   : > { %18082 = vst [vmem:[#allocation179_spill] sm:$0xff] %v15557_v30  ;;  %v6096_v43 = vsel %vm5584_vm7, %v15320_v49, %v15382_v63  ;;  %v6100_v15 = vsel %vm5588_vm9, %v15340_v9, %v15388_v6  ;;  %v6105_v61 = vsel %vm5593_vm10, %v15361_v32, %v15404_v1  ;;  %v6109_v54 = vsel %vm5597_vm11, %v15444_v55, %v5853_v5  ;;  %v4861_v55 = vpop.f32.mrb[220].mxu0  ;;  %v18145_v30 = vld [vmem:[#allocation70_spill] sm:$0xff] }
 0x5da   : > { %v15570_v40 = vsel %vm5628_vm3, %v5372_v42, %v5884_v58  ;;  %v6274_v63 = vpack.c.bf16 %v6100_v15, %v6096_v43  ;;  %v6279_v42 = vpack.c.bf16 %v6109_v54, %v6105_v61  ;;  %v5099_v33 = vmul.f32 %v13731_v56, %v4458_v19  ;;  %v15586_v58 = vpop.f32.mrb[143].mxu1 }
 0x5db   : > { %v5084_v9 = vmul.f32 %v13735_v26, %v15353_v34  ;;  %v5088_v1 = vmul.f32 %v13735_v26, %v15374_v38  ;;  %v5092_v32 = vmul.f32 %v13735_v26, %v15439_v62  ;;  %v5103_v6 = vmul.f32 %v13731_v56, %v4462_v60  ;;  %v15607_v62 = vpop.f32.mrb[221].mxu0  ;;  %v15624_v61 = vpop.f32.mrb[144].mxu1 }
 0x5dc   : > { %6939 = vmatmul.mubr.bf16.gmra.mrb[240].mxu1 %v6274_v63  ;;  %v5376_v43 = vadd.f32 %v17943_v11, %v5099_v33  ;;  %v6104_v19 = vsel %vm5592_vm12, %v15358_v14, %v15401_v12  ;;  %v6108_v34 = vsel %vm5596_vm13, %v15370_v13, %v15410_v27  ;;  %v6117_v38 = vsel %vm5605_vm15, %v15471_v25, %v5861_v24  ;;  %v4865_v27 = vpop.f32.mrb[222].mxu0  ;;  %v10759_v13 = vld [vmem:[%s18019_s23 + $0x20] sm:$0xff]  }
 0x5dd   : > { %vm5604_vm4 = vcmp.gt.f32.partialorder %v15463_v21, 0.0  ;;  %v5096_v5 = vmul.f32 %v13735_v26, %v15457_v10  ;;  %6948 = vmatprep.mubr.bf16.mxu1 %v6279_v42  ;;  %v5380_v60 = vadd.f32 %v17943_v11, %v5103_v6  ;;  %v6278_v14 = vpack.c.bf16 %v6108_v34, %v6104_v19  ;;  %v15622_v15 = vpop.f32.mrb[223].mxu0  ;;  %8277 = vmatpush1.bf16.msra.mxu0 %v10759_v13  ;;  %v4480_v6 = vpop.f32.mrb[145].mxu1 }
 0x5de   : > { %v6113_v12 = vsel %vm5601_vm14, %v15460_v50, %v15515_v28  ;;  %vm5600_vm5 = vcmp.gt.f32.partialorder %v15451_v45, 0.0  ;;  %vm5632_vm6 = vcmp.gt.f32.partialorder %v5376_v43, 0.0  ;;  %v5888_v25 = vmul.f32 0.01, %v5376_v43  ;;  %8278 = vmatprep.subr.bf16.mxu0 %v18028_v46  ;;  %v4482_v34 = vpop.f32.mrb[146].mxu1 }
 0x5df   : > { %v6283_v24 = vpack.c.bf16 %v6117_v38, %v6113_v12  ;;  %v5107_v10 = vmul.f32 %v13731_v56, %v4468_v39  ;;  %vm5609_vm7 = vcmp.gt.f32.partialorder %v15529_v47, 0.0  ;;  %v5100_v50 = vmul.f32 %v13735_v26, %v15502_v52  ;;  %v4484_v12 = vpop.f32.mrb[147].mxu1 }
 0x5e0   : > { %vm5636_vm8 = vcmp.gt.f32.partialorder %v5380_v60, 0.0  ;;  %v5892_v28 = vmul.f32 0.01, %v5380_v60  ;;  %v5104_v54 = vmul.f32 %v13735_v26, %v15522_v22  ;;  %v15632_v63 = vadd.f32 %v13756_v44, %v5084_v9 }
 0x5e1   : > { %v15635_v39 = vadd.f32 %v13756_v44, %v5088_v1  ;;  %v15638_v42 = vadd.f32 %v13756_v44, %v5092_v32  ;;  %v5384_v33 = vadd.f32 %v17943_v11, %v5107_v10  ;;  %v15643_v52 = vsel %vm5632_vm6, %v5376_v43, %v5888_v25 }
 0x5e2   : > { %v15645_v19 = vsel %vm5636_vm8, %v5380_v60, %v5892_v28  ;;  %v5141_v22 = vmul.f32 %v17965_v35, %v4861_v55  ;;  %v5111_v9 = vmul.f32 %v13731_v56, %v4472_v48  ;;  %vm5613_vm9 = vcmp.gt.f32.partialorder %v15560_v8, 0.0 }
 0x5e3   : > { %v5869_v1 = vmul.f32 0.01, %v15560_v8  ;;  %v15652_v32 = vadd.f32 %v13756_v44, %v5096_v5  ;;  %vm5612_vm10 = vcmp.gt.f32.partialorder %v15532_v17, 0.0  ;;  %v15658_v43 = vadd.f32 %v13756_v44, %v5100_v50 }
 0x5e4   : > { %v15661_v55 = vadd.f32 %v13756_v44, %v5104_v54  ;;  %v5108_v48 = vmul.f32 %v13735_v26, %v4470_v18  ;;  %v5388_v60 = vadd.f32 %v17943_v11, %v5111_v9  ;;  %vm5608_vm11 = vcmp.gt.f32.partialorder %v15526_v36, 0.0  ;;  %6949 = vmatmul.mubr.bf16.gmra.mrb[244].mxu1 %v6278_v14  ;;  %v4488_v9 = vpop.f32.mrb[148].mxu1 }
 0x5e5   : > { %v15667_v5 = vmul.f32 0.01, %v15632_v63  ;;  %v5896_v13 = vmul.f32 0.01, %v5384_v33  ;;  %v5418_v25 = vadd.f32 %v13388_v23, %v5141_v22  ;;  %v5145_v10 = vmul.f32 %v17965_v35, %v4865_v27  ;;  %6958 = vmatprep.mubr.bf16.mxu1 %v6283_v24  ;;  %v4490_v53 = vpop.f32.mrb[149].mxu1 }
 0x5e6   : > { %vm5617_vm12 = vcmp.gt.f32.partialorder %v15632_v63, 0.0  ;;  %vm5621_vm13 = vcmp.gt.f32.partialorder %v15635_v39, 0.0  ;;  %v5877_v50 = vmul.f32 0.01, %v15635_v39  ;;  %v15675_v18 = vmul.f32 0.01, %v15638_v42 }
 0x5e7   : > { %vm5640_vm14 = vcmp.gt.f32.partialorder %v5384_v33, 0.0  ;;  %v15678_v28 = vmul.f32 0.01, %v15652_v32  ;;  %vm5644_vm15 = vcmp.gt.f32.partialorder %v5388_v60, 0.0  ;;  %v5900_v14 = vmul.f32 0.01, %v5388_v60 }
 0x5e8   : > { %v5112_v54 = vmul.f32 %v13735_v26, %v15586_v58  ;;  %v15683_v35 = vmul.f32 0.01, %v15658_v43  ;;  %v15686_v27 = vmul.f32 0.01, %v15661_v55  ;;  %v15689_v22 = vadd.f32 %v13756_v44, %v5108_v48  ;;  %v4492_v48 = vpop.f32.mrb[150].mxu1 }
 0x5e9   : > { %v5422_v24 = vadd.f32 %v13388_v23, %v5145_v10  ;;  %vm5625_vm0 = vcmp.gt.f32.partialorder %v15638_v42, 0.0  ;;  %vm5629_vm1 = vcmp.gt.f32.partialorder %v15652_v32, 0.0  ;;  %v15694_v4 = vsel %vm5640_vm14, %v5384_v33, %v5896_v13 }
 0x5ea   : > { %v5930_v38 = vmul.f32 0.01, %v5418_v25  ;;  %v15696_v58 = vsel %vm5644_vm15, %v5388_v60, %v5900_v14  ;;  %v6116_v49 = vsel %vm5604_vm4, %v15463_v21, %v15518_v0  ;;  %vm5674_vm2 = vcmp.gt.f32.partialorder %v5418_v25, 0.0  ;;  %v4494_v0 = vpop.f32.mrb[151].mxu1 }
 0x5eb   : > { %vm5678_vm3 = vcmp.gt.f32.partialorder %v5422_v24, 0.0  ;;  %v6112_v33 = vsel %vm5600_vm5, %v15451_v45, %v15507_v31  ;;  %v15709_v60 = vadd.f32 %v13756_v44, %v5112_v54  ;;  %v5934_v13 = vmul.f32 0.01, %v5422_v24 }
 0x5ec   : > { %v6282_v10 = vpack.c.bf16 %v6116_v49, %v6112_v33  ;;  %v6121_v21 = vsel %vm5609_vm7, %v15529_v47, %v15550_v3  ;;  %v6125_v14 = vsel %vm5613_vm9, %v15560_v8, %v5869_v1  ;;  %v5115_v23 = vmul.f32 %v13731_v56, %v15624_v61 }
 0x5ed   : > { %v5116_v45 = vmul.f32 %v13735_v26, %v4480_v6  ;;  %v5119_v31 = vmul.f32 %v13731_v56, %v4482_v34  ;;  %v15722_v54 = vsel %vm5674_vm2, %v5418_v25, %v5930_v38  ;;  %v15724_v49 = vsel %vm5678_vm3, %v5422_v24, %v5934_v13  ;;  %v10760_v6 = vld [vmem:[%s18019_s23 + $0x28] sm:$0xff]   ;;  %v4498_v24 = vpop.f32.mrb[152].mxu1 }
 0x5ee   : > { %18083 = vst [vmem:[#allocation180_spill] sm:$0xff] %v15722_v54  ;;  %18084 = vst [vmem:[#allocation181_spill] sm:$0xff] %v15724_v49  ;;  %6959 = vmatmul.mubr.bf16.gmra.mrb[248].mxu1 %v6282_v10  ;;  %v6287_v33 = vpack.c.bf16 %v6125_v14, %v6121_v21  ;;  %v5120_v47 = vmul.f32 %v13735_v26, %v4484_v12  ;;  %v5392_v8 = vadd.f32 %v17943_v11, %v5115_v23  ;;  %v18131_v54 = vld [vmem:[#allocation78_spill] sm:$0xff]  ;;  %v18132_v49 = vld [vmem:[#allocation123_spill] sm:$0xff] }
 0x5ef   : > { %v15731_v1 = vadd.f32 %v13756_v44, %v5116_v45  ;;  %v5396_v61 = vadd.f32 %v17943_v11, %v5119_v31  ;;  %vm5633_vm4 = vcmp.gt.f32.partialorder %v15658_v43, 0.0  ;;  %v15739_v34 = vmul.f32 0.01, %v15689_v22  ;;  %8279 = vmatpush1.bf16.msra.mxu0 %v10760_v6 }
 0x5f0   : > { %v15742_v38 = vmul.f32 0.01, %v15709_v60  ;;  %6968 = vmatprep.mubr.bf16.mxu1 %v6287_v33  ;;  %v6124_v12 = vsel %vm5612_vm10, %v15532_v17, %v15553_v59  ;;  %v6133_v25 = vsel %vm5621_vm13, %v15635_v39, %v5877_v50  ;;  %vm5648_vm5 = vcmp.gt.f32.partialorder %v5392_v8, 0.0  ;;  %8280 = vmatprep.subr.bf16.mxu0 %v18028_v46 }
 0x5f1   : > { %v5904_v23 = vmul.f32 0.01, %v5392_v8  ;;  %v15752_v13 = vadd.f32 %v13756_v44, %v5120_v47  ;;  %v6120_v10 = vsel %vm5608_vm11, %v15526_v36, %v15547_v57  ;;  %vm5637_vm6 = vcmp.gt.f32.partialorder %v15661_v55, 0.0  ;;  %v4500_v57 = vpop.f32.mrb[153].mxu1 }
 0x5f2   : > { %v15760_v17 = vmul.f32 0.01, %v15731_v1  ;;  %vm5652_vm7 = vcmp.gt.f32.partialorder %v5396_v61, 0.0  ;;  %v5908_v59 = vmul.f32 0.01, %v5396_v61  ;;  %v6129_v39 = vsel %vm5617_vm12, %v15632_v63, %v15667_v5  ;;  %v4502_v6 = vpop.f32.mrb[154].mxu1 }
 0x5f3   : > { %v15767_v50 = vsel %vm5648_vm5, %v5392_v8, %v5904_v23  ;;  %v6286_v21 = vpack.c.bf16 %v6124_v12, %v6120_v10  ;;  %v6291_v14 = vpack.c.bf16 %v6133_v25, %v6129_v39  ;;  %v5123_v36 = vmul.f32 %v13731_v56, %v4488_v9  ;;  %v18129_v63 = vld [vmem:[#allocation101_spill] sm:$0xff] }
 0x5f4   : > { %v15770_v45 = vsel %vm5652_vm7, %v5396_v61, %v5908_v59  ;;  %v5124_v31 = vmul.f32 %v13735_v26, %v4490_v53  ;;  %v5127_v33 = vmul.f32 %v13731_v56, %v4492_v48  ;;  %v5128_v47 = vmul.f32 %v13735_v26, %v4494_v0  ;;  %v4504_v48 = vpop.f32.mrb[155].mxu1 }
 0x5f5   : > { %vm5641_vm8 = vcmp.gt.f32.partialorder %v15689_v22, 0.0  ;;  %vm5645_vm9 = vcmp.gt.f32.partialorder %v15709_v60, 0.0  ;;  %v5400_v5 = vadd.f32 %v17943_v11, %v5123_v36  ;;  %v6137_v9 = vsel %vm5625_vm0, %v15638_v42, %v15675_v18  ;;  %v4508_v39 = vpop.f32.mrb[156].mxu1 }
 0x5f6   : > { %v6141_v53 = vsel %vm5629_vm1, %v15652_v32, %v15678_v28  ;;  %6969 = vmatmul.mubr.bf16.gmra.mrb[252].mxu1 %v6286_v21  ;;  %v15789_v0 = vadd.f32 %v13756_v44, %v5124_v31  ;;  %v5404_v8 = vadd.f32 %v17943_v11, %v5127_v33  ;;  %v15793_v61 = vadd.f32 %v13756_v44, %v5128_v47  ;;  %v4510_v31 = vpop.f32.mrb[157].mxu1 }
 0x5f7   : > { %v6295_v12 = vpack.c.bf16 %v6141_v53, %v6137_v9  ;;  %6978 = vmatprep.mubr.bf16.mxu1 %v6291_v14  ;;  %vm5656_vm10 = vcmp.gt.f32.partialorder %v5400_v5, 0.0  ;;  %v5912_v25 = vmul.f32 0.01, %v5400_v5  ;;  %v5131_v42 = vmul.f32 %v13731_v56, %v4498_v24  ;;  %v4512_v9 = vpop.f32.mrb[158].mxu1 }
 0x5f8   : > { %v5132_v18 = vmul.f32 %v13735_v26, %v4500_v57  ;;  %vm5649_vm11 = vcmp.gt.f32.partialorder %v15731_v1, 0.0  ;;  %vm5653_vm12 = vcmp.gt.f32.partialorder %v15752_v13, 0.0  ;;  %v5909_v32 = vmul.f32 0.01, %v15752_v13 }
 0x5f9   : > { %vm5657_vm13 = vcmp.gt.f32.partialorder %v15789_v0, 0.0  ;;  %vm5660_vm14 = vcmp.gt.f32.partialorder %v5404_v8, 0.0  ;;  %v5916_v28 = vmul.f32 0.01, %v5404_v8  ;;  %v15801_v23 = vsel %vm5656_vm10, %v5400_v5, %v5912_v25  ;;  %v4514_v25 = vpop.f32.mrb[159].mxu1 }
 0x5fa   : > { %v5913_v10 = vmul.f32 0.01, %v15789_v0  ;;  %v5917_v59 = vmul.f32 0.01, %v15793_v61  ;;  %v5408_v24 = vadd.f32 %v17943_v11, %v5131_v42  ;;  %vm5661_vm15 = vcmp.gt.f32.partialorder %v15793_v61, 0.0 }
 0x5fb   : > { %v15806_v21 = vsel %vm5660_vm14, %v5404_v8, %v5916_v28  ;;  %v5409_v14 = vadd.f32 %v13756_v44, %v5132_v18  ;;  %v5135_v36 = vmul.f32 %v13731_v56, %v4502_v6  ;;  %v5136_v57 = vmul.f32 %v13735_v26, %v4504_v48 }
 0x5fc   : > { %vm5664_vm0 = vcmp.gt.f32.partialorder %v5408_v24, 0.0  ;;  %v5920_v47 = vmul.f32 0.01, %v5408_v24  ;;  %v6145_v5 = vsel %vm5633_vm4, %v15658_v43, %v15683_v35  ;;  %v6149_v42 = vsel %vm5637_vm6, %v15661_v55, %v15686_v27 }
 0x5fd   : > { %vm5665_vm1 = vcmp.gt.f32.partialorder %v5409_v14, 0.0  ;;  %v5921_v53 = vmul.f32 0.01, %v5409_v14  ;;  %v5412_v8 = vadd.f32 %v17943_v11, %v5135_v36  ;;  %v5413_v6 = vadd.f32 %v13756_v44, %v5136_v57  ;;  %v18086_v57 = vld [vmem:[#allocation83_spill] sm:$0xff] }
 0x5fe   : > { %v15820_v48 = vsel %vm5664_vm0, %v5408_v24, %v5920_v47  ;;  %v5139_v18 = vmul.f32 %v13731_v56, %v4508_v39  ;;  %v5140_v28 = vmul.f32 %v13735_v26, %v4510_v31  ;;  %v18085_v43 = vpack.c.bf16 %v15499_v37, %v15497_v2  ;;  %v10761_v39 = vld [vmem:[%s18019_s23 + $0x30] sm:$0xff]  }
 0x5ff   : > { %vm5668_vm2 = vcmp.gt.f32.partialorder %v5412_v8, 0.0  ;;  %v5924_v35 = vmul.f32 0.01, %v5412_v8  ;;  %vm5669_vm3 = vcmp.gt.f32.partialorder %v5413_v6, 0.0  ;;  %v5925_v36 = vmul.f32 0.01, %v5413_v6  ;;  %8281 = vmatpush1.bf16.msra.mxu0 %v10761_v39 }
 0x600   : > { %6979 = vmatmul.mubr.bf16.gmra.mrb[0].mxu1 %v18085_v43  ;;  %vm5507_vm4 = vcmp.gt.f32.partialorder %v18086_v57, 0.0  ;;  %v6299_v24 = vpack.c.bf16 %v6149_v42, %v6145_v5  ;;  %v5416_v47 = vadd.f32 %v17943_v11, %v5139_v18  ;;  %v5417_v55 = vadd.f32 %v13756_v44, %v5140_v28  ;;  %8282 = vmatprep.subr.bf16.mxu0 %v18028_v46  ;;  %v18089_v28 = vld [vmem:[#allocation81_spill] sm:$0xff]  ;;  %v18090_v43 = vld [vmem:[#allocation84_spill] sm:$0xff]  ;;  %v18125_v18 = vld [vmem:[#allocation79_spill] sm:$0xff] }
 0x601   : > { %6988 = vmatprep.mubr.bf16.mxu1 %v6295_v12  ;;  %v5143_v27 = vmul.f32 %v13731_v56, %v4512_v9  ;;  %v15838_v2 = vsel %vm5668_vm2, %v5412_v8, %v5924_v35  ;;  %v5144_v37 = vmul.f32 %v13735_v26, %v4514_v25  ;;  %v15845_v12 = vsel %vm5641_vm8, %v15689_v22, %v15739_v34  ;;  %v18124_v56 = vld [vmem:[#allocation77_spill] sm:$0xff]  ;;  %v18130_v42 = vld [vmem:[#allocation76_spill] sm:$0xff] }
 0x602   : > { %v6157_v31 = vsel %vm5645_vm9, %v15709_v60, %v15742_v38  ;;  %vm5672_vm5 = vcmp.gt.f32.partialorder %v5416_v47, 0.0  ;;  %v5928_v5 = vmul.f32 0.01, %v5416_v47  ;;  %vm5673_vm6 = vcmp.gt.f32.partialorder %v5417_v55, 0.0 }
 0x603   : > { %v5929_v9 = vmul.f32 0.01, %v5417_v55  ;;  %v5420_v26 = vadd.f32 %v17943_v11, %v5143_v27  ;;  %v5421_v8 = vadd.f32 %v13756_v44, %v5144_v37  ;;  %v6303_v22 = vpack.c.bf16 %v6157_v31, %v15845_v12  ;;  %v18094_v27 = vld [vmem:[#allocation89_spill] sm:$0xff]  ;;  %v18120_v12 = vld [vmem:[#allocation107_spill] sm:$0xff] }
 0x604   : > { %v15857_v34 = vsel %vm5672_vm5, %v5416_v47, %v5928_v5  ;;  %v15863_v60 = vsel %vm5649_vm11, %v15731_v1, %v15760_v17  ;;  %v15868_v38 = vsel %vm5653_vm12, %v15752_v13, %v5909_v32  ;;  %v15873_v44 = vsel %vm5657_vm13, %v15789_v0, %v5913_v10  ;;  %v18092_v47 = vld [vmem:[#allocation87_spill] sm:$0xff]  ;;  %v18097_v5 = vld [vmem:[#allocation86_spill] sm:$0xff] }
 0x605   : > { %vm5676_vm7 = vcmp.gt.f32.partialorder %v5420_v26, 0.0  ;;  %v5932_v11 = vmul.f32 0.01, %v5420_v26  ;;  %vm5677_vm8 = vcmp.gt.f32.partialorder %v5421_v8, 0.0  ;;  %v5933_v25 = vmul.f32 0.01, %v5421_v8 }
 0x606   : > { %v15880_v1 = vsel %vm5661_vm15, %v15793_v61, %v5917_v59  ;;  %v15883_v13 = vsel %vm5665_vm1, %v5409_v14, %v5921_v53  ;;  %v15886_v17 = vsel %vm5669_vm3, %v5413_v6, %v5925_v36  ;;  %v18087_v0 = vpack.c.bf16 %v15570_v40, %v15562_v16  ;;  %v18088_v53 = vld [vmem:[#allocation85_spill] sm:$0xff] }
 0x607   : > { %v15891_v32 = vsel %vm5676_vm7, %v5420_v26, %v5932_v11  ;;  %v15898_v61 = vsel %vm5673_vm6, %v5417_v55, %v5929_v9  ;;  %v15902_v14 = vsel %vm5677_vm8, %v5421_v8, %v5933_v25  ;;  %vm5511_vm9 = vcmp.gt.f32.partialorder %v18088_v53, 0.0  ;;  %v18100_v11 = vld [vmem:[#allocation88_spill] sm:$0xff]  ;;  %v18114_v25 = vld [vmem:[#allocation113_spill] sm:$0xff] }
 0x608   : > { %6989 = vmatmul.mubr.bf16.gmra.mrb[4].mxu1 %v18087_v0  ;;  %v5763_v16 = vmul.f32 0.01, %v18086_v57  ;;  %v5767_v6 = vmul.f32 0.01, %v18088_v53  ;;  %vm5506_vm10 = vcmp.gt.f32.partialorder %v18089_v28, 0.0  ;;  %vm5510_vm11 = vcmp.gt.f32.partialorder %v18090_v43, 0.0 }
 0x609   : > { %6998 = vmatprep.mubr.bf16.mxu1 %v6299_v24  ;;  %v5762_v36 = vmul.f32 0.01, %v18089_v28  ;;  %v5766_v24 = vmul.f32 0.01, %v18090_v43  ;;  %vm5515_vm12 = vcmp.gt.f32.partialorder %v18092_v47, 0.0  ;;  %vm5519_vm13 = vcmp.gt.f32.partialorder %v18094_v27, 0.0 }
 0x60a   : > { %v15914_v35 = vsel %vm5507_vm4, %v18086_v57, %v5763_v16  ;;  %v15920_v55 = vsel %vm5511_vm9, %v18088_v53, %v5767_v6  ;;  %v5771_v39 = vmul.f32 0.01, %v18092_v47  ;;  %v5775_v37 = vmul.f32 0.01, %v18094_v27  ;;  %v18101_v16 = vld [vmem:[#allocation92_spill] sm:$0xff]  ;;  %v18123_v40 = vld [vmem:[#allocation97_spill] sm:$0xff] }
 0x60b   : > { %18091 = vst [vmem:[#allocation83_spill] sm:$0xff] %v15914_v35  ;;  %18093 = vst [vmem:[#allocation85_spill] sm:$0xff] %v15920_v55  ;;  %v15928_v57 = vsel %vm5506_vm10, %v18089_v28, %v5762_v36  ;;  %v15931_v31 = vsel %vm5510_vm11, %v18090_v43, %v5766_v24  ;;  %vm5514_vm14 = vcmp.gt.f32.partialorder %v18097_v5, 0.0  ;;  %vm5518_vm15 = vcmp.gt.f32.partialorder %v18100_v11, 0.0  ;;  %v18103_v28 = vld [vmem:[#allocation95_spill] sm:$0xff]  ;;  %v18119_v9 = vld [vmem:[#allocation64_spill] sm:$0xff] }
 0x60c   : > { %18095 = vst [vmem:[#allocation81_spill] sm:$0xff] %v15928_v57  ;;  %18096 = vst [vmem:[#allocation84_spill] sm:$0xff] %v15931_v31  ;;  %v15937_v26 = vsel %vm5515_vm12, %v18092_v47, %v5771_v39  ;;  %v15940_v8 = vsel %vm5519_vm13, %v18094_v27, %v5775_v37  ;;  %v5770_v0 = vmul.f32 0.01, %v18097_v5  ;;  %v5774_v53 = vmul.f32 0.01, %v18100_v11 }
 0x60d   : > { %18098 = vst [vmem:[#allocation87_spill] sm:$0xff] %v15937_v26  ;;  %18099 = vst [vmem:[#allocation89_spill] sm:$0xff] %v15940_v8  ;;  %vm5523_vm0 = vcmp.gt.f32.partialorder %v18101_v16, 0.0  ;;  %v18102_v6 = vpack.c.bf16 %v15645_v19, %v15643_v52  ;;  %vm5527_vm1 = vcmp.gt.f32.partialorder %v18103_v28, 0.0  ;;  %v5779_v43 = vmul.f32 0.01, %v18101_v16 }
 0x60e   : > { %v5783_v36 = vmul.f32 0.01, %v18103_v28  ;;  %v18104_v24 = vld [vmem:[#allocation91_spill] sm:$0xff]  ;;  %v15961_v27 = vsel %vm5514_vm14, %v18097_v5, %v5770_v0  ;;  %v15964_v52 = vsel %vm5518_vm15, %v18100_v11, %v5774_v53  ;;  %v18107_v19 = vld [vmem:[#allocation94_spill] sm:$0xff]  ;;  %v18112_v11 = vld [vmem:[#allocation61_spill] sm:$0xff]  ;;  %vm5563_vm8 = vcmp.gt.f32.partialorder %v18114_v25, 0.0 }
 0x60f   : > { %vm5522_vm2 = vcmp.gt.f32.partialorder %v18104_v24, 0.0  ;;  %v10762_v47 = vld [vmem:[%s18019_s23 + $0x38] sm:$0xff]   ;;  %18105 = vst [vmem:[#allocation86_spill] sm:$0xff] %v15961_v27  ;;  %18106 = vst [vmem:[#allocation88_spill] sm:$0xff] %v15964_v52  ;;  %vm5526_vm3 = vcmp.gt.f32.partialorder %v18107_v19, 0.0  ;;  %vm5558_vm6 = vcmp.gt.f32.partialorder %v18112_v11, 0.0  ;;  %v18174_v55 = vpack.c.bf16 %v15770_v45, %v15767_v50 }
 0x610   : > { %6999 = vmatmul.mubr.bf16.gmra.mrb[8].mxu1 %v18102_v6  ;;  %v5778_v39 = vmul.f32 0.01, %v18104_v24  ;;  %v18108_v37 = vld [vmem:[#allocation103_spill] sm:$0xff]  ;;  %v15972_v6 = vsel %vm5523_vm0, %v18101_v16, %v5779_v43  ;;  %v15975_v3 = vsel %vm5527_vm1, %v18103_v28, %v5783_v36  ;;  %v5782_v5 = vmul.f32 0.01, %v18107_v19  ;;  %v18113_v53 = vld [vmem:[#allocation105_spill] sm:$0xff]  ;;  %8283 = vmatpush1.bf16.msra.mxu0 %v10762_v47 }
 0x611   : > { %7008 = vmatprep.mubr.bf16.mxu1 %v6303_v22  ;;  %vm5555_vm4 = vcmp.gt.f32.partialorder %v18108_v37, 0.0  ;;  %18109 = vst [vmem:[#allocation92_spill] sm:$0xff] %v15972_v6  ;;  %18110 = vst [vmem:[#allocation95_spill] sm:$0xff] %v15975_v3  ;;  %v18111_v0 = vld [vmem:[#allocation67_spill] sm:$0xff]  ;;  %vm5559_vm7 = vcmp.gt.f32.partialorder %v18113_v53, 0.0  ;;  %v18116_v28 = vld [vmem:[#allocation96_spill] sm:$0xff]  ;;  %8284 = vmatprep.subr.bf16.mxu0 %v18028_v46  ;;  %v18138_v6 = vpack.c.bf16 %v15696_v58, %v15694_v4 }
 0x612   : > { %vm5554_vm5 = vcmp.gt.f32.partialorder %v18111_v0, 0.0  ;;  %v15987_v16 = vsel %vm5522_vm2, %v18104_v24, %v5778_v39  ;;  %vm5531_vm9 = vcmp.gt.f32.partialorder %v18116_v28, 0.0  ;;  %v18117_v43 = vld [vmem:[#allocation98_spill] sm:$0xff]  ;;  %v15994_v36 = vsel %vm5526_vm3, %v18107_v19, %v5782_v5  ;;  %v18122_v39 = vld [vmem:[#allocation120_spill] sm:$0xff]  ;;  %v18128_v59 = vld [vmem:[#allocation69_spill] sm:$0xff] }
 0x613   : > { %18115 = vst [vmem:[#allocation91_spill] sm:$0xff] %v15987_v16  ;;  %vm5535_vm10 = vcmp.gt.f32.partialorder %v18117_v43, 0.0  ;;  %18118 = vst [vmem:[#allocation94_spill] sm:$0xff] %v15994_v36  ;;  %v5787_v47 = vmul.f32 0.01, %v18116_v28  ;;  %vm5530_vm11 = vcmp.gt.f32.partialorder %v18119_v9, 0.0  ;;  %v18180_v45 = vpack.c.bf16 %v15880_v1, %v15873_v44 }
 0x614   : > { %v5791_v22 = vmul.f32 0.01, %v18117_v43  ;;  %v18121_v24 = vld [vmem:[#allocation114_spill] sm:$0xff]  ;;  %vm5567_vm14 = vcmp.gt.f32.partialorder %v18122_v39, 0.0  ;;  %vm5534_vm15 = vcmp.gt.f32.partialorder %v18123_v40, 0.0  ;;  %vm5539_vm2 = vcmp.gt.f32.partialorder %v18128_v59, 0.0 }
 0x615   : > { %v5786_v19 = vmul.f32 0.01, %v18119_v9  ;;  %v5790_v5 = vmul.f32 0.01, %v18123_v40  ;;  %v16013_v33 = vsel %vm5531_vm9, %v18116_v28, %v5787_v47  ;;  %vm5543_vm3 = vcmp.gt.f32.partialorder %v18129_v63, 0.0  ;;  %v18135_v47 = vld [vmem:[#allocation122_spill] sm:$0xff] }
 0x616   : > { %18126 = vst [vmem:[#allocation103_spill] sm:$0xff] %v16013_v33  ;;  %v16018_v10 = vsel %vm5535_vm10, %v18117_v43, %v5791_v22  ;;  %v5795_v43 = vmul.f32 0.01, %v18128_v59  ;;  %v18136_v16 = vld [vmem:[#allocation124_spill] sm:$0xff]  ;;  %v18137_v36 = vld [vmem:[#allocation65_spill] sm:$0xff]  ;;  %vm5547_vm10 = vcmp.gt.f32.partialorder %v18145_v30, 0.0 }
 0x617   : > { %18127 = vst [vmem:[#allocation67_spill] sm:$0xff] %v16018_v10  ;;  %v16030_v28 = vsel %vm5530_vm11, %v18119_v9, %v5786_v19  ;;  %v16033_v22 = vsel %vm5534_vm15, %v18123_v40, %v5790_v5  ;;  %v5799_v9 = vmul.f32 0.01, %v18129_v63  ;;  %v18139_v19 = vld [vmem:[#allocation99_spill] sm:$0xff]  ;;  %v18140_v40 = vld [vmem:[#allocation100_spill] sm:$0xff]  ;;  %v18141_v5 = vld [vmem:[#allocation126_spill] sm:$0xff]  ;;  %v18143_v10 = vpack.c.bf16 %v15868_v38, %v15863_v60 }
 0x618   : > { %18133 = vst [vmem:[#allocation61_spill] sm:$0xff] %v16030_v28  ;;  %18134 = vst [vmem:[#allocation105_spill] sm:$0xff] %v16033_v22  ;;  %7009 = vmatmul.mubr.bf16.gmra.mrb[12].mxu1 %v18138_v6  ;;  %vm5538_vm11 = vcmp.gt.f32.partialorder %v18139_v19, 0.0  ;;  %vm5542_vm15 = vcmp.gt.f32.partialorder %v18140_v40, 0.0  ;;  %v18142_v33 = vld [vmem:[#allocation129_spill] sm:$0xff]  ;;  %v16055_v4 = vsel %vm5539_vm2, %v18128_v59, %v5795_v43  ;;  %v18146_v28 = vld [vmem:[#allocation104_spill] sm:$0xff] }
 0x619   : > { %7018 = vmatprep.mubr.bf16.mxu1 %v18143_v10  ;;  %18144 = vst [vmem:[#allocation113_spill] sm:$0xff] %v16055_v4  ;;  %v5794_v58 = vmul.f32 0.01, %v18139_v19  ;;  %v5798_v6 = vmul.f32 0.01, %v18140_v40  ;;  %v18147_v22 = vld [vmem:[#allocation127_spill] sm:$0xff]  ;;  %v16066_v60 = vsel %vm5543_vm3, %v18129_v63, %v5799_v9 }
 0x61a   : > { %vm5590_vm1 = vcmp.gt.f32.partialorder %v18147_v22, 0.0  ;;  %v18148_v3 = vld [vmem:[#allocation106_spill] sm:$0xff]  ;;  %18149 = vst [vmem:[#allocation96_spill] sm:$0xff] %v16066_v60  ;;  %vm5551_vm2 = vcmp.gt.f32.partialorder %v15379_v20, 0.0  ;;  %v5803_v38 = vmul.f32 0.01, %v18145_v30 }
 0x61b   : > { %vm5595_vm9 = vcmp.gt.f32.partialorder %v18148_v3, 0.0  ;;  %v5807_v10 = vmul.f32 0.01, %v15379_v20  ;;  %v18150_v59 = vld [vmem:[#allocation130_spill] sm:$0xff]  ;;  %v16079_v63 = vsel %vm5538_vm11, %v18139_v19, %v5794_v58  ;;  %v16084_v9 = vsel %vm5542_vm15, %v18140_v40, %v5798_v6  ;;  %v18154_v52 = vld [vmem:[#allocation135_spill] sm:$0xff]  ;;  %v18159_v40 = vld [vmem:[#allocation112_spill] sm:$0xff] }
 0x61c   : > { %18151 = vst [vmem:[#allocation98_spill] sm:$0xff] %v16079_v63  ;;  %18152 = vst [vmem:[#allocation64_spill] sm:$0xff] %v16084_v9  ;;  %v18153_v27 = vld [vmem:[#allocation102_spill] sm:$0xff]  ;;  %v16094_v43 = vsel %vm5547_vm10, %v18145_v30, %v5803_v38  ;;  %v18158_v58 = vld [vmem:[#allocation115_spill] sm:$0xff]  ;;  %vm5602_vm15 = vcmp.gt.f32.partialorder %v18159_v40, 0.0 }
 0x61d   : > { %vm5546_vm3 = vcmp.gt.f32.partialorder %v18153_v27, 0.0  ;;  %v18155_v26 = vld [vmem:[#allocation138_spill] sm:$0xff]  ;;  %18156 = vst [vmem:[#allocation107_spill] sm:$0xff] %v16094_v43  ;;  %v16097_v19 = vsel %vm5551_vm2, %v15379_v20, %v5807_v10  ;;  %vm5550_vm11 = vcmp.gt.f32.partialorder %v18158_v58, 0.0  ;;  %v18160_v6 = vld [vmem:[#allocation136_spill] sm:$0xff]  ;;  %v18162_v30 = vld [vmem:[#allocation117_spill] sm:$0xff] }
 0x61e   : > { %vm5607_vm12 = vcmp.gt.f32.partialorder %v18155_v26, 0.0  ;;  %18157 = vst [vmem:[#allocation114_spill] sm:$0xff] %v16097_v19  ;;  %v18161_v4 = vld [vmem:[#allocation146_spill] sm:$0xff]  ;;  %v5802_v8 = vmul.f32 0.01, %v18153_v27  ;;  %v16111_v20 = vsel %vm5555_vm4, %v18108_v37, %v18162_v30  ;;  %v18163_v38 = vld [vmem:[#allocation140_spill] sm:$0xff] }
 0x61f   : > { %vm5611_vm13 = vcmp.gt.f32.partialorder %v18161_v4, 0.0  ;;  %v5806_v63 = vmul.f32 0.01, %v18158_v58  ;;  %vm5610_vm10 = vcmp.gt.f32.partialorder %v18163_v38, 0.0  ;;  %v18164_v10 = vld [vmem:[#allocation148_spill] sm:$0xff]  ;;  %v18165_v9 = vld [vmem:[#allocation150_spill] sm:$0xff] }
 0x620   : > { %vm5614_vm2 = vcmp.gt.f32.partialorder %v18164_v10, 0.0  ;;  %vm5615_vm0 = vcmp.gt.f32.partialorder %v18165_v9, 0.0  ;;  %v18166_v57 = vld [vmem:[#allocation74_spill] sm:$0xff]  ;;  %v18167_v43 = vld [vmem:[#allocation116_spill] sm:$0xff]  ;;  %v18169_v31 = vld [vmem:[#allocation75_spill] sm:$0xff]  ;;  %7019 = vmatmul.mubr.bf16.gmra.mrb[16].mxu1 %v18174_v55 }
 0x621   : > { %v16120_v60 = vsel %vm5559_vm7, %v18113_v53, %v18166_v57  ;;  %v16126_v19 = vsel %vm5554_vm5, %v18111_v0, %v18167_v43  ;;  %v18168_v37 = vld [vmem:[#allocation118_spill] sm:$0xff]  ;;  %v16138_v35 = vsel %vm5563_vm8, %v18114_v25, %v18169_v31  ;;  %v18170_v57 = vld [vmem:[#allocation156_spill] sm:$0xff]  ;;  %v18171_v53 = vld [vmem:[#allocation161_spill] sm:$0xff]  ;;  %v16145_v0 = vsel %vm5546_vm3, %v18153_v27, %v5802_v8  ;;  %7028 = vmatprep.mubr.bf16.mxu1 %v18180_v45 }
 0x622   : > { %v16132_v30 = vsel %vm5558_vm6, %v18112_v11, %v18168_v37  ;;  %vm5619_vm4 = vcmp.gt.f32.partialorder %v18170_v57, 0.0  ;;  %vm5623_vm7 = vcmp.gt.f32.partialorder %v18171_v53, 0.0  ;;  %v16150_v11 = vsel %vm5550_vm11, %v18158_v58, %v5806_v63  ;;  %v18172_v25 = vld [vmem:[#allocation163_spill] sm:$0xff]  ;;  %v18173_v37 = vld [vmem:[#allocation169_spill] sm:$0xff]  ;;  %v18175_v27 = vld [vmem:[#allocation80_spill] sm:$0xff] }
 0x623   : > { %vm5627_vm5 = vcmp.gt.f32.partialorder %v18172_v25, 0.0  ;;  %vm5631_vm6 = vcmp.gt.f32.partialorder %v18173_v37, 0.0  ;;  %v16167_v63 = vsel %vm5567_vm14, %v18122_v39, %v18175_v27  ;;  %v18176_v58 = vld [vmem:[#allocation26_spill] sm:$0xff]  ;;  %vm18177_vm8 = vcmp.gt.f32.partialorder %v18120_v12, 0.0  ;;  %v18178_v43 = vld [vmem:[#allocation119_spill] sm:$0xff]  ;;  %v10763_v55 = vld [vmem:[%s18019_s23 + $0x40] sm:$0xff]  }
 0x624   : > { %v16173_v31 = vsel %vm18177_vm8, %v18120_v12, %v18176_v58  ;;  %vm18179_vm3 = vcmp.gt.f32.partialorder %v18121_v24, 0.0  ;;  %v18181_v27 = vld [vmem:[#allocation82_spill] sm:$0xff]  ;;  %vm18182_vm14 = vcmp.gt.f32.partialorder %v18124_v56, 0.0  ;;  %vm18184_vm11 = vcmp.gt.f32.partialorder %v18125_v18, 0.0  ;;  %v18185_v58 = vld [vmem:[#allocation121_spill] sm:$0xff]  ;;  %8285 = vmatpush1.bf16.msra.mxu0 %v10763_v55  ;;  %v18191_v1 = vld [vmem:[#allocation128_spill] sm:$0xff] }
 0x625   : > { %v16179_v50 = vsel %vm18179_vm3, %v18121_v24, %v18178_v43  ;;  %v16195_v24 = vsel %vm18182_vm14, %v18124_v56, %v18181_v27  ;;  %v18183_v43 = vld [vmem:[#allocation125_spill] sm:$0xff]  ;;  %vm18186_vm8 = vcmp.gt.f32.partialorder %v18130_v42, 0.0  ;;  %v18187_v12 = vld [vmem:[#allocation90_spill] sm:$0xff]  ;;  %vm18188_vm3 = vcmp.gt.f32.partialorder %v18131_v54, 0.0  ;;  %v18189_v27 = vld [vmem:[#allocation68_spill] sm:$0xff]  ;;  %8286 = vmatprep.subr.bf16.mxu0 %v18028_v46 }
 0x626   : > { %v16201_v44 = vsel %vm18184_vm11, %v18125_v18, %v18183_v43  ;;  %v16209_v45 = vsel %vm18186_vm8, %v18130_v42, %v18185_v58  ;;  %v16215_v56 = vsel %vm18188_vm3, %v18131_v54, %v18187_v12  ;;  %vm18190_vm14 = vcmp.gt.f32.partialorder %v18132_v49, 0.0  ;;  %v18193_v58 = vld [vmem:[#allocation93_spill] sm:$0xff]  ;;  %v18195_v12 = vld [vmem:[#allocation66_spill] sm:$0xff] }
 0x627   : > { %v16221_v18 = vsel %vm18190_vm14, %v18132_v49, %v18189_v27  ;;  %vm18192_vm11 = vcmp.gt.f32.partialorder %v18137_v36, 0.0  ;;  %vm18194_vm8 = vcmp.gt.f32.partialorder %v18135_v47, 0.0  ;;  %vm18196_vm3 = vcmp.gt.f32.partialorder %v18136_v16, 0.0  ;;  %v18199_v27 = vld [vmem:[#allocation110_spill] sm:$0xff]  ;;  %v18203_v55 = vld [vmem:[#allocation133_spill] sm:$0xff] }
 0x628   : > { %v16229_v42 = vsel %vm18192_vm11, %v18137_v36, %v18191_v1  ;;  %v16235_v54 = vsel %vm18194_vm8, %v18135_v47, %v18193_v58  ;;  %v16241_v49 = vsel %vm18196_vm3, %v18136_v16, %v18195_v12  ;;  %v18197_v1 = vld [vmem:[#allocation109_spill] sm:$0xff]  ;;  %vm18198_vm14 = vcmp.gt.f32.partialorder %v18141_v5, 0.0  ;;  %v18201_v12 = vld [vmem:[#allocation132_spill] sm:$0xff]  ;;  %v18205_v58 = vld [vmem:[#allocation139_spill] sm:$0xff] }
 0x629   : > { %v16252_v47 = vsel %vm18198_vm14, %v18141_v5, %v18197_v1  ;;  %vm18200_vm11 = vcmp.gt.f32.partialorder %v18142_v33, 0.0  ;;  %vm18202_vm8 = vcmp.gt.f32.partialorder %v18146_v28, 0.0  ;;  %v16272_v5 = vsel %vm5590_vm1, %v18147_v22, %v18203_v55  ;;  %v18204_v1 = vld [vmem:[#allocation134_spill] sm:$0xff]  ;;  %v18209_v55 = vld [vmem:[#allocation137_spill] sm:$0xff] }
 0x62a   : > { %v16258_v16 = vsel %vm18200_vm11, %v18142_v33, %v18199_v27  ;;  %v16266_v36 = vsel %vm18202_vm8, %v18146_v28, %v18201_v12  ;;  %v16278_v33 = vsel %vm5595_vm9, %v18148_v3, %v18204_v1  ;;  %vm18206_vm3 = vcmp.gt.f32.partialorder %v15034_v51, 0.0  ;;  %v18207_v12 = vld [vmem:[#allocation111_spill] sm:$0xff] }
 0x62b   : > { %v16286_v28 = vsel %vm18206_vm3, %v15034_v51, %v18205_v58  ;;  %vm18208_vm1 = vcmp.gt.f32.partialorder %v18150_v59, 0.0  ;;  %vm18210_vm9 = vcmp.gt.f32.partialorder %v15025_v41, 0.0  ;;  %v18211_v51 = vld [vmem:[#allocation144_spill] sm:$0xff]  ;;  %vm18212_vm14 = vcmp.gt.f32.partialorder %v18154_v52, 0.0  ;;  %v18215_v27 = vld [vmem:[#allocation143_spill] sm:$0xff] }
 0x62c   : > { %v16292_v22 = vsel %vm18208_vm1, %v18150_v59, %v18207_v12  ;;  %v16298_v3 = vsel %vm18210_vm9, %v15025_v41, %v18209_v55  ;;  %v16308_v58 = vsel %vm18212_vm14, %v18154_v52, %v18211_v51  ;;  %v18213_v59 = vld [vmem:[#allocation147_spill] sm:$0xff]  ;;  %v18214_v41 = vpack.c.bf16 %v15806_v21, %v15801_v23  ;;  %v18216_v52 = vld [vmem:[#allocation145_spill] sm:$0xff]  ;;  %v18230_v55 = vld [vmem:[#allocation154_spill] sm:$0xff] }
 0x62d   : > { %v16314_v12 = vsel %vm5607_vm12, %v18155_v26, %v18213_v59  ;;  %v16325_v1 = vsel %vm5602_vm15, %v18159_v40, %v18215_v27  ;;  %vm18217_vm11 = vcmp.gt.f32.partialorder %v18160_v6, 0.0  ;;  %v18218_v26 = vld [vmem:[#allocation152_spill] sm:$0xff]  ;;  %v18219_v21 = vpack.c.bf16 %v15886_v17, %v15883_v13  ;;  %v18220_v27 = vld [vmem:[#allocation155_spill] sm:$0xff] }
 0x62e   : > { %7029 = vmatmul.mubr.bf16.gmra.mrb[20].mxu1 %v18214_v41  ;;  %v16331_v51 = vsel %vm18217_vm11, %v18160_v6, %v18216_v52  ;;  %v16337_v23 = vsel %vm5611_vm13, %v18161_v4, %v18218_v26  ;;  %v16348_v59 = vsel %vm5615_vm0, %v18165_v9, %v18220_v27  ;;  %v18221_v6 = vld [vmem:[#allocation149_spill] sm:$0xff]  ;;  %v18223_v9 = vld [vmem:[#allocation160_spill] sm:$0xff]  ;;  %v5895_v52 = vmul.f32 0.01, %v15544_v29 }
 0x62f   : > { %7038 = vmatprep.mubr.bf16.mxu1 %v18219_v21  ;;  %v16354_v41 = vsel %vm5610_vm10, %v18163_v38, %v18221_v6  ;;  %v18222_v4 = vld [vmem:[#allocation153_spill] sm:$0xff]  ;;  %v16370_v26 = vsel %vm5619_vm4, %v18170_v57, %v18223_v9  ;;  %v18224_v38 = vld [vmem:[#allocation166_spill] sm:$0xff]  ;;  %v18225_v27 = vld [vmem:[#allocation168_spill] sm:$0xff]  ;;  %vm5639_vm13 = vcmp.gt.f32.partialorder %v15544_v29, 0.0  ;;  %v18232_v9 = vpack.c.bf16 %v15902_v14, %v15898_v61 }
 0x630   : > { %v16360_v13 = vsel %vm5614_vm2, %v18164_v10, %v18222_v4  ;;  %v16376_v21 = vsel %vm5623_vm7, %v18171_v53, %v18224_v38  ;;  %v16384_v6 = vsel %vm5627_vm5, %v18172_v25, %v18225_v27  ;;  %v18226_v4 = vld [vmem:[#allocation173_spill] sm:$0xff]  ;;  %v18227_v53 = vld [vmem:[#allocation71_spill] sm:$0xff]  ;;  %v18229_v17 = vld [vmem:[#allocation28_spill] sm:$0xff]  ;;  %v16417_v43 = vsel %vm5639_vm13, %v15544_v29, %v5895_v52 }
 0x631   : > { %v16390_v57 = vsel %vm5631_vm6, %v18173_v37, %v18226_v4  ;;  %v5891_v38 = vmul.f32 0.01, %v18227_v53  ;;  %v18228_v10 = vld [vmem:[#allocation151_spill] sm:$0xff]  ;;  %v5114_v25 = vmul.f32 %v18229_v17, %v18230_v55  ;;  %vm5635_vm12 = vcmp.gt.f32.partialorder %v18227_v53, 0.0  ;;  %v10764_v55 = vld [vmem:[%s18019_s23 + $0x48] sm:$0xff]  }
 0x632   : > { %v5110_v40 = vmul.f32 %v18229_v17, %v18228_v10  ;;  %v18231_v37 = vpack.c.bf16 %v15838_v2, %v15820_v48  ;;  %8287 = vmatpush1.bf16.msra.mxu0 %v10764_v55  ;;  %v18234_v61 = vld [vmem:[#allocation159_spill] sm:$0xff]  ;;  %v18236_v29 = vpack.c.bf16 %v15891_v32, %v15857_v34  ;;  %v18241_v32 = vld [vmem:[#allocation170_spill] sm:$0xff] }
 0x633   : > { %v5391_v4 = vadd.f32 %v13396_v7, %v5114_v25  ;;  %v16414_v10 = vsel %vm5635_vm12, %v18227_v53, %v5891_v38  ;;  %8288 = vmatprep.subr.bf16.mxu0 %v18028_v46  ;;  %v5118_v14 = vmul.f32 %v18229_v17, %v18234_v61  ;;  %v18237_v38 = vld [vmem:[#allocation21_spill] sm:$0xff] }
 0x634   : > { %v5387_v27 = vadd.f32 %v13396_v7, %v5110_v40  ;;  %18233 = vst [vmem:[#allocation120_spill] sm:$0xff] %v16414_v10  ;;  %v18240_v10 = vld [vmem:[#allocation167_spill] sm:$0xff] }
 0x635   : > { %v5903_v40 = vmul.f32 0.01, %v5391_v4  ;;  %vm5647_vm15 = vcmp.gt.f32.partialorder %v5391_v4, 0.0  ;;  %v5395_v52 = vadd.f32 %v13396_v7, %v5118_v14  ;;  %v5126_v34 = vmul.f32 %v18229_v17, %v18240_v10  ;;  %v10765_v10 = vld [vmem:[%s18019_s23 + $0x50] sm:$0xff]  }
 0x636   : > { %7039 = vmatmul.mubr.bf16.gmra.mrb[24].mxu1 %v18231_v37  ;;  %v5899_v2 = vmul.f32 0.01, %v5387_v27  ;;  %vm5643_vm0 = vcmp.gt.f32.partialorder %v5387_v27, 0.0  ;;  %v18238_v37 = vld [vmem:[#allocation25_spill] sm:$0xff]  ;;  %v5130_v14 = vmul.f32 %v18229_v17, %v18241_v32  ;;  %8289 = vmatpush1.bf16.msra.mxu0 %v10765_v10 }
 0x637   : > { %7048 = vmatprep.mubr.bf16.mxu1 %v18232_v9  ;;  %v18235_v9 = vld [vmem:[#allocation162_spill] sm:$0xff]  ;;  %v18239_v55 = vpack.c.bf16 %v18237_v38, %v18238_v37  ;;  %v16436_v61 = vsel %vm5647_vm15, %v5391_v4, %v5903_v40  ;;  %v5907_v39 = vmul.f32 0.01, %v5395_v52  ;;  %vm5651_vm10 = vcmp.gt.f32.partialorder %v5395_v52, 0.0  ;;  %8290 = vmatprep.subr.bf16.mxu0 %v18028_v46 }
 0x638   : > { %v5122_v25 = vmul.f32 %v18229_v17, %v18235_v9  ;;  %v16434_v48 = vsel %vm5643_vm0, %v5387_v27, %v5899_v2  ;;  %v5403_v27 = vadd.f32 %v13396_v7, %v5126_v34  ;;  %v5407_v4 = vadd.f32 %v13396_v7, %v5130_v14  ;;  %v18245_v2 = vld [vmem:[#allocation32_spill] sm:$0xff]  ;;  %v18246_v40 = vld [vmem:[#allocation30_spill] sm:$0xff] }
 0x639   : > { %v18247_v37 = vpack.c.bf16 %v18245_v2, %v18246_v40  ;;  %v18252_v40 = vld [vmem:[#allocation34_spill] sm:$0xff] }
 0x63a   : > { %v5399_v53 = vadd.f32 %v13396_v7, %v5122_v25  ;;  %v18242_v25 = vld [vmem:[#allocation29_spill] sm:$0xff]  ;;  %v5915_v34 = vmul.f32 0.01, %v5403_v27  ;;  %v5919_v14 = vmul.f32 0.01, %v5407_v4  ;;  %vm5659_vm4 = vcmp.gt.f32.partialorder %v5403_v27, 0.0 }
 0x63b   : > { %vm5663_vm7 = vcmp.gt.f32.partialorder %v5407_v4, 0.0 }
 0x63c   : > { %v5911_v8 = vmul.f32 0.01, %v5399_v53  ;;  %vm5655_vm2 = vcmp.gt.f32.partialorder %v5399_v53, 0.0 }
 0x63e   : > { %7049 = vmatmul.mubr.bf16.gmra.mrb[28].mxu1 %v18236_v29  ;;  %v18243_v29 = vld [vmem:[#allocation27_spill] sm:$0xff]  ;;  %v16457_v32 = vsel %vm5655_vm2, %v5399_v53, %v5911_v8  ;;  %v16468_v8 = vsel %vm5659_vm4, %v5403_v27, %v5915_v34  ;;  %v18255_v53 = vld [vmem:[#allocation174_spill] sm:$0xff] }
 0x63f   : > { %7091 = vmatprep.mubr.bf16.mxu1 %v18239_v55  ;;  %v18244_v38 = vpack.c.bf16 %v18242_v25, %v18243_v29  ;;  %v16455_v55 = vsel %vm5651_vm10, %v5395_v52, %v5907_v39  ;;  %v18249_v29 = vld [vmem:[#allocation31_spill] sm:$0xff]  ;;  %v16470_v52 = vsel %vm5663_vm7, %v5407_v4, %v5919_v14  ;;  %v5134_v10 = vmul.f32 %v18229_v17, %v18255_v53  ;;  %v18260_v27 = vld [vmem:[#allocation38_spill] sm:$0xff]  ;;  %v18261_v4 = vld [vmem:[#allocation37_spill] sm:$0xff] }
 0x640   : > { %18248 = vst [vmem:[#allocation97_spill] sm:$0xff] %v16455_v55  ;;  %v18256_v25 = vld [vmem:[#allocation175_spill] sm:$0xff]  ;;  %v18262_v34 = vpack.c.bf16 %v18260_v27, %v18261_v4  ;;  %v18268_v27 = vld [vmem:[#allocation42_spill] sm:$0xff]  ;;  %v18269_v4 = vld [vmem:[#allocation41_spill] sm:$0xff] }
 0x641   : > { %v5138_v9 = vmul.f32 %v18229_v17, %v18256_v25  ;;  %v10766_v14 = vld [vmem:[%s18019_s23 + $0x58] sm:$0xff]  }
 0x642   : > { %8291 = vmatpush1.bf16.msra.mxu0 %v10766_v14  ;;  %v5142_v14 = vmul.f32 %v18229_v17, %v15607_v62 }
 0x643   : > { %8292 = vmatprep.subr.bf16.mxu0 %v18028_v46 }
 0x646   : > { %7092 = vmatmul.mubr.bf16.vlgmr.msra.gmra.mrb[160].mxu1 %v18244_v38  ;;  %v18250_v38 = vld [vmem:[#allocation24_spill] sm:$0xff] }
 0x647   : > { %7101 = vmatprep.mubr.bf16.mxu1 %v18247_v37  ;;  %v18251_v2 = vpack.c.bf16 %v18249_v29, %v18250_v38  ;;  %v18253_v37 = vld [vmem:[#allocation33_spill] sm:$0xff]  ;;  %v5411_v29 = vadd.f32 %v13396_v7, %v5134_v10  ;;  %v5415_v38 = vadd.f32 %v13396_v7, %v5138_v9  ;;  %v5419_v10 = vadd.f32 %v13396_v7, %v5142_v14 }
 0x648   : > { %v18254_v39 = vpack.c.bf16 %v18252_v40, %v18253_v37  ;;  %v18258_v40 = vld [vmem:[#allocation35_spill] sm:$0xff]  ;;  %v18281_v14 = vld [vmem:[#allocation49_spill] sm:$0xff] }
 0x649   : > { %v5923_v25 = vmul.f32 0.01, %v5411_v29  ;;  %vm5667_vm5 = vcmp.gt.f32.partialorder %v5411_v29, 0.0  ;;  %vm5671_vm6 = vcmp.gt.f32.partialorder %v5415_v38, 0.0  ;;  %v5931_v62 = vmul.f32 0.01, %v5419_v10 }
 0x64a   : > { %vm5675_vm8 = vcmp.gt.f32.partialorder %v5419_v10, 0.0 }
 0x64b   : > { %v16490_v9 = vsel %vm5667_vm5, %v5411_v29, %v5923_v25  ;;  %v5146_v29 = vmul.f32 %v18229_v17, %v15622_v15  ;;  %v18271_v25 = vld [vmem:[#allocation44_spill] sm:$0xff] }
 0x64c   : > { %18263 = vst [vmem:[#allocation77_spill] sm:$0xff] %v16490_v9  ;;  %v18277_v17 = vld [vmem:[#allocation48_spill] sm:$0xff]  ;;  %v18287_v9 = vld [vmem:[#allocation53_spill] sm:$0xff] }
 0x64d   : > { %v5423_v55 = vadd.f32 %v13396_v7, %v5146_v29  ;;  %v18280_v7 = vld [vmem:[#allocation50_spill] sm:$0xff] }
 0x64e   : > { %7102 = vmatmul.mubr.bf16.gmra.mrb[164].mxu1 %v18251_v2  ;;  %v18257_v2 = vld [vmem:[#allocation36_spill] sm:$0xff]  ;;  %v18282_v29 = vpack.c.bf16 %v18280_v7, %v18281_v14  ;;  %v18295_v7 = vld [vmem:[#allocation58_spill] sm:$0xff]  ;;  %v18296_v14 = vld [vmem:[#allocation57_spill] sm:$0xff] }
 0x64f   : > { %7111 = vmatprep.mubr.bf16.mxu1 %v18254_v39  ;;  %v18259_v37 = vpack.c.bf16 %v18257_v2, %v18258_v40  ;;  %v5927_v39 = vmul.f32 0.01, %v5415_v38  ;;  %v18265_v2 = vld [vmem:[#allocation40_spill] sm:$0xff]  ;;  %v18266_v40 = vld [vmem:[#allocation39_spill] sm:$0xff]  ;;  %v5935_v15 = vmul.f32 0.01, %v5423_v55 }
 0x650   : > { %vm5679_vm3 = vcmp.gt.f32.partialorder %v5423_v55, 0.0 }
 0x651   : > { %v16492_v53 = vsel %vm5671_vm6, %v5415_v38, %v5927_v39  ;;  %v18272_v38 = vld [vmem:[#allocation43_spill] sm:$0xff] }
 0x652   : > { %18264 = vst [vmem:[#allocation79_spill] sm:$0xff] %v16492_v53  ;;  %v18273_v39 = vpack.c.bf16 %v18271_v25, %v18272_v38  ;;  %v16524_v25 = vsel %vm5675_vm8, %v5419_v10, %v5931_v62  ;;  %v16526_v38 = vsel %vm5679_vm3, %v5423_v55, %v5935_v15  ;;  %v18289_v55 = vld [vmem:[#allocation56_spill] sm:$0xff]  ;;  %v18290_v10 = vld [vmem:[#allocation55_spill] sm:$0xff] }
 0x653   : > { %v18291_v62 = vpack.c.bf16 %v18289_v55, %v18290_v10  ;;  %v18292_v15 = vld [vmem:[#allocation59_spill] sm:$0xff]  ;;  %v18304_v55 = vld [vmem:[#allocation85_spill] sm:$0xff] }
 0x654   : > { %v18305_v10 = vld [vmem:[#allocation83_spill] sm:$0xff] }
 0x656   : > { %7112 = vmatmul.mubr.bf16.gmra.mrb[168].mxu1 %v18259_v37  ;;  %v18267_v37 = vpack.c.bf16 %v18265_v2, %v18266_v40  ;;  %v18274_v2 = vld [vmem:[#allocation46_spill] sm:$0xff]  ;;  %v18275_v40 = vld [vmem:[#allocation45_spill] sm:$0xff] }
 0x657   : > { %7121 = vmatprep.mubr.bf16.mxu1 %v18262_v34  ;;  %v18270_v34 = vpack.c.bf16 %v18268_v27, %v18269_v4  ;;  %v10767_v27 = vld [vmem:[%s18019_s23 + $0x60] sm:$0xff]   ;;  %v18278_v4 = vld [vmem:[#allocation47_spill] sm:$0xff] }
 0x658   : > { %8293 = vmatpush1.bf16.msra.mxu0 %v10767_v27  ;;  %v18286_v27 = vld [vmem:[#allocation54_spill] sm:$0xff] }
 0x659   : > { %8294 = vmatprep.subr.bf16.mxu0 %v18028_v46  ;;  %v18288_v53 = vpack.c.bf16 %v18286_v27, %v18287_v9  ;;  %v18298_v9 = vld [vmem:[#allocation63_spill] sm:$0xff]  ;;  %v18302_v27 = vld [vmem:[#allocation73_spill] sm:$0xff] }
 0x65e   : > { %7122 = vmatmul.mubr.bf16.gmra.mrb[172].mxu1 %v18267_v37  ;;  %v18276_v37 = vpack.c.bf16 %v18274_v2, %v18275_v40  ;;  %v18283_v2 = vld [vmem:[#allocation52_spill] sm:$0xff]  ;;  %v18284_v40 = vld [vmem:[#allocation51_spill] sm:$0xff] }
 0x65f   : > { %7131 = vmatprep.mubr.bf16.mxu1 %v18270_v34  ;;  %v18279_v34 = vpack.c.bf16 %v18277_v17, %v18278_v4  ;;  %v10768_v17 = vld [vmem:[%s18019_s23 + $0x68] sm:$0xff]   ;;  %v18293_v4 = vld [vmem:[#allocation60_spill] sm:$0xff] }
 0x660   : > { %8295 = vmatpush1.bf16.msra.mxu0 %v10768_v17 }
 0x661   : > { %8296 = vmatprep.subr.bf16.mxu0 %v18028_v46 }
 0x666   : > { %7132 = vmatmul.mubr.bf16.gmra.mrb[176].mxu1 %v18273_v39  ;;  %v6321_v39 = vpack.c.bf16 %v16526_v38, %v16524_v25 }
 0x667   : > { %7141 = vmatprep.mubr.bf16.mxu1 %v18276_v37  ;;  %v18285_v37 = vpack.c.bf16 %v18283_v2, %v18284_v40  ;;  %v10769_v40 = vld [vmem:[%s18019_s23 + $0x70] sm:$0xff]  }
 0x668   : > { %8297 = vmatpush1.bf16.msra.mxu0 %v10769_v40  ;;  %v18316_v40 = vld [vmem:[#allocation95_spill] sm:$0xff] }
 0x669   : > { %8298 = vmatprep.subr.bf16.mxu0 %v18028_v46  ;;  %v10770_v46 = vld [vmem:[%s18019_s23 + $0x78] sm:$0xff]  }
 0x66c   : > { %8299 = vmatpush1.bf16.msra.mxu0 %v10770_v46  ;;  %v18329_v46 = vld [vmem:[#allocation113_spill] sm:$0xff] }
 0x66e   : > { %7142 = vmatmul.mubr.bf16.gmra.mrb[180].mxu1 %v18279_v34  ;;  %v18294_v34 = vpack.c.bf16 %v18292_v15, %v18293_v4  ;;  %v18307_v15 = vld [vmem:[#allocation84_spill] sm:$0xff]  ;;  %v18308_v4 = vld [vmem:[#allocation81_spill] sm:$0xff] }
 0x66f   : > { %7151 = vmatprep.mubr.bf16.mxu1 %v18282_v29  ;;  %v18297_v29 = vpack.c.bf16 %v18295_v7, %v18296_v14  ;;  %v18310_v7 = vld [vmem:[#allocation89_spill] sm:$0xff]  ;;  %v18311_v14 = vld [vmem:[#allocation87_spill] sm:$0xff] }
 0x676   : > { %7152 = vmatmul.mubr.bf16.gmra.mrb[184].mxu1 %v18285_v37  ;;  %v18301_v37 = vld [vmem:[#allocation72_spill] sm:$0xff] }
 0x677   : > { %7161 = vmatprep.mubr.bf16.mxu1 %v18288_v53  ;;  %v18299_v53 = vld [vmem:[#allocation62_spill] sm:$0xff]  ;;  %v18303_v17 = vpack.c.bf16 %v18301_v37, %v18302_v27  ;;  %v18317_v37 = vld [vmem:[#allocation92_spill] sm:$0xff] }
 0x678   : > { %v18300_v2 = vpack.c.bf16 %v18298_v9, %v18299_v53  ;;  %v18313_v9 = vld [vmem:[#allocation88_spill] sm:$0xff]  ;;  %v18314_v53 = vld [vmem:[#allocation86_spill] sm:$0xff]  ;;  %v18318_v27 = vpack.c.bf16 %v18316_v40, %v18317_v37 }
 0x679   : > { %v18334_v37 = vld [vmem:[#allocation114_spill] sm:$0xff] }
 0x67e   : > { %7162 = vmatmul.mubr.bf16.gmra.mrb[188].mxu1 %v18291_v62  ;;  %v18306_v62 = vpack.c.bf16 %v18304_v55, %v18305_v10  ;;  %v18320_v55 = vld [vmem:[#allocation91_spill] sm:$0xff] }
 0x67f   : > { %7171 = vmatprep.mubr.bf16.mxu1 %v18294_v34  ;;  %v18309_v34 = vpack.c.bf16 %v18307_v15, %v18308_v4  ;;  %v18323_v15 = vld [vmem:[#allocation103_spill] sm:$0xff] }
 0x686   : > { %7172 = vmatmul.mubr.bf16.gmra.mrb[192].mxu1 %v18297_v29  ;;  %v18312_v29 = vpack.c.bf16 %v18310_v7, %v18311_v14  ;;  %v18326_v7 = vld [vmem:[#allocation61_spill] sm:$0xff] }
 0x687   : > { %7181 = vmatprep.mubr.bf16.mxu1 %v18300_v2  ;;  %v18315_v2 = vpack.c.bf16 %v18313_v9, %v18314_v53  ;;  %v18331_v53 = vld [vmem:[#allocation64_spill] sm:$0xff] }
 0x68e   : > { %7182 = vmatmul.mubr.bf16.gmra.mrb[196].mxu1 %v18303_v17  ;;  %v18319_v17 = vld [vmem:[#allocation94_spill] sm:$0xff] }
 0x68f   : > { %7191 = vmatprep.mubr.bf16.mxu1 %v18306_v62  ;;  %v18321_v10 = vpack.c.bf16 %v18319_v17, %v18320_v55  ;;  %v18322_v62 = vld [vmem:[#allocation67_spill] sm:$0xff]  ;;  %v18337_v55 = vpack.c.bf16 %v16150_v11, %v16145_v0  ;;  %v18342_v0 = vpack.c.bf16 %v16201_v44, %v16195_v24  ;;  %v18348_v11 = vpack.c.bf16 %v16286_v28, %v16278_v33 }
 0x690   : > { %v18324_v4 = vpack.c.bf16 %v18322_v62, %v18323_v15  ;;  %v18339_v62 = vpack.c.bf16 %v16132_v30, %v16126_v19  ;;  %v18340_v15 = vpack.c.bf16 %v16167_v63, %v16138_v35  ;;  %v18344_v19 = vpack.c.bf16 %v16229_v42, %v16221_v18  ;;  %v18356_v18 = vld [vmem:[#allocation108_spill] sm:$0xff]  ;;  %v6192_v28 = vld [vmem:[%s837_s8] sm:$0x3]  ;;  %s17188_s8 = scalar_lea.vmem %s18394_s18, %s10063_s20 }
 0x691   : > { %v18345_v35 = vpack.c.bf16 %v16241_v49, %v16235_v54  ;;  %v18347_v30 = vpack.c.bf16 %v16272_v5, %v16266_v36  ;;  %v18350_v63 = vpack.c.bf16 %v16314_v12, %v16308_v58  ;;  %v18352_v24 = vpack.c.bf16 %v16348_v59, %v16337_v23  ;;  %v16658_v49 = vld [vmem:[%s18359_s2] sm:$0xff]   ;;  %v18360_v36 = vld [vmem:[#allocation142_spill] sm:$0xff]  ;;  %v18368_v12 = vld [vmem:[#allocation23_spill] sm:$0xff] }
 0x692   : > { %v18353_v44 = vpack.c.bf16 %v16360_v13, %v16354_v41  ;;  %v18358_v54 = vpack.c.bf16 %v16390_v57, %v16384_v6  ;;  %10105 = vmatprep.subr.bf16.mxu0 %v16658_v49  ;;  %v18363_v5 = vld [vmem:[#allocation120_spill] sm:$0xff]  ;;  %v18369_v23 = vpack.c.bf16 %v16436_v61, %v16434_v48  ;;  %v18370_v59 = vld [vmem:[#allocation22_spill] sm:$0xff] }
 0x693   : > { %v18364_v33 = vpack.c.bf16 %v16417_v43, %v18363_v5  ;;  %v16679_v41 = vrot.slane %v6192_v28, %v18370_v59  ;;  %v18379_v5 = vpack.c.bf16 %v16470_v52, %v16468_v8 }
 0x696   : > { %7192 = vmatmul.mubr.bf16.gmra.mrb[200].mxu1 %v18309_v34  ;;  %v18325_v34 = vld [vmem:[#allocation105_spill] sm:$0xff] }
 0x697   : > { %7201 = vmatprep.mubr.bf16.mxu1 %v18312_v29  ;;  %v18327_v14 = vpack.c.bf16 %v18325_v34, %v18326_v7  ;;  %v18328_v29 = vld [vmem:[#allocation96_spill] sm:$0xff] }
 0x698   : > { %v18330_v9 = vpack.c.bf16 %v18328_v29, %v18329_v46 }
 0x69e   : > { %7202 = vmatmul.mubr.bf16.gmra.mrb[204].mxu1 %v18315_v2  ;;  %v18332_v2 = vld [vmem:[#allocation98_spill] sm:$0xff] }
 0x69f   : > { %7211 = vmatprep.mubr.bf16.mxu1 %v18318_v27  ;;  %v18333_v40 = vpack.c.bf16 %v18331_v53, %v18332_v2  ;;  %v18335_v27 = vld [vmem:[#allocation107_spill] sm:$0xff]  ;;  %v18371_v53 = vld [vmem:[#allocation165_spill] sm:$0xff]  ;;  %v18372_v2 = vld [vmem:[#allocation164_spill] sm:$0xff] }
 0x6a0   : > { %v18336_v17 = vpack.c.bf16 %v18334_v37, %v18335_v27 }
 0x6a6   : > { %7212 = vmatmul.mubr.bf16.gmra.mrb[208].mxu1 %v18321_v10  ;;  %v18338_v10 = vpack.c.bf16 %v16120_v60, %v16111_v20  ;;  %v18343_v60 = vpack.c.bf16 %v16215_v56, %v16209_v45  ;;  %v18346_v20 = vpack.c.bf16 %v16258_v16, %v16252_v47  ;;  %v18354_v45 = vpack.c.bf16 %v16376_v21, %v16370_v26  ;;  %v18355_v56 = vld [vmem:[#allocation131_spill] sm:$0xff]  ;;  %v18361_v47 = vld [vmem:[#allocation141_spill] sm:$0xff] }
 0x6a7   : > { %7221 = vmatprep.mubr.bf16.mxu1 %v18324_v4  ;;  %v18341_v4 = vpack.c.bf16 %v16179_v50, %v16173_v31  ;;  %v18349_v31 = vpack.c.bf16 %v16298_v3, %v16292_v22  ;;  %v18351_v50 = vpack.c.bf16 %v16331_v51, %v16325_v1  ;;  %v18357_v42 = vpack.c.bf16 %v18355_v56, %v18356_v18  ;;  %v6193_v22 = vld [vmem:[%s846_s10] sm:$0x3]  ;;  %v18365_v3 = vld [vmem:[#allocation158_spill] sm:$0xff]  ;;  %v18366_v1 = vld [vmem:[#allocation157_spill] sm:$0xff] }
 0x6a8   : > { %v18362_v16 = vpack.c.bf16 %v18360_v36, %v18361_v47  ;;  %v18367_v58 = vpack.c.bf16 %v18365_v3, %v18366_v1  ;;  %v16673_v51 = vrot.slane %v6192_v28, %v18368_v12  ;;  %v16682_v43 = vrot.slane %v6193_v22, %v18368_v12 }
 0x6a9   : > { %v16685_v26 = vrot.slane %v6193_v22, %v18370_v59 }
 0x6ae   : > { %7222 = vmatmul.mubr.bf16.gmra.mrb[212].mxu1 %v18327_v14 }
 0x6af   : > { %7231 = vmatprep.mubr.bf16.mxu1 %v18330_v9 }
 0x6b6   : > { %7232 = vmatmul.mubr.bf16.gmra.mrb[216].mxu1 %v18333_v40  ;;  %v18373_v40 = vpack.c.bf16 %v18371_v53, %v18372_v2 }
 0x6b7   : > { %7241 = vmatprep.mubr.bf16.mxu1 %v18336_v17  ;;  %v18374_v17 = vld [vmem:[#allocation97_spill] sm:$0xff] }
 0x6be   : > { %7242 = vmatmul.mubr.bf16.gmra.mrb[220].mxu1 %v18337_v55  ;;  %v18375_v55 = vpack.c.bf16 %v16457_v32, %v18374_v17 }
 0x6bf   : > { %7251 = vmatprep.mubr.bf16.mxu1 %v18338_v10 }
 0x6c6   : > { %7252 = vmatmul.mubr.bf16.gmra.mrb[224].mxu1 %v18339_v62 }
 0x6c7   : > { %7261 = vmatprep.mubr.bf16.mxu1 %v18340_v15 }
 0x6ce   : > { %7262 = vmatmul.mubr.bf16.gmra.mrb[228].mxu1 %v18341_v4 }
 0x6cf   : > { %7271 = vmatprep.mubr.bf16.mxu1 %v18342_v0 }
 0x6d6   : > { %7272 = vmatmul.mubr.bf16.gmra.mrb[232].mxu1 %v18343_v60 }
 0x6d7   : > { %7281 = vmatprep.mubr.bf16.mxu1 %v18344_v19 }
 0x6de   : > { %7282 = vmatmul.mubr.bf16.gmra.mrb[236].mxu1 %v18345_v35 }
 0x6df   : > { %7291 = vmatprep.mubr.bf16.mxu1 %v18346_v20 }
 0x6e6   : > { %7292 = vmatmul.mubr.bf16.gmra.mrb[240].mxu1 %v18347_v30 }
 0x6e7   : > { %7301 = vmatprep.mubr.bf16.mxu1 %v18348_v11 }
 0x6ee   : > { %7302 = vmatmul.mubr.bf16.gmra.mrb[244].mxu1 %v18349_v31 }
 0x6ef   : > { %7311 = vmatprep.mubr.bf16.mxu1 %v18350_v63 }
 0x6f6   : > { %7312 = vmatmul.mubr.bf16.gmra.mrb[248].mxu1 %v18351_v50 }
 0x6f7   : > { %7321 = vmatprep.mubr.bf16.mxu1 %v18352_v24 }
 0x6fe   : > { %7322 = vmatmul.mubr.bf16.gmra.mrb[252].mxu1 %v18353_v44 }
 0x6ff   : > { %7331 = vmatprep.mubr.bf16.mxu1 %v18354_v45 }
 0x706   : > { %7332 = vmatmul.mubr.bf16.gmra.mrb[0].mxu1 %v18357_v42  ;;  %v18376_v42 = vld [vmem:[#allocation172_spill] sm:$0xff] }
 0x707   : > { %7341 = vmatprep.mubr.bf16.mxu1 %v18358_v54  ;;  %v18377_v54 = vld [vmem:[#allocation171_spill] sm:$0xff] }
 0x708   : > { %v18378_v36 = vpack.c.bf16 %v18376_v42, %v18377_v54 }
 0x70e   : > { %7342 = vmatmul.mubr.bf16.gmra.mrb[4].mxu1 %v18362_v16 }
 0x70f   : > { %7351 = vmatprep.mubr.bf16.mxu1 %v18364_v33 }
 0x716   : > { %7352 = vmatmul.mubr.bf16.gmra.mrb[8].mxu1 %v18367_v58 }
 0x717   : > { %7361 = vmatprep.mubr.bf16.mxu1 %v18369_v23 }
 0x719   : > { %v7093_v13 = vpop.f32.mrb[160].mxu1 }
 0x71a   : > { %v7423_v21 = vmul.f32 %v16673_v51, %v7093_v13  ;;  %v7095_v6 = vpop.f32.mrb[161].mxu1 }
 0x71b   : > { %v7424_v57 = vmul.f32 %v16679_v41, %v7095_v6  ;;  %v7097_v34 = vpop.f32.mrb[162].mxu1 }
 0x71c   : > { %v7562_v7 = vadd.f32 %v16682_v43, %v7423_v21  ;;  %v7425_v48 = vmul.f32 %v16673_v51, %v7097_v34  ;;  %v7099_v61 = vpop.f32.mrb[163].mxu1  ;;  %v10772_v21 = vld [vmem:[%s18359_s2 + $0x8] sm:$0xff]  }
 0x71d   : > { %v7563_v14 = vadd.f32 %v16685_v26, %v7424_v57  ;;  %v7426_v29 = vmul.f32 %v16679_v41, %v7099_v61 }
 0x71e   : > { %v7818_v46 = vmul.f32 0.01, %v7562_v7  ;;  %v7564_v9 = vadd.f32 %v16682_v43, %v7425_v48  ;;  %7362 = vmatmul.mubr.bf16.gmra.mrb[12].mxu1 %v18373_v40  ;;  %vm7690_vm1 = vcmp.gt.f32.partialorder %v7562_v7, 0.0  ;;  %v18383_v40 = vld [vmem:[#allocation79_spill] sm:$0xff] }
 0x71f   : > { %v7819_v37 = vmul.f32 0.01, %v7563_v14  ;;  %v7565_v27 = vadd.f32 %v16685_v26, %v7426_v29  ;;  %7371 = vmatprep.mubr.bf16.mxu1 %v18375_v55  ;;  %vm7691_vm9 = vcmp.gt.f32.partialorder %v7563_v14, 0.0  ;;  %v18380_v29 = vld [vmem:[#allocation177_spill] sm:$0xff] }
 0x720   : > { %vm7692_vm14 = vcmp.gt.f32.partialorder %v7564_v9, 0.0  ;;  %v7820_v10 = vmul.f32 0.01, %v7564_v9  ;;  %v7946_v4 = vsel %vm7690_vm1, %v7562_v7, %v7818_v46  ;;  %v18381_v46 = vld [vmem:[#allocation176_spill] sm:$0xff] }
 0x721   : > { %vm7693_vm11 = vcmp.gt.f32.partialorder %v7565_v27, 0.0  ;;  %v7821_v62 = vmul.f32 0.01, %v7565_v27  ;;  %v7103_v15 = vpop.f32.mrb[164].mxu1  ;;  %v7947_v11 = vsel %vm7691_vm9, %v7563_v14, %v7819_v37  ;;  %v18384_v37 = vld [vmem:[#allocation77_spill] sm:$0xff] }
 0x722   : > { %v7948_v0 = vsel %vm7692_vm14, %v7564_v9, %v7820_v10  ;;  %v7427_v60 = vmul.f32 %v16673_v51, %v7103_v15  ;;  %v7105_v19 = vpop.f32.mrb[165].mxu1  ;;  %v18382_v9 = vpack.c.bf16 %v18380_v29, %v18381_v46 }
 0x723   : > { %v8076_v35 = vpack.c.bf16 %v7948_v0, %v7946_v4  ;;  %v7428_v20 = vmul.f32 %v16679_v41, %v7105_v19  ;;  %v7107_v30 = vpop.f32.mrb[166].mxu1  ;;  %v7949_v31 = vsel %vm7693_vm11, %v7565_v27, %v7821_v62  ;;  %v18385_v27 = vpack.c.bf16 %v18383_v40, %v18384_v37 }
 0x724   : > { %v7566_v32 = vadd.f32 %v16682_v43, %v7427_v60  ;;  %v7429_v63 = vmul.f32 %v16673_v51, %v7107_v30  ;;  %v7109_v50 = vpop.f32.mrb[167].mxu1  ;;  %v8077_v24 = vpack.c.bf16 %v7949_v31, %v7947_v11 }
 0x725   : > { %v7567_v44 = vadd.f32 %v16685_v26, %v7428_v20  ;;  %v7430_v45 = vmul.f32 %v16679_v41, %v7109_v50 }
 0x726   : > { %v7822_v56 = vmul.f32 0.01, %v7566_v32  ;;  %v7568_v18 = vadd.f32 %v16682_v43, %v7429_v63  ;;  %7372 = vmatmul.mubr.bf16.gmra.mrb[16].mxu1 %v18378_v36  ;;  %8300 = vmatprep.mubr.bf16.mxu0 %v8077_v24  ;;  %vm7694_vm12 = vcmp.gt.f32.partialorder %v7566_v32, 0.0 }
 0x727   : > { %v7823_v47 = vmul.f32 0.01, %v7567_v44  ;;  %v7569_v16 = vadd.f32 %v16685_v26, %v7430_v45  ;;  %7381 = vmatprep.mubr.bf16.mxu1 %v18379_v5  ;;  %8301 = vmatmul.mubr.bf16.vlgmr.msra.gmra.mrb[224].mxu0 %v8076_v35  ;;  %vm7695_vm13 = vcmp.gt.f32.partialorder %v7567_v44, 0.0 }
 0x728   : > { %vm7696_vm0 = vcmp.gt.f32.partialorder %v7568_v18, 0.0  ;;  %v7824_v33 = vmul.f32 0.01, %v7568_v18  ;;  %10106 = vmatpush3.bf16.msra.mxu0 %v16658_v49  ;;  %v7950_v58 = vsel %vm7694_vm12, %v7566_v32, %v7822_v56  ;;  %v18386_v56 = vld [vmem:[#allocation179_spill] sm:$0xff] }
 0x729   : > { %vm7697_vm15 = vcmp.gt.f32.partialorder %v7569_v16, 0.0  ;;  %v7825_v28 = vmul.f32 0.01, %v7569_v16  ;;  %v7113_v22 = vpop.f32.mrb[168].mxu1  ;;  %v7951_v13 = vsel %vm7695_vm13, %v7567_v44, %v7823_v47  ;;  %10107 = vmatprep.subr.bf16.mxu0 %v10772_v21 }
 0x72a   : > { %v7431_v3 = vmul.f32 %v16673_v51, %v7113_v22  ;;  %v7115_v1 = vpop.f32.mrb[169].mxu1  ;;  %v7952_v12 = vsel %vm7696_vm0, %v7568_v18, %v7824_v33  ;;  %v18387_v18 = vld [vmem:[#allocation178_spill] sm:$0xff] }
 0x72b   : > { %v7432_v23 = vmul.f32 %v16679_v41, %v7115_v1  ;;  %v7117_v59 = vpop.f32.mrb[170].mxu1  ;;  %v7953_v8 = vsel %vm7697_vm15, %v7569_v16, %v7825_v28  ;;  %v8078_v52 = vpack.c.bf16 %v7952_v12, %v7950_v58  ;;  %v18388_v42 = vpack.c.bf16 %v18386_v56, %v18387_v18 }
 0x72c   : > { %v7570_v49 = vadd.f32 %v16682_v43, %v7431_v3  ;;  %v7433_v6 = vmul.f32 %v16673_v51, %v7117_v59  ;;  %v7119_v57 = vpop.f32.mrb[171].mxu1  ;;  %v8079_v34 = vpack.c.bf16 %v7953_v8, %v7951_v13  ;;  %10108 = vmatpush3.bf16.msra.mxu0 %v10772_v21 }
 0x72d   : > { %v7571_v7 = vadd.f32 %v16685_v26, %v7432_v23  ;;  %v7434_v48 = vmul.f32 %v16679_v41, %v7119_v57  ;;  %v18390_v57 = vld [vmem:[#allocation180_spill] sm:$0xff] }
 0x72e   : > { %v7826_v61 = vmul.f32 0.01, %v7570_v49  ;;  %v7572_v14 = vadd.f32 %v16682_v43, %v7433_v6  ;;  %7382 = vmatmul.mubr.bf16.gmra.mrb[20].mxu1 %v18382_v9  ;;  %8308 = vmatprep.mubr.bf16.mxu0 %v8079_v34  ;;  %vm7698_vm10 = vcmp.gt.f32.partialorder %v7570_v49, 0.0  ;;  %v18389_v6 = vld [vmem:[#allocation181_spill] sm:$0xff] }
 0x72f   : > { %v7827_v53 = vmul.f32 0.01, %v7571_v7  ;;  %v7573_v2 = vadd.f32 %v16685_v26, %v7434_v48  ;;  %7391 = vmatprep.mubr.bf16.mxu1 %v18385_v27  ;;  %8309 = vmatmul.mubr.bf16.gmra.mrb[228].mxu0 %v8078_v52  ;;  %vm7699_vm2 = vcmp.gt.f32.partialorder %v7571_v7, 0.0  ;;  %v18391_v34 = vpack.c.bf16 %v18389_v6, %v18390_v57 }
 0x730   : > { %vm7700_vm4 = vcmp.gt.f32.partialorder %v7572_v14, 0.0  ;;  %v7828_v17 = vmul.f32 0.01, %v7572_v14  ;;  %v7954_v4 = vsel %vm7698_vm10, %v7570_v49, %v7826_v61 }
 0x731   : > { %vm7701_vm7 = vcmp.gt.f32.partialorder %v7573_v2, 0.0  ;;  %v7829_v55 = vmul.f32 0.01, %v7573_v2  ;;  %v7123_v10 = vpop.f32.mrb[172].mxu1  ;;  %v7955_v35 = vsel %vm7699_vm2, %v7571_v7, %v7827_v53 }
 0x732   : > { %v7435_v62 = vmul.f32 %v16673_v51, %v7123_v10  ;;  %v7125_v15 = vpop.f32.mrb[173].mxu1  ;;  %v7956_v0 = vsel %vm7700_vm4, %v7572_v14, %v7828_v17 }
 0x733   : > { %v7436_v60 = vmul.f32 %v16679_v41, %v7125_v15  ;;  %v7127_v19 = vpop.f32.mrb[174].mxu1  ;;  %v7957_v20 = vsel %vm7701_vm7, %v7573_v2, %v7829_v55  ;;  %v8080_v30 = vpack.c.bf16 %v7956_v0, %v7954_v4 }
 0x734   : > { %v7574_v11 = vadd.f32 %v16682_v43, %v7435_v62  ;;  %v7437_v31 = vmul.f32 %v16673_v51, %v7127_v19  ;;  %v7129_v32 = vpop.f32.mrb[175].mxu1  ;;  %v8081_v63 = vpack.c.bf16 %v7957_v20, %v7955_v35 }
 0x735   : > { %v7575_v50 = vadd.f32 %v16685_v26, %v7436_v60  ;;  %v7438_v24 = vmul.f32 %v16679_v41, %v7129_v32 }
 0x736   : > { %v7830_v44 = vmul.f32 0.01, %v7574_v11  ;;  %v7576_v45 = vadd.f32 %v16682_v43, %v7437_v31  ;;  %7392 = vmatmul.mubr.bf16.gmra.mrb[24].mxu1 %v18388_v42  ;;  %8316 = vmatprep.mubr.bf16.mxu0 %v8081_v63  ;;  %vm7702_vm5 = vcmp.gt.f32.partialorder %v7574_v11, 0.0 }
 0x737   : > { %v7831_v54 = vmul.f32 0.01, %v7575_v50  ;;  %v7577_v36 = vadd.f32 %v16685_v26, %v7438_v24  ;;  %7401 = vmatprep.mubr.bf16.mxu1 %v6321_v39  ;;  %8317 = vmatmul.mubr.bf16.gmra.mrb[232].mxu0 %v8080_v30  ;;  %vm7703_vm6 = vcmp.gt.f32.partialorder %v7575_v50, 0.0 }
 0x738   : > { %vm7704_vm8 = vcmp.gt.f32.partialorder %v7576_v45, 0.0  ;;  %v7832_v47 = vmul.f32 0.01, %v7576_v45  ;;  %v7958_v22 = vsel %vm7702_vm5, %v7574_v11, %v7830_v44 }
 0x739   : > { %vm7705_vm3 = vcmp.gt.f32.partialorder %v7577_v36, 0.0  ;;  %v7833_v16 = vmul.f32 0.01, %v7577_v36  ;;  %v7133_v5 = vpop.f32.mrb[176].mxu1  ;;  %v7959_v12 = vsel %vm7703_vm6, %v7575_v50, %v7831_v54 }
 0x73a   : > { %v7439_v33 = vmul.f32 %v16673_v51, %v7133_v5  ;;  %v7135_v28 = vpop.f32.mrb[177].mxu1  ;;  %v7960_v3 = vsel %vm7704_vm8, %v7576_v45, %v7832_v47 }
 0x73b   : > { %v7440_v1 = vmul.f32 %v16679_v41, %v7135_v28  ;;  %v7137_v58 = vpop.f32.mrb[178].mxu1  ;;  %v7961_v23 = vsel %vm7705_vm3, %v7577_v36, %v7833_v16  ;;  %v8082_v59 = vpack.c.bf16 %v7960_v3, %v7958_v22  ;;  %v10773_v36 = vld [vmem:[%s18359_s2 + $0x10] sm:$0xff]  }
 0x73c   : > { %v7578_v25 = vadd.f32 %v16682_v43, %v7439_v33  ;;  %v7441_v38 = vmul.f32 %v16673_v51, %v7137_v58  ;;  %v7139_v39 = vpop.f32.mrb[179].mxu1  ;;  %v8083_v13 = vpack.c.bf16 %v7961_v23, %v7959_v12  ;;  %10109 = vmatprep.subr.bf16.mxu0 %v10773_v36 }
 0x73d   : > { %v7579_v8 = vadd.f32 %v16685_v26, %v7440_v1  ;;  %v7442_v52 = vmul.f32 %v16679_v41, %v7139_v39  ;;  %10110 = vmatpush3.bf16.msra.mxu0 %v10773_v36 }
 0x73e   : > { %v7834_v21 = vmul.f32 0.01, %v7578_v25  ;;  %v7580_v49 = vadd.f32 %v16682_v43, %v7441_v38  ;;  %7402 = vmatmul.mubr.bf16.gmra.mrb[28].mxu1 %v18391_v34  ;;  %8324 = vmatprep.mubr.bf16.mxu0 %v8083_v13  ;;  %vm7706_vm1 = vcmp.gt.f32.partialorder %v7578_v25, 0.0 }
 0x73f   : > { %v7835_v7 = vmul.f32 0.01, %v7579_v8  ;;  %v7581_v48 = vadd.f32 %v16685_v26, %v7442_v52  ;;  %8325 = vmatmul.mubr.bf16.gmra.mrb[236].mxu0 %v8082_v59  ;;  %vm7707_vm9 = vcmp.gt.f32.partialorder %v7579_v8, 0.0 }
 0x740   : > { %vm7708_vm14 = vcmp.gt.f32.partialorder %v7580_v49, 0.0  ;;  %v7836_v61 = vmul.f32 0.01, %v7580_v49  ;;  %v7962_v53 = vsel %vm7706_vm1, %v7578_v25, %v7834_v21 }
 0x741   : > { %vm7709_vm11 = vcmp.gt.f32.partialorder %v7581_v48, 0.0  ;;  %v7837_v14 = vmul.f32 0.01, %v7581_v48  ;;  %v7143_v29 = vpop.f32.mrb[180].mxu1  ;;  %v7963_v27 = vsel %vm7707_vm9, %v7579_v8, %v7835_v7 }
 0x742   : > { %v7443_v46 = vmul.f32 %v16673_v51, %v7143_v29  ;;  %v7145_v9 = vpop.f32.mrb[181].mxu1  ;;  %v7964_v2 = vsel %vm7708_vm14, %v7580_v49, %v7836_v61 }
 0x743   : > { %v7444_v40 = vmul.f32 %v16679_v41, %v7145_v9  ;;  %v7147_v37 = vpop.f32.mrb[182].mxu1  ;;  %v7965_v17 = vsel %vm7709_vm11, %v7581_v48, %v7837_v14  ;;  %v8084_v55 = vpack.c.bf16 %v7964_v2, %v7962_v53 }
 0x744   : > { %v7582_v10 = vadd.f32 %v16682_v43, %v7443_v46  ;;  %v7445_v62 = vmul.f32 %v16673_v51, %v7147_v37  ;;  %v7149_v15 = vpop.f32.mrb[183].mxu1  ;;  %v8085_v4 = vpack.c.bf16 %v7965_v17, %v7963_v27 }
 0x745   : > { %v7583_v0 = vadd.f32 %v16685_v26, %v7444_v40  ;;  %v7446_v60 = vmul.f32 %v16679_v41, %v7149_v15 }
 0x746   : > { %v7838_v19 = vmul.f32 0.01, %v7582_v10  ;;  %v7584_v35 = vadd.f32 %v16682_v43, %v7445_v62  ;;  %8332 = vmatprep.mubr.bf16.mxu0 %v8085_v4  ;;  %vm7710_vm12 = vcmp.gt.f32.partialorder %v7582_v10, 0.0 }
 0x747   : > { %v7839_v20 = vmul.f32 0.01, %v7583_v0  ;;  %v7585_v30 = vadd.f32 %v16685_v26, %v7446_v60  ;;  %8333 = vmatmul.mubr.bf16.gmra.mrb[240].mxu0 %v8084_v55  ;;  %vm7711_vm13 = vcmp.gt.f32.partialorder %v7583_v0, 0.0 }
 0x748   : > { %vm7712_vm0 = vcmp.gt.f32.partialorder %v7584_v35, 0.0  ;;  %v7840_v11 = vmul.f32 0.01, %v7584_v35  ;;  %v7966_v24 = vsel %vm7710_vm12, %v7582_v10, %v7838_v19 }
 0x749   : > { %vm7713_vm15 = vcmp.gt.f32.partialorder %v7585_v30, 0.0  ;;  %v7841_v31 = vmul.f32 0.01, %v7585_v30  ;;  %v7153_v32 = vpop.f32.mrb[184].mxu1  ;;  %v7967_v18 = vsel %vm7711_vm13, %v7583_v0, %v7839_v20 }
 0x74a   : > { %v7447_v63 = vmul.f32 %v16673_v51, %v7153_v32  ;;  %v7155_v50 = vpop.f32.mrb[185].mxu1  ;;  %v7968_v44 = vsel %vm7712_vm0, %v7584_v35, %v7840_v11 }
 0x74b   : > { %v7448_v45 = vmul.f32 %v16679_v41, %v7155_v50  ;;  %v7157_v56 = vpop.f32.mrb[186].mxu1  ;;  %v7969_v42 = vsel %vm7713_vm15, %v7585_v30, %v7841_v31  ;;  %v8086_v54 = vpack.c.bf16 %v7968_v44, %v7966_v24 }
 0x74c   : > { %v7586_v47 = vadd.f32 %v16682_v43, %v7447_v63  ;;  %v7449_v16 = vmul.f32 %v16673_v51, %v7157_v56  ;;  %v7159_v5 = vpop.f32.mrb[187].mxu1  ;;  %v8087_v33 = vpack.c.bf16 %v7969_v42, %v7967_v18 }
 0x74d   : > { %v7587_v28 = vadd.f32 %v16685_v26, %v7448_v45  ;;  %v7450_v22 = vmul.f32 %v16679_v41, %v7159_v5 }
 0x74e   : > { %v7842_v3 = vmul.f32 0.01, %v7586_v47  ;;  %v7588_v1 = vadd.f32 %v16682_v43, %v7449_v16  ;;  %8340 = vmatprep.mubr.bf16.mxu0 %v8087_v33  ;;  %vm7714_vm10 = vcmp.gt.f32.partialorder %v7586_v47, 0.0 }
 0x74f   : > { %v7843_v58 = vmul.f32 0.01, %v7587_v28  ;;  %v7589_v12 = vadd.f32 %v16685_v26, %v7450_v22  ;;  %8341 = vmatmul.mubr.bf16.gmra.mrb[244].mxu0 %v8086_v54  ;;  %vm7715_vm2 = vcmp.gt.f32.partialorder %v7587_v28, 0.0 }
 0x750   : > { %vm7716_vm4 = vcmp.gt.f32.partialorder %v7588_v1, 0.0  ;;  %v7844_v23 = vmul.f32 0.01, %v7588_v1  ;;  %v7970_v13 = vsel %vm7714_vm10, %v7586_v47, %v7842_v3 }
 0x751   : > { %vm7717_vm7 = vcmp.gt.f32.partialorder %v7589_v12, 0.0  ;;  %v7845_v59 = vmul.f32 0.01, %v7589_v12  ;;  %v7163_v25 = vpop.f32.mrb[188].mxu1  ;;  %v7971_v49 = vsel %vm7715_vm2, %v7587_v28, %v7843_v58 }
 0x752   : > { %v7451_v38 = vmul.f32 %v16673_v51, %v7163_v25  ;;  %v7165_v39 = vpop.f32.mrb[189].mxu1  ;;  %v7972_v8 = vsel %vm7716_vm4, %v7588_v1, %v7844_v23 }
 0x753   : > { %v7452_v52 = vmul.f32 %v16679_v41, %v7165_v39  ;;  %v7167_v21 = vpop.f32.mrb[190].mxu1  ;;  %v7973_v6 = vsel %vm7717_vm7, %v7589_v12, %v7845_v59  ;;  %v8088_v57 = vpack.c.bf16 %v7972_v8, %v7970_v13 }
 0x754   : > { %v7590_v34 = vadd.f32 %v16682_v43, %v7451_v38  ;;  %v7453_v7 = vmul.f32 %v16673_v51, %v7167_v21  ;;  %v7169_v48 = vpop.f32.mrb[191].mxu1  ;;  %v8089_v61 = vpack.c.bf16 %v7973_v6, %v7971_v49 }
 0x755   : > { %v7591_v14 = vadd.f32 %v16685_v26, %v7452_v52  ;;  %v7454_v29 = vmul.f32 %v16679_v41, %v7169_v48 }
 0x756   : > { %v7846_v46 = vmul.f32 0.01, %v7590_v34  ;;  %v7592_v9 = vadd.f32 %v16682_v43, %v7453_v7  ;;  %8348 = vmatprep.mubr.bf16.mxu0 %v8089_v61  ;;  %vm7718_vm5 = vcmp.gt.f32.partialorder %v7590_v34, 0.0 }
 0x757   : > { %v7847_v53 = vmul.f32 0.01, %v7591_v14  ;;  %v7593_v2 = vadd.f32 %v16685_v26, %v7454_v29  ;;  %8349 = vmatmul.mubr.bf16.gmra.mrb[248].mxu0 %v8088_v57  ;;  %vm7719_vm6 = vcmp.gt.f32.partialorder %v7591_v14, 0.0 }
 0x758   : > { %vm7720_vm8 = vcmp.gt.f32.partialorder %v7592_v9, 0.0  ;;  %v7848_v40 = vmul.f32 0.01, %v7592_v9  ;;  %v7974_v10 = vsel %vm7718_vm5, %v7590_v34, %v7846_v46  ;;  %v10774_v46 = vld [vmem:[%s18359_s2 + $0x18] sm:$0xff]  }
 0x759   : > { %vm7721_vm3 = vcmp.gt.f32.partialorder %v7593_v2, 0.0  ;;  %v7849_v37 = vmul.f32 0.01, %v7593_v2  ;;  %v7173_v27 = vpop.f32.mrb[192].mxu1  ;;  %v7975_v0 = vsel %vm7719_vm6, %v7591_v14, %v7847_v53  ;;  %10111 = vmatprep.subr.bf16.mxu0 %v10774_v46 }
 0x75a   : > { %v7455_v17 = vmul.f32 %v16673_v51, %v7173_v27  ;;  %v7175_v55 = vpop.f32.mrb[193].mxu1  ;;  %v7976_v62 = vsel %vm7720_vm8, %v7592_v9, %v7848_v40  ;;  %10112 = vmatpush3.bf16.msra.mxu0 %v10774_v46 }
 0x75b   : > { %v7456_v15 = vmul.f32 %v16679_v41, %v7175_v55  ;;  %v7177_v4 = vpop.f32.mrb[194].mxu1  ;;  %v7977_v60 = vsel %vm7721_vm3, %v7593_v2, %v7849_v37  ;;  %v8090_v19 = vpack.c.bf16 %v7976_v62, %v7974_v10 }
 0x75c   : > { %v7594_v35 = vadd.f32 %v16682_v43, %v7455_v17  ;;  %v7457_v20 = vmul.f32 %v16673_v51, %v7177_v4  ;;  %v7179_v30 = vpop.f32.mrb[195].mxu1  ;;  %v8091_v11 = vpack.c.bf16 %v7977_v60, %v7975_v0 }
 0x75d   : > { %v7595_v31 = vadd.f32 %v16685_v26, %v7456_v15  ;;  %v7458_v32 = vmul.f32 %v16679_v41, %v7179_v30 }
 0x75e   : > { %v7850_v63 = vmul.f32 0.01, %v7594_v35  ;;  %v7596_v50 = vadd.f32 %v16682_v43, %v7457_v20  ;;  %8356 = vmatprep.mubr.bf16.mxu0 %v8091_v11  ;;  %vm7722_vm1 = vcmp.gt.f32.partialorder %v7594_v35, 0.0 }
 0x75f   : > { %v7851_v24 = vmul.f32 0.01, %v7595_v31  ;;  %v7597_v44 = vadd.f32 %v16685_v26, %v7458_v32  ;;  %8357 = vmatmul.mubr.bf16.gmra.mrb[252].mxu0 %v8090_v19  ;;  %vm7723_vm9 = vcmp.gt.f32.partialorder %v7595_v31, 0.0 }
 0x760   : > { %vm7724_vm14 = vcmp.gt.f32.partialorder %v7596_v50, 0.0  ;;  %v7852_v45 = vmul.f32 0.01, %v7596_v50  ;;  %v7978_v42 = vsel %vm7722_vm1, %v7594_v35, %v7850_v63 }
 0x761   : > { %vm7725_vm11 = vcmp.gt.f32.partialorder %v7597_v44, 0.0  ;;  %v7853_v56 = vmul.f32 0.01, %v7597_v44  ;;  %v7183_v18 = vpop.f32.mrb[196].mxu1  ;;  %v7979_v28 = vsel %vm7723_vm9, %v7595_v31, %v7851_v24 }
 0x762   : > { %v7980_v54 = vsel %vm7724_vm14, %v7596_v50, %v7852_v45  ;;  %v7459_v36 = vmul.f32 %v16673_v51, %v7183_v18  ;;  %v7185_v47 = vpop.f32.mrb[197].mxu1 }
 0x763   : > { %v8092_v16 = vpack.c.bf16 %v7980_v54, %v7978_v42  ;;  %v7460_v5 = vmul.f32 %v16679_v41, %v7185_v47  ;;  %v7187_v33 = vpop.f32.mrb[198].mxu1  ;;  %v7981_v22 = vsel %vm7725_vm11, %v7597_v44, %v7853_v56 }
 0x764   : > { %v7598_v3 = vadd.f32 %v16682_v43, %v7459_v36  ;;  %v7461_v1 = vmul.f32 %v16673_v51, %v7187_v33  ;;  %v7189_v58 = vpop.f32.mrb[199].mxu1  ;;  %v8093_v12 = vpack.c.bf16 %v7981_v22, %v7979_v28 }
 0x765   : > { %v7599_v23 = vadd.f32 %v16685_v26, %v7460_v5  ;;  %v7462_v59 = vmul.f32 %v16679_v41, %v7189_v58 }
 0x766   : > { %v7854_v25 = vmul.f32 0.01, %v7598_v3  ;;  %v7600_v38 = vadd.f32 %v16682_v43, %v7461_v1  ;;  %8364 = vmatprep.mubr.bf16.mxu0 %v8093_v12  ;;  %vm7726_vm12 = vcmp.gt.f32.partialorder %v7598_v3, 0.0 }
 0x767   : > { %v7855_v39 = vmul.f32 0.01, %v7599_v23  ;;  %v7601_v13 = vadd.f32 %v16685_v26, %v7462_v59  ;;  %8365 = vmatmul.mubr.bf16.gmra.mrb[0].mxu0 %v8092_v16  ;;  %vm7727_vm13 = vcmp.gt.f32.partialorder %v7599_v23, 0.0 }
 0x768   : > { %vm7728_vm0 = vcmp.gt.f32.partialorder %v7600_v38, 0.0  ;;  %v7856_v8 = vmul.f32 0.01, %v7600_v38  ;;  %v7982_v49 = vsel %vm7726_vm12, %v7598_v3, %v7854_v25 }
 0x769   : > { %vm7729_vm15 = vcmp.gt.f32.partialorder %v7601_v13, 0.0  ;;  %v7857_v52 = vmul.f32 0.01, %v7601_v13  ;;  %v7193_v21 = vpop.f32.mrb[200].mxu1  ;;  %v7983_v14 = vsel %vm7727_vm13, %v7599_v23, %v7855_v39 }
 0x76a   : > { %v7984_v6 = vsel %vm7728_vm0, %v7600_v38, %v7856_v8  ;;  %v7463_v57 = vmul.f32 %v16673_v51, %v7193_v21  ;;  %v7195_v34 = vpop.f32.mrb[201].mxu1 }
 0x76b   : > { %v8094_v7 = vpack.c.bf16 %v7984_v6, %v7982_v49  ;;  %v7464_v48 = vmul.f32 %v16679_v41, %v7195_v34  ;;  %v7197_v61 = vpop.f32.mrb[202].mxu1  ;;  %v7985_v29 = vsel %vm7729_vm15, %v7601_v13, %v7857_v52 }
 0x76c   : > { %v7602_v9 = vadd.f32 %v16682_v43, %v7463_v57  ;;  %v7465_v53 = vmul.f32 %v16673_v51, %v7197_v61  ;;  %v7199_v2 = vpop.f32.mrb[203].mxu1  ;;  %v8095_v40 = vpack.c.bf16 %v7985_v29, %v7983_v14 }
 0x76d   : > { %v7603_v37 = vadd.f32 %v16685_v26, %v7464_v48  ;;  %v7466_v27 = vmul.f32 %v16679_v41, %v7199_v2 }
 0x76e   : > { %v7858_v17 = vmul.f32 0.01, %v7602_v9  ;;  %v7604_v55 = vadd.f32 %v16682_v43, %v7465_v53  ;;  %8372 = vmatprep.mubr.bf16.mxu0 %v8095_v40  ;;  %vm7730_vm10 = vcmp.gt.f32.partialorder %v7602_v9, 0.0 }
 0x76f   : > { %v7859_v10 = vmul.f32 0.01, %v7603_v37  ;;  %v7605_v62 = vadd.f32 %v16685_v26, %v7466_v27  ;;  %8373 = vmatmul.mubr.bf16.gmra.mrb[4].mxu0 %v8094_v7  ;;  %vm7731_vm2 = vcmp.gt.f32.partialorder %v7603_v37, 0.0 }
 0x770   : > { %vm7732_vm4 = vcmp.gt.f32.partialorder %v7604_v55, 0.0  ;;  %v7860_v15 = vmul.f32 0.01, %v7604_v55  ;;  %v7986_v60 = vsel %vm7730_vm10, %v7602_v9, %v7858_v17 }
 0x771   : > { %vm7733_vm7 = vcmp.gt.f32.partialorder %v7605_v62, 0.0  ;;  %v7861_v4 = vmul.f32 0.01, %v7605_v62  ;;  %v7203_v0 = vpop.f32.mrb[204].mxu1  ;;  %v7987_v32 = vsel %vm7731_vm2, %v7603_v37, %v7859_v10 }
 0x772   : > { %v7988_v19 = vsel %vm7732_vm4, %v7604_v55, %v7860_v15  ;;  %v7467_v35 = vmul.f32 %v16673_v51, %v7203_v0  ;;  %v7205_v20 = vpop.f32.mrb[205].mxu1 }
 0x773   : > { %v8096_v30 = vpack.c.bf16 %v7988_v19, %v7986_v60  ;;  %v7468_v11 = vmul.f32 %v16679_v41, %v7205_v20  ;;  %v7207_v31 = vpop.f32.mrb[206].mxu1  ;;  %v7989_v63 = vsel %vm7733_vm7, %v7605_v62, %v7861_v4 }
 0x774   : > { %v7606_v50 = vadd.f32 %v16682_v43, %v7467_v35  ;;  %v7469_v24 = vmul.f32 %v16673_v51, %v7207_v31  ;;  %v7209_v44 = vpop.f32.mrb[207].mxu1  ;;  %v8097_v45 = vpack.c.bf16 %v7989_v63, %v7987_v32 }
 0x775   : > { %v7607_v56 = vadd.f32 %v16685_v26, %v7468_v11  ;;  %v7470_v18 = vmul.f32 %v16679_v41, %v7209_v44 }
 0x776   : > { %v7862_v42 = vmul.f32 0.01, %v7606_v50  ;;  %v7608_v54 = vadd.f32 %v16682_v43, %v7469_v24  ;;  %8380 = vmatprep.mubr.bf16.mxu0 %v8097_v45  ;;  %vm7734_vm5 = vcmp.gt.f32.partialorder %v7606_v50, 0.0 }
 0x777   : > { %v7863_v36 = vmul.f32 0.01, %v7607_v56  ;;  %v7609_v47 = vadd.f32 %v16685_v26, %v7470_v18  ;;  %8381 = vmatmul.mubr.bf16.gmra.mrb[8].mxu0 %v8096_v30  ;;  %vm7735_vm6 = vcmp.gt.f32.partialorder %v7607_v56, 0.0 }
 0x778   : > { %vm7736_vm8 = vcmp.gt.f32.partialorder %v7608_v54, 0.0  ;;  %v7864_v16 = vmul.f32 0.01, %v7608_v54  ;;  %v7990_v28 = vsel %vm7734_vm5, %v7606_v50, %v7862_v42 }
 0x779   : > { %vm7737_vm3 = vcmp.gt.f32.partialorder %v7609_v47, 0.0  ;;  %v7865_v5 = vmul.f32 0.01, %v7609_v47  ;;  %v7213_v33 = vpop.f32.mrb[208].mxu1  ;;  %v7991_v59 = vsel %vm7735_vm6, %v7607_v56, %v7863_v36 }
 0x77a   : > { %v7992_v22 = vsel %vm7736_vm8, %v7608_v54, %v7864_v16  ;;  %v7471_v3 = vmul.f32 %v16673_v51, %v7213_v33  ;;  %v7215_v1 = vpop.f32.mrb[209].mxu1  ;;  %v10775_v33 = vld [vmem:[%s18359_s2 + $0x20] sm:$0xff]  }
 0x77b   : > { %v8098_v58 = vpack.c.bf16 %v7992_v22, %v7990_v28  ;;  %v7472_v12 = vmul.f32 %v16679_v41, %v7215_v1  ;;  %v7217_v23 = vpop.f32.mrb[210].mxu1  ;;  %v7993_v25 = vsel %vm7737_vm3, %v7609_v47, %v7865_v5  ;;  %10113 = vmatprep.subr.bf16.mxu0 %v10775_v33 }
 0x77c   : > { %v7610_v38 = vadd.f32 %v16682_v43, %v7471_v3  ;;  %v7473_v39 = vmul.f32 %v16673_v51, %v7217_v23  ;;  %v7219_v13 = vpop.f32.mrb[211].mxu1  ;;  %v8099_v8 = vpack.c.bf16 %v7993_v25, %v7991_v59  ;;  %10114 = vmatpush3.bf16.msra.mxu0 %v10775_v33 }
 0x77d   : > { %v7611_v52 = vadd.f32 %v16685_v26, %v7472_v12  ;;  %v7474_v21 = vmul.f32 %v16679_v41, %v7219_v13 }
 0x77e   : > { %v7866_v49 = vmul.f32 0.01, %v7610_v38  ;;  %v7612_v6 = vadd.f32 %v16682_v43, %v7473_v39  ;;  %8388 = vmatprep.mubr.bf16.mxu0 %v8099_v8  ;;  %vm7738_vm1 = vcmp.gt.f32.partialorder %v7610_v38, 0.0 }
 0x77f   : > { %v7867_v57 = vmul.f32 0.01, %v7611_v52  ;;  %v7613_v34 = vadd.f32 %v16685_v26, %v7474_v21  ;;  %8389 = vmatmul.mubr.bf16.gmra.mrb[12].mxu0 %v8098_v58  ;;  %vm7739_vm9 = vcmp.gt.f32.partialorder %v7611_v52, 0.0 }
 0x780   : > { %vm7740_vm14 = vcmp.gt.f32.partialorder %v7612_v6, 0.0  ;;  %v7868_v7 = vmul.f32 0.01, %v7612_v6  ;;  %v7994_v14 = vsel %vm7738_vm1, %v7610_v38, %v7866_v49 }
 0x781   : > { %vm7741_vm11 = vcmp.gt.f32.partialorder %v7613_v34, 0.0  ;;  %v7869_v48 = vmul.f32 0.01, %v7613_v34  ;;  %v7223_v61 = vpop.f32.mrb[212].mxu1  ;;  %v7995_v37 = vsel %vm7739_vm9, %v7611_v52, %v7867_v57 }
 0x782   : > { %v7996_v29 = vsel %vm7740_vm14, %v7612_v6, %v7868_v7  ;;  %v7475_v46 = vmul.f32 %v16673_v51, %v7223_v61  ;;  %v7225_v9 = vpop.f32.mrb[213].mxu1 }
 0x783   : > { %v8100_v53 = vpack.c.bf16 %v7996_v29, %v7994_v14  ;;  %v7476_v2 = vmul.f32 %v16679_v41, %v7225_v9  ;;  %v7227_v40 = vpop.f32.mrb[214].mxu1  ;;  %v7997_v27 = vsel %vm7741_vm11, %v7613_v34, %v7869_v48 }
 0x784   : > { %v7614_v17 = vadd.f32 %v16682_v43, %v7475_v46  ;;  %v7477_v55 = vmul.f32 %v16673_v51, %v7227_v40  ;;  %v7229_v10 = vpop.f32.mrb[215].mxu1  ;;  %v8101_v62 = vpack.c.bf16 %v7997_v27, %v7995_v37 }
 0x785   : > { %v7615_v15 = vadd.f32 %v16685_v26, %v7476_v2  ;;  %v7478_v4 = vmul.f32 %v16679_v41, %v7229_v10 }
 0x786   : > { %v7870_v0 = vmul.f32 0.01, %v7614_v17  ;;  %v7616_v60 = vadd.f32 %v16682_v43, %v7477_v55  ;;  %8396 = vmatprep.mubr.bf16.mxu0 %v8101_v62  ;;  %vm7742_vm12 = vcmp.gt.f32.partialorder %v7614_v17, 0.0 }
 0x787   : > { %v7871_v19 = vmul.f32 0.01, %v7615_v15  ;;  %v7617_v35 = vadd.f32 %v16685_v26, %v7478_v4  ;;  %8397 = vmatmul.mubr.bf16.gmra.mrb[16].mxu0 %v8100_v53  ;;  %vm7743_vm13 = vcmp.gt.f32.partialorder %v7615_v15, 0.0 }
 0x788   : > { %vm7744_vm0 = vcmp.gt.f32.partialorder %v7616_v60, 0.0  ;;  %v7872_v20 = vmul.f32 0.01, %v7616_v60  ;;  %v7998_v31 = vsel %vm7742_vm12, %v7614_v17, %v7870_v0 }
 0x789   : > { %vm7745_vm15 = vcmp.gt.f32.partialorder %v7617_v35, 0.0  ;;  %v7873_v30 = vmul.f32 0.01, %v7617_v35  ;;  %v7233_v11 = vpop.f32.mrb[216].mxu1  ;;  %v7999_v56 = vsel %vm7743_vm13, %v7615_v15, %v7871_v19 }
 0x78a   : > { %v8000_v32 = vsel %vm7744_vm0, %v7616_v60, %v7872_v20  ;;  %v7479_v63 = vmul.f32 %v16673_v51, %v7233_v11  ;;  %v7235_v50 = vpop.f32.mrb[217].mxu1 }
 0x78b   : > { %v8102_v24 = vpack.c.bf16 %v8000_v32, %v7998_v31  ;;  %v7480_v44 = vmul.f32 %v16679_v41, %v7235_v50  ;;  %v7237_v45 = vpop.f32.mrb[218].mxu1  ;;  %v8001_v18 = vsel %vm7745_vm15, %v7617_v35, %v7873_v30 }
 0x78c   : > { %v7618_v42 = vadd.f32 %v16682_v43, %v7479_v63  ;;  %v7481_v54 = vmul.f32 %v16673_v51, %v7237_v45  ;;  %v7239_v36 = vpop.f32.mrb[219].mxu1  ;;  %v8103_v47 = vpack.c.bf16 %v8001_v18, %v7999_v56  ;;  %v10777_v18 = vld [vmem:[%s18359_s2 + $0x30] sm:$0xff]  }
 0x78d   : > { %v7619_v16 = vadd.f32 %v16685_v26, %v7480_v44  ;;  %v7482_v5 = vmul.f32 %v16679_v41, %v7239_v36 }
 0x78e   : > { %v7874_v28 = vmul.f32 0.01, %v7618_v42  ;;  %v7620_v22 = vadd.f32 %v16682_v43, %v7481_v54  ;;  %8404 = vmatprep.mubr.bf16.mxu0 %v8103_v47  ;;  %vm7746_vm10 = vcmp.gt.f32.partialorder %v7618_v42, 0.0 }
 0x78f   : > { %v7875_v3 = vmul.f32 0.01, %v7619_v16  ;;  %v7621_v1 = vadd.f32 %v16685_v26, %v7482_v5  ;;  %8405 = vmatmul.mubr.bf16.gmra.mrb[20].mxu0 %v8102_v24  ;;  %vm7747_vm2 = vcmp.gt.f32.partialorder %v7619_v16, 0.0  ;;  %v10776_v24 = vld [vmem:[%s18359_s2 + $0x28] sm:$0xff]  }
 0x790   : > { %vm7748_vm4 = vcmp.gt.f32.partialorder %v7620_v22, 0.0  ;;  %v7876_v58 = vmul.f32 0.01, %v7620_v22  ;;  %v8002_v59 = vsel %vm7746_vm10, %v7618_v42, %v7874_v28  ;;  %10115 = vmatprep.subr.bf16.mxu0 %v10776_v24 }
 0x791   : > { %vm7749_vm7 = vcmp.gt.f32.partialorder %v7621_v1, 0.0  ;;  %v7877_v12 = vmul.f32 0.01, %v7621_v1  ;;  %v7243_v23 = vpop.f32.mrb[220].mxu1  ;;  %v8003_v21 = vsel %vm7747_vm2, %v7619_v16, %v7875_v3  ;;  %10116 = vmatpush3.bf16.msra.mxu0 %v10776_v24 }
 0x792   : > { %v8004_v25 = vsel %vm7748_vm4, %v7620_v22, %v7876_v58  ;;  %v7483_v38 = vmul.f32 %v16673_v51, %v7243_v23  ;;  %v7245_v39 = vpop.f32.mrb[221].mxu1  ;;  %10117 = vmatprep.subr.bf16.mxu0 %v10777_v18 }
 0x793   : > { %v8104_v13 = vpack.c.bf16 %v8004_v25, %v8002_v59  ;;  %v7484_v8 = vmul.f32 %v16679_v41, %v7245_v39  ;;  %v7247_v52 = vpop.f32.mrb[222].mxu1  ;;  %v8005_v49 = vsel %vm7749_vm7, %v7621_v1, %v7877_v12 }
 0x794   : > { %v7622_v6 = vadd.f32 %v16682_v43, %v7483_v38  ;;  %v7485_v57 = vmul.f32 %v16673_v51, %v7247_v52  ;;  %v7249_v34 = vpop.f32.mrb[223].mxu1  ;;  %v8105_v7 = vpack.c.bf16 %v8005_v49, %v8003_v21  ;;  %v10778_v49 = vld [vmem:[%s18359_s2 + $0x38] sm:$0xff]  }
 0x795   : > { %v7623_v48 = vadd.f32 %v16685_v26, %v7484_v8  ;;  %v7486_v61 = vmul.f32 %v16679_v41, %v7249_v34  ;;  %10118 = vmatpush3.bf16.msra.mxu0 %v10777_v18 }
 0x796   : > { %v7878_v14 = vmul.f32 0.01, %v7622_v6  ;;  %v7624_v29 = vadd.f32 %v16682_v43, %v7485_v57  ;;  %8412 = vmatprep.mubr.bf16.mxu0 %v8105_v7  ;;  %vm7750_vm5 = vcmp.gt.f32.partialorder %v7622_v6, 0.0  ;;  %10119 = vmatprep.subr.bf16.mxu0 %v10778_v49 }
 0x797   : > { %v7879_v46 = vmul.f32 0.01, %v7623_v48  ;;  %v7625_v9 = vadd.f32 %v16685_v26, %v7486_v61  ;;  %8413 = vmatmul.mubr.bf16.gmra.mrb[24].mxu0 %v8104_v13  ;;  %vm7751_vm6 = vcmp.gt.f32.partialorder %v7623_v48, 0.0 }
 0x798   : > { %vm7752_vm8 = vcmp.gt.f32.partialorder %v7624_v29, 0.0  ;;  %v7880_v53 = vmul.f32 0.01, %v7624_v29  ;;  %v8006_v37 = vsel %vm7750_vm5, %v7622_v6, %v7878_v14 }
 0x799   : > { %vm7753_vm3 = vcmp.gt.f32.partialorder %v7625_v9, 0.0  ;;  %v7881_v2 = vmul.f32 0.01, %v7625_v9  ;;  %v7253_v40 = vpop.f32.mrb[224].mxu1  ;;  %v8007_v4 = vsel %vm7751_vm6, %v7623_v48, %v7879_v46  ;;  %10120 = vmatpush3.bf16.msra.mxu0 %v10778_v49 }
 0x79a   : > { %v8008_v27 = vsel %vm7752_vm8, %v7624_v29, %v7880_v53  ;;  %v7487_v17 = vmul.f32 %v16673_v51, %v7253_v40  ;;  %v7255_v55 = vpop.f32.mrb[225].mxu1 }
 0x79b   : > { %v8106_v10 = vpack.c.bf16 %v8008_v27, %v8006_v37  ;;  %v7488_v62 = vmul.f32 %v16679_v41, %v7255_v55  ;;  %v7257_v15 = vpop.f32.mrb[226].mxu1  ;;  %v8009_v0 = vsel %vm7753_vm3, %v7625_v9, %v7881_v2 }
 0x79c   : > { %v7626_v60 = vadd.f32 %v16682_v43, %v7487_v17  ;;  %v7489_v19 = vmul.f32 %v16673_v51, %v7257_v15  ;;  %v7259_v35 = vpop.f32.mrb[227].mxu1  ;;  %v8107_v20 = vpack.c.bf16 %v8009_v0, %v8007_v4 }
 0x79d   : > { %v7627_v30 = vadd.f32 %v16685_v26, %v7488_v62  ;;  %v7490_v11 = vmul.f32 %v16679_v41, %v7259_v35 }
 0x79e   : > { %v7882_v31 = vmul.f32 0.01, %v7626_v60  ;;  %v7628_v32 = vadd.f32 %v16682_v43, %v7489_v19  ;;  %8420 = vmatprep.mubr.bf16.mxu0 %v8107_v20  ;;  %vm7754_vm1 = vcmp.gt.f32.partialorder %v7626_v60, 0.0 }
 0x79f   : > { %v7883_v63 = vmul.f32 0.01, %v7627_v30  ;;  %v7629_v50 = vadd.f32 %v16685_v26, %v7490_v11  ;;  %8421 = vmatmul.mubr.bf16.gmra.mrb[28].mxu0 %v8106_v10  ;;  %vm7755_vm9 = vcmp.gt.f32.partialorder %v7627_v30, 0.0 }
 0x7a0   : > { %vm7756_vm14 = vcmp.gt.f32.partialorder %v7628_v32, 0.0  ;;  %v7884_v44 = vmul.f32 0.01, %v7628_v32  ;;  %v8010_v42 = vsel %vm7754_vm1, %v7626_v60, %v7882_v31 }
 0x7a1   : > { %vm7757_vm11 = vcmp.gt.f32.partialorder %v7629_v50, 0.0  ;;  %v7885_v45 = vmul.f32 0.01, %v7629_v50  ;;  %v7263_v56 = vpop.f32.mrb[228].mxu1  ;;  %v8011_v28 = vsel %vm7755_vm9, %v7627_v30, %v7883_v63 }
 0x7a2   : > { %v8012_v54 = vsel %vm7756_vm14, %v7628_v32, %v7884_v44  ;;  %v7491_v36 = vmul.f32 %v16673_v51, %v7263_v56  ;;  %v7265_v47 = vpop.f32.mrb[229].mxu1 }
 0x7a3   : > { %v8108_v16 = vpack.c.bf16 %v8012_v54, %v8010_v42  ;;  %v7492_v5 = vmul.f32 %v16679_v41, %v7265_v47  ;;  %v7267_v33 = vpop.f32.mrb[230].mxu1  ;;  %v8013_v22 = vsel %vm7757_vm11, %v7629_v50, %v7885_v45 }
 0x7a4   : > { %v7630_v3 = vadd.f32 %v16682_v43, %v7491_v36  ;;  %v7493_v1 = vmul.f32 %v16673_v51, %v7267_v33  ;;  %v7269_v58 = vpop.f32.mrb[231].mxu1  ;;  %v8109_v12 = vpack.c.bf16 %v8013_v22, %v8011_v28 }
 0x7a5   : > { %v7631_v23 = vadd.f32 %v16685_v26, %v7492_v5  ;;  %v7494_v59 = vmul.f32 %v16679_v41, %v7269_v58 }
 0x7a6   : > { %v7886_v25 = vmul.f32 0.01, %v7630_v3  ;;  %v7632_v38 = vadd.f32 %v16682_v43, %v7493_v1  ;;  %8428 = vmatprep.mubr.bf16.mxu0 %v8109_v12  ;;  %vm7758_vm12 = vcmp.gt.f32.partialorder %v7630_v3, 0.0 }
 0x7a7   : > { %v7887_v39 = vmul.f32 0.01, %v7631_v23  ;;  %v7633_v13 = vadd.f32 %v16685_v26, %v7494_v59  ;;  %8429 = vmatmul.mubr.bf16.gmra.mrb[32].mxu0 %v8108_v16  ;;  %vm7759_vm13 = vcmp.gt.f32.partialorder %v7631_v23, 0.0 }
 0x7a8   : > { %vm7760_vm0 = vcmp.gt.f32.partialorder %v7632_v38, 0.0  ;;  %v7888_v8 = vmul.f32 0.01, %v7632_v38  ;;  %v8014_v6 = vsel %vm7758_vm12, %v7630_v3, %v7886_v25 }
 0x7a9   : > { %vm7761_vm15 = vcmp.gt.f32.partialorder %v7633_v13, 0.0  ;;  %v7889_v52 = vmul.f32 0.01, %v7633_v13  ;;  %v7273_v21 = vpop.f32.mrb[232].mxu1  ;;  %v8015_v29 = vsel %vm7759_vm13, %v7631_v23, %v7887_v39 }
 0x7aa   : > { %v8016_v57 = vsel %vm7760_vm0, %v7632_v38, %v7888_v8  ;;  %v7495_v34 = vmul.f32 %v16673_v51, %v7273_v21  ;;  %v7275_v7 = vpop.f32.mrb[233].mxu1 }
 0x7ab   : > { %v8110_v48 = vpack.c.bf16 %v8016_v57, %v8014_v6  ;;  %v7496_v61 = vmul.f32 %v16679_v41, %v7275_v7  ;;  %v7277_v14 = vpop.f32.mrb[234].mxu1  ;;  %v8017_v46 = vsel %vm7761_vm15, %v7633_v13, %v7889_v52 }
 0x7ac   : > { %v7634_v9 = vadd.f32 %v16682_v43, %v7495_v34  ;;  %v7497_v53 = vmul.f32 %v16673_v51, %v7277_v14  ;;  %v7279_v2 = vpop.f32.mrb[235].mxu1  ;;  %v8111_v40 = vpack.c.bf16 %v8017_v46, %v8015_v29 }
 0x7ad   : > { %v7635_v37 = vadd.f32 %v16685_v26, %v7496_v61  ;;  %v7498_v27 = vmul.f32 %v16679_v41, %v7279_v2 }
 0x7ae   : > { %v7890_v17 = vmul.f32 0.01, %v7634_v9  ;;  %v7636_v55 = vadd.f32 %v16682_v43, %v7497_v53  ;;  %8436 = vmatprep.mubr.bf16.mxu0 %v8111_v40  ;;  %vm7762_vm10 = vcmp.gt.f32.partialorder %v7634_v9, 0.0 }
 0x7af   : > { %v7891_v10 = vmul.f32 0.01, %v7635_v37  ;;  %v7637_v62 = vadd.f32 %v16685_v26, %v7498_v27  ;;  %8437 = vmatmul.mubr.bf16.gmra.mrb[36].mxu0 %v8110_v48  ;;  %vm7763_vm2 = vcmp.gt.f32.partialorder %v7635_v37, 0.0 }
 0x7b0   : > { %vm7764_vm4 = vcmp.gt.f32.partialorder %v7636_v55, 0.0  ;;  %v7892_v15 = vmul.f32 0.01, %v7636_v55  ;;  %v8018_v60 = vsel %vm7762_vm10, %v7634_v9, %v7890_v17 }
 0x7b1   : > { %vm7765_vm7 = vcmp.gt.f32.partialorder %v7637_v62, 0.0  ;;  %v7893_v4 = vmul.f32 0.01, %v7637_v62  ;;  %v7283_v0 = vpop.f32.mrb[236].mxu1  ;;  %v8019_v32 = vsel %vm7763_vm2, %v7635_v37, %v7891_v10 }
 0x7b2   : > { %v8020_v19 = vsel %vm7764_vm4, %v7636_v55, %v7892_v15  ;;  %v7499_v35 = vmul.f32 %v16673_v51, %v7283_v0  ;;  %v7285_v20 = vpop.f32.mrb[237].mxu1 }
 0x7b3   : > { %v8112_v30 = vpack.c.bf16 %v8020_v19, %v8018_v60  ;;  %v7500_v11 = vmul.f32 %v16679_v41, %v7285_v20  ;;  %v7287_v31 = vpop.f32.mrb[238].mxu1  ;;  %v8021_v63 = vsel %vm7765_vm7, %v7637_v62, %v7893_v4 }
 0x7b4   : > { %v7638_v50 = vadd.f32 %v16682_v43, %v7499_v35  ;;  %v7501_v24 = vmul.f32 %v16673_v51, %v7287_v31  ;;  %v7289_v44 = vpop.f32.mrb[239].mxu1  ;;  %v8113_v45 = vpack.c.bf16 %v8021_v63, %v8019_v32 }
 0x7b5   : > { %v7639_v56 = vadd.f32 %v16685_v26, %v7500_v11  ;;  %v7502_v18 = vmul.f32 %v16679_v41, %v7289_v44 }
 0x7b6   : > { %v7894_v42 = vmul.f32 0.01, %v7638_v50  ;;  %v7640_v54 = vadd.f32 %v16682_v43, %v7501_v24  ;;  %8444 = vmatprep.mubr.bf16.mxu0 %v8113_v45  ;;  %vm7766_vm5 = vcmp.gt.f32.partialorder %v7638_v50, 0.0 }
 0x7b7   : > { %v7895_v36 = vmul.f32 0.01, %v7639_v56  ;;  %v7641_v47 = vadd.f32 %v16685_v26, %v7502_v18  ;;  %8445 = vmatmul.mubr.bf16.gmra.mrb[40].mxu0 %v8112_v30  ;;  %vm7767_vm6 = vcmp.gt.f32.partialorder %v7639_v56, 0.0 }
 0x7b8   : > { %vm7768_vm8 = vcmp.gt.f32.partialorder %v7640_v54, 0.0  ;;  %v7896_v16 = vmul.f32 0.01, %v7640_v54  ;;  %v8022_v28 = vsel %vm7766_vm5, %v7638_v50, %v7894_v42 }
 0x7b9   : > { %vm7769_vm3 = vcmp.gt.f32.partialorder %v7641_v47, 0.0  ;;  %v7897_v5 = vmul.f32 0.01, %v7641_v47  ;;  %v7293_v33 = vpop.f32.mrb[240].mxu1  ;;  %v8023_v59 = vsel %vm7767_vm6, %v7639_v56, %v7895_v36 }
 0x7ba   : > { %v8024_v22 = vsel %vm7768_vm8, %v7640_v54, %v7896_v16  ;;  %v7503_v3 = vmul.f32 %v16673_v51, %v7293_v33  ;;  %v7295_v1 = vpop.f32.mrb[241].mxu1 }
 0x7bb   : > { %v8114_v58 = vpack.c.bf16 %v8024_v22, %v8022_v28  ;;  %v7504_v12 = vmul.f32 %v16679_v41, %v7295_v1  ;;  %v7297_v23 = vpop.f32.mrb[242].mxu1  ;;  %v8025_v25 = vsel %vm7769_vm3, %v7641_v47, %v7897_v5 }
 0x7bc   : > { %v7642_v38 = vadd.f32 %v16682_v43, %v7503_v3  ;;  %v7505_v39 = vmul.f32 %v16673_v51, %v7297_v23  ;;  %v7299_v13 = vpop.f32.mrb[243].mxu1  ;;  %v8115_v8 = vpack.c.bf16 %v8025_v25, %v8023_v59 }
 0x7bd   : > { %v7643_v52 = vadd.f32 %v16685_v26, %v7504_v12  ;;  %v7506_v21 = vmul.f32 %v16679_v41, %v7299_v13 }
 0x7be   : > { %v7898_v49 = vmul.f32 0.01, %v7642_v38  ;;  %v7644_v6 = vadd.f32 %v16682_v43, %v7505_v39  ;;  %8452 = vmatprep.mubr.bf16.mxu0 %v8115_v8  ;;  %vm7770_vm1 = vcmp.gt.f32.partialorder %v7642_v38, 0.0 }
 0x7bf   : > { %v7899_v57 = vmul.f32 0.01, %v7643_v52  ;;  %v7645_v34 = vadd.f32 %v16685_v26, %v7506_v21  ;;  %8453 = vmatmul.mubr.bf16.gmra.mrb[44].mxu0 %v8114_v58  ;;  %vm7771_vm9 = vcmp.gt.f32.partialorder %v7643_v52, 0.0 }
 0x7c0   : > { %vm7772_vm14 = vcmp.gt.f32.partialorder %v7644_v6, 0.0  ;;  %v7900_v7 = vmul.f32 0.01, %v7644_v6  ;;  %v8026_v14 = vsel %vm7770_vm1, %v7642_v38, %v7898_v49 }
 0x7c1   : > { %vm7773_vm11 = vcmp.gt.f32.partialorder %v7645_v34, 0.0  ;;  %v7901_v48 = vmul.f32 0.01, %v7645_v34  ;;  %v7303_v61 = vpop.f32.mrb[244].mxu1  ;;  %v8027_v37 = vsel %vm7771_vm9, %v7643_v52, %v7899_v57 }
 0x7c2   : > { %v8028_v29 = vsel %vm7772_vm14, %v7644_v6, %v7900_v7  ;;  %v7507_v46 = vmul.f32 %v16673_v51, %v7303_v61  ;;  %v7305_v9 = vpop.f32.mrb[245].mxu1 }
 0x7c3   : > { %v8116_v53 = vpack.c.bf16 %v8028_v29, %v8026_v14  ;;  %v7508_v2 = vmul.f32 %v16679_v41, %v7305_v9  ;;  %v7307_v40 = vpop.f32.mrb[246].mxu1  ;;  %v8029_v27 = vsel %vm7773_vm11, %v7645_v34, %v7901_v48 }
 0x7c4   : > { %v7646_v17 = vadd.f32 %v16682_v43, %v7507_v46  ;;  %v7509_v55 = vmul.f32 %v16673_v51, %v7307_v40  ;;  %v7309_v10 = vpop.f32.mrb[247].mxu1  ;;  %v8117_v62 = vpack.c.bf16 %v8029_v27, %v8027_v37 }
 0x7c5   : > { %v7647_v15 = vadd.f32 %v16685_v26, %v7508_v2  ;;  %v7510_v4 = vmul.f32 %v16679_v41, %v7309_v10 }
 0x7c6   : > { %v7902_v0 = vmul.f32 0.01, %v7646_v17  ;;  %v7648_v60 = vadd.f32 %v16682_v43, %v7509_v55  ;;  %8460 = vmatprep.mubr.bf16.mxu0 %v8117_v62  ;;  %vm7774_vm12 = vcmp.gt.f32.partialorder %v7646_v17, 0.0 }
 0x7c7   : > { %v7903_v19 = vmul.f32 0.01, %v7647_v15  ;;  %v7649_v35 = vadd.f32 %v16685_v26, %v7510_v4  ;;  %8461 = vmatmul.mubr.bf16.gmra.mrb[48].mxu0 %v8116_v53  ;;  %vm7775_vm13 = vcmp.gt.f32.partialorder %v7647_v15, 0.0 }
 0x7c8   : > { %vm7776_vm0 = vcmp.gt.f32.partialorder %v7648_v60, 0.0  ;;  %v7904_v20 = vmul.f32 0.01, %v7648_v60  ;;  %v8030_v31 = vsel %vm7774_vm12, %v7646_v17, %v7902_v0 }
 0x7c9   : > { %vm7777_vm15 = vcmp.gt.f32.partialorder %v7649_v35, 0.0  ;;  %v7905_v30 = vmul.f32 0.01, %v7649_v35  ;;  %v7313_v11 = vpop.f32.mrb[248].mxu1  ;;  %v8031_v56 = vsel %vm7775_vm13, %v7647_v15, %v7903_v19 }
 0x7ca   : > { %v8032_v32 = vsel %vm7776_vm0, %v7648_v60, %v7904_v20  ;;  %v7511_v63 = vmul.f32 %v16673_v51, %v7313_v11  ;;  %v7315_v50 = vpop.f32.mrb[249].mxu1 }
 0x7cb   : > { %v8118_v24 = vpack.c.bf16 %v8032_v32, %v8030_v31  ;;  %v7512_v44 = vmul.f32 %v16679_v41, %v7315_v50  ;;  %v7317_v45 = vpop.f32.mrb[250].mxu1  ;;  %v8033_v18 = vsel %vm7777_vm15, %v7649_v35, %v7905_v30 }
 0x7cc   : > { %v7650_v42 = vadd.f32 %v16682_v43, %v7511_v63  ;;  %v7513_v54 = vmul.f32 %v16673_v51, %v7317_v45  ;;  %v7319_v36 = vpop.f32.mrb[251].mxu1  ;;  %v8119_v47 = vpack.c.bf16 %v8033_v18, %v8031_v56 }
 0x7cd   : > { %v7651_v16 = vadd.f32 %v16685_v26, %v7512_v44  ;;  %v7514_v5 = vmul.f32 %v16679_v41, %v7319_v36 }
 0x7ce   : > { %v7906_v33 = vmul.f32 0.01, %v7650_v42  ;;  %v7652_v28 = vadd.f32 %v16682_v43, %v7513_v54  ;;  %8468 = vmatprep.mubr.bf16.mxu0 %v8119_v47  ;;  %vm7778_vm10 = vcmp.gt.f32.partialorder %v7650_v42, 0.0 }
 0x7cf   : > { %v7907_v22 = vmul.f32 0.01, %v7651_v16  ;;  %v7653_v3 = vadd.f32 %v16685_v26, %v7514_v5  ;;  %8469 = vmatmul.mubr.bf16.gmra.mrb[52].mxu0 %v8118_v24  ;;  %vm7779_vm2 = vcmp.gt.f32.partialorder %v7651_v16, 0.0 }
 0x7d0   : > { %vm7780_vm4 = vcmp.gt.f32.partialorder %v7652_v28, 0.0  ;;  %v7908_v1 = vmul.f32 0.01, %v7652_v28  ;;  %v8034_v23 = vsel %vm7778_vm10, %v7650_v42, %v7906_v33 }
 0x7d1   : > { %vm7781_vm7 = vcmp.gt.f32.partialorder %v7653_v3, 0.0  ;;  %v7909_v58 = vmul.f32 0.01, %v7653_v3  ;;  %v7323_v12 = vpop.f32.mrb[252].mxu1  ;;  %v8035_v52 = vsel %vm7779_vm2, %v7651_v16, %v7907_v22 }
 0x7d2   : > { %v8036_v59 = vsel %vm7780_vm4, %v7652_v28, %v7908_v1  ;;  %v7515_v25 = vmul.f32 %v16673_v51, %v7323_v12  ;;  %v7325_v38 = vpop.f32.mrb[253].mxu1 }
 0x7d3   : > { %v8120_v39 = vpack.c.bf16 %v8036_v59, %v8034_v23  ;;  %v7516_v13 = vmul.f32 %v16679_v41, %v7325_v38  ;;  %v7327_v8 = vpop.f32.mrb[254].mxu1  ;;  %v8037_v21 = vsel %vm7781_vm7, %v7653_v3, %v7909_v58 }
 0x7d4   : > { %v7654_v49 = vadd.f32 %v16682_v43, %v7515_v25  ;;  %v7517_v6 = vmul.f32 %v16673_v51, %v7327_v8  ;;  %v7329_v57 = vpop.f32.mrb[255].mxu1  ;;  %v8121_v34 = vpack.c.bf16 %v8037_v21, %v8035_v52 }
 0x7d5   : > { %v7655_v7 = vadd.f32 %v16685_v26, %v7516_v13  ;;  %v7518_v48 = vmul.f32 %v16679_v41, %v7329_v57 }
 0x7d6   : > { %v7910_v61 = vmul.f32 0.01, %v7654_v49  ;;  %v7656_v14 = vadd.f32 %v16682_v43, %v7517_v6  ;;  %8476 = vmatprep.mubr.bf16.mxu0 %v8121_v34  ;;  %vm7782_vm5 = vcmp.gt.f32.partialorder %v7654_v49, 0.0 }
 0x7d7   : > { %v7911_v29 = vmul.f32 0.01, %v7655_v7  ;;  %v7657_v46 = vadd.f32 %v16685_v26, %v7518_v48  ;;  %8477 = vmatmul.mubr.bf16.gmra.mrb[56].mxu0 %v8120_v39  ;;  %vm7783_vm6 = vcmp.gt.f32.partialorder %v7655_v7, 0.0 }
 0x7d8   : > { %vm7784_vm8 = vcmp.gt.f32.partialorder %v7656_v14, 0.0  ;;  %v7912_v9 = vmul.f32 0.01, %v7656_v14  ;;  %v8038_v40 = vsel %vm7782_vm5, %v7654_v49, %v7910_v61 }
 0x7d9   : > { %vm7785_vm3 = vcmp.gt.f32.partialorder %v7657_v46, 0.0  ;;  %v7913_v53 = vmul.f32 0.01, %v7657_v46  ;;  %v7333_v2 = vpop.f32.mrb[0].mxu1  ;;  %v8039_v15 = vsel %vm7783_vm6, %v7655_v7, %v7911_v29 }
 0x7da   : > { %v8040_v37 = vsel %vm7784_vm8, %v7656_v14, %v7912_v9  ;;  %v7519_v27 = vmul.f32 %v16673_v51, %v7333_v2  ;;  %v7335_v17 = vpop.f32.mrb[1].mxu1 }
 0x7db   : > { %v8122_v55 = vpack.c.bf16 %v8040_v37, %v8038_v40  ;;  %v7520_v10 = vmul.f32 %v16679_v41, %v7335_v17  ;;  %v7337_v62 = vpop.f32.mrb[2].mxu1  ;;  %v8041_v4 = vsel %vm7785_vm3, %v7657_v46, %v7913_v53 }
 0x7dc   : > { %v7658_v0 = vadd.f32 %v16682_v43, %v7519_v27  ;;  %v7521_v60 = vmul.f32 %v16673_v51, %v7337_v62  ;;  %v7339_v19 = vpop.f32.mrb[3].mxu1  ;;  %v8123_v35 = vpack.c.bf16 %v8041_v4, %v8039_v15 }
 0x7dd   : > { %v7659_v20 = vadd.f32 %v16685_v26, %v7520_v10  ;;  %v7522_v30 = vmul.f32 %v16679_v41, %v7339_v19 }
 0x7de   : > { %v7914_v11 = vmul.f32 0.01, %v7658_v0  ;;  %v7660_v31 = vadd.f32 %v16682_v43, %v7521_v60  ;;  %8484 = vmatprep.mubr.bf16.mxu0 %v8123_v35  ;;  %vm7786_vm1 = vcmp.gt.f32.partialorder %v7658_v0, 0.0 }
 0x7df   : > { %v7915_v32 = vmul.f32 0.01, %v7659_v20  ;;  %v7661_v63 = vadd.f32 %v16685_v26, %v7522_v30  ;;  %8485 = vmatmul.mubr.bf16.gmra.mrb[60].mxu0 %v8122_v55  ;;  %vm7787_vm9 = vcmp.gt.f32.partialorder %v7659_v20, 0.0 }
 0x7e0   : > { %vm7788_vm14 = vcmp.gt.f32.partialorder %v7660_v31, 0.0  ;;  %v7916_v50 = vmul.f32 0.01, %v7660_v31  ;;  %v8042_v45 = vsel %vm7786_vm1, %v7658_v0, %v7914_v11 }
 0x7e1   : > { %vm7789_vm11 = vcmp.gt.f32.partialorder %v7661_v63, 0.0  ;;  %v7917_v24 = vmul.f32 0.01, %v7661_v63  ;;  %v7343_v44 = vpop.f32.mrb[4].mxu1  ;;  %v8043_v16 = vsel %vm7787_vm9, %v7659_v20, %v7915_v32 }
 0x7e2   : > { %v8044_v56 = vsel %vm7788_vm14, %v7660_v31, %v7916_v50  ;;  %v7523_v18 = vmul.f32 %v16673_v51, %v7343_v44  ;;  %v7345_v42 = vpop.f32.mrb[5].mxu1 }
 0x7e3   : > { %v8124_v54 = vpack.c.bf16 %v8044_v56, %v8042_v45  ;;  %v7524_v36 = vmul.f32 %v16679_v41, %v7345_v42  ;;  %v7347_v47 = vpop.f32.mrb[6].mxu1  ;;  %v8045_v5 = vsel %vm7789_vm11, %v7661_v63, %v7917_v24 }
 0x7e4   : > { %v7662_v33 = vadd.f32 %v16682_v43, %v7523_v18  ;;  %v7525_v28 = vmul.f32 %v16673_v51, %v7347_v47  ;;  %v7349_v22 = vpop.f32.mrb[7].mxu1  ;;  %v8125_v3 = vpack.c.bf16 %v8045_v5, %v8043_v16 }
 0x7e5   : > { %v7663_v1 = vadd.f32 %v16685_v26, %v7524_v36  ;;  %v7526_v58 = vmul.f32 %v16679_v41, %v7349_v22  ;;  %v16970_v22 = vld [vmem:[%s862_s6] ss:$0 sm:$0xff] }
 0x7e6   : > { %v7918_v12 = vmul.f32 0.01, %v7662_v33  ;;  %v7664_v23 = vadd.f32 %v16682_v43, %v7525_v28  ;;  %8492 = vmatprep.mubr.bf16.mxu0 %v8125_v3  ;;  %vm7790_vm12 = vcmp.gt.f32.partialorder %v7662_v33, 0.0 }
 0x7e7   : > { %v7919_v59 = vmul.f32 0.01, %v7663_v1  ;;  %v7665_v25 = vadd.f32 %v16685_v26, %v7526_v58  ;;  %8493 = vmatmul.mubr.bf16.gmra.mrb[64].mxu0 %v8124_v54  ;;  %vm7791_vm13 = vcmp.gt.f32.partialorder %v7663_v1, 0.0  ;;  %v16964_v54 = vld [vmem:[%s854_s17] ss:$0 sm:$0xff] }
 0x7e8   : > { %vm7792_vm0 = vcmp.gt.f32.partialorder %v7664_v23, 0.0  ;;  %v7920_v38 = vmul.f32 0.01, %v7664_v23  ;;  %v8046_v8 = vsel %vm7790_vm12, %v7662_v33, %v7918_v12 }
 0x7e9   : > { %vm7793_vm15 = vcmp.gt.f32.partialorder %v7665_v25, 0.0  ;;  %v7921_v39 = vmul.f32 0.01, %v7665_v25  ;;  %v7353_v13 = vpop.f32.mrb[8].mxu1  ;;  %v8047_v7 = vsel %vm7791_vm13, %v7663_v1, %v7919_v59 }
 0x7ea   : > { %v8048_v52 = vsel %vm7792_vm0, %v7664_v23, %v7920_v38  ;;  %v7527_v21 = vmul.f32 %v16673_v51, %v7353_v13  ;;  %v7355_v49 = vpop.f32.mrb[9].mxu1 }
 0x7eb   : > { %v8126_v6 = vpack.c.bf16 %v8048_v52, %v8046_v8  ;;  %v7528_v57 = vmul.f32 %v16679_v41, %v7355_v49  ;;  %v7357_v34 = vpop.f32.mrb[10].mxu1  ;;  %v8049_v48 = vsel %vm7793_vm15, %v7665_v25, %v7921_v39 }
 0x7ec   : > { %v7666_v61 = vadd.f32 %v16682_v43, %v7527_v21  ;;  %v7529_v14 = vmul.f32 %v16673_v51, %v7357_v34  ;;  %v7359_v29 = vpop.f32.mrb[11].mxu1  ;;  %v8127_v46 = vpack.c.bf16 %v8049_v48, %v8047_v7 }
 0x7ed   : > { %v7667_v9 = vadd.f32 %v16685_v26, %v7528_v57  ;;  %v7530_v53 = vmul.f32 %v16679_v41, %v7359_v29 }
 0x7ee   : > { %v7922_v2 = vmul.f32 0.01, %v7666_v61  ;;  %v7668_v40 = vadd.f32 %v16682_v43, %v7529_v14  ;;  %8500 = vmatprep.mubr.bf16.mxu0 %v8127_v46  ;;  %vm7794_vm10 = vcmp.gt.f32.partialorder %v7666_v61, 0.0 }
 0x7ef   : > { %v7923_v37 = vmul.f32 0.01, %v7667_v9  ;;  %v7669_v27 = vadd.f32 %v16685_v26, %v7530_v53  ;;  %8501 = vmatmul.mubr.bf16.gmra.mrb[68].mxu0 %v8126_v6  ;;  %vm7795_vm2 = vcmp.gt.f32.partialorder %v7667_v9, 0.0 }
 0x7f0   : > { %vm7796_vm4 = vcmp.gt.f32.partialorder %v7668_v40, 0.0  ;;  %v7924_v17 = vmul.f32 0.01, %v7668_v40  ;;  %v8050_v62 = vsel %vm7794_vm10, %v7666_v61, %v7922_v2 }
 0x7f1   : > { %vm7797_vm7 = vcmp.gt.f32.partialorder %v7669_v27, 0.0  ;;  %v7925_v55 = vmul.f32 0.01, %v7669_v27  ;;  %v7363_v10 = vpop.f32.mrb[12].mxu1  ;;  %v8051_v20 = vsel %vm7795_vm2, %v7667_v9, %v7923_v37 }
 0x7f2   : > { %v8052_v15 = vsel %vm7796_vm4, %v7668_v40, %v7924_v17  ;;  %v7531_v4 = vmul.f32 %v16673_v51, %v7363_v10  ;;  %v7365_v0 = vpop.f32.mrb[13].mxu1 }
 0x7f3   : > { %v8128_v60 = vpack.c.bf16 %v8052_v15, %v8050_v62  ;;  %v7532_v19 = vmul.f32 %v16679_v41, %v7365_v0  ;;  %v7367_v35 = vpop.f32.mrb[14].mxu1  ;;  %v8053_v30 = vsel %vm7797_vm7, %v7669_v27, %v7925_v55 }
 0x7f4   : > { %v7670_v11 = vadd.f32 %v16682_v43, %v7531_v4  ;;  %v7533_v31 = vmul.f32 %v16673_v51, %v7367_v35  ;;  %v7369_v32 = vpop.f32.mrb[15].mxu1  ;;  %v8129_v63 = vpack.c.bf16 %v8053_v30, %v8051_v20 }
 0x7f5   : > { %v7671_v50 = vadd.f32 %v16685_v26, %v7532_v19  ;;  %v7534_v24 = vmul.f32 %v16679_v41, %v7369_v32 }
 0x7f6   : > { %v7926_v44 = vmul.f32 0.01, %v7670_v11  ;;  %v7672_v45 = vadd.f32 %v16682_v43, %v7533_v31  ;;  %8508 = vmatprep.mubr.bf16.mxu0 %v8129_v63  ;;  %vm7798_vm5 = vcmp.gt.f32.partialorder %v7670_v11, 0.0 }
 0x7f7   : > { %vm7799_vm6 = vcmp.gt.f32.partialorder %v7671_v50, 0.0  ;;  %v7927_v56 = vmul.f32 0.01, %v7671_v50  ;;  %v7673_v18 = vadd.f32 %v16685_v26, %v7534_v24  ;;  %8509 = vmatmul.mubr.bf16.gmra.mrb[72].mxu0 %v8128_v60 }
 0x7f8   : > { %vm7800_vm8 = vcmp.gt.f32.partialorder %v7672_v45, 0.0  ;;  %v7928_v42 = vmul.f32 0.01, %v7672_v45  ;;  %v8054_v16 = vsel %vm7798_vm5, %v7670_v11, %v7926_v44 }
 0x7f9   : > { %vm7801_vm3 = vcmp.gt.f32.partialorder %v7673_v18, 0.0  ;;  %v7929_v36 = vmul.f32 0.01, %v7673_v18  ;;  %v7373_v47 = vpop.f32.mrb[16].mxu1  ;;  %v8055_v1 = vsel %vm7799_vm6, %v7671_v50, %v7927_v56 }
 0x7fa   : > { %v8056_v5 = vsel %vm7800_vm8, %v7672_v45, %v7928_v42  ;;  %v7535_v33 = vmul.f32 %v16673_v51, %v7373_v47  ;;  %v7375_v28 = vpop.f32.mrb[17].mxu1  ;;  %v8302_v3 = vpop.f32.mrb[224].mxu0 }
 0x7fb   : > { %v8130_v58 = vpack.c.bf16 %v8056_v5, %v8054_v16  ;;  %v7536_v12 = vmul.f32 %v16679_v41, %v7375_v28  ;;  %v8563_v23 = vmul.f32 %v16964_v54, %v8302_v3  ;;  %v7377_v59 = vpop.f32.mrb[18].mxu1  ;;  %v8304_v25 = vpop.f32.mrb[225].mxu0  ;;  %v8057_v38 = vsel %vm7801_vm3, %v7673_v18, %v7929_v36 }
 0x7fc   : > { %v7674_v39 = vadd.f32 %v16682_v43, %v7535_v33  ;;  %v7537_v13 = vmul.f32 %v16673_v51, %v7377_v59  ;;  %v7379_v8 = vpop.f32.mrb[19].mxu1  ;;  %v8305_v52 = vpop.f32.mrb[226].mxu0  ;;  %v8131_v21 = vpack.c.bf16 %v8057_v38, %v8055_v1 }
 0x7fd   : > { %v7675_v49 = vadd.f32 %v16685_v26, %v7536_v12  ;;  %v8633_v6 = vadd.f32 %v16970_v22, %v8563_v23  ;;  %v7538_v57 = vmul.f32 %v16679_v41, %v7379_v8  ;;  %v8564_v34 = vmul.f32 %v16964_v54, %v8305_v52  ;;  %v8307_v7 = vpop.f32.mrb[227].mxu0 }
 0x7fe   : > { %vm7802_vm1 = vcmp.gt.f32.partialorder %v7674_v39, 0.0  ;;  %v7930_v48 = vmul.f32 0.01, %v7674_v39  ;;  %v7676_v61 = vadd.f32 %v16682_v43, %v7537_v13  ;;  %8516 = vmatprep.mubr.bf16.mxu0 %v8131_v21 }
 0x7ff   : > { %vm7803_vm9 = vcmp.gt.f32.partialorder %v7675_v49, 0.0  ;;  %v7931_v14 = vmul.f32 0.01, %v7675_v49  ;;  %vm8697_vm14 = vcmp.gt.f32.partialorder %v8633_v6, 0.0  ;;  %v8761_v29 = vmul.f32 0.01, %v8633_v6  ;;  %8517 = vmatmul.mubr.bf16.gmra.mrb[76].mxu0 %v8130_v58 }
 0x800   : > { %vm7804_vm11 = vcmp.gt.f32.partialorder %v7676_v61, 0.0  ;;  %v7932_v46 = vmul.f32 0.01, %v7676_v61  ;;  %v7677_v9 = vadd.f32 %v16685_v26, %v7538_v57  ;;  %v8058_v53 = vsel %vm7802_vm1, %v7674_v39, %v7930_v48 }
 0x801   : > { %v8634_v2 = vadd.f32 %v16970_v22, %v8564_v34  ;;  %v7383_v40 = vpop.f32.mrb[20].mxu1  ;;  %v8059_v37 = vsel %vm7803_vm9, %v7675_v49, %v7931_v14  ;;  %v16985_v27 = vsel %vm8697_vm14, %v8633_v6, %v8761_v29 }
 0x802   : > { %v8060_v17 = vsel %vm7804_vm11, %v7676_v61, %v7932_v46  ;;  %vm7805_vm12 = vcmp.gt.f32.partialorder %v7677_v9, 0.0  ;;  %v7933_v55 = vmul.f32 0.01, %v7677_v9  ;;  %v7539_v10 = vmul.f32 %v16673_v51, %v7383_v40  ;;  %v7385_v62 = vpop.f32.mrb[21].mxu1  ;;  %v8310_v15 = vpop.f32.mrb[228].mxu0 }
 0x803   : > { %v8132_v4 = vpack.c.bf16 %v8060_v17, %v8058_v53  ;;  %vm8698_vm13 = vcmp.gt.f32.partialorder %v8634_v2, 0.0  ;;  %v8762_v0 = vmul.f32 0.01, %v8634_v2  ;;  %v7540_v60 = vmul.f32 %v16679_v41, %v7385_v62  ;;  %v7387_v19 = vpop.f32.mrb[22].mxu1  ;;  %v8312_v35 = vpop.f32.mrb[229].mxu0 }
 0x804   : > { %v7678_v20 = vadd.f32 %v16682_v43, %v7539_v10  ;;  %v8565_v30 = vmul.f32 %v16964_v54, %v8310_v15  ;;  %v7541_v11 = vmul.f32 %v16673_v51, %v7387_v19  ;;  %v7389_v31 = vpop.f32.mrb[23].mxu1  ;;  %v8313_v32 = vpop.f32.mrb[230].mxu0  ;;  %v8061_v63 = vsel %vm7805_vm12, %v7677_v9, %v7933_v55 }
 0x805   : > { %v7679_v50 = vadd.f32 %v16685_v26, %v7540_v60  ;;  %v7542_v24 = vmul.f32 %v16679_v41, %v7389_v31  ;;  %v8566_v44 = vmul.f32 %v16964_v54, %v8313_v32  ;;  %v8315_v45 = vpop.f32.mrb[231].mxu0  ;;  %v8133_v56 = vpack.c.bf16 %v8061_v63, %v8059_v37 }
 0x806   : > { %vm7806_vm0 = vcmp.gt.f32.partialorder %v7678_v20, 0.0  ;;  %v7934_v18 = vmul.f32 0.01, %v7678_v20  ;;  %v8635_v42 = vadd.f32 %v16970_v22, %v8565_v30  ;;  %v7680_v36 = vadd.f32 %v16682_v43, %v7541_v11 }
 0x807   : > { %vm7807_vm15 = vcmp.gt.f32.partialorder %v7679_v50, 0.0  ;;  %v7935_v47 = vmul.f32 0.01, %v7679_v50  ;;  %v7681_v16 = vadd.f32 %v16685_v26, %v7542_v24  ;;  %v8636_v5 = vadd.f32 %v16970_v22, %v8566_v44  ;;  %8524 = vmatprep.mubr.bf16.mxu0 %v8133_v56 }
 0x808   : > { %v8062_v33 = vsel %vm7806_vm0, %v7678_v20, %v7934_v18  ;;  %vm8699_vm10 = vcmp.gt.f32.partialorder %v8635_v42, 0.0  ;;  %v8763_v28 = vmul.f32 0.01, %v8635_v42  ;;  %vm7808_vm2 = vcmp.gt.f32.partialorder %v7680_v36, 0.0  ;;  %8525 = vmatmul.mubr.bf16.gmra.mrb[80].mxu0 %v8132_v4 }
 0x809   : > { %v7936_v3 = vmul.f32 0.01, %v7680_v36  ;;  %vm7809_vm4 = vcmp.gt.f32.partialorder %v7681_v16, 0.0  ;;  %v7937_v1 = vmul.f32 0.01, %v7681_v16  ;;  %vm8700_vm7 = vcmp.gt.f32.partialorder %v8636_v5, 0.0 }
 0x80a   : > { %v17000_v58 = vsel %vm8699_vm10, %v8635_v42, %v8763_v28  ;;  %v8764_v12 = vmul.f32 0.01, %v8636_v5  ;;  %v7393_v23 = vpop.f32.mrb[24].mxu1  ;;  %v8318_v59 = vpop.f32.mrb[232].mxu0  ;;  %v8063_v25 = vsel %vm7807_vm15, %v7679_v50, %v7935_v47  ;;  %v17004_v38 = vsel %vm8698_vm13, %v8634_v2, %v8762_v0 }
 0x80b   : > { %v8064_v39 = vsel %vm7808_vm2, %v7680_v36, %v7936_v3  ;;  %v7543_v13 = vmul.f32 %v16673_v51, %v7393_v23  ;;  %v7395_v8 = vpop.f32.mrb[25].mxu1  ;;  %v8567_v52 = vmul.f32 %v16964_v54, %v8318_v59  ;;  %v8320_v21 = vpop.f32.mrb[233].mxu0  ;;  %v8065_v49 = vsel %vm7809_vm4, %v7681_v16, %v7937_v1 }
 0x80c   : > { %v8134_v6 = vpack.c.bf16 %v8064_v39, %v8062_v33  ;;  %v17008_v57 = vsel %vm8700_vm7, %v8636_v5, %v8764_v12  ;;  %v7544_v34 = vmul.f32 %v16679_v41, %v7395_v8  ;;  %v7397_v7 = vpop.f32.mrb[26].mxu1  ;;  %v8321_v48 = vpop.f32.mrb[234].mxu0  ;;  %v8135_v61 = vpack.c.bf16 %v8065_v49, %v8063_v25 }
 0x80d   : > { %v8892_v14 = vpack.c.bf16 %v17008_v57, %v17000_v58  ;;  %v7682_v29 = vadd.f32 %v16682_v43, %v7543_v13  ;;  %v8637_v46 = vadd.f32 %v16970_v22, %v8567_v52  ;;  %v7545_v9 = vmul.f32 %v16673_v51, %v7397_v7  ;;  %v7399_v53 = vpop.f32.mrb[27].mxu1  ;;  %v8323_v2 = vpop.f32.mrb[235].mxu0 }
 0x80e   : > { %v7683_v40 = vadd.f32 %v16685_v26, %v7544_v34  ;;  %v7546_v37 = vmul.f32 %v16679_v41, %v7399_v53  ;;  %v8568_v17 = vmul.f32 %v16964_v54, %v8321_v48  ;;  %8532 = vmatprep.mubr.bf16.mxu0 %v8135_v61  ;;  %v8891_v55 = vpack.c.bf16 %v17004_v38, %v16985_v27 }
 0x80f   : > { %vm7810_vm5 = vcmp.gt.f32.partialorder %v7682_v29, 0.0  ;;  %v7938_v10 = vmul.f32 0.01, %v7682_v29  ;;  %v7684_v15 = vadd.f32 %v16682_v43, %v7545_v9  ;;  %vm8701_vm8 = vcmp.gt.f32.partialorder %v8637_v46, 0.0 }
 0x810   : > { %vm7811_vm6 = vcmp.gt.f32.partialorder %v7683_v40, 0.0  ;;  %v7939_v62 = vmul.f32 0.01, %v7683_v40  ;;  %v7685_v4 = vadd.f32 %v16685_v26, %v7546_v37  ;;  %8533 = vmatmul.mubr.bf16.gmra.mrb[84].mxu0 %v8134_v6  ;;  %v8765_v60 = vmul.f32 0.01, %v8637_v46 }
 0x811   : > { %v8066_v0 = vsel %vm7810_vm5, %v7682_v29, %v7938_v10  ;;  %v8638_v19 = vadd.f32 %v16970_v22, %v8568_v17  ;;  %v7403_v35 = vpop.f32.mrb[28].mxu1  ;;  %vm7812_vm3 = vcmp.gt.f32.partialorder %v7684_v15, 0.0  ;;  %v7940_v20 = vmul.f32 0.01, %v7684_v15 }
 0x812   : > { %vm7813_vm1 = vcmp.gt.f32.partialorder %v7685_v4, 0.0  ;;  %v7941_v30 = vmul.f32 0.01, %v7685_v4  ;;  %v7547_v31 = vmul.f32 %v16673_v51, %v7403_v35  ;;  %v7405_v32 = vpop.f32.mrb[29].mxu1  ;;  %v8326_v63 = vpop.f32.mrb[236].mxu0  ;;  %v8067_v50 = vsel %vm7811_vm6, %v7683_v40, %v7939_v62 }
 0x813   : > { %vm8702_vm9 = vcmp.gt.f32.partialorder %v8638_v19, 0.0  ;;  %v8766_v11 = vmul.f32 0.01, %v8638_v19  ;;  %v8068_v24 = vsel %vm7812_vm3, %v7684_v15, %v7940_v20  ;;  %v7548_v44 = vmul.f32 %v16679_v41, %v7405_v32  ;;  %v7407_v56 = vpop.f32.mrb[30].mxu1  ;;  %v8328_v18 = vpop.f32.mrb[237].mxu0 }
 0x814   : > { %v8569_v45 = vmul.f32 %v16964_v54, %v8326_v63  ;;  %v8069_v42 = vsel %vm7813_vm1, %v7685_v4, %v7941_v30  ;;  %v8136_v36 = vpack.c.bf16 %v8068_v24, %v8066_v0  ;;  %v7686_v47 = vadd.f32 %v16682_v43, %v7547_v31  ;;  %v7409_v5 = vpop.f32.mrb[31].mxu1  ;;  %v8329_v33 = vpop.f32.mrb[238].mxu0 }
 0x815   : > { %v7549_v16 = vmul.f32 %v16673_v51, %v7407_v56  ;;  %v8137_v28 = vpack.c.bf16 %v8069_v42, %v8067_v50  ;;  %v7687_v3 = vadd.f32 %v16685_v26, %v7548_v44  ;;  %v7550_v12 = vmul.f32 %v16679_v41, %v7409_v5  ;;  %v8331_v59 = vpop.f32.mrb[239].mxu0 }
 0x816   : > { %v8639_v1 = vadd.f32 %v16970_v22, %v8569_v45  ;;  %v8570_v23 = vmul.f32 %v16964_v54, %v8329_v33  ;;  %vm7814_vm14 = vcmp.gt.f32.partialorder %v7686_v47, 0.0  ;;  %v7942_v25 = vmul.f32 0.01, %v7686_v47 }
 0x817   : > { %v7688_v39 = vadd.f32 %v16682_v43, %v7549_v16  ;;  %8540 = vmatprep.mubr.bf16.mxu0 %v8137_v28  ;;  %v8830_v13 = vsel %vm8702_vm9, %v8638_v19, %v8766_v11  ;;  %vm7815_vm11 = vcmp.gt.f32.partialorder %v7687_v3, 0.0  ;;  %v7943_v51 = vmul.f32 0.01, %v7687_v3 }
 0x818   : > { %8541 = vmatmul.mubr.bf16.gmra.mrb[88].mxu0 %v8136_v36  ;;  %v8829_v8 = vsel %vm8701_vm8, %v8637_v46, %v8765_v60  ;;  %vm8703_vm12 = vcmp.gt.f32.partialorder %v8639_v1, 0.0  ;;  %v7689_v41 = vadd.f32 %v16685_v26, %v7550_v12  ;;  %v8070_v21 = vsel %vm7814_vm14, %v7686_v47, %v7942_v25 }
 0x819   : > { %vm7816_vm13 = vcmp.gt.f32.partialorder %v7688_v39, 0.0  ;;  %v7944_v52 = vmul.f32 0.01, %v7688_v39  ;;  %v8767_v49 = vmul.f32 0.01, %v8639_v1  ;;  %v8640_v6 = vadd.f32 %v16970_v22, %v8570_v23 }
 0x81a   : > { %v8334_v34 = vpop.f32.mrb[240].mxu0  ;;  %v8893_v7 = vpack.c.bf16 %v8830_v13, %v8829_v8  ;;  %vm7817_vm0 = vcmp.gt.f32.partialorder %v7689_v41, 0.0  ;;  %v7945_v48 = vmul.f32 0.01, %v7689_v41  ;;  %v8071_v37 = vsel %vm7815_vm11, %v7687_v3, %v7943_v51 }
 0x81b   : > { %v8072_v43 = vsel %vm7816_vm13, %v7688_v39, %v7944_v52  ;;  %v8571_v61 = vmul.f32 %v16964_v54, %v8334_v34  ;;  %v8336_v29 = vpop.f32.mrb[241].mxu0  ;;  %vm8704_vm15 = vcmp.gt.f32.partialorder %v8640_v6, 0.0  ;;  %v8768_v46 = vmul.f32 0.01, %v8640_v6 }
 0x81c   : > { %v8138_v9 = vpack.c.bf16 %v8072_v43, %v8070_v21  ;;  %v8337_v53 = vpop.f32.mrb[242].mxu0  ;;  %v8073_v17 = vsel %vm7817_vm0, %v7689_v41, %v7945_v48  ;;  %v8831_v10 = vsel %vm8703_vm12, %v8639_v1, %v8767_v49 }
 0x81d   : > { %v8641_v2 = vadd.f32 %v16970_v22, %v8571_v61  ;;  %v8572_v26 = vmul.f32 %v16964_v54, %v8337_v53  ;;  %v8339_v40 = vpop.f32.mrb[243].mxu0  ;;  %v8832_v62 = vsel %vm8704_vm15, %v8640_v6, %v8768_v46  ;;  %v8139_v15 = vpack.c.bf16 %v8073_v17, %v8071_v37 }
 0x81e   : > { %v8894_v4 = vpack.c.bf16 %v8832_v62, %v8831_v10 }
 0x81f   : > { %v8769_v0 = vmul.f32 0.01, %v8641_v2  ;;  %v8642_v60 = vadd.f32 %v16970_v22, %v8572_v26  ;;  %vm8705_vm10 = vcmp.gt.f32.partialorder %v8641_v2, 0.0  ;;  %8548 = vmatprep.mubr.bf16.mxu0 %v8139_v15 }
 0x820   : > { %8549 = vmatmul.mubr.bf16.gmra.mrb[92].mxu0 %v8138_v9 }
 0x821   : > { %vm8706_vm2 = vcmp.gt.f32.partialorder %v8642_v60, 0.0  ;;  %v8770_v19 = vmul.f32 0.01, %v8642_v60  ;;  %10121 = vmatprep.mubr.bf16.mxu0 %v8891_v55  ;;  %v8833_v11 = vsel %vm8705_vm10, %v8641_v2, %v8769_v0 }
 0x822   : > { %v8342_v35 = vpop.f32.mrb[244].mxu0 }
 0x823   : > { %v8573_v20 = vmul.f32 %v16964_v54, %v8342_v35  ;;  %v8344_v30 = vpop.f32.mrb[245].mxu0  ;;  %v8834_v31 = vsel %vm8706_vm2, %v8642_v60, %v8770_v19 }
 0x824   : > { %v8345_v32 = vpop.f32.mrb[246].mxu0  ;;  %v8895_v63 = vpack.c.bf16 %v8834_v31, %v8833_v11 }
 0x825   : > { %v8643_v50 = vadd.f32 %v16970_v22, %v8573_v20  ;;  %v8574_v24 = vmul.f32 %v16964_v54, %v8345_v32  ;;  %v8347_v44 = vpop.f32.mrb[247].mxu0 }
 0x827   : > { %v8771_v45 = vmul.f32 0.01, %v8643_v50  ;;  %v8644_v56 = vadd.f32 %v16970_v22, %v8574_v24  ;;  %vm8707_vm4 = vcmp.gt.f32.partialorder %v8643_v50, 0.0 }
 0x828   : > { %10122 = vmatmul.mubr.bf16.vlgmr.msra.gmra.mrb[96].mxu0 %v8892_v14 }
 0x829   : > { %vm8708_vm7 = vcmp.gt.f32.partialorder %v8644_v56, 0.0  ;;  %v8772_v27 = vmul.f32 0.01, %v8644_v56  ;;  %10125 = vmatprep.mubr.bf16.mxu0 %v8893_v7  ;;  %v8835_v55 = vsel %vm8707_vm4, %v8643_v50, %v8771_v45 }
 0x82a   : > { %v8350_v38 = vpop.f32.mrb[248].mxu0 }
 0x82b   : > { %v8836_v18 = vsel %vm8708_vm7, %v8644_v56, %v8772_v27  ;;  %v8575_v42 = vmul.f32 %v16964_v54, %v8350_v38  ;;  %v8352_v36 = vpop.f32.mrb[249].mxu0 }
 0x82c   : > { %v8896_v47 = vpack.c.bf16 %v8836_v18, %v8835_v55  ;;  %v8353_v16 = vpop.f32.mrb[250].mxu0 }
 0x82d   : > { %v8645_v5 = vadd.f32 %v16970_v22, %v8575_v42  ;;  %v8576_v33 = vmul.f32 %v16964_v54, %v8353_v16  ;;  %v8355_v28 = vpop.f32.mrb[251].mxu0 }
 0x82f   : > { %v8773_v3 = vmul.f32 0.01, %v8645_v5  ;;  %v8646_v1 = vadd.f32 %v16970_v22, %v8576_v33  ;;  %vm8709_vm5 = vcmp.gt.f32.partialorder %v8645_v5, 0.0 }
 0x830   : > { %10126 = vmatmul.mubr.bf16.gmra.mrb[100].mxu0 %v8894_v4 }
 0x831   : > { %vm8710_vm6 = vcmp.gt.f32.partialorder %v8646_v1, 0.0  ;;  %v8774_v58 = vmul.f32 0.01, %v8646_v1  ;;  %10129 = vmatprep.mubr.bf16.mxu0 %v8895_v63  ;;  %v8837_v23 = vsel %vm8709_vm5, %v8645_v5, %v8773_v3 }
 0x832   : > { %v8358_v57 = vpop.f32.mrb[252].mxu0 }
 0x833   : > { %v8577_v14 = vmul.f32 %v16964_v54, %v8358_v57  ;;  %v8360_v12 = vpop.f32.mrb[253].mxu0  ;;  %v8838_v59 = vsel %vm8710_vm6, %v8646_v1, %v8774_v58 }
 0x834   : > { %v8361_v25 = vpop.f32.mrb[254].mxu0  ;;  %v8897_v39 = vpack.c.bf16 %v8838_v59, %v8837_v23 }
 0x835   : > { %v8647_v13 = vadd.f32 %v16970_v22, %v8577_v14  ;;  %v8578_v51 = vmul.f32 %v16964_v54, %v8361_v25  ;;  %v8363_v8 = vpop.f32.mrb[255].mxu0 }
 0x837   : > { %v8775_v52 = vmul.f32 0.01, %v8647_v13  ;;  %v8648_v41 = vadd.f32 %v16970_v22, %v8578_v51  ;;  %vm8711_vm8 = vcmp.gt.f32.partialorder %v8647_v13, 0.0 }
 0x838   : > { %10130 = vmatmul.mubr.bf16.gmra.mrb[104].mxu0 %v8896_v47 }
 0x839   : > { %vm8712_vm3 = vcmp.gt.f32.partialorder %v8648_v41, 0.0  ;;  %v8776_v21 = vmul.f32 0.01, %v8648_v41  ;;  %10133 = vmatprep.mubr.bf16.mxu0 %v8897_v39  ;;  %v8839_v6 = vsel %vm8711_vm8, %v8647_v13, %v8775_v52 }
 0x83a   : > { %v8366_v49 = vpop.f32.mrb[0].mxu0 }
 0x83b   : > { %v8840_v34 = vsel %vm8712_vm3, %v8648_v41, %v8776_v21  ;;  %v8579_v7 = vmul.f32 %v16964_v54, %v8366_v49  ;;  %v8368_v43 = vpop.f32.mrb[1].mxu0 }
 0x83c   : > { %v8898_v48 = vpack.c.bf16 %v8840_v34, %v8839_v6  ;;  %v8369_v61 = vpop.f32.mrb[2].mxu0 }
 0x83d   : > { %v8649_v29 = vadd.f32 %v16970_v22, %v8579_v7  ;;  %v8580_v9 = vmul.f32 %v16964_v54, %v8369_v61  ;;  %v8371_v46 = vpop.f32.mrb[3].mxu0 }
 0x83f   : > { %v8777_v53 = vmul.f32 0.01, %v8649_v29  ;;  %v8650_v2 = vadd.f32 %v16970_v22, %v8580_v9  ;;  %vm8713_vm1 = vcmp.gt.f32.partialorder %v8649_v29, 0.0 }
 0x840   : > { %10134 = vmatmul.mubr.bf16.gmra.mrb[108].mxu0 %v8898_v48 }
 0x841   : > { %vm8714_vm9 = vcmp.gt.f32.partialorder %v8650_v2, 0.0  ;;  %v8778_v26 = vmul.f32 0.01, %v8650_v2  ;;  %v8841_v10 = vsel %vm8713_vm1, %v8649_v29, %v8777_v53 }
 0x842   : > { %v8374_v40 = vpop.f32.mrb[4].mxu0 }
 0x843   : > { %v8581_v37 = vmul.f32 %v16964_v54, %v8374_v40  ;;  %v8376_v17 = vpop.f32.mrb[5].mxu0  ;;  %v8842_v62 = vsel %vm8714_vm9, %v8650_v2, %v8778_v26 }
 0x844   : > { %v8377_v15 = vpop.f32.mrb[6].mxu0  ;;  %v8899_v4 = vpack.c.bf16 %v8842_v62, %v8841_v10 }
 0x845   : > { %v8651_v0 = vadd.f32 %v16970_v22, %v8581_v37  ;;  %v8582_v60 = vmul.f32 %v16964_v54, %v8377_v15  ;;  %v8379_v19 = vpop.f32.mrb[7].mxu0 }
 0x846   : > { %10137 = vmatprep.mubr.bf16.mxu0 %v8899_v4 }
 0x847   : > { %v8779_v35 = vmul.f32 0.01, %v8651_v0  ;;  %v8652_v20 = vadd.f32 %v16970_v22, %v8582_v60  ;;  %vm8715_vm14 = vcmp.gt.f32.partialorder %v8651_v0, 0.0 }
 0x849   : > { %vm8716_vm11 = vcmp.gt.f32.partialorder %v8652_v20, 0.0  ;;  %v8780_v30 = vmul.f32 0.01, %v8652_v20  ;;  %v8843_v31 = vsel %vm8715_vm14, %v8651_v0, %v8779_v35 }
 0x84a   : > { %v8382_v11 = vpop.f32.mrb[8].mxu0 }
 0x84b   : > { %v8844_v32 = vsel %vm8716_vm11, %v8652_v20, %v8780_v30  ;;  %v8583_v63 = vmul.f32 %v16964_v54, %v8382_v11  ;;  %v8384_v50 = vpop.f32.mrb[9].mxu0 }
 0x84c   : > { %v8900_v24 = vpack.c.bf16 %v8844_v32, %v8843_v31  ;;  %v8385_v44 = vpop.f32.mrb[10].mxu0 }
 0x84d   : > { %v8653_v45 = vadd.f32 %v16970_v22, %v8583_v63  ;;  %v8584_v56 = vmul.f32 %v16964_v54, %v8385_v44  ;;  %v8387_v27 = vpop.f32.mrb[11].mxu0 }
 0x84e   : > { %10138 = vmatmul.mubr.bf16.gmra.mrb[112].mxu0 %v8900_v24 }
 0x84f   : > { %v8781_v38 = vmul.f32 0.01, %v8653_v45  ;;  %v8654_v55 = vadd.f32 %v16970_v22, %v8584_v56  ;;  %vm8717_vm12 = vcmp.gt.f32.partialorder %v8653_v45, 0.0 }
 0x851   : > { %vm8718_vm13 = vcmp.gt.f32.partialorder %v8654_v55, 0.0  ;;  %v8782_v18 = vmul.f32 0.01, %v8654_v55  ;;  %v8845_v16 = vsel %vm8717_vm12, %v8653_v45, %v8781_v38 }
 0x852   : > { %v8390_v42 = vpop.f32.mrb[12].mxu0 }
 0x853   : > { %v8585_v36 = vmul.f32 %v16964_v54, %v8390_v42  ;;  %v8392_v47 = vpop.f32.mrb[13].mxu0  ;;  %v8846_v5 = vsel %vm8718_vm13, %v8654_v55, %v8782_v18 }
 0x854   : > { %v8393_v33 = vpop.f32.mrb[14].mxu0  ;;  %v8901_v28 = vpack.c.bf16 %v8846_v5, %v8845_v16 }
 0x855   : > { %v8655_v3 = vadd.f32 %v16970_v22, %v8585_v36  ;;  %v8586_v1 = vmul.f32 %v16964_v54, %v8393_v33  ;;  %v8395_v58 = vpop.f32.mrb[15].mxu0 }
 0x856   : > { %10141 = vmatprep.mubr.bf16.mxu0 %v8901_v28 }
 0x857   : > { %v8783_v57 = vmul.f32 0.01, %v8655_v3  ;;  %v8656_v14 = vadd.f32 %v16970_v22, %v8586_v1  ;;  %vm8719_vm0 = vcmp.gt.f32.partialorder %v8655_v3, 0.0 }
 0x859   : > { %vm8720_vm15 = vcmp.gt.f32.partialorder %v8656_v14, 0.0  ;;  %v8784_v12 = vmul.f32 0.01, %v8656_v14  ;;  %v8847_v59 = vsel %vm8719_vm0, %v8655_v3, %v8783_v57 }
 0x85a   : > { %v8398_v23 = vpop.f32.mrb[16].mxu0 }
 0x85b   : > { %v8848_v25 = vsel %vm8720_vm15, %v8656_v14, %v8784_v12  ;;  %v8587_v39 = vmul.f32 %v16964_v54, %v8398_v23  ;;  %v8400_v13 = vpop.f32.mrb[17].mxu0 }
 0x85c   : > { %v8902_v51 = vpack.c.bf16 %v8848_v25, %v8847_v59  ;;  %v8401_v8 = vpop.f32.mrb[18].mxu0 }
 0x85d   : > { %v8657_v52 = vadd.f32 %v16970_v22, %v8587_v39  ;;  %v8588_v41 = vmul.f32 %v16964_v54, %v8401_v8  ;;  %v8403_v21 = vpop.f32.mrb[19].mxu0 }
 0x85e   : > { %10142 = vmatmul.mubr.bf16.gmra.mrb[116].mxu0 %v8902_v51 }
 0x85f   : > { %v8785_v49 = vmul.f32 0.01, %v8657_v52  ;;  %v8658_v6 = vadd.f32 %v16970_v22, %v8588_v41  ;;  %vm8721_vm10 = vcmp.gt.f32.partialorder %v8657_v52, 0.0 }
 0x861   : > { %vm8722_vm2 = vcmp.gt.f32.partialorder %v8658_v6, 0.0  ;;  %v8786_v34 = vmul.f32 0.01, %v8658_v6  ;;  %v8849_v61 = vsel %vm8721_vm10, %v8657_v52, %v8785_v49 }
 0x862   : > { %v8406_v7 = vpop.f32.mrb[20].mxu0 }
 0x863   : > { %v8589_v43 = vmul.f32 %v16964_v54, %v8406_v7  ;;  %v8408_v48 = vpop.f32.mrb[21].mxu0  ;;  %v8850_v29 = vsel %vm8722_vm2, %v8658_v6, %v8786_v34 }
 0x864   : > { %v8409_v9 = vpop.f32.mrb[22].mxu0  ;;  %v8903_v46 = vpack.c.bf16 %v8850_v29, %v8849_v61 }
 0x865   : > { %v8659_v53 = vadd.f32 %v16970_v22, %v8589_v43  ;;  %v8590_v2 = vmul.f32 %v16964_v54, %v8409_v9  ;;  %v8411_v26 = vpop.f32.mrb[23].mxu0 }
 0x866   : > { %10145 = vmatprep.mubr.bf16.mxu0 %v8903_v46 }
 0x867   : > { %v8787_v40 = vmul.f32 0.01, %v8659_v53  ;;  %v8660_v37 = vadd.f32 %v16970_v22, %v8590_v2  ;;  %vm8723_vm4 = vcmp.gt.f32.partialorder %v8659_v53, 0.0 }
 0x869   : > { %vm8724_vm7 = vcmp.gt.f32.partialorder %v8660_v37, 0.0  ;;  %v8788_v17 = vmul.f32 0.01, %v8660_v37  ;;  %v8851_v62 = vsel %vm8723_vm4, %v8659_v53, %v8787_v40 }
 0x86a   : > { %v8414_v10 = vpop.f32.mrb[24].mxu0 }
 0x86b   : > { %v8852_v15 = vsel %vm8724_vm7, %v8660_v37, %v8788_v17  ;;  %v8591_v4 = vmul.f32 %v16964_v54, %v8414_v10  ;;  %v8416_v0 = vpop.f32.mrb[25].mxu0 }
 0x86c   : > { %v8904_v60 = vpack.c.bf16 %v8852_v15, %v8851_v62  ;;  %v8417_v19 = vpop.f32.mrb[26].mxu0 }
 0x86d   : > { %v8661_v35 = vadd.f32 %v16970_v22, %v8591_v4  ;;  %v8592_v20 = vmul.f32 %v16964_v54, %v8417_v19  ;;  %v8419_v30 = vpop.f32.mrb[27].mxu0 }
 0x86e   : > { %10146 = vmatmul.mubr.bf16.gmra.mrb[120].mxu0 %v8904_v60 }
 0x86f   : > { %v8789_v11 = vmul.f32 0.01, %v8661_v35  ;;  %v8662_v31 = vadd.f32 %v16970_v22, %v8592_v20  ;;  %vm8725_vm5 = vcmp.gt.f32.partialorder %v8661_v35, 0.0 }
 0x871   : > { %vm8726_vm6 = vcmp.gt.f32.partialorder %v8662_v31, 0.0  ;;  %v8790_v32 = vmul.f32 0.01, %v8662_v31  ;;  %v8853_v44 = vsel %vm8725_vm5, %v8661_v35, %v8789_v11 }
 0x872   : > { %v8422_v63 = vpop.f32.mrb[28].mxu0 }
 0x873   : > { %v8593_v50 = vmul.f32 %v16964_v54, %v8422_v63  ;;  %v8424_v24 = vpop.f32.mrb[29].mxu0  ;;  %v8854_v45 = vsel %vm8726_vm6, %v8662_v31, %v8790_v32 }
 0x874   : > { %v8425_v56 = vpop.f32.mrb[30].mxu0  ;;  %v8905_v27 = vpack.c.bf16 %v8854_v45, %v8853_v44 }
 0x875   : > { %v8663_v38 = vadd.f32 %v16970_v22, %v8593_v50  ;;  %v8594_v55 = vmul.f32 %v16964_v54, %v8425_v56  ;;  %v8427_v18 = vpop.f32.mrb[31].mxu0 }
 0x876   : > { %10149 = vmatprep.mubr.bf16.mxu0 %v8905_v27 }
 0x877   : > { %v8791_v42 = vmul.f32 0.01, %v8663_v38  ;;  %v8664_v36 = vadd.f32 %v16970_v22, %v8594_v55  ;;  %vm8727_vm8 = vcmp.gt.f32.partialorder %v8663_v38, 0.0 }
 0x879   : > { %vm8728_vm3 = vcmp.gt.f32.partialorder %v8664_v36, 0.0  ;;  %v8792_v47 = vmul.f32 0.01, %v8664_v36  ;;  %v8855_v5 = vsel %vm8727_vm8, %v8663_v38, %v8791_v42 }
 0x87a   : > { %v8430_v16 = vpop.f32.mrb[32].mxu0 }
 0x87b   : > { %v8856_v33 = vsel %vm8728_vm3, %v8664_v36, %v8792_v47  ;;  %v8595_v28 = vmul.f32 %v16964_v54, %v8430_v16  ;;  %v8432_v3 = vpop.f32.mrb[33].mxu0 }
 0x87c   : > { %v8906_v1 = vpack.c.bf16 %v8856_v33, %v8855_v5  ;;  %v8433_v58 = vpop.f32.mrb[34].mxu0 }
 0x87d   : > { %v8665_v57 = vadd.f32 %v16970_v22, %v8595_v28  ;;  %v8596_v14 = vmul.f32 %v16964_v54, %v8433_v58  ;;  %v8435_v12 = vpop.f32.mrb[35].mxu0 }
 0x87e   : > { %10150 = vmatmul.mubr.bf16.gmra.mrb[124].mxu0 %v8906_v1 }
 0x87f   : > { %v8793_v23 = vmul.f32 0.01, %v8665_v57  ;;  %v8666_v59 = vadd.f32 %v16970_v22, %v8596_v14  ;;  %vm8729_vm1 = vcmp.gt.f32.partialorder %v8665_v57, 0.0 }
 0x881   : > { %vm8730_vm9 = vcmp.gt.f32.partialorder %v8666_v59, 0.0  ;;  %v8794_v25 = vmul.f32 0.01, %v8666_v59  ;;  %v8857_v8 = vsel %vm8729_vm1, %v8665_v57, %v8793_v23 }
 0x882   : > { %v8438_v39 = vpop.f32.mrb[36].mxu0 }
 0x883   : > { %v8597_v13 = vmul.f32 %v16964_v54, %v8438_v39  ;;  %v8440_v51 = vpop.f32.mrb[37].mxu0  ;;  %v8858_v52 = vsel %vm8730_vm9, %v8666_v59, %v8794_v25 }
 0x884   : > { %v8441_v41 = vpop.f32.mrb[38].mxu0  ;;  %v8907_v21 = vpack.c.bf16 %v8858_v52, %v8857_v8 }
 0x885   : > { %v8667_v49 = vadd.f32 %v16970_v22, %v8597_v13  ;;  %v8598_v6 = vmul.f32 %v16964_v54, %v8441_v41  ;;  %v8443_v34 = vpop.f32.mrb[39].mxu0 }
 0x886   : > { %10153 = vmatprep.mubr.bf16.mxu0 %v8907_v21 }
 0x887   : > { %v8795_v7 = vmul.f32 0.01, %v8667_v49  ;;  %v8668_v43 = vadd.f32 %v16970_v22, %v8598_v6  ;;  %vm8731_vm14 = vcmp.gt.f32.partialorder %v8667_v49, 0.0 }
 0x889   : > { %vm8732_vm11 = vcmp.gt.f32.partialorder %v8668_v43, 0.0  ;;  %v8796_v48 = vmul.f32 0.01, %v8668_v43  ;;  %v8859_v29 = vsel %vm8731_vm14, %v8667_v49, %v8795_v7 }
 0x88a   : > { %v8446_v61 = vpop.f32.mrb[40].mxu0 }
 0x88b   : > { %v8860_v9 = vsel %vm8732_vm11, %v8668_v43, %v8796_v48  ;;  %v8599_v46 = vmul.f32 %v16964_v54, %v8446_v61  ;;  %v8448_v53 = vpop.f32.mrb[41].mxu0 }
 0x88c   : > { %v8908_v2 = vpack.c.bf16 %v8860_v9, %v8859_v29  ;;  %v8449_v26 = vpop.f32.mrb[42].mxu0 }
 0x88d   : > { %v8669_v40 = vadd.f32 %v16970_v22, %v8599_v46  ;;  %v8600_v37 = vmul.f32 %v16964_v54, %v8449_v26  ;;  %v8451_v17 = vpop.f32.mrb[43].mxu0 }
 0x88e   : > { %10154 = vmatmul.mubr.bf16.gmra.mrb[128].mxu0 %v8908_v2 }
 0x88f   : > { %v8797_v10 = vmul.f32 0.01, %v8669_v40  ;;  %v8670_v62 = vadd.f32 %v16970_v22, %v8600_v37  ;;  %vm8733_vm12 = vcmp.gt.f32.partialorder %v8669_v40, 0.0 }
 0x891   : > { %vm8734_vm13 = vcmp.gt.f32.partialorder %v8670_v62, 0.0  ;;  %v8798_v15 = vmul.f32 0.01, %v8670_v62  ;;  %v8861_v19 = vsel %vm8733_vm12, %v8669_v40, %v8797_v10 }
 0x892   : > { %v8454_v4 = vpop.f32.mrb[44].mxu0 }
 0x893   : > { %v8601_v0 = vmul.f32 %v16964_v54, %v8454_v4  ;;  %v8456_v60 = vpop.f32.mrb[45].mxu0  ;;  %v8862_v35 = vsel %vm8734_vm13, %v8670_v62, %v8798_v15 }
 0x894   : > { %v8457_v20 = vpop.f32.mrb[46].mxu0  ;;  %v8909_v30 = vpack.c.bf16 %v8862_v35, %v8861_v19 }
 0x895   : > { %v8671_v11 = vadd.f32 %v16970_v22, %v8601_v0  ;;  %v8602_v31 = vmul.f32 %v16964_v54, %v8457_v20  ;;  %v8459_v32 = vpop.f32.mrb[47].mxu0 }
 0x896   : > { %10157 = vmatprep.mubr.bf16.mxu0 %v8909_v30 }
 0x897   : > { %v8799_v63 = vmul.f32 0.01, %v8671_v11  ;;  %v8672_v50 = vadd.f32 %v16970_v22, %v8602_v31  ;;  %vm8735_vm0 = vcmp.gt.f32.partialorder %v8671_v11, 0.0 }
 0x899   : > { %vm8736_vm15 = vcmp.gt.f32.partialorder %v8672_v50, 0.0  ;;  %v8800_v24 = vmul.f32 0.01, %v8672_v50  ;;  %v8863_v45 = vsel %vm8735_vm0, %v8671_v11, %v8799_v63 }
 0x89a   : > { %v8462_v44 = vpop.f32.mrb[48].mxu0 }
 0x89b   : > { %v8864_v56 = vsel %vm8736_vm15, %v8672_v50, %v8800_v24  ;;  %v8603_v27 = vmul.f32 %v16964_v54, %v8462_v44  ;;  %v8464_v38 = vpop.f32.mrb[49].mxu0  ;;  %v17131_v50 = vld [vmem:[%s854_s17] ss:$0 sm:$0xff] }
 0x89c   : > { %v8910_v55 = vpack.c.bf16 %v8864_v56, %v8863_v45  ;;  %v8465_v18 = vpop.f32.mrb[50].mxu0 }
 0x89d   : > { %v8673_v42 = vadd.f32 %v16970_v22, %v8603_v27  ;;  %v8604_v36 = vmul.f32 %v16964_v54, %v8465_v18  ;;  %v8467_v47 = vpop.f32.mrb[51].mxu0 }
 0x89e   : > { %10158 = vmatmul.mubr.bf16.gmra.mrb[132].mxu0 %v8910_v55 }
 0x89f   : > { %v8801_v16 = vmul.f32 0.01, %v8673_v42  ;;  %v8674_v5 = vadd.f32 %v16970_v22, %v8604_v36  ;;  %vm8737_vm10 = vcmp.gt.f32.partialorder %v8673_v42, 0.0 }
 0x8a1   : > { %vm8738_vm2 = vcmp.gt.f32.partialorder %v8674_v5, 0.0  ;;  %v8802_v33 = vmul.f32 0.01, %v8674_v5  ;;  %v8865_v58 = vsel %vm8737_vm10, %v8673_v42, %v8801_v16  ;;  %v17138_v16 = vld [vmem:[%s862_s6] ss:$0 sm:$0xff] }
 0x8a2   : > { %v8470_v28 = vpop.f32.mrb[52].mxu0 }
 0x8a3   : > { %v8605_v3 = vmul.f32 %v16964_v54, %v8470_v28  ;;  %v8472_v1 = vpop.f32.mrb[53].mxu0  ;;  %v8866_v57 = vsel %vm8738_vm2, %v8674_v5, %v8802_v33 }
 0x8a4   : > { %v8473_v14 = vpop.f32.mrb[54].mxu0  ;;  %v8911_v12 = vpack.c.bf16 %v8866_v57, %v8865_v58 }
 0x8a5   : > { %v8675_v23 = vadd.f32 %v16970_v22, %v8605_v3  ;;  %v8606_v59 = vmul.f32 %v16964_v54, %v8473_v14  ;;  %v8475_v25 = vpop.f32.mrb[55].mxu0 }
 0x8a6   : > { %10161 = vmatprep.mubr.bf16.mxu0 %v8911_v12 }
 0x8a7   : > { %v8803_v39 = vmul.f32 0.01, %v8675_v23  ;;  %v8676_v13 = vadd.f32 %v16970_v22, %v8606_v59  ;;  %vm8739_vm4 = vcmp.gt.f32.partialorder %v8675_v23, 0.0 }
 0x8a9   : > { %vm8740_vm7 = vcmp.gt.f32.partialorder %v8676_v13, 0.0  ;;  %v8804_v51 = vmul.f32 0.01, %v8676_v13  ;;  %v8867_v52 = vsel %vm8739_vm4, %v8675_v23, %v8803_v39 }
 0x8aa   : > { %v8478_v8 = vpop.f32.mrb[56].mxu0 }
 0x8ab   : > { %v8868_v41 = vsel %vm8740_vm7, %v8676_v13, %v8804_v51  ;;  %v8607_v21 = vmul.f32 %v16964_v54, %v8478_v8  ;;  %v8480_v49 = vpop.f32.mrb[57].mxu0 }
 0x8ac   : > { %v8912_v6 = vpack.c.bf16 %v8868_v41, %v8867_v52  ;;  %v8481_v34 = vpop.f32.mrb[58].mxu0 }
 0x8ad   : > { %v8677_v7 = vadd.f32 %v16970_v22, %v8607_v21  ;;  %v8608_v43 = vmul.f32 %v16964_v54, %v8481_v34  ;;  %v8483_v48 = vpop.f32.mrb[59].mxu0 }
 0x8ae   : > { %10162 = vmatmul.mubr.bf16.gmra.mrb[136].mxu0 %v8912_v6 }
 0x8af   : > { %v8805_v61 = vmul.f32 0.01, %v8677_v7  ;;  %v8678_v29 = vadd.f32 %v16970_v22, %v8608_v43  ;;  %vm8741_vm5 = vcmp.gt.f32.partialorder %v8677_v7, 0.0 }
 0x8b1   : > { %vm8742_vm6 = vcmp.gt.f32.partialorder %v8678_v29, 0.0  ;;  %v8806_v9 = vmul.f32 0.01, %v8678_v29  ;;  %v8869_v26 = vsel %vm8741_vm5, %v8677_v7, %v8805_v61 }
 0x8b2   : > { %v8486_v46 = vpop.f32.mrb[60].mxu0 }
 0x8b3   : > { %v8609_v53 = vmul.f32 %v16964_v54, %v8486_v46  ;;  %v8488_v2 = vpop.f32.mrb[61].mxu0  ;;  %v8870_v40 = vsel %vm8742_vm6, %v8678_v29, %v8806_v9 }
 0x8b4   : > { %v8489_v37 = vpop.f32.mrb[62].mxu0  ;;  %v8913_v17 = vpack.c.bf16 %v8870_v40, %v8869_v26 }
 0x8b5   : > { %v8679_v10 = vadd.f32 %v16970_v22, %v8609_v53  ;;  %v8610_v62 = vmul.f32 %v16964_v54, %v8489_v37  ;;  %v8491_v15 = vpop.f32.mrb[63].mxu0 }
 0x8b6   : > { %10165 = vmatprep.mubr.bf16.mxu0 %v8913_v17 }
 0x8b7   : > { %v8807_v4 = vmul.f32 0.01, %v8679_v10  ;;  %v8680_v0 = vadd.f32 %v16970_v22, %v8610_v62  ;;  %vm8743_vm8 = vcmp.gt.f32.partialorder %v8679_v10, 0.0 }
 0x8b9   : > { %vm8744_vm3 = vcmp.gt.f32.partialorder %v8680_v0, 0.0  ;;  %v8808_v60 = vmul.f32 0.01, %v8680_v0  ;;  %v8871_v35 = vsel %vm8743_vm8, %v8679_v10, %v8807_v4 }
 0x8ba   : > { %v8494_v19 = vpop.f32.mrb[64].mxu0 }
 0x8bb   : > { %v8872_v20 = vsel %vm8744_vm3, %v8680_v0, %v8808_v60  ;;  %v8611_v30 = vmul.f32 %v16964_v54, %v8494_v19  ;;  %v8496_v11 = vpop.f32.mrb[65].mxu0 }
 0x8bc   : > { %v8914_v31 = vpack.c.bf16 %v8872_v20, %v8871_v35  ;;  %v8497_v32 = vpop.f32.mrb[66].mxu0 }
 0x8bd   : > { %v8681_v63 = vadd.f32 %v16970_v22, %v8611_v30  ;;  %v8612_v24 = vmul.f32 %v17131_v50, %v8497_v32  ;;  %v8499_v44 = vpop.f32.mrb[67].mxu0 }
 0x8be   : > { %10166 = vmatmul.mubr.bf16.gmra.mrb[140].mxu0 %v8914_v31 }
 0x8bf   : > { %v8809_v45 = vmul.f32 0.01, %v8681_v63  ;;  %v8682_v56 = vadd.f32 %v16970_v22, %v8612_v24  ;;  %vm8745_vm1 = vcmp.gt.f32.partialorder %v8681_v63, 0.0 }
 0x8c1   : > { %vm8746_vm9 = vcmp.gt.f32.partialorder %v8682_v56, 0.0  ;;  %v8810_v27 = vmul.f32 0.01, %v8682_v56  ;;  %v8873_v18 = vsel %vm8745_vm1, %v8681_v63, %v8809_v45  ;;  %vm9480_vm1 = vcmask 23552  }
 0x8c2   : > { %v8502_v54 = vpop.f32.mrb[68].mxu0 }
 0x8c3   : > { %v8613_v38 = vmul.f32 %v17131_v50, %v8502_v54  ;;  %v8504_v55 = vpop.f32.mrb[69].mxu0  ;;  %v8874_v42 = vsel %vm8746_vm9, %v8682_v56, %v8810_v27 }
 0x8c4   : > { %v8505_v36 = vpop.f32.mrb[70].mxu0  ;;  %v8915_v47 = vpack.c.bf16 %v8874_v42, %v8873_v18 }
 0x8c5   : > { %v8683_v5 = vadd.f32 %v17138_v16, %v8613_v38  ;;  %v8614_v33 = vmul.f32 %v17131_v50, %v8505_v36  ;;  %v8507_v28 = vpop.f32.mrb[71].mxu0 }
 0x8c6   : > { %10169 = vmatprep.mubr.bf16.mxu0 %v8915_v47 }
 0x8c7   : > { %v8811_v22 = vmul.f32 0.01, %v8683_v5  ;;  %v8684_v3 = vadd.f32 %v17138_v16, %v8614_v33  ;;  %vm8747_vm14 = vcmp.gt.f32.partialorder %v8683_v5, 0.0 }
 0x8c9   : > { %vm8748_vm11 = vcmp.gt.f32.partialorder %v8684_v3, 0.0  ;;  %v8812_v1 = vmul.f32 0.01, %v8684_v3  ;;  %v8875_v57 = vsel %vm8747_vm14, %v8683_v5, %v8811_v22 }
 0x8ca   : > { %v8510_v58 = vpop.f32.mrb[72].mxu0 }
 0x8cb   : > { %v8876_v14 = vsel %vm8748_vm11, %v8684_v3, %v8812_v1  ;;  %v8615_v12 = vmul.f32 %v17131_v50, %v8510_v58  ;;  %v8512_v23 = vpop.f32.mrb[73].mxu0 }
 0x8cc   : > { %v8916_v59 = vpack.c.bf16 %v8876_v14, %v8875_v57  ;;  %v8513_v25 = vpop.f32.mrb[74].mxu0 }
 0x8cd   : > { %v8685_v39 = vadd.f32 %v17138_v16, %v8615_v12  ;;  %v8616_v13 = vmul.f32 %v17131_v50, %v8513_v25  ;;  %v8515_v51 = vpop.f32.mrb[75].mxu0 }
 0x8ce   : > { %10170 = vmatmul.mubr.bf16.gmra.mrb[144].mxu0 %v8916_v59 }
 0x8cf   : > { %v8813_v8 = vmul.f32 0.01, %v8685_v39  ;;  %v8686_v52 = vadd.f32 %v17138_v16, %v8616_v13  ;;  %vm8749_vm12 = vcmp.gt.f32.partialorder %v8685_v39, 0.0 }
 0x8d1   : > { %vm8750_vm13 = vcmp.gt.f32.partialorder %v8686_v52, 0.0  ;;  %v8814_v41 = vmul.f32 0.01, %v8686_v52  ;;  %v8877_v34 = vsel %vm8749_vm12, %v8685_v39, %v8813_v8 }
 0x8d2   : > { %v8518_v21 = vpop.f32.mrb[76].mxu0 }
 0x8d3   : > { %v8617_v49 = vmul.f32 %v17131_v50, %v8518_v21  ;;  %v8520_v6 = vpop.f32.mrb[77].mxu0  ;;  %v8878_v7 = vsel %vm8750_vm13, %v8686_v52, %v8814_v41 }
 0x8d4   : > { %v8521_v43 = vpop.f32.mrb[78].mxu0  ;;  %v8917_v48 = vpack.c.bf16 %v8878_v7, %v8877_v34  ;;  %v17175_v6 = vld [vmem:[%s991_s3] ss:$0 sm:$0xff] }
 0x8d5   : > { %v8687_v61 = vadd.f32 %v17138_v16, %v8617_v49  ;;  %v8618_v29 = vmul.f32 %v17131_v50, %v8521_v43  ;;  %v8523_v9 = vpop.f32.mrb[79].mxu0 }
 0x8d6   : > { %10173 = vmatprep.mubr.bf16.mxu0 %v8917_v48 }
 0x8d7   : > { %v8815_v46 = vmul.f32 0.01, %v8687_v61  ;;  %v8688_v53 = vadd.f32 %v17138_v16, %v8618_v29  ;;  %vm8751_vm0 = vcmp.gt.f32.partialorder %v8687_v61, 0.0 }
 0x8d9   : > { %vm8752_vm15 = vcmp.gt.f32.partialorder %v8688_v53, 0.0  ;;  %v8816_v2 = vmul.f32 0.01, %v8688_v53  ;;  %v8879_v26 = vsel %vm8751_vm0, %v8687_v61, %v8815_v46 }
 0x8db   : > { %v8880_v40 = vsel %vm8752_vm15, %v8688_v53, %v8816_v2  ;;  %v8526_v37 = vpop.f32.mrb[80].mxu0 }
 0x8dc   : > { %v8918_v17 = vpack.c.bf16 %v8880_v40, %v8879_v26  ;;  %v8619_v10 = vmul.f32 %v17131_v50, %v8526_v37  ;;  %v8528_v62 = vpop.f32.mrb[81].mxu0 }
 0x8dd   : > { %v8529_v15 = vpop.f32.mrb[82].mxu0 }
 0x8de   : > { %v8689_v4 = vadd.f32 %v17138_v16, %v8619_v10  ;;  %v8620_v0 = vmul.f32 %v17131_v50, %v8529_v15  ;;  %v8531_v60 = vpop.f32.mrb[83].mxu0  ;;  %10174 = vmatmul.mubr.bf16.gmra.mrb[148].mxu0 %v8918_v17  ;;  %v10804_v17 = vld [vmem:[%s11730_s13 + $0x10] sm:$0xff]  ;;  %v10805_v15 = vld [vmem:[%s11730_s13] sm:$0xff] }
 0x8df   : > { %v10806_v60 = vld [vmem:[%s11730_s13 + $0x18] sm:$0xff] }
 0x8e0   : > { %v8817_v19 = vmul.f32 0.01, %v8689_v4  ;;  %v8690_v35 = vadd.f32 %v17138_v16, %v8620_v0  ;;  %vm8753_vm10 = vcmp.gt.f32.partialorder %v8689_v4, 0.0 }
 0x8e2   : > { %vm8754_vm2 = vcmp.gt.f32.partialorder %v8690_v35, 0.0  ;;  %v8818_v20 = vmul.f32 0.01, %v8690_v35  ;;  %v8881_v32 = vsel %vm8753_vm10, %v8689_v4, %v8817_v19 }
 0x8e3   : > { %v8534_v30 = vpop.f32.mrb[84].mxu0 }
 0x8e4   : > { %v8621_v11 = vmul.f32 %v17131_v50, %v8534_v30  ;;  %v8536_v31 = vpop.f32.mrb[85].mxu0  ;;  %v8882_v63 = vsel %vm8754_vm2, %v8690_v35, %v8818_v20  ;;  %v10807_v35 = vld [vmem:[%s11730_s13 + $0x8] sm:$0xff] }
 0x8e5   : > { %v8537_v24 = vpop.f32.mrb[86].mxu0  ;;  %v8919_v44 = vpack.c.bf16 %v8882_v63, %v8881_v32 }
 0x8e6   : > { %v8691_v45 = vadd.f32 %v17138_v16, %v8621_v11  ;;  %v8622_v56 = vmul.f32 %v17131_v50, %v8537_v24  ;;  %v8539_v27 = vpop.f32.mrb[87].mxu0 }
 0x8e7   : > { %10177 = vmatprep.mubr.bf16.mxu0 %v8919_v44 }
 0x8e8   : > { %v8819_v54 = vmul.f32 0.01, %v8691_v45  ;;  %v8692_v38 = vadd.f32 %v17138_v16, %v8622_v56  ;;  %vm8755_vm4 = vcmp.gt.f32.partialorder %v8691_v45, 0.0 }
 0x8ea   : > { %vm8756_vm7 = vcmp.gt.f32.partialorder %v8692_v38, 0.0  ;;  %v8820_v55 = vmul.f32 0.01, %v8692_v38  ;;  %v8883_v42 = vsel %vm8755_vm4, %v8691_v45, %v8819_v54  ;;  %v10808_v54 = vld [vmem:[%s11730_s13 + $0x30] sm:$0xff] }
 0x8eb   : > { %v8542_v18 = vpop.f32.mrb[88].mxu0 }
 0x8ec   : > { %v8884_v36 = vsel %vm8756_vm7, %v8692_v38, %v8820_v55  ;;  %v8623_v47 = vmul.f32 %v17131_v50, %v8542_v18  ;;  %v8544_v5 = vpop.f32.mrb[89].mxu0  ;;  %v10809_v18 = vld [vmem:[%s11730_s13 + $0x20] sm:$0xff] }
 0x8ed   : > { %v8920_v33 = vpack.c.bf16 %v8884_v36, %v8883_v42  ;;  %v8545_v28 = vpop.f32.mrb[90].mxu0 }
 0x8ee   : > { %v8693_v22 = vadd.f32 %v17138_v16, %v8623_v47  ;;  %v8624_v3 = vmul.f32 %v17131_v50, %v8545_v28  ;;  %v8547_v1 = vpop.f32.mrb[91].mxu0  ;;  %v10810_v47 = vld [vmem:[%s11730_s13 + $0x38] sm:$0xff] }
 0x8ef   : > { %10178 = vmatmul.mubr.bf16.gmra.mrb[152].mxu0 %v8920_v33  ;;  %v10811_v33 = vld [vmem:[%s11730_s13 + $0x28] sm:$0xff] }
 0x8f0   : > { %v8821_v58 = vmul.f32 0.01, %v8693_v22  ;;  %v8694_v57 = vadd.f32 %v17138_v16, %v8624_v3  ;;  %vm8757_vm5 = vcmp.gt.f32.partialorder %v8693_v22, 0.0 }
 0x8f2   : > { %vm8758_vm6 = vcmp.gt.f32.partialorder %v8694_v57, 0.0  ;;  %v8822_v14 = vmul.f32 0.01, %v8694_v57  ;;  %v8885_v23 = vsel %vm8757_vm5, %v8693_v22, %v8821_v58 }
 0x8f3   : > { %v8550_v12 = vpop.f32.mrb[92].mxu0 }
 0x8f4   : > { %v8886_v59 = vsel %vm8758_vm6, %v8694_v57, %v8822_v14  ;;  %v8625_v25 = vmul.f32 %v17131_v50, %v8550_v12  ;;  %v8552_v39 = vpop.f32.mrb[93].mxu0 }
 0x8f5   : > { %v8921_v13 = vpack.c.bf16 %v8886_v59, %v8885_v23  ;;  %v8553_v51 = vpop.f32.mrb[94].mxu0  ;;  %v10812_v39 = vld [vmem:[%s11730_s13 + $0x50] sm:$0xff] }
 0x8f6   : > { %v8695_v8 = vadd.f32 %v17138_v16, %v8625_v25  ;;  %v8626_v52 = vmul.f32 %v17131_v50, %v8553_v51  ;;  %v8555_v41 = vpop.f32.mrb[95].mxu0  ;;  %v17177_v50 = vld [vmem:[%s994_s16] ss:$0 sm:$0xff] }
 0x8f7   : > { %10181 = vmatprep.mubr.bf16.mxu0 %v8921_v13 }
 0x8f8   : > { %v8823_v21 = vmul.f32 0.01, %v8695_v8  ;;  %v8696_v49 = vadd.f32 %v17138_v16, %v8626_v52  ;;  %vm8759_vm8 = vcmp.gt.f32.partialorder %v8695_v8, 0.0 }
 0x8fa   : > { %vm8760_vm3 = vcmp.gt.f32.partialorder %v8696_v49, 0.0  ;;  %v8824_v34 = vmul.f32 0.01, %v8696_v49  ;;  %v8887_v43 = vsel %vm8759_vm8, %v8695_v8, %v8823_v21  ;;  %v10813_v8 = vld [vmem:[%s11730_s13 + $0x40] sm:$0xff]  ;;  %v10814_v21 = vld [vmem:[%s11730_s13 + $0x58] sm:$0xff] }
 0x8fb   : > { %v10123_v7 = vpop.f32.mrb[96].mxu0 }
 0x8fc   : > { %v8888_v48 = vsel %vm8760_vm3, %v8696_v49, %v8824_v34  ;;  %v9284_v61 = vmul.f32 %v10123_v7, %v17175_v6  ;;  %v9021_v16 = vpop.f32.mrb[97].mxu0  ;;  %v10815_v34 = vld [vmem:[%s11730_s13 + $0x48] sm:$0xff] }
 0x8fd   : > { %v8922_v29 = vpack.c.bf16 %v8888_v48, %v8887_v43  ;;  %v9282_v9 = vmul.f32 %v17175_v6, %v9021_v16  ;;  %v10124_v46 = vpop.f32.mrb[98].mxu0 }
 0x8fe   : > { %v9354_v53 = vadd.f32 %v17177_v50, %v9284_v61  ;;  %v9285_v2 = vmul.f32 %v10124_v46, %v17175_v6  ;;  %v9024_v26 = vpop.f32.mrb[99].mxu0 }
 0x8ff   : > { %v9352_v40 = vadd.f32 %v17177_v50, %v9282_v9  ;;  %v9283_v37 = vmul.f32 %v17175_v6, %v9024_v26  ;;  %10182 = vmatmul.mubr.bf16.gmra.mrb[156].mxu0 %v8922_v29 }
 0x900   : > { %v9418_v10 = vadd.f32 %v10804_v17, %v9354_v53  ;;  %v9355_v62 = vadd.f32 %v17177_v50, %v9285_v2 }
 0x901   : > { %v9416_v4 = vadd.f32 %v10805_v15, %v9352_v40  ;;  %v9353_v0 = vadd.f32 %v17177_v50, %v9283_v37  ;;  %v10816_v40 = vld [vmem:[%s11730_s13 + $0x70] sm:$0xff] }
 0x902   : > { %9483 = vst.msk [vmem:[%s17188_s8 + $0x10] sm:$0xff] %vm9480_vm1, %v9418_v10  ;;  %v9419_v19 = vadd.f32 %v10806_v60, %v9355_v62  ;;  %v10817_v10 = vld [vmem:[%s11730_s13 + $0x60] sm:$0xff]  ;;  %v10819_v60 = vld [vmem:[%s11730_s13 + $0x68] sm:$0xff] }
 0x903   : > { %9481 = vst.msk [vmem:[%s17188_s8] sm:$0xff] %vm9480_vm1, %v9416_v4  ;;  %v9417_v20 = vadd.f32 %v10807_v35, %v9353_v0  ;;  %v10127_v30 = vpop.f32.mrb[100].mxu0  ;;  %v10818_v4 = vld [vmem:[%s11730_s13 + $0x78] sm:$0xff] }
 0x904   : > { %9484 = vst.msk [vmem:[%s17188_s8 + $0x18] sm:$0xff] %vm9480_vm1, %v9419_v19  ;;  %v9288_v11 = vmul.f32 %v10127_v30, %v17175_v6  ;;  %v9037_v31 = vpop.f32.mrb[101].mxu0 }
 0x905   : > { %9482 = vst.msk [vmem:[%s17188_s8 + $0x8] sm:$0xff] %vm9480_vm1, %v9417_v20  ;;  %v9286_v32 = vmul.f32 %v17175_v6, %v9037_v31  ;;  %v10128_v63 = vpop.f32.mrb[102].mxu0 }
 0x906   : > { %v9358_v24 = vadd.f32 %v17177_v50, %v9288_v11  ;;  %v9289_v44 = vmul.f32 %v10128_v63, %v17175_v6  ;;  %v9040_v45 = vpop.f32.mrb[103].mxu0 }
 0x907   : > { %v9356_v56 = vadd.f32 %v17177_v50, %v9286_v32  ;;  %v9287_v27 = vmul.f32 %v17175_v6, %v9040_v45 }
 0x908   : > { %v9422_v38 = vadd.f32 %v10808_v54, %v9358_v24  ;;  %v9359_v55 = vadd.f32 %v17177_v50, %v9289_v44 }
 0x909   : > { %v9420_v42 = vadd.f32 %v10809_v18, %v9356_v56  ;;  %v9357_v36 = vadd.f32 %v17177_v50, %v9287_v27  ;;  %v10820_v56 = vld [vmem:[%s11730_s13 + $0x90] sm:$0xff] }
 0x90a   : > { %9487 = vst.msk [vmem:[%s17188_s8 + $0x30] sm:$0xff] %vm9480_vm1, %v9422_v38  ;;  %v9423_v5 = vadd.f32 %v10810_v47, %v9359_v55  ;;  %v10821_v38 = vld [vmem:[%s11730_s13 + $0x80] sm:$0xff]  ;;  %v10823_v47 = vld [vmem:[%s11730_s13 + $0x88] sm:$0xff] }
 0x90b   : > { %9485 = vst.msk [vmem:[%s17188_s8 + $0x20] sm:$0xff] %vm9480_vm1, %v9420_v42  ;;  %v9421_v28 = vadd.f32 %v10811_v33, %v9357_v36  ;;  %v10131_v22 = vpop.f32.mrb[104].mxu0  ;;  %v10822_v42 = vld [vmem:[%s11730_s13 + $0x98] sm:$0xff] }
 0x90c   : > { %9488 = vst.msk [vmem:[%s17188_s8 + $0x38] sm:$0xff] %vm9480_vm1, %v9423_v5  ;;  %v9292_v3 = vmul.f32 %v10131_v22, %v17175_v6  ;;  %v9053_v1 = vpop.f32.mrb[105].mxu0 }
 0x90d   : > { %9486 = vst.msk [vmem:[%s17188_s8 + $0x28] sm:$0xff] %vm9480_vm1, %v9421_v28  ;;  %v9290_v58 = vmul.f32 %v17175_v6, %v9053_v1  ;;  %v10132_v57 = vpop.f32.mrb[106].mxu0 }
 0x90e   : > { %v9362_v14 = vadd.f32 %v17177_v50, %v9292_v3  ;;  %v9293_v12 = vmul.f32 %v10132_v57, %v17175_v6  ;;  %v9056_v23 = vpop.f32.mrb[107].mxu0 }
 0x90f   : > { %v9360_v59 = vadd.f32 %v17177_v50, %v9290_v58  ;;  %v9291_v25 = vmul.f32 %v17175_v6, %v9056_v23 }
 0x910   : > { %v9426_v13 = vadd.f32 %v10812_v39, %v9362_v14  ;;  %v9363_v51 = vadd.f32 %v17177_v50, %v9293_v12 }
 0x911   : > { %v9424_v52 = vadd.f32 %v10813_v8, %v9360_v59  ;;  %v9361_v41 = vadd.f32 %v17177_v50, %v9291_v25  ;;  %v10824_v59 = vld [vmem:[%s11730_s13 + $0xb0] sm:$0xff] }
 0x912   : > { %9491 = vst.msk [vmem:[%s17188_s8 + $0x50] sm:$0xff] %vm9480_vm1, %v9426_v13  ;;  %v9427_v49 = vadd.f32 %v10814_v21, %v9363_v51  ;;  %v10825_v13 = vld [vmem:[%s11730_s13 + $0xa0] sm:$0xff]  ;;  %v10827_v21 = vld [vmem:[%s11730_s13 + $0xa8] sm:$0xff] }
 0x913   : > { %9489 = vst.msk [vmem:[%s17188_s8 + $0x40] sm:$0xff] %vm9480_vm1, %v9424_v52  ;;  %v9425_v7 = vadd.f32 %v10815_v34, %v9361_v41  ;;  %v10135_v43 = vpop.f32.mrb[108].mxu0  ;;  %v10826_v52 = vld [vmem:[%s11730_s13 + $0xb8] sm:$0xff] }
 0x914   : > { %9492 = vst.msk [vmem:[%s17188_s8 + $0x58] sm:$0xff] %vm9480_vm1, %v9427_v49  ;;  %v9296_v48 = vmul.f32 %v10135_v43, %v17175_v6  ;;  %v9069_v61 = vpop.f32.mrb[109].mxu0 }
 0x915   : > { %9490 = vst.msk [vmem:[%s17188_s8 + $0x48] sm:$0xff] %vm9480_vm1, %v9425_v7  ;;  %v9294_v16 = vmul.f32 %v17175_v6, %v9069_v61  ;;  %v10136_v29 = vpop.f32.mrb[110].mxu0 }
 0x916   : > { %v9366_v9 = vadd.f32 %v17177_v50, %v9296_v48  ;;  %v9297_v46 = vmul.f32 %v10136_v29, %v17175_v6  ;;  %v9072_v53 = vpop.f32.mrb[111].mxu0 }
 0x917   : > { %v9364_v2 = vadd.f32 %v17177_v50, %v9294_v16  ;;  %v9295_v26 = vmul.f32 %v17175_v6, %v9072_v53 }
 0x918   : > { %v9430_v37 = vadd.f32 %v10816_v40, %v9366_v9  ;;  %v9367_v17 = vadd.f32 %v17177_v50, %v9297_v46 }
 0x919   : > { %v9428_v62 = vadd.f32 %v10817_v10, %v9364_v2  ;;  %v9365_v15 = vadd.f32 %v17177_v50, %v9295_v26  ;;  %v10828_v2 = vld [vmem:[%s11730_s13 + $0xd0] sm:$0xff] }
 0x91a   : > { %9495 = vst.msk [vmem:[%s17188_s8 + $0x70] sm:$0xff] %vm9480_vm1, %v9430_v37  ;;  %v9431_v0 = vadd.f32 %v10818_v4, %v9367_v17  ;;  %v10829_v37 = vld [vmem:[%s11730_s13 + $0xc0] sm:$0xff]  ;;  %v10831_v4 = vld [vmem:[%s11730_s13 + $0xc8] sm:$0xff] }
 0x91b   : > { %9493 = vst.msk [vmem:[%s17188_s8 + $0x60] sm:$0xff] %vm9480_vm1, %v9428_v62  ;;  %v9429_v19 = vadd.f32 %v10819_v60, %v9365_v15  ;;  %v10830_v62 = vld [vmem:[%s11730_s13 + $0xd8] sm:$0xff] }
 0x91c   : > { %9496 = vst.msk [vmem:[%s17188_s8 + $0x78] sm:$0xff] %vm9480_vm1, %v9431_v0 }
 0x91d   : > { %9494 = vst.msk [vmem:[%s17188_s8 + $0x68] sm:$0xff] %vm9480_vm1, %v9429_v19 }
 0x921   : > { %v10139_v35 = vpop.f32.mrb[112].mxu0 }
 0x922   : > { %v9300_v20 = vmul.f32 %v10139_v35, %v17175_v6  ;;  %v9085_v30 = vpop.f32.mrb[113].mxu0 }
 0x923   : > { %v9298_v11 = vmul.f32 %v17175_v6, %v9085_v30  ;;  %v10140_v31 = vpop.f32.mrb[114].mxu0 }
 0x924   : > { %v9370_v32 = vadd.f32 %v17177_v50, %v9300_v20  ;;  %v9301_v63 = vmul.f32 %v10140_v31, %v17175_v6  ;;  %v9088_v24 = vpop.f32.mrb[115].mxu0 }
 0x925   : > { %v9368_v44 = vadd.f32 %v17177_v50, %v9298_v11  ;;  %v9299_v45 = vmul.f32 %v17175_v6, %v9088_v24 }
 0x926   : > { %v9434_v27 = vadd.f32 %v10820_v56, %v9370_v32  ;;  %v9371_v54 = vadd.f32 %v17177_v50, %v9301_v63 }
 0x927   : > { %v9432_v55 = vadd.f32 %v10821_v38, %v9368_v44  ;;  %v9369_v18 = vadd.f32 %v17177_v50, %v9299_v45  ;;  %v10832_v44 = vld [vmem:[%s11730_s13 + $0xf0] sm:$0xff] }
 0x928   : > { %9499 = vst.msk [vmem:[%s17188_s8 + $0x90] sm:$0xff] %vm9480_vm1, %v9434_v27  ;;  %v9435_v36 = vadd.f32 %v10822_v42, %v9371_v54  ;;  %v10833_v27 = vld [vmem:[%s11730_s13 + $0xe0] sm:$0xff]  ;;  %v10835_v42 = vld [vmem:[%s11730_s13 + $0xe8] sm:$0xff] }
 0x929   : > { %9497 = vst.msk [vmem:[%s17188_s8 + $0x80] sm:$0xff] %vm9480_vm1, %v9432_v55  ;;  %v9433_v5 = vadd.f32 %v10823_v47, %v9369_v18  ;;  %v10834_v55 = vld [vmem:[%s11730_s13 + $0xf8] sm:$0xff] }
 0x92a   : > { %9500 = vst.msk [vmem:[%s17188_s8 + $0x98] sm:$0xff] %vm9480_vm1, %v9435_v36 }
 0x92b   : > { %9498 = vst.msk [vmem:[%s17188_s8 + $0x88] sm:$0xff] %vm9480_vm1, %v9433_v5 }
 0x931   : > { %v10143_v33 = vpop.f32.mrb[116].mxu0 }
 0x932   : > { %v9304_v28 = vmul.f32 %v10143_v33, %v17175_v6  ;;  %v9101_v22 = vpop.f32.mrb[117].mxu0 }
 0x933   : > { %v9302_v3 = vmul.f32 %v17175_v6, %v9101_v22  ;;  %v10144_v1 = vpop.f32.mrb[118].mxu0 }
 0x934   : > { %v9374_v58 = vadd.f32 %v17177_v50, %v9304_v28  ;;  %v9305_v57 = vmul.f32 %v10144_v1, %v17175_v6  ;;  %v9104_v14 = vpop.f32.mrb[119].mxu0 }
 0x935   : > { %v9372_v12 = vadd.f32 %v17177_v50, %v9302_v3  ;;  %v9303_v23 = vmul.f32 %v17175_v6, %v9104_v14 }
 0x936   : > { %v9438_v25 = vadd.f32 %v10824_v59, %v9374_v58  ;;  %v9375_v39 = vadd.f32 %v17177_v50, %v9305_v57 }
 0x937   : > { %v9436_v51 = vadd.f32 %v10825_v13, %v9372_v12  ;;  %v9373_v8 = vadd.f32 %v17177_v50, %v9303_v23  ;;  %v10836_v12 = vld [vmem:[%s11730_s13 + $0x110] sm:$0xff] }
 0x938   : > { %9503 = vst.msk [vmem:[%s17188_s8 + $0xb0] sm:$0xff] %vm9480_vm1, %v9438_v25  ;;  %v9439_v41 = vadd.f32 %v10826_v52, %v9375_v39  ;;  %v10837_v25 = vld [vmem:[%s11730_s13 + $0x100] sm:$0xff]  ;;  %v10839_v52 = vld [vmem:[%s11730_s13 + $0x108] sm:$0xff] }
 0x939   : > { %9501 = vst.msk [vmem:[%s17188_s8 + $0xa0] sm:$0xff] %vm9480_vm1, %v9436_v51  ;;  %v9437_v49 = vadd.f32 %v10827_v21, %v9373_v8  ;;  %v10838_v51 = vld [vmem:[%s11730_s13 + $0x118] sm:$0xff] }
 0x93a   : > { %9504 = vst.msk [vmem:[%s17188_s8 + $0xb8] sm:$0xff] %vm9480_vm1, %v9439_v41 }
 0x93b   : > { %9502 = vst.msk [vmem:[%s17188_s8 + $0xa8] sm:$0xff] %vm9480_vm1, %v9437_v49 }
 0x941   : > { %v10147_v34 = vpop.f32.mrb[120].mxu0 }
 0x942   : > { %v9308_v7 = vmul.f32 %v10147_v34, %v17175_v6  ;;  %v9117_v43 = vpop.f32.mrb[121].mxu0 }
 0x943   : > { %v9306_v48 = vmul.f32 %v17175_v6, %v9117_v43  ;;  %v10148_v61 = vpop.f32.mrb[122].mxu0 }
 0x944   : > { %v9378_v16 = vadd.f32 %v17177_v50, %v9308_v7  ;;  %v9309_v29 = vmul.f32 %v10148_v61, %v17175_v6  ;;  %v9120_v9 = vpop.f32.mrb[123].mxu0 }
 0x945   : > { %v9376_v46 = vadd.f32 %v17177_v50, %v9306_v48  ;;  %v9307_v53 = vmul.f32 %v17175_v6, %v9120_v9 }
 0x946   : > { %v9442_v26 = vadd.f32 %v10828_v2, %v9378_v16  ;;  %v9379_v40 = vadd.f32 %v17177_v50, %v9309_v29 }
 0x947   : > { %v9440_v17 = vadd.f32 %v10829_v37, %v9376_v46  ;;  %v9377_v10 = vadd.f32 %v17177_v50, %v9307_v53  ;;  %v10840_v46 = vld [vmem:[%s11730_s13 + $0x130] sm:$0xff] }
 0x948   : > { %9507 = vst.msk [vmem:[%s17188_s8 + $0xd0] sm:$0xff] %vm9480_vm1, %v9442_v26  ;;  %v9443_v15 = vadd.f32 %v10830_v62, %v9379_v40  ;;  %v10841_v26 = vld [vmem:[%s11730_s13 + $0x120] sm:$0xff]  ;;  %v10843_v62 = vld [vmem:[%s11730_s13 + $0x128] sm:$0xff] }
 0x949   : > { %9505 = vst.msk [vmem:[%s17188_s8 + $0xc0] sm:$0xff] %vm9480_vm1, %v9440_v17  ;;  %v9441_v0 = vadd.f32 %v10831_v4, %v9377_v10  ;;  %v10842_v17 = vld [vmem:[%s11730_s13 + $0x138] sm:$0xff] }
 0x94a   : > { %9508 = vst.msk [vmem:[%s17188_s8 + $0xd8] sm:$0xff] %vm9480_vm1, %v9443_v15 }
 0x94b   : > { %9506 = vst.msk [vmem:[%s17188_s8 + $0xc8] sm:$0xff] %vm9480_vm1, %v9441_v0 }
 0x951   : > { %v10151_v60 = vpop.f32.mrb[124].mxu0 }
 0x952   : > { %v9312_v19 = vmul.f32 %v10151_v60, %v17175_v6  ;;  %v9133_v35 = vpop.f32.mrb[125].mxu0 }
 0x953   : > { %v9310_v20 = vmul.f32 %v17175_v6, %v9133_v35  ;;  %v10152_v30 = vpop.f32.mrb[126].mxu0 }
 0x954   : > { %v9382_v11 = vadd.f32 %v17177_v50, %v9312_v19  ;;  %v9313_v31 = vmul.f32 %v10152_v30, %v17175_v6  ;;  %v9136_v32 = vpop.f32.mrb[127].mxu0 }
 0x955   : > { %v9380_v63 = vadd.f32 %v17177_v50, %v9310_v20  ;;  %v9311_v24 = vmul.f32 %v17175_v6, %v9136_v32 }
 0x956   : > { %v9446_v45 = vadd.f32 %v10832_v44, %v9382_v11  ;;  %v9383_v56 = vadd.f32 %v17177_v50, %v9313_v31 }
 0x957   : > { %v9444_v54 = vadd.f32 %v10833_v27, %v9380_v63  ;;  %v9381_v38 = vadd.f32 %v17177_v50, %v9311_v24  ;;  %v10844_v63 = vld [vmem:[%s11730_s13 + $0x150] sm:$0xff] }
 0x958   : > { %9511 = vst.msk [vmem:[%s17188_s8 + $0xf0] sm:$0xff] %vm9480_vm1, %v9446_v45  ;;  %v9447_v18 = vadd.f32 %v10834_v55, %v9383_v56  ;;  %v10845_v45 = vld [vmem:[%s11730_s13 + $0x140] sm:$0xff]  ;;  %v10847_v55 = vld [vmem:[%s11730_s13 + $0x148] sm:$0xff] }
 0x959   : > { %9509 = vst.msk [vmem:[%s17188_s8 + $0xe0] sm:$0xff] %vm9480_vm1, %v9444_v54  ;;  %v9445_v36 = vadd.f32 %v10835_v42, %v9381_v38  ;;  %v10846_v54 = vld [vmem:[%s11730_s13 + $0x158] sm:$0xff] }
 0x95a   : > { %9512 = vst.msk [vmem:[%s17188_s8 + $0xf8] sm:$0xff] %vm9480_vm1, %v9447_v18 }
 0x95b   : > { %9510 = vst.msk [vmem:[%s17188_s8 + $0xe8] sm:$0xff] %vm9480_vm1, %v9445_v36 }
 0x961   : > { %v10155_v47 = vpop.f32.mrb[128].mxu0 }
 0x962   : > { %v9316_v5 = vmul.f32 %v10155_v47, %v17175_v6  ;;  %v9149_v33 = vpop.f32.mrb[129].mxu0 }
 0x963   : > { %v9314_v28 = vmul.f32 %v17175_v6, %v9149_v33  ;;  %v10156_v22 = vpop.f32.mrb[130].mxu0 }
 0x964   : > { %v9386_v3 = vadd.f32 %v17177_v50, %v9316_v5  ;;  %v9317_v1 = vmul.f32 %v10156_v22, %v17175_v6  ;;  %v9152_v58 = vpop.f32.mrb[131].mxu0 }
 0x965   : > { %v9384_v57 = vadd.f32 %v17177_v50, %v9314_v28  ;;  %v9315_v14 = vmul.f32 %v17175_v6, %v9152_v58 }
 0x966   : > { %v9450_v23 = vadd.f32 %v10836_v12, %v9386_v3  ;;  %v9387_v59 = vadd.f32 %v17177_v50, %v9317_v1 }
 0x967   : > { %v9448_v39 = vadd.f32 %v10837_v25, %v9384_v57  ;;  %v9385_v13 = vadd.f32 %v17177_v50, %v9315_v14  ;;  %v10848_v57 = vld [vmem:[%s11730_s13 + $0x170] sm:$0xff] }
 0x968   : > { %9515 = vst.msk [vmem:[%s17188_s8 + $0x110] sm:$0xff] %vm9480_vm1, %v9450_v23  ;;  %v9451_v8 = vadd.f32 %v10838_v51, %v9387_v59  ;;  %v10849_v23 = vld [vmem:[%s11730_s13 + $0x160] sm:$0xff]  ;;  %v10851_v51 = vld [vmem:[%s11730_s13 + $0x168] sm:$0xff] }
 0x969   : > { %9513 = vst.msk [vmem:[%s17188_s8 + $0x100] sm:$0xff] %vm9480_vm1, %v9448_v39  ;;  %v9449_v41 = vadd.f32 %v10839_v52, %v9385_v13  ;;  %v10850_v39 = vld [vmem:[%s11730_s13 + $0x178] sm:$0xff] }
 0x96a   : > { %9516 = vst.msk [vmem:[%s17188_s8 + $0x118] sm:$0xff] %vm9480_vm1, %v9451_v8 }
 0x96b   : > { %9514 = vst.msk [vmem:[%s17188_s8 + $0x108] sm:$0xff] %vm9480_vm1, %v9449_v41 }
 0x971   : > { %v10159_v21 = vpop.f32.mrb[132].mxu0 }
 0x972   : > { %v9320_v49 = vmul.f32 %v10159_v21, %v17175_v6  ;;  %v9165_v34 = vpop.f32.mrb[133].mxu0 }
 0x973   : > { %v9318_v7 = vmul.f32 %v17175_v6, %v9165_v34  ;;  %v10160_v43 = vpop.f32.mrb[134].mxu0 }
 0x974   : > { %v9390_v48 = vadd.f32 %v17177_v50, %v9320_v49  ;;  %v9321_v61 = vmul.f32 %v10160_v43, %v17175_v6  ;;  %v9168_v16 = vpop.f32.mrb[135].mxu0 }
 0x975   : > { %v9388_v29 = vadd.f32 %v17177_v50, %v9318_v7  ;;  %v9319_v9 = vmul.f32 %v17175_v6, %v9168_v16 }
 0x976   : > { %v9454_v53 = vadd.f32 %v10840_v46, %v9390_v48  ;;  %v9391_v2 = vadd.f32 %v17177_v50, %v9321_v61 }
 0x977   : > { %v9452_v40 = vadd.f32 %v10841_v26, %v9388_v29  ;;  %v9389_v37 = vadd.f32 %v17177_v50, %v9319_v9  ;;  %v10852_v29 = vld [vmem:[%s11730_s13 + $0x190] sm:$0xff] }
 0x978   : > { %9519 = vst.msk [vmem:[%s17188_s8 + $0x130] sm:$0xff] %vm9480_vm1, %v9454_v53  ;;  %v9455_v10 = vadd.f32 %v10842_v17, %v9391_v2  ;;  %v10853_v53 = vld [vmem:[%s11730_s13 + $0x180] sm:$0xff]  ;;  %v10855_v17 = vld [vmem:[%s11730_s13 + $0x188] sm:$0xff] }
 0x979   : > { %9517 = vst.msk [vmem:[%s17188_s8 + $0x120] sm:$0xff] %vm9480_vm1, %v9452_v40  ;;  %v9453_v15 = vadd.f32 %v10843_v62, %v9389_v37  ;;  %v10854_v40 = vld [vmem:[%s11730_s13 + $0x198] sm:$0xff] }
 0x97a   : > { %9520 = vst.msk [vmem:[%s17188_s8 + $0x138] sm:$0xff] %vm9480_vm1, %v9455_v10 }
 0x97b   : > { %9518 = vst.msk [vmem:[%s17188_s8 + $0x128] sm:$0xff] %vm9480_vm1, %v9453_v15 }
 0x981   : > { %v10163_v4 = vpop.f32.mrb[136].mxu0 }
 0x982   : > { %v9324_v0 = vmul.f32 %v10163_v4, %v17175_v6  ;;  %v9181_v60 = vpop.f32.mrb[137].mxu0 }
 0x983   : > { %v9322_v19 = vmul.f32 %v17175_v6, %v9181_v60  ;;  %v10164_v35 = vpop.f32.mrb[138].mxu0 }
 0x984   : > { %v9394_v20 = vadd.f32 %v17177_v50, %v9324_v0  ;;  %v9325_v30 = vmul.f32 %v10164_v35, %v17175_v6  ;;  %v9184_v11 = vpop.f32.mrb[139].mxu0 }
 0x985   : > { %v9392_v31 = vadd.f32 %v17177_v50, %v9322_v19  ;;  %v9323_v32 = vmul.f32 %v17175_v6, %v9184_v11 }
 0x986   : > { %v9458_v24 = vadd.f32 %v10844_v63, %v9394_v20  ;;  %v9395_v44 = vadd.f32 %v17177_v50, %v9325_v30 }
 0x987   : > { %v9456_v56 = vadd.f32 %v10845_v45, %v9392_v31  ;;  %v9393_v27 = vadd.f32 %v17177_v50, %v9323_v32  ;;  %v10856_v31 = vld [vmem:[%s11730_s13 + $0x1b0] sm:$0xff] }
 0x988   : > { %9523 = vst.msk [vmem:[%s17188_s8 + $0x150] sm:$0xff] %vm9480_vm1, %v9458_v24  ;;  %v9459_v38 = vadd.f32 %v10846_v54, %v9395_v44  ;;  %v10857_v24 = vld [vmem:[%s11730_s13 + $0x1a0] sm:$0xff]  ;;  %v10859_v54 = vld [vmem:[%s11730_s13 + $0x1a8] sm:$0xff] }
 0x989   : > { %9521 = vst.msk [vmem:[%s17188_s8 + $0x140] sm:$0xff] %vm9480_vm1, %v9456_v56  ;;  %v9457_v18 = vadd.f32 %v10847_v55, %v9393_v27  ;;  %v10858_v56 = vld [vmem:[%s11730_s13 + $0x1b8] sm:$0xff] }
 0x98a   : > { %9524 = vst.msk [vmem:[%s17188_s8 + $0x158] sm:$0xff] %vm9480_vm1, %v9459_v38 }
 0x98b   : > { %9522 = vst.msk [vmem:[%s17188_s8 + $0x148] sm:$0xff] %vm9480_vm1, %v9457_v18 }
 0x991   : > { %v10167_v42 = vpop.f32.mrb[140].mxu0 }
 0x992   : > { %v9328_v36 = vmul.f32 %v10167_v42, %v17175_v6  ;;  %v9197_v47 = vpop.f32.mrb[141].mxu0 }
 0x993   : > { %v9326_v5 = vmul.f32 %v17175_v6, %v9197_v47  ;;  %v10168_v33 = vpop.f32.mrb[142].mxu0 }
 0x994   : > { %v9398_v28 = vadd.f32 %v17177_v50, %v9328_v36  ;;  %v9329_v22 = vmul.f32 %v10168_v33, %v17175_v6  ;;  %v9200_v3 = vpop.f32.mrb[143].mxu0 }
 0x995   : > { %v9396_v1 = vadd.f32 %v17177_v50, %v9326_v5  ;;  %v9327_v58 = vmul.f32 %v17175_v6, %v9200_v3 }
 0x996   : > { %v9462_v14 = vadd.f32 %v10848_v57, %v9398_v28  ;;  %v9399_v12 = vadd.f32 %v17177_v50, %v9329_v22 }
 0x997   : > { %v9460_v59 = vadd.f32 %v10849_v23, %v9396_v1  ;;  %v9397_v25 = vadd.f32 %v17177_v50, %v9327_v58  ;;  %v10860_v1 = vld [vmem:[%s11730_s13 + $0x1d0] sm:$0xff] }
 0x998   : > { %9527 = vst.msk [vmem:[%s17188_s8 + $0x170] sm:$0xff] %vm9480_vm1, %v9462_v14  ;;  %v9463_v13 = vadd.f32 %v10850_v39, %v9399_v12  ;;  %v10861_v14 = vld [vmem:[%s11730_s13 + $0x1c0] sm:$0xff]  ;;  %v10863_v39 = vld [vmem:[%s11730_s13 + $0x1c8] sm:$0xff] }
 0x999   : > { %9525 = vst.msk [vmem:[%s17188_s8 + $0x160] sm:$0xff] %vm9480_vm1, %v9460_v59  ;;  %v9461_v8 = vadd.f32 %v10851_v51, %v9397_v25  ;;  %v10862_v59 = vld [vmem:[%s11730_s13 + $0x1d8] sm:$0xff] }
 0x99a   : > { %9528 = vst.msk [vmem:[%s17188_s8 + $0x178] sm:$0xff] %vm9480_vm1, %v9463_v13 }
 0x99b   : > { %9526 = vst.msk [vmem:[%s17188_s8 + $0x168] sm:$0xff] %vm9480_vm1, %v9461_v8 }
 0x9a1   : > { %v10171_v52 = vpop.f32.mrb[144].mxu0 }
 0x9a2   : > { %v9332_v41 = vmul.f32 %v10171_v52, %v17175_v6  ;;  %v9213_v21 = vpop.f32.mrb[145].mxu0 }
 0x9a3   : > { %v9330_v49 = vmul.f32 %v17175_v6, %v9213_v21  ;;  %v10172_v34 = vpop.f32.mrb[146].mxu0 }
 0x9a4   : > { %v9402_v7 = vadd.f32 %v17177_v50, %v9332_v41  ;;  %v9333_v43 = vmul.f32 %v10172_v34, %v17175_v6  ;;  %v9216_v48 = vpop.f32.mrb[147].mxu0 }
 0x9a5   : > { %v9400_v61 = vadd.f32 %v17177_v50, %v9330_v49  ;;  %v9331_v16 = vmul.f32 %v17175_v6, %v9216_v48 }
 0x9a6   : > { %v9466_v9 = vadd.f32 %v10852_v29, %v9402_v7  ;;  %v9403_v46 = vadd.f32 %v17177_v50, %v9333_v43 }
 0x9a7   : > { %v9464_v2 = vadd.f32 %v10853_v53, %v9400_v61  ;;  %v9401_v26 = vadd.f32 %v17177_v50, %v9331_v16  ;;  %v10864_v61 = vld [vmem:[%s11730_s13 + $0x1f0] sm:$0xff] }
 0x9a8   : > { %9531 = vst.msk [vmem:[%s17188_s8 + $0x190] sm:$0xff] %vm9480_vm1, %v9466_v9  ;;  %v9467_v37 = vadd.f32 %v10854_v40, %v9403_v46  ;;  %v10865_v9 = vld [vmem:[%s11730_s13 + $0x1e0] sm:$0xff]  ;;  %v10867_v40 = vld [vmem:[%s11730_s13 + $0x1e8] sm:$0xff] }
 0x9a9   : > { %9529 = vst.msk [vmem:[%s17188_s8 + $0x180] sm:$0xff] %vm9480_vm1, %v9464_v2  ;;  %v9465_v10 = vadd.f32 %v10855_v17, %v9401_v26  ;;  %v10866_v2 = vld [vmem:[%s11730_s13 + $0x1f8] sm:$0xff] }
 0x9aa   : > { %9532 = vst.msk [vmem:[%s17188_s8 + $0x198] sm:$0xff] %vm9480_vm1, %v9467_v37 }
 0x9ab   : > { %9530 = vst.msk [vmem:[%s17188_s8 + $0x188] sm:$0xff] %vm9480_vm1, %v9465_v10 }
 0x9b1   : > { %v10175_v62 = vpop.f32.mrb[148].mxu0 }
 0x9b2   : > { %v9336_v15 = vmul.f32 %v10175_v62, %v17175_v6  ;;  %v9229_v4 = vpop.f32.mrb[149].mxu0 }
 0x9b3   : > { %v9334_v0 = vmul.f32 %v17175_v6, %v9229_v4  ;;  %v10176_v60 = vpop.f32.mrb[150].mxu0 }
 0x9b4   : > { %v9406_v19 = vadd.f32 %v17177_v50, %v9336_v15  ;;  %v9337_v35 = vmul.f32 %v10176_v60, %v17175_v6  ;;  %v9232_v20 = vpop.f32.mrb[151].mxu0 }
 0x9b5   : > { %v9404_v30 = vadd.f32 %v17177_v50, %v9334_v0  ;;  %v9335_v11 = vmul.f32 %v17175_v6, %v9232_v20 }
 0x9b6   : > { %v9470_v32 = vadd.f32 %v10856_v31, %v9406_v19  ;;  %v9407_v63 = vadd.f32 %v17177_v50, %v9337_v35 }
 0x9b7   : > { %v9468_v44 = vadd.f32 %v10857_v24, %v9404_v30  ;;  %v9405_v45 = vadd.f32 %v17177_v50, %v9335_v11 }
 0x9b8   : > { %9535 = vst.msk [vmem:[%s17188_s8 + $0x1b0] sm:$0xff] %vm9480_vm1, %v9470_v32  ;;  %v9471_v27 = vadd.f32 %v10858_v56, %v9407_v63 }
 0x9b9   : > { %9533 = vst.msk [vmem:[%s17188_s8 + $0x1a0] sm:$0xff] %vm9480_vm1, %v9468_v44  ;;  %v9469_v38 = vadd.f32 %v10859_v54, %v9405_v45 }
 0x9ba   : > { %9536 = vst.msk [vmem:[%s17188_s8 + $0x1b8] sm:$0xff] %vm9480_vm1, %v9471_v27 }
 0x9bb   : > { %9534 = vst.msk [vmem:[%s17188_s8 + $0x1a8] sm:$0xff] %vm9480_vm1, %v9469_v38 }
 0x9c2   : > { %v10179_v55 = vpop.f32.mrb[152].mxu0 }
 0x9c3   : > { %v9340_v18 = vmul.f32 %v10179_v55, %v17175_v6  ;;  %v9245_v42 = vpop.f32.mrb[153].mxu0 }
 0x9c4   : > { %v9338_v36 = vmul.f32 %v17175_v6, %v9245_v42  ;;  %v10180_v47 = vpop.f32.mrb[154].mxu0 }
 0x9c5   : > { %v9410_v5 = vadd.f32 %v17177_v50, %v9340_v18  ;;  %v9341_v33 = vmul.f32 %v10180_v47, %v17175_v6  ;;  %v9248_v28 = vpop.f32.mrb[155].mxu0 }
 0x9c6   : > { %v9408_v22 = vadd.f32 %v17177_v50, %v9338_v36  ;;  %v9339_v3 = vmul.f32 %v17175_v6, %v9248_v28 }
 0x9c7   : > { %v9474_v58 = vadd.f32 %v10860_v1, %v9410_v5  ;;  %v9411_v57 = vadd.f32 %v17177_v50, %v9341_v33 }
 0x9c8   : > { %v9472_v12 = vadd.f32 %v10861_v14, %v9408_v22  ;;  %v9409_v23 = vadd.f32 %v17177_v50, %v9339_v3 }
 0x9c9   : > { %9539 = vst.msk [vmem:[%s17188_s8 + $0x1d0] sm:$0xff] %vm9480_vm1, %v9474_v58  ;;  %v9475_v25 = vadd.f32 %v10862_v59, %v9411_v57 }
 0x9ca   : > { %9537 = vst.msk [vmem:[%s17188_s8 + $0x1c0] sm:$0xff] %vm9480_vm1, %v9472_v12  ;;  %v9473_v13 = vadd.f32 %v10863_v39, %v9409_v23 }
 0x9cb   : > { %9540 = vst.msk [vmem:[%s17188_s8 + $0x1d8] sm:$0xff] %vm9480_vm1, %v9475_v25 }
 0x9cc   : > { %9538 = vst.msk [vmem:[%s17188_s8 + $0x1c8] sm:$0xff] %vm9480_vm1, %v9473_v13 }
 0x9d2   : > { %v10183_v51 = vpop.f32.mrb[156].mxu0 }
 0x9d3   : > { %v9344_v8 = vmul.f32 %v10183_v51, %v17175_v6  ;;  %v9261_v52 = vpop.f32.mrb[157].mxu0 }
 0x9d4   : > { %v9342_v41 = vmul.f32 %v17175_v6, %v9261_v52  ;;  %v10184_v21 = vpop.f32.mrb[158].mxu0 }
 0x9d5   : > { %v9414_v49 = vadd.f32 %v17177_v50, %v9344_v8  ;;  %v9345_v34 = vmul.f32 %v10184_v21, %v17175_v6  ;;  %v9264_v7 = vpop.f32.mrb[159].mxu0 }
 0x9d6   : > { %v9412_v43 = vadd.f32 %v17177_v50, %v9342_v41  ;;  %v9343_v48 = vmul.f32 %v17175_v6, %v9264_v7 }
 0x9d7   : > { %v9478_v16 = vadd.f32 %v10864_v61, %v9414_v49  ;;  %v9415_v29 = vadd.f32 %v17177_v50, %v9345_v34 }
 0x9d8   : > { %v9476_v46 = vadd.f32 %v10865_v9, %v9412_v43  ;;  %v9413_v53 = vadd.f32 %v17177_v50, %v9343_v48 }
 0x9d9   : > { %9543 = vst.msk [vmem:[%s17188_s8 + $0x1f0] sm:$0xff] %vm9480_vm1, %v9478_v16  ;;  %v9479_v26 = vadd.f32 %v10866_v2, %v9415_v29 }
 0x9da   : > { %9541 = vst.msk [vmem:[%s17188_s8 + $0x1e0] sm:$0xff] %vm9480_vm1, %v9476_v46  ;;  %v9477_v37 = vadd.f32 %v10867_v40, %v9413_v53 }
 0x9db   : > { %9544 = vst.msk [vmem:[%s17188_s8 + $0x1f8] sm:$0xff] %vm9480_vm1, %v9479_v26 }
 0x9dc   : > { %9542 = vst.msk [vmem:[%s17188_s8 + $0x1e8] sm:$0xff] %vm9480_vm1, %v9477_v37 }
 0x9dd PF: > { %s33_s22 = sadd.s32 1, %s11224_s22   ;;  %s18395_s19 = sld [smem:[#allocation17_spill]] }
 0x9de   : > { %p30_p5 = scmp.ge.s32.totalorder %s33_s22, 4   ;;  %s18396_s20 = sld [smem:[#allocation20_spill]] }
 0x9df   : > { %s18397_s10 = sld [smem:[#allocation19_spill]]  ;;  %s18398_s0 = smov %s11208_s30 }
 0x9e0   : > { %s18400_s21 = smov %s11220_s1  ;;  %32 = sbr.rel (!%p30_p5) target bundleno = 20 (0x14), region = 240 }
 0x9e3   : > { %s18399_s30 = smov %s18395_s19 }
 0x9e5   : > { %s18401_s1 = smov %s18397_s10 }
 0x9e7   :  { %9575 = vsyncpa [#allocation3], 1 }
 0x9e8   :  { %9577 = vsyncpa [#allocation3 + $0x1], 1 }
 0x9e9   :  { %9578 = vsyncpa [#allocation5], 1 }

</bundles_post_ra>
